<compile_context>
chip_gen: v7x
topology: tpu7x:2x2x1
jax: 0.10.0
libtpu: 0.0.40
codegen_flags: <defaults>
</compile_context>

<pallas_src>
import jax
import jax.numpy as jnp
from jax import lax
from jax.experimental import pallas as pl
from jax.experimental.pallas import tpu as pltpu

BN_EPS = 1e-5
PAD_L = 8        # zero columns at the start of each padded image row (aligned)
PAD_G = 8        # total zero-gap columns between consecutive rows (== PAD_L)


def _largest_divisor_leq(n, cap):
    cap = max(1, min(n, cap))
    for d in range(cap, 0, -1):
        if n % d == 0:
            return d
    return 1


# ----------------------------------------------------------------------------
# Forward pass: wrapper + Pallas kernels (kernels are closures over the sizes)
# ----------------------------------------------------------------------------
def upsample_gblock_forward(x_nhwc, params):
    N, H, W, Cin = x_nhwc.shape
    Cout = params["b3a"].shape[0]
    Cmid = Cout                        # == input_channels // 2
    H2, W2 = 2 * H, 2 * W
    assert W % 8 == 0, "kernel assumes the input width is a multiple of 8"

    WP = W2 + PAD_G                    # padded (flat) row stride, multiple of 8
    S = (H2 + 3) * WP                  # padded conv-input scratch rows
    tap_off = [dy * WP + PAD_L + dx - 1 for dy in range(3) for dx in range(3)]

    # Chunk of output image rows per tap-accumulation pass (~<=512 flat rows).
    CH = _largest_divisor_leq(H2, max(1, 512 // WP))
    NC = H2 // CH
    MC = CH * WP

    # ---- BN1 (training-mode batch stats) folded to per-channel scale/bias ----
    mean1 = jnp.mean(x_nhwc, axis=(0, 1, 2))
    var1 = jnp.var(x_nhwc, axis=(0, 1, 2))
    scale1 = params["gamma1"] / jnp.sqrt(var1 + BN_EPS)
    bias1 = params["beta1"] - mean1 * scale1

    # Width-duplication matrix with the PAD_L gap zeros folded in:
    #   dot(dup_pad, row) -> [zeros(PAD_L); row[0]; row[0]; row[1]; row[1]; ...]
    # (0/1 weights -> exact pass-through on the MXU).
    dup_pad = jnp.zeros((WP, W), jnp.float32)
    dup_pad = dup_pad.at[PAD_L + jnp.arange(W2), jnp.arange(W2) // 2].set(1.0)

    x_flat = x_nhwc.reshape(N, H * W, Cin)     # free, dense reshape

    # ------------------------------------------------------------------ stage 1
    def stage1_kernel(x_ref, dup_ref, scale1_ref, bias1_ref, w3a_ref, b3a_ref,
                      z1_ref, zsum_ref, zsq_ref, scr_ref):
        # Per-step halo zeroing (top block + 2 bottom blocks); every grid step
        # is fully self-contained -> "parallel" batch axis is safe.
        scr_ref[pl.ds(0, WP), :] = jnp.zeros((WP, Cin), jnp.float32)
        scr_ref[pl.ds((H2 + 1) * WP, 2 * WP), :] = jnp.zeros((2 * WP, Cin),
                                                             jnp.float32)

        dupm = dup_ref[...]                                      # (WP, W)
        scale1b = jnp.broadcast_to(scale1_ref[...], (W, Cin))
        bias1b = jnp.broadcast_to(bias1_ref[...], (W, Cin))

        # scratch <- 2x nearest-upsample(relu(bn1(x))) in the flat padded layout.
        # Width dup + leading-gap zeros come from the dup matmul; height dup is
        # two stores of the same padded row slab.
        def row_body(r, carry):
            xr = x_ref[pl.ds(pl.multiple_of(r * W, 8), W), :]
            yr = jnp.maximum(xr * scale1b + bias1b, 0.0)
            slab = jnp.dot(dupm, yr, preferred_element_type=jnp.float32)
            base = pl.multiple_of((2 * r + 1) * WP, 8)
            scr_ref[pl.ds(base, WP), :] = slab
            scr_ref[pl.ds(pl.multiple_of(base + WP, 8), WP), :] = slab
            return carry

        lax.fori_loop(0, H, row_body, None)

        # 3x3 conv: per chunk, 9 contiguous-slab matmuls into a local f32
        # accumulator; epilogue stores the dense valid rows and accumulates the
        # BN2 batch-stat partial sums (valid columns only, no mask needed).
        b3ab = b3a_ref[...]
        zs = jnp.zeros((1, Cmid), jnp.float32)
        zq = jnp.zeros((1, Cmid), jnp.float32)
        for c in range(NC):                     # TODO(synk): fori_loop at prod NC
            m0 = c * CH * WP
            acc = jnp.dot(scr_ref[pl.ds(m0 + tap_off[0], MC), :], w3a_ref[0],
                          preferred_element_type=jnp.float32)
            for t in range(1, 9):
                acc = acc + jnp.dot(scr_ref[pl.ds(m0 + tap_off[t], MC), :],
                                    w3a_ref[t],
                                    preferred_element_type=jnp.float32)
            acc = acc + b3ab
            for lr in range(CH):
                row = acc[lr * WP:lr * WP + W2, :]          # valid columns only
                z1_ref[pl.ds((c * CH + lr) * W2, W2), :] = row
                zs = zs + jnp.sum(row, axis=0, keepdims=True)
                zq = zq + jnp.sum(row * row, axis=0, keepdims=True)
        zsum_ref[...] = zs
        zsq_ref[...] = zq

    # ------------------------------------------------------------------ stage 2
    def stage2_kernel(z1_ref, x_ref, dup_ref, scale2_ref, bias2_ref,
                      w1_ref, b1_ref, w3b_ref, b3b_ref,
                      out_ref, scr_ref, skip_ref):
        scr_ref[pl.ds(0, WP), :] = jnp.zeros((WP, Cmid), jnp.float32)
        scr_ref[pl.ds((H2 + 1) * WP, 2 * WP), :] = jnp.zeros((2 * WP, Cmid),
                                                             jnp.float32)

        scale2b = jnp.broadcast_to(scale2_ref[...], (W2, Cmid))
        bias2b = jnp.broadcast_to(bias2_ref[...], (W2, Cmid))
        zpad = jnp.zeros((PAD_L, Cmid), jnp.float32)

        # scratch <- relu(bn2(z1)) in the flat padded layout (dense z1 rows in,
        # padded rows out; the 8-row gap zero store keeps the step independent).
        def z1_row_body(rr, carry):
            row = jnp.maximum(
                z1_ref[pl.ds(pl.multiple_of(rr * W2, 8), W2), :] * scale2b
                + bias2b, 0.0)
            base = pl.multiple_of((rr + 1) * WP, 8)
            scr_ref[pl.ds(base, PAD_L), :] = zpad
            scr_ref[pl.ds(pl.multiple_of(base + PAD_L, 8), W2), :] = row
            return carry

        lax.fori_loop(0, H2, z1_row_body, None)

        # Skip branch: conv1x1 on the ORIGINAL x (H*W rows), width-duplicated
        # into skip_ref; height duplication happens in the output epilogue.
        dupw = dup_ref[...][PAD_L:, :]                       # (W2, W)
        w1 = w1_ref[...]
        b1 = b1_ref[...]

        def skip_row_body(r, carry):
            xr = x_ref[pl.ds(pl.multiple_of(r * W, 8), W), :]
            sk = jnp.dot(xr, w1, preferred_element_type=jnp.float32) + b1
            skip_ref[pl.ds(pl.multiple_of(r * W2, 8), W2), :] = jnp.dot(
                dupw, sk, preferred_element_type=jnp.float32)
            return carry

        lax.fori_loop(0, H, skip_row_body, None)

        # 3x3 conv per chunk; epilogue adds bias + upsampled skip and stores the
        # dense valid rows once.
        b3bb = b3b_ref[...]
        for c in range(NC):
            m0 = c * CH * WP
            acc = jnp.dot(scr_ref[pl.ds(m0 + tap_off[0], MC), :], w3b_ref[0],
                          preferred_element_type=jnp.float32)
            for t in range(1, 9):
                acc = acc + jnp.dot(scr_ref[pl.ds(m0 + tap_off[t], MC), :],
                                    w3b_ref[t],
                                    preferred_element_type=jnp.float32)
            acc = acc + b3bb
            for lr in range(CH):
                grow = c * CH + lr
                out_ref[pl.ds(grow * W2, W2), :] = (
                    acc[lr * WP:lr * WP + W2, :]
                    + skip_ref[pl.ds((grow // 2) * W2, W2), :])

    def rep(shape):
        return pl.BlockSpec(shape, lambda n, _k=len(shape): (0,) * _k)

    # ---------------------------------------------------------------- stage 1 call
    z1, zsum, zsq = pl.pallas_call(
        stage1_kernel,
        out_shape=(jax.ShapeDtypeStruct((N, H2 * W2, Cmid), jnp.float32),
                   jax.ShapeDtypeStruct((N, 1, Cmid), jnp.float32),
                   jax.ShapeDtypeStruct((N, 1, Cmid), jnp.float32)),
        grid_spec=pltpu.PrefetchScalarGridSpec(
            num_scalar_prefetch=0,
            grid=(N,),
            in_specs=[pl.BlockSpec((None, H * W, Cin), lambda n: (n, 0, 0)),
                      rep((WP, W)),
                      rep((1, Cin)), rep((1, Cin)),
                      rep((9, Cin, Cmid)), rep((1, Cmid))],
            out_specs=[pl.BlockSpec((None, H2 * W2, Cmid), lambda n: (n, 0, 0)),
                       pl.BlockSpec((None, 1, Cmid), lambda n: (n, 0, 0)),
                       pl.BlockSpec((None, 1, Cmid), lambda n: (n, 0, 0))],
            scratch_shapes=[pltpu.VMEM((S, Cin), jnp.float32)]),
        compiler_params=pltpu.CompilerParams(dimension_semantics=("parallel",)),
    )(x_flat, dup_pad, scale1[None, :], bias1[None, :],
      params["w3a"], params["b3a"][None, :])

    # ---- BN2 batch statistics from the per-sample sums (no extra z1 pass) ----
    cnt = float(N * H2 * W2)
    mean2 = jnp.sum(zsum[:, 0, :], axis=0) / cnt
    ex2 = jnp.sum(zsq[:, 0, :], axis=0) / cnt
    var2 = jnp.maximum(ex2 - mean2 * mean2, 0.0)
    scale2 = params["gamma2"] / jnp.sqrt(var2 + BN_EPS)
    bias2 = params["beta2"] - mean2 * scale2

    # ---------------------------------------------------------------- stage 2 call
    out_flat = pl.pallas_call(
        stage2_kernel,
        out_shape=jax.ShapeDtypeStruct((N, H2 * W2, Cout), jnp.float32),
        grid_spec=pltpu.PrefetchScalarGridSpec(
            num_scalar_prefetch=0,
            grid=(N,),
            in_specs=[pl.BlockSpec((None, H2 * W2, Cmid), lambda n: (n, 0, 0)),
                      pl.BlockSpec((None, H * W, Cin), lambda n: (n, 0, 0)),
                      rep((WP, W)),
                      rep((1, Cmid)), rep((1, Cmid)),
                      rep((Cin, Cout)), rep((1, Cout)),
                      rep((9, Cmid, Cout)), rep((1, Cout))],
            out_specs=pl.BlockSpec((None, H2 * W2, Cout), lambda n: (n, 0, 0)),
            scratch_shapes=[pltpu.VMEM((S, Cmid), jnp.float32),
                            pltpu.VMEM((H * W2, Cout), jnp.float32)]),
        compiler_params=pltpu.CompilerParams(dimension_semantics=("parallel",)),
    )(z1, x_flat, dup_pad, scale2[None, :], bias2[None, :],
      params["w1x1"], params["b1x1"][None, :],
      params["w3b"], params["b3b"][None, :])

    # Dense output: only a metadata reshape, no slice copy.
    return out_flat.reshape(N, H2, W2, Cout)


# ----------------------------------------------------------------------------
# Parameter setup (deterministic, synthetic) + pure-JAX reference
# ----------------------------------------------------------------------------
def spectral_normalize(w_oihw, eps=1e-4, n_iters=30):
    """Divide conv weight (O,I,kh,kw) by its largest singular value (power iteration)."""
    o = w_oihw.shape[0]
    wm = w_oihw.reshape(o, -1)
    u = jnp.full((o,), 1.0 / jnp.sqrt(o), jnp.float32)
    v = None
    for _ in range(n_iters):
        v = wm.T @ u
        v = v / (jnp.linalg.norm(v) + eps)
        u = wm @ v
        u = u / (jnp.linalg.norm(u) + eps)
    sigma = jnp.dot(u, wm @ v)
    return w_oihw / sigma


def init_params(key, in_channels, out_channels):
    assert out_channels == in_channels // 2, "bn2/last_conv require out == in // 2"
    half = in_channels // 2
    ks = jax.random.split(key, 6)

    def conv_w(k, cout, cin, kh, kw):
        bound = 1.0 / jnp.sqrt(cin * kh * kw)
        return jax.random.uniform(k, (cout, cin, kh, kw), jnp.float32, -bound, bound)

    def conv_b(k, cout, fan_in):
        bound = 1.0 / jnp.sqrt(fan_in)
        return jax.random.uniform(k, (cout,), jnp.float32, -bound, bound)

    w1 = spectral_normalize(conv_w(ks[0], out_channels, in_channels, 1, 1))
    b1 = conv_b(ks[1], out_channels, in_channels)
    w3a = spectral_normalize(conv_w(ks[2], out_channels, in_channels, 3, 3))
    b3a = conv_b(ks[3], out_channels, in_channels * 9)
    w3b = spectral_normalize(conv_w(ks[4], out_channels, half, 3, 3))
    b3b = conv_b(ks[5], out_channels, half * 9)

    return {
        # kernel-friendly layouts
        "w1x1": jnp.transpose(w1[:, :, 0, 0], (1, 0)),                            # (Cin, Cout)
        "b1x1": b1,
        "w3a": jnp.transpose(w3a, (2, 3, 1, 0)).reshape(9, in_channels, out_channels),
        "b3a": b3a,
        "w3b": jnp.transpose(w3b, (2, 3, 1, 0)).reshape(9, half, out_channels),
        "b3b": b3b,
        # BatchNorm affine params (PyTorch default init: gamma=1, beta=0)
        "gamma1": jnp.ones((in_channels,), jnp.float32),
        "beta1": jnp.zeros((in_channels,), jnp.float32),
        "gamma2": jnp.ones((half,), jnp.float32),
        "beta2": jnp.zeros((half,), jnp.float32),
        # HWIO copies for the pure-JAX reference
        "w1_hwio": jnp.transpose(w1, (2, 3, 1, 0)),
        "w3a_hwio": jnp.transpose(w3a, (2, 3, 1, 0)),
        "w3b_hwio": jnp.transpose(w3b, (2, 3, 1, 0)),
    }


def reference_forward(x_nhwc, params):
    def conv(x, w, b, pad):
        y = lax.conv_general_dilated(
            x, w, window_strides=(1, 1), padding=pad,
            dimension_numbers=("NHWC", "HWIO", "NHWC"),
            precision=lax.Precision.HIGHEST)
        return y + b[None, None, None, :]

    def up(a):
        return jnp.repeat(jnp.repeat(a, 2, axis=1), 2, axis=2)

    mean1 = jnp.mean(x_nhwc, axis=(0, 1, 2))
    var1 = jnp.var(x_nhwc, axis=(0, 1, 2))
    xn = (x_nhwc - mean1) / jnp.sqrt(var1 + BN_EPS) * params["gamma1"] + params["beta1"]

    sc = conv(up(x_nhwc), params["w1_hwio"], params["b1x1"], "VALID")

    x2 = up(jnp.maximum(xn, 0.0))
    x2 = conv(x2, params["w3a_hwio"], params["b3a"], "SAME")
    mean2 = jnp.mean(x2, axis=(0, 1, 2))
    var2 = jnp.var(x2, axis=(0, 1, 2))
    x2 = (x2 - mean2) / jnp.sqrt(var2 + BN_EPS) * params["gamma2"] + params["beta2"]
    x2 = jnp.maximum(x2, 0.0)
    x2 = conv(x2, params["w3b_hwio"], params["b3b"], "SAME")
    return x2 + sc


# ----------------------------------------------------------------------------
if __name__ == "__main__":
    key = jax.random.PRNGKey(0)
    kx, kp = jax.random.split(key)

    N, Cin, H, W = 2, 8, 16, 16
    Cout = Cin // 2          # output_channels must equal input_channels // 2

    x_nchw = jax.random.normal(kx, (N, Cin, H, W), jnp.float32)   # PyTorch layout
    x_nhwc = jnp.transpose(x_nchw, (0, 2, 3, 1))                  # kernel layout

    params = init_params(kp, Cin, Cout)

    out = upsample_gblock_forward(x_nhwc, params)
    out = jax.block_until_ready(out)

    assert out.shape == (N, 2 * H, 2 * W, Cout), out.shape

    ref = reference_forward(x_nhwc, params)
    max_err = float(jnp.max(jnp.abs(out - ref)))
    if not bool(jnp.allclose(out, ref, rtol=5e-3, atol=5e-3)):
        raise AssertionError(f"Pallas output mismatch vs reference, max abs err = {max_err}")

    print("KERNEL_OK")
</pallas_src>

<mosaic_0001>
module attributes {stable_mosaic.version = 11 : i64} {
  func.func @stage1_kernel(%arg0: i32, %arg1: memref<1x256x8xf32, #tpu.memory_space<vmem>>, %arg2: memref<40x16xf32, #tpu.memory_space<vmem>>, %arg3: memref<1x8xf32, #tpu.memory_space<vmem>>, %arg4: memref<1x8xf32, #tpu.memory_space<vmem>>, %arg5: memref<9x8x4xf32, #tpu.memory_space<vmem>>, %arg6: memref<1x4xf32, #tpu.memory_space<vmem>>, %arg7: memref<1x1024x4xf32, #tpu.memory_space<vmem>>, %arg8: memref<1x1x4xf32, #tpu.memory_space<vmem>>, %arg9: memref<1x1x4xf32, #tpu.memory_space<vmem>>, %arg10: memref<1400x8xf32, #tpu.memory_space<vmem>>) attributes {dimension_semantics = [#tpu.dimension_semantics<parallel>], iteration_bounds = array<i64: 2>, scalar_prefetch = 0 : i64, scratch_operands = 1 : i64, tpu.core_type = #tpu.core_type<tc>, window_params = [{transform_indices = @transform_0, window_bounds = array<i64: 1, 256, 8>}, {pipeline_mode = #tpu.pipeline_mode<synchronous>, transform_indices = @transform_1, window_bounds = array<i64: 40, 16>}, {pipeline_mode = #tpu.pipeline_mode<synchronous>, transform_indices = @transform_2, window_bounds = array<i64: 1, 8>}, {pipeline_mode = #tpu.pipeline_mode<synchronous>, transform_indices = @transform_3, window_bounds = array<i64: 1, 8>}, {pipeline_mode = #tpu.pipeline_mode<synchronous>, transform_indices = @transform_4, window_bounds = array<i64: 9, 8, 4>}, {pipeline_mode = #tpu.pipeline_mode<synchronous>, transform_indices = @transform_5, window_bounds = array<i64: 1, 4>}, {transform_indices = @transform_6, window_bounds = array<i64: 1, 1024, 4>}, {transform_indices = @transform_7, window_bounds = array<i64: 1, 1, 4>}, {transform_indices = @transform_8, window_bounds = array<i64: 1, 1, 4>}]} {
    %cst = arith.constant 0.000000e+00 : f32
    %0 = vector.broadcast %cst : f32 to vector<40x8xf32>
    %c0 = arith.constant 0 : index
    %c0_0 = arith.constant 0 : index
    %1 = vector.load %arg10[%c0, %c0_0] : memref<1400x8xf32, #tpu.memory_space<vmem>>, vector<40x8xf32>
    tpu.vector_store %arg10[%c0, %c0_0], %0 {strides = array<i32>} : memref<1400x8xf32, #tpu.memory_space<vmem>>, vector<40x8xf32>,
    %cst_1 = arith.constant 0.000000e+00 : f32
    %2 = vector.broadcast %cst_1 : f32 to vector<80x8xf32>
    %c1320 = arith.constant 1320 : index
    %c0_2 = arith.constant 0 : index
    %3 = vector.load %arg10[%c1320, %c0_2] : memref<1400x8xf32, #tpu.memory_space<vmem>>, vector<80x8xf32>
    tpu.vector_store %arg10[%c1320, %c0_2], %2 {strides = array<i32>} : memref<1400x8xf32, #tpu.memory_space<vmem>>, vector<80x8xf32>,
    %c0_3 = arith.constant 0 : index
    %c0_4 = arith.constant 0 : index
    %4 = vector.load %arg2[%c0_3, %c0_4] : memref<40x16xf32, #tpu.memory_space<vmem>>, vector<40x16xf32>
    %c0_5 = arith.constant 0 : index
    %c0_6 = arith.constant 0 : index
    %5 = vector.load %arg3[%c0_5, %c0_6] : memref<1x8xf32, #tpu.memory_space<vmem>>, vector<1x8xf32>
    %6 = vector.shape_cast %5 : vector<1x8xf32> to vector<1x8xf32>
    %7 = vector.broadcast %6 : vector<1x8xf32> to vector<16x8xf32>
    %c0_7 = arith.constant 0 : index
    %c0_8 = arith.constant 0 : index
    %8 = vector.load %arg4[%c0_7, %c0_8] : memref<1x8xf32, #tpu.memory_space<vmem>>, vector<1x8xf32>
    %9 = vector.shape_cast %8 : vector<1x8xf32> to vector<1x8xf32>
    %10 = vector.broadcast %9 : vector<1x8xf32> to vector<16x8xf32>
    %c0_i32 = arith.constant 0 : i32
    %c16_i32 = arith.constant 16 : i32
    %11 = arith.addi %c0_i32, %c16_i32 : i32
    %c1_i32 = arith.constant 1 : i32
    scf.for %arg11 = %c0_i32 to %11 step %c1_i32  : i32 {
      %c16_i32_323 = arith.constant 16 : i32
      %557 = arith.muli %arg11, %c16_i32_323 : i32
      %558 = tpu.assume_multiple %557, 8 : i32
      %c0_324 = arith.constant 0 : index
      %559 = arith.index_cast %558 : i32 to index
      %c0_325 = arith.constant 0 : index
      %560 = vector.load %arg1[%c0_324, %559, %c0_325] : memref<1x256x8xf32, #tpu.memory_space<vmem>>, vector<1x16x8xf32>
      %561 = vector.shape_cast %560 : vector<1x16x8xf32> to vector<16x8xf32>
      %562 = arith.mulf %561, %7 : vector<16x8xf32>
      %563 = arith.addf %562, %10 : vector<16x8xf32>
      %cst_326 = arith.constant 0.000000e+00 : f32
      %564 = vector.broadcast %cst_326 : f32 to vector<16x8xf32>
      %565 = arith.maximumf %563, %564 : vector<16x8xf32>
      %cst_327 = arith.constant dense<0.000000e+00> : vector<40x8xf32>
      %566 = tpu.matmul %4, %565, %cst_327 {dimension_numbers = #tpu.dot_dimension_numbers<[1], [0], [0], [1], [0, 0, 1, 1], [], []>} : vector<40x16xf32>, vector<16x8xf32>, vector<40x8xf32> -> vector<40x8xf32>
      %c2_i32 = arith.constant 2 : i32
      %567 = arith.muli %c2_i32, %arg11 : i32
      %c1_i32_328 = arith.constant 1 : i32
      %568 = arith.addi %567, %c1_i32_328 : i32
      %c40_i32 = arith.constant 40 : i32
      %569 = arith.muli %568, %c40_i32 : i32
      %570 = tpu.assume_multiple %569, 8 : i32
      %571 = arith.index_cast %570 : i32 to index
      %c0_329 = arith.constant 0 : index
      %572 = vector.load %arg10[%571, %c0_329] : memref<1400x8xf32, #tpu.memory_space<vmem>>, vector<40x8xf32>
      tpu.vector_store %arg10[%571, %c0_329], %566 {strides = array<i32>} : memref<1400x8xf32, #tpu.memory_space<vmem>>, vector<40x8xf32>,
      %c40_i32_330 = arith.constant 40 : i32
      %573 = arith.addi %570, %c40_i32_330 : i32
      %574 = tpu.assume_multiple %573, 8 : i32
      %575 = arith.index_cast %574 : i32 to index
      %c0_331 = arith.constant 0 : index
      %576 = vector.load %arg10[%575, %c0_331] : memref<1400x8xf32, #tpu.memory_space<vmem>>, vector<40x8xf32>
      tpu.vector_store %arg10[%575, %c0_331], %566 {strides = array<i32>} : memref<1400x8xf32, #tpu.memory_space<vmem>>, vector<40x8xf32>,
    }
    %c16_i32_9 = arith.constant 16 : i32
    %c0_10 = arith.constant 0 : index
    %c0_11 = arith.constant 0 : index
    %12 = vector.load %arg6[%c0_10, %c0_11] : memref<1x4xf32, #tpu.memory_space<vmem>>, vector<1x4xf32>
    %cst_12 = arith.constant 0.000000e+00 : f32
    %13 = vector.broadcast %cst_12 : f32 to vector<1x4xf32>
    %cst_13 = arith.constant 0.000000e+00 : f32
    %14 = vector.broadcast %cst_13 : f32 to vector<1x4xf32>
    %c7 = arith.constant 7 : index
    %c0_14 = arith.constant 0 : index
    %15 = vector.load %arg10[%c7, %c0_14] : memref<1400x8xf32, #tpu.memory_space<vmem>>, vector<320x8xf32>
    %c0_15 = arith.constant 0 : index
    %c0_16 = arith.constant 0 : index
    %c0_17 = arith.constant 0 : index
    %16 = vector.load %arg5[%c0_15, %c0_16, %c0_17] : memref<9x8x4xf32, #tpu.memory_space<vmem>>, vector<1x8x4xf32>
    %17 = vector.shape_cast %16 : vector<1x8x4xf32> to vector<8x4xf32>
    %cst_18 = arith.constant dense<0.000000e+00> : vector<320x4xf32>
    %18 = tpu.matmul %15, %17, %cst_18 {dimension_numbers = #tpu.dot_dimension_numbers<[1], [0], [0], [1], [0, 0, 1, 1], [], []>} : vector<320x8xf32>, vector<8x4xf32>, vector<320x4xf32> -> vector<320x4xf32>
    %c8 = arith.constant 8 : index
    %c0_19 = arith.constant 0 : index
    %19 = vector.load %arg10[%c8, %c0_19] : memref<1400x8xf32, #tpu.memory_space<vmem>>, vector<320x8xf32>
    %c1 = arith.constant 1 : index
    %c0_20 = arith.constant 0 : index
    %c0_21 = arith.constant 0 : index
    %20 = vector.load %arg5[%c1, %c0_20, %c0_21] : memref<9x8x4xf32, #tpu.memory_space<vmem>>, vector<1x8x4xf32>
    %21 = vector.shape_cast %20 : vector<1x8x4xf32> to vector<8x4xf32>
    %cst_22 = arith.constant dense<0.000000e+00> : vector<320x4xf32>
    %22 = tpu.matmul %19, %21, %cst_22 {dimension_numbers = #tpu.dot_dimension_numbers<[1], [0], [0], [1], [0, 0, 1, 1], [], []>} : vector<320x8xf32>, vector<8x4xf32>, vector<320x4xf32> -> vector<320x4xf32>
    %23 = arith.addf %18, %22 : vector<320x4xf32>
    %c9 = arith.constant 9 : index
    %c0_23 = arith.constant 0 : index
    %24 = vector.load %arg10[%c9, %c0_23] : memref<1400x8xf32, #tpu.memory_space<vmem>>, vector<320x8xf32>
    %c2 = arith.constant 2 : index
    %c0_24 = arith.constant 0 : index
    %c0_25 = arith.constant 0 : index
    %25 = vector.load %arg5[%c2, %c0_24, %c0_25] : memref<9x8x4xf32, #tpu.memory_space<vmem>>, vector<1x8x4xf32>
    %26 = vector.shape_cast %25 : vector<1x8x4xf32> to vector<8x4xf32>
    %cst_26 = arith.constant dense<0.000000e+00> : vector<320x4xf32>
    %27 = tpu.matmul %24, %26, %cst_26 {dimension_numbers = #tpu.dot_dimension_numbers<[1], [0], [0], [1], [0, 0, 1, 1], [], []>} : vector<320x8xf32>, vector<8x4xf32>, vector<320x4xf32> -> vector<320x4xf32>
    %28 = arith.addf %23, %27 : vector<320x4xf32>
    %c47 = arith.constant 47 : index
    %c0_27 = arith.constant 0 : index
    %29 = vector.load %arg10[%c47, %c0_27] : memref<1400x8xf32, #tpu.memory_space<vmem>>, vector<320x8xf32>
    %c3 = arith.constant 3 : index
    %c0_28 = arith.constant 0 : index
    %c0_29 = arith.constant 0 : index
    %30 = vector.load %arg5[%c3, %c0_28, %c0_29] : memref<9x8x4xf32, #tpu.memory_space<vmem>>, vector<1x8x4xf32>
    %31 = vector.shape_cast %30 : vector<1x8x4xf32> to vector<8x4xf32>
    %cst_30 = arith.constant dense<0.000000e+00> : vector<320x4xf32>
    %32 = tpu.matmul %29, %31, %cst_30 {dimension_numbers = #tpu.dot_dimension_numbers<[1], [0], [0], [1], [0, 0, 1, 1], [], []>} : vector<320x8xf32>, vector<8x4xf32>, vector<320x4xf32> -> vector<320x4xf32>
    %33 = arith.addf %28, %32 : vector<320x4xf32>
    %c48 = arith.constant 48 : index
    %c0_31 = arith.constant 0 : index
    %34 = vector.load %arg10[%c48, %c0_31] : memref<1400x8xf32, #tpu.memory_space<vmem>>, vector<320x8xf32>
    %c4 = arith.constant 4 : index
    %c0_32 = arith.constant 0 : index
    %c0_33 = arith.constant 0 : index
    %35 = vector.load %arg5[%c4, %c0_32, %c0_33] : memref<9x8x4xf32, #tpu.memory_space<vmem>>, vector<1x8x4xf32>
    %36 = vector.shape_cast %35 : vector<1x8x4xf32> to vector<8x4xf32>
    %cst_34 = arith.constant dense<0.000000e+00> : vector<320x4xf32>
    %37 = tpu.matmul %34, %36, %cst_34 {dimension_numbers = #tpu.dot_dimension_numbers<[1], [0], [0], [1], [0, 0, 1, 1], [], []>} : vector<320x8xf32>, vector<8x4xf32>, vector<320x4xf32> -> vector<320x4xf32>
    %38 = arith.addf %33, %37 : vector<320x4xf32>
    %c49 = arith.constant 49 : index
    %c0_35 = arith.constant 0 : index
    %39 = vector.load %arg10[%c49, %c0_35] : memref<1400x8xf32, #tpu.memory_space<vmem>>, vector<320x8xf32>
    %c5 = arith.constant 5 : index
    %c0_36 = arith.constant 0 : index
    %c0_37 = arith.constant 0 : index
    %40 = vector.load %arg5[%c5, %c0_36, %c0_37] : memref<9x8x4xf32, #tpu.memory_space<vmem>>, vector<1x8x4xf32>
    %41 = vector.shape_cast %40 : vector<1x8x4xf32> to vector<8x4xf32>
    %cst_38 = arith.constant dense<0.000000e+00> : vector<320x4xf32>
    %42 = tpu.matmul %39, %41, %cst_38 {dimension_numbers = #tpu.dot_dimension_numbers<[1], [0], [0], [1], [0, 0, 1, 1], [], []>} : vector<320x8xf32>, vector<8x4xf32>, vector<320x4xf32> -> vector<320x4xf32>
    %43 = arith.addf %38, %42 : vector<320x4xf32>
    %c87 = arith.constant 87 : index
    %c0_39 = arith.constant 0 : index
    %44 = vector.load %arg10[%c87, %c0_39] : memref<1400x8xf32, #tpu.memory_space<vmem>>, vector<320x8xf32>
    %c6 = arith.constant 6 : index
    %c0_40 = arith.constant 0 : index
    %c0_41 = arith.constant 0 : index
    %45 = vector.load %arg5[%c6, %c0_40, %c0_41] : memref<9x8x4xf32, #tpu.memory_space<vmem>>, vector<1x8x4xf32>
    %46 = vector.shape_cast %45 : vector<1x8x4xf32> to vector<8x4xf32>
    %cst_42 = arith.constant dense<0.000000e+00> : vector<320x4xf32>
    %47 = tpu.matmul %44, %46, %cst_42 {dimension_numbers = #tpu.dot_dimension_numbers<[1], [0], [0], [1], [0, 0, 1, 1], [], []>} : vector<320x8xf32>, vector<8x4xf32>, vector<320x4xf32> -> vector<320x4xf32>
    %48 = arith.addf %43, %47 : vector<320x4xf32>
    %c88 = arith.constant 88 : index
    %c0_43 = arith.constant 0 : index
    %49 = vector.load %arg10[%c88, %c0_43] : memref<1400x8xf32, #tpu.memory_space<vmem>>, vector<320x8xf32>
    %c7_44 = arith.constant 7 : index
    %c0_45 = arith.constant 0 : index
    %c0_46 = arith.constant 0 : index
    %50 = vector.load %arg5[%c7_44, %c0_45, %c0_46] : memref<9x8x4xf32, #tpu.memory_space<vmem>>, vector<1x8x4xf32>
    %51 = vector.shape_cast %50 : vector<1x8x4xf32> to vector<8x4xf32>
    %cst_47 = arith.constant dense<0.000000e+00> : vector<320x4xf32>
    %52 = tpu.matmul %49, %51, %cst_47 {dimension_numbers = #tpu.dot_dimension_numbers<[1], [0], [0], [1], [0, 0, 1, 1], [], []>} : vector<320x8xf32>, vector<8x4xf32>, vector<320x4xf32> -> vector<320x4xf32>
    %53 = arith.addf %48, %52 : vector<320x4xf32>
    %c89 = arith.constant 89 : index
    %c0_48 = arith.constant 0 : index
    %54 = vector.load %arg10[%c89, %c0_48] : memref<1400x8xf32, #tpu.memory_space<vmem>>, vector<320x8xf32>
    %c8_49 = arith.constant 8 : index
    %c0_50 = arith.constant 0 : index
    %c0_51 = arith.constant 0 : index
    %55 = vector.load %arg5[%c8_49, %c0_50, %c0_51] : memref<9x8x4xf32, #tpu.memory_space<vmem>>, vector<1x8x4xf32>
    %56 = vector.shape_cast %55 : vector<1x8x4xf32> to vector<8x4xf32>
    %cst_52 = arith.constant dense<0.000000e+00> : vector<320x4xf32>
    %57 = tpu.matmul %54, %56, %cst_52 {dimension_numbers = #tpu.dot_dimension_numbers<[1], [0], [0], [1], [0, 0, 1, 1], [], []>} : vector<320x8xf32>, vector<8x4xf32>, vector<320x4xf32> -> vector<320x4xf32>
    %58 = arith.addf %53, %57 : vector<320x4xf32>
    %59 = vector.broadcast %12 : vector<1x4xf32> to vector<320x4xf32>
    %60 = arith.addf %58, %59 : vector<320x4xf32>
    %61 = vector.extract_strided_slice %60 {offsets = [0, 0], sizes = [32, 4], strides = [1, 1]} : vector<320x4xf32> to vector<32x4xf32>
    %c0_53 = arith.constant 0 : index
    %c0_54 = arith.constant 0 : index
    %c0_55 = arith.constant 0 : index
    %62 = vector.load %arg7[%c0_53, %c0_54, %c0_55] : memref<1x1024x4xf32, #tpu.memory_space<vmem>>, vector<1x32x4xf32>
    %63 = vector.shape_cast %62 : vector<1x32x4xf32> to vector<32x4xf32>
    %64 = vector.shape_cast %61 : vector<32x4xf32> to vector<1x32x4xf32>
    tpu.vector_store %arg7[%c0_53, %c0_54, %c0_55], %64 {strides = array<i32>} : memref<1x1024x4xf32, #tpu.memory_space<vmem>>, vector<1x32x4xf32>,
    %cst_56 = arith.constant dense<0.000000e+00> : vector<4xf32>
    %65 = vector.multi_reduction <add>, %61, %cst_56 [0] : vector<32x4xf32> to vector<4xf32>
    %66 = vector.shape_cast %65 : vector<4xf32> to vector<1x4xf32>
    %67 = arith.addf %13, %66 : vector<1x4xf32>
    %68 = arith.mulf %61, %61 : vector<32x4xf32>
    %cst_57 = arith.constant dense<0.000000e+00> : vector<4xf32>
    %69 = vector.multi_reduction <add>, %68, %cst_57 [0] : vector<32x4xf32> to vector<4xf32>
    %70 = vector.shape_cast %69 : vector<4xf32> to vector<1x4xf32>
    %71 = arith.addf %14, %70 : vector<1x4xf32>
    %72 = vector.extract_strided_slice %60 {offsets = [40, 0], sizes = [32, 4], strides = [1, 1]} : vector<320x4xf32> to vector<32x4xf32>
    %c0_58 = arith.constant 0 : index
    %c32 = arith.constant 32 : index
    %c0_59 = arith.constant 0 : index
    %73 = vector.load %arg7[%c0_58, %c32, %c0_59] : memref<1x1024x4xf32, #tpu.memory_space<vmem>>, vector<1x32x4xf32>
    %74 = vector.shape_cast %73 : vector<1x32x4xf32> to vector<32x4xf32>
    %75 = vector.shape_cast %72 : vector<32x4xf32> to vector<1x32x4xf32>
    tpu.vector_store %arg7[%c0_58, %c32, %c0_59], %75 {strides = array<i32>} : memref<1x1024x4xf32, #tpu.memory_space<vmem>>, vector<1x32x4xf32>,
    %cst_60 = arith.constant dense<0.000000e+00> : vector<4xf32>
    %76 = vector.multi_reduction <add>, %72, %cst_60 [0] : vector<32x4xf32> to vector<4xf32>
    %77 = vector.shape_cast %76 : vector<4xf32> to vector<1x4xf32>
    %78 = arith.addf %67, %77 : vector<1x4xf32>
    %79 = arith.mulf %72, %72 : vector<32x4xf32>
    %cst_61 = arith.constant dense<0.000000e+00> : vector<4xf32>
    %80 = vector.multi_reduction <add>, %79, %cst_61 [0] : vector<32x4xf32> to vector<4xf32>
    %81 = vector.shape_cast %80 : vector<4xf32> to vector<1x4xf32>
    %82 = arith.addf %71, %81 : vector<1x4xf32>
    %83 = vector.extract_strided_slice %60 {offsets = [80, 0], sizes = [32, 4], strides = [1, 1]} : vector<320x4xf32> to vector<32x4xf32>
    %c0_62 = arith.constant 0 : index
    %c64 = arith.constant 64 : index
    %c0_63 = arith.constant 0 : index
    %84 = vector.load %arg7[%c0_62, %c64, %c0_63] : memref<1x1024x4xf32, #tpu.memory_space<vmem>>, vector<1x32x4xf32>
    %85 = vector.shape_cast %84 : vector<1x32x4xf32> to vector<32x4xf32>
    %86 = vector.shape_cast %83 : vector<32x4xf32> to vector<1x32x4xf32>
    tpu.vector_store %arg7[%c0_62, %c64, %c0_63], %86 {strides = array<i32>} : memref<1x1024x4xf32, #tpu.memory_space<vmem>>, vector<1x32x4xf32>,
    %cst_64 = arith.constant dense<0.000000e+00> : vector<4xf32>
    %87 = vector.multi_reduction <add>, %83, %cst_64 [0] : vector<32x4xf32> to vector<4xf32>
    %88 = vector.shape_cast %87 : vector<4xf32> to vector<1x4xf32>
    %89 = arith.addf %78, %88 : vector<1x4xf32>
    %90 = arith.mulf %83, %83 : vector<32x4xf32>
    %cst_65 = arith.constant dense<0.000000e+00> : vector<4xf32>
    %91 = vector.multi_reduction <add>, %90, %cst_65 [0] : vector<32x4xf32> to vector<4xf32>
    %92 = vector.shape_cast %91 : vector<4xf32> to vector<1x4xf32>
    %93 = arith.addf %82, %92 : vector<1x4xf32>
    %94 = vector.extract_strided_slice %60 {offsets = [120, 0], sizes = [32, 4], strides = [1, 1]} : vector<320x4xf32> to vector<32x4xf32>
    %c0_66 = arith.constant 0 : index
    %c96 = arith.constant 96 : index
    %c0_67 = arith.constant 0 : index
    %95 = vector.load %arg7[%c0_66, %c96, %c0_67] : memref<1x1024x4xf32, #tpu.memory_space<vmem>>, vector<1x32x4xf32>
    %96 = vector.shape_cast %95 : vector<1x32x4xf32> to vector<32x4xf32>
    %97 = vector.shape_cast %94 : vector<32x4xf32> to vector<1x32x4xf32>
    tpu.vector_store %arg7[%c0_66, %c96, %c0_67], %97 {strides = array<i32>} : memref<1x1024x4xf32, #tpu.memory_space<vmem>>, vector<1x32x4xf32>,
    %cst_68 = arith.constant dense<0.000000e+00> : vector<4xf32>
    %98 = vector.multi_reduction <add>, %94, %cst_68 [0] : vector<32x4xf32> to vector<4xf32>
    %99 = vector.shape_cast %98 : vector<4xf32> to vector<1x4xf32>
    %100 = arith.addf %89, %99 : vector<1x4xf32>
    %101 = arith.mulf %94, %94 : vector<32x4xf32>
    %cst_69 = arith.constant dense<0.000000e+00> : vector<4xf32>
    %102 = vector.multi_reduction <add>, %101, %cst_69 [0] : vector<32x4xf32> to vector<4xf32>
    %103 = vector.shape_cast %102 : vector<4xf32> to vector<1x4xf32>
    %104 = arith.addf %93, %103 : vector<1x4xf32>
    %105 = vector.extract_strided_slice %60 {offsets = [160, 0], sizes = [32, 4], strides = [1, 1]} : vector<320x4xf32> to vector<32x4xf32>
    %c0_70 = arith.constant 0 : index
    %c128 = arith.constant 128 : index
    %c0_71 = arith.constant 0 : index
    %106 = vector.load %arg7[%c0_70, %c128, %c0_71] : memref<1x1024x4xf32, #tpu.memory_space<vmem>>, vector<1x32x4xf32>
    %107 = vector.shape_cast %106 : vector<1x32x4xf32> to vector<32x4xf32>
    %108 = vector.shape_cast %105 : vector<32x4xf32> to vector<1x32x4xf32>
    tpu.vector_store %arg7[%c0_70, %c128, %c0_71], %108 {strides = array<i32>} : memref<1x1024x4xf32, #tpu.memory_space<vmem>>, vector<1x32x4xf32>,
    %cst_72 = arith.constant dense<0.000000e+00> : vector<4xf32>
    %109 = vector.multi_reduction <add>, %105, %cst_72 [0] : vector<32x4xf32> to vector<4xf32>
    %110 = vector.shape_cast %109 : vector<4xf32> to vector<1x4xf32>
    %111 = arith.addf %100, %110 : vector<1x4xf32>
    %112 = arith.mulf %105, %105 : vector<32x4xf32>
    %cst_73 = arith.constant dense<0.000000e+00> : vector<4xf32>
    %113 = vector.multi_reduction <add>, %112, %cst_73 [0] : vector<32x4xf32> to vector<4xf32>
    %114 = vector.shape_cast %113 : vector<4xf32> to vector<1x4xf32>
    %115 = arith.addf %104, %114 : vector<1x4xf32>
    %116 = vector.extract_strided_slice %60 {offsets = [200, 0], sizes = [32, 4], strides = [1, 1]} : vector<320x4xf32> to vector<32x4xf32>
    %c0_74 = arith.constant 0 : index
    %c160 = arith.constant 160 : index
    %c0_75 = arith.constant 0 : index
    %117 = vector.load %arg7[%c0_74, %c160, %c0_75] : memref<1x1024x4xf32, #tpu.memory_space<vmem>>, vector<1x32x4xf32>
    %118 = vector.shape_cast %117 : vector<1x32x4xf32> to vector<32x4xf32>
    %119 = vector.shape_cast %116 : vector<32x4xf32> to vector<1x32x4xf32>
    tpu.vector_store %arg7[%c0_74, %c160, %c0_75], %119 {strides = array<i32>} : memref<1x1024x4xf32, #tpu.memory_space<vmem>>, vector<1x32x4xf32>,
    %cst_76 = arith.constant dense<0.000000e+00> : vector<4xf32>
    %120 = vector.multi_reduction <add>, %116, %cst_76 [0] : vector<32x4xf32> to vector<4xf32>
    %121 = vector.shape_cast %120 : vector<4xf32> to vector<1x4xf32>
    %122 = arith.addf %111, %121 : vector<1x4xf32>
    %123 = arith.mulf %116, %116 : vector<32x4xf32>
    %cst_77 = arith.constant dense<0.000000e+00> : vector<4xf32>
    %124 = vector.multi_reduction <add>, %123, %cst_77 [0] : vector<32x4xf32> to vector<4xf32>
    %125 = vector.shape_cast %124 : vector<4xf32> to vector<1x4xf32>
    %126 = arith.addf %115, %125 : vector<1x4xf32>
    %127 = vector.extract_strided_slice %60 {offsets = [240, 0], sizes = [32, 4], strides = [1, 1]} : vector<320x4xf32> to vector<32x4xf32>
    %c0_78 = arith.constant 0 : index
    %c192 = arith.constant 192 : index
    %c0_79 = arith.constant 0 : index
    %128 = vector.load %arg7[%c0_78, %c192, %c0_79] : memref<1x1024x4xf32, #tpu.memory_space<vmem>>, vector<1x32x4xf32>
    %129 = vector.shape_cast %128 : vector<1x32x4xf32> to vector<32x4xf32>
    %130 = vector.shape_cast %127 : vector<32x4xf32> to vector<1x32x4xf32>
    tpu.vector_store %arg7[%c0_78, %c192, %c0_79], %130 {strides = array<i32>} : memref<1x1024x4xf32, #tpu.memory_space<vmem>>, vector<1x32x4xf32>,
    %cst_80 = arith.constant dense<0.000000e+00> : vector<4xf32>
    %131 = vector.multi_reduction <add>, %127, %cst_80 [0] : vector<32x4xf32> to vector<4xf32>
    %132 = vector.shape_cast %131 : vector<4xf32> to vector<1x4xf32>
    %133 = arith.addf %122, %132 : vector<1x4xf32>
    %134 = arith.mulf %127, %127 : vector<32x4xf32>
    %cst_81 = arith.constant dense<0.000000e+00> : vector<4xf32>
    %135 = vector.multi_reduction <add>, %134, %cst_81 [0] : vector<32x4xf32> to vector<4xf32>
    %136 = vector.shape_cast %135 : vector<4xf32> to vector<1x4xf32>
    %137 = arith.addf %126, %136 : vector<1x4xf32>
    %138 = vector.extract_strided_slice %60 {offsets = [280, 0], sizes = [32, 4], strides = [1, 1]} : vector<320x4xf32> to vector<32x4xf32>
    %c0_82 = arith.constant 0 : index
    %c224 = arith.constant 224 : index
    %c0_83 = arith.constant 0 : index
    %139 = vector.load %arg7[%c0_82, %c224, %c0_83] : memref<1x1024x4xf32, #tpu.memory_space<vmem>>, vector<1x32x4xf32>
    %140 = vector.shape_cast %139 : vector<1x32x4xf32> to vector<32x4xf32>
    %141 = vector.shape_cast %138 : vector<32x4xf32> to vector<1x32x4xf32>
    tpu.vector_store %arg7[%c0_82, %c224, %c0_83], %141 {strides = array<i32>} : memref<1x1024x4xf32, #tpu.memory_space<vmem>>, vector<1x32x4xf32>,
    %cst_84 = arith.constant dense<0.000000e+00> : vector<4xf32>
    %142 = vector.multi_reduction <add>, %138, %cst_84 [0] : vector<32x4xf32> to vector<4xf32>
    %143 = vector.shape_cast %142 : vector<4xf32> to vector<1x4xf32>
    %144 = arith.addf %133, %143 : vector<1x4xf32>
    %145 = arith.mulf %138, %138 : vector<32x4xf32>
    %cst_85 = arith.constant dense<0.000000e+00> : vector<4xf32>
    %146 = vector.multi_reduction <add>, %145, %cst_85 [0] : vector<32x4xf32> to vector<4xf32>
    %147 = vector.shape_cast %146 : vector<4xf32> to vector<1x4xf32>
    %148 = arith.addf %137, %147 : vector<1x4xf32>
    %c327 = arith.constant 327 : index
    %c0_86 = arith.constant 0 : index
    %149 = vector.load %arg10[%c327, %c0_86] : memref<1400x8xf32, #tpu.memory_space<vmem>>, vector<320x8xf32>
    %c0_87 = arith.constant 0 : index
    %c0_88 = arith.constant 0 : index
    %c0_89 = arith.constant 0 : index
    %150 = vector.load %arg5[%c0_87, %c0_88, %c0_89] : memref<9x8x4xf32, #tpu.memory_space<vmem>>, vector<1x8x4xf32>
    %151 = vector.shape_cast %150 : vector<1x8x4xf32> to vector<8x4xf32>
    %cst_90 = arith.constant dense<0.000000e+00> : vector<320x4xf32>
    %152 = tpu.matmul %149, %151, %cst_90 {dimension_numbers = #tpu.dot_dimension_numbers<[1], [0], [0], [1], [0, 0, 1, 1], [], []>} : vector<320x8xf32>, vector<8x4xf32>, vector<320x4xf32> -> vector<320x4xf32>
    %c328 = arith.constant 328 : index
    %c0_91 = arith.constant 0 : index
    %153 = vector.load %arg10[%c328, %c0_91] : memref<1400x8xf32, #tpu.memory_space<vmem>>, vector<320x8xf32>
    %c1_92 = arith.constant 1 : index
    %c0_93 = arith.constant 0 : index
    %c0_94 = arith.constant 0 : index
    %154 = vector.load %arg5[%c1_92, %c0_93, %c0_94] : memref<9x8x4xf32, #tpu.memory_space<vmem>>, vector<1x8x4xf32>
    %155 = vector.shape_cast %154 : vector<1x8x4xf32> to vector<8x4xf32>
    %cst_95 = arith.constant dense<0.000000e+00> : vector<320x4xf32>
    %156 = tpu.matmul %153, %155, %cst_95 {dimension_numbers = #tpu.dot_dimension_numbers<[1], [0], [0], [1], [0, 0, 1, 1], [], []>} : vector<320x8xf32>, vector<8x4xf32>, vector<320x4xf32> -> vector<320x4xf32>
    %157 = arith.addf %152, %156 : vector<320x4xf32>
    %c329 = arith.constant 329 : index
    %c0_96 = arith.constant 0 : index
    %158 = vector.load %arg10[%c329, %c0_96] : memref<1400x8xf32, #tpu.memory_space<vmem>>, vector<320x8xf32>
    %c2_97 = arith.constant 2 : index
    %c0_98 = arith.constant 0 : index
    %c0_99 = arith.constant 0 : index
    %159 = vector.load %arg5[%c2_97, %c0_98, %c0_99] : memref<9x8x4xf32, #tpu.memory_space<vmem>>, vector<1x8x4xf32>
    %160 = vector.shape_cast %159 : vector<1x8x4xf32> to vector<8x4xf32>
    %cst_100 = arith.constant dense<0.000000e+00> : vector<320x4xf32>
    %161 = tpu.matmul %158, %160, %cst_100 {dimension_numbers = #tpu.dot_dimension_numbers<[1], [0], [0], [1], [0, 0, 1, 1], [], []>} : vector<320x8xf32>, vector<8x4xf32>, vector<320x4xf32> -> vector<320x4xf32>
    %162 = arith.addf %157, %161 : vector<320x4xf32>
    %c367 = arith.constant 367 : index
    %c0_101 = arith.constant 0 : index
    %163 = vector.load %arg10[%c367, %c0_101] : memref<1400x8xf32, #tpu.memory_space<vmem>>, vector<320x8xf32>
    %c3_102 = arith.constant 3 : index
    %c0_103 = arith.constant 0 : index
    %c0_104 = arith.constant 0 : index
    %164 = vector.load %arg5[%c3_102, %c0_103, %c0_104] : memref<9x8x4xf32, #tpu.memory_space<vmem>>, vector<1x8x4xf32>
    %165 = vector.shape_cast %164 : vector<1x8x4xf32> to vector<8x4xf32>
    %cst_105 = arith.constant dense<0.000000e+00> : vector<320x4xf32>
    %166 = tpu.matmul %163, %165, %cst_105 {dimension_numbers = #tpu.dot_dimension_numbers<[1], [0], [0], [1], [0, 0, 1, 1], [], []>} : vector<320x8xf32>, vector<8x4xf32>, vector<320x4xf32> -> vector<320x4xf32>
    %167 = arith.addf %162, %166 : vector<320x4xf32>
    %c368 = arith.constant 368 : index
    %c0_106 = arith.constant 0 : index
    %168 = vector.load %arg10[%c368, %c0_106] : memref<1400x8xf32, #tpu.memory_space<vmem>>, vector<320x8xf32>
    %c4_107 = arith.constant 4 : index
    %c0_108 = arith.constant 0 : index
    %c0_109 = arith.constant 0 : index
    %169 = vector.load %arg5[%c4_107, %c0_108, %c0_109] : memref<9x8x4xf32, #tpu.memory_space<vmem>>, vector<1x8x4xf32>
    %170 = vector.shape_cast %169 : vector<1x8x4xf32> to vector<8x4xf32>
    %cst_110 = arith.constant dense<0.000000e+00> : vector<320x4xf32>
    %171 = tpu.matmul %168, %170, %cst_110 {dimension_numbers = #tpu.dot_dimension_numbers<[1], [0], [0], [1], [0, 0, 1, 1], [], []>} : vector<320x8xf32>, vector<8x4xf32>, vector<320x4xf32> -> vector<320x4xf32>
    %172 = arith.addf %167, %171 : vector<320x4xf32>
    %c369 = arith.constant 369 : index
    %c0_111 = arith.constant 0 : index
    %173 = vector.load %arg10[%c369, %c0_111] : memref<1400x8xf32, #tpu.memory_space<vmem>>, vector<320x8xf32>
    %c5_112 = arith.constant 5 : index
    %c0_113 = arith.constant 0 : index
    %c0_114 = arith.constant 0 : index
    %174 = vector.load %arg5[%c5_112, %c0_113, %c0_114] : memref<9x8x4xf32, #tpu.memory_space<vmem>>, vector<1x8x4xf32>
    %175 = vector.shape_cast %174 : vector<1x8x4xf32> to vector<8x4xf32>
    %cst_115 = arith.constant dense<0.000000e+00> : vector<320x4xf32>
    %176 = tpu.matmul %173, %175, %cst_115 {dimension_numbers = #tpu.dot_dimension_numbers<[1], [0], [0], [1], [0, 0, 1, 1], [], []>} : vector<320x8xf32>, vector<8x4xf32>, vector<320x4xf32> -> vector<320x4xf32>
    %177 = arith.addf %172, %176 : vector<320x4xf32>
    %c407 = arith.constant 407 : index
    %c0_116 = arith.constant 0 : index
    %178 = vector.load %arg10[%c407, %c0_116] : memref<1400x8xf32, #tpu.memory_space<vmem>>, vector<320x8xf32>
    %c6_117 = arith.constant 6 : index
    %c0_118 = arith.constant 0 : index
    %c0_119 = arith.constant 0 : index
    %179 = vector.load %arg5[%c6_117, %c0_118, %c0_119] : memref<9x8x4xf32, #tpu.memory_space<vmem>>, vector<1x8x4xf32>
    %180 = vector.shape_cast %179 : vector<1x8x4xf32> to vector<8x4xf32>
    %cst_120 = arith.constant dense<0.000000e+00> : vector<320x4xf32>
    %181 = tpu.matmul %178, %180, %cst_120 {dimension_numbers = #tpu.dot_dimension_numbers<[1], [0], [0], [1], [0, 0, 1, 1], [], []>} : vector<320x8xf32>, vector<8x4xf32>, vector<320x4xf32> -> vector<320x4xf32>
    %182 = arith.addf %177, %181 : vector<320x4xf32>
    %c408 = arith.constant 408 : index
    %c0_121 = arith.constant 0 : index
    %183 = vector.load %arg10[%c408, %c0_121] : memref<1400x8xf32, #tpu.memory_space<vmem>>, vector<320x8xf32>
    %c7_122 = arith.constant 7 : index
    %c0_123 = arith.constant 0 : index
    %c0_124 = arith.constant 0 : index
    %184 = vector.load %arg5[%c7_122, %c0_123, %c0_124] : memref<9x8x4xf32, #tpu.memory_space<vmem>>, vector<1x8x4xf32>
    %185 = vector.shape_cast %184 : vector<1x8x4xf32> to vector<8x4xf32>
    %cst_125 = arith.constant dense<0.000000e+00> : vector<320x4xf32>
    %186 = tpu.matmul %183, %185, %cst_125 {dimension_numbers = #tpu.dot_dimension_numbers<[1], [0], [0], [1], [0, 0, 1, 1], [], []>} : vector<320x8xf32>, vector<8x4xf32>, vector<320x4xf32> -> vector<320x4xf32>
    %187 = arith.addf %182, %186 : vector<320x4xf32>
    %c409 = arith.constant 409 : index
    %c0_126 = arith.constant 0 : index
    %188 = vector.load %arg10[%c409, %c0_126] : memref<1400x8xf32, #tpu.memory_space<vmem>>, vector<320x8xf32>
    %c8_127 = arith.constant 8 : index
    %c0_128 = arith.constant 0 : index
    %c0_129 = arith.constant 0 : index
    %189 = vector.load %arg5[%c8_127, %c0_128, %c0_129] : memref<9x8x4xf32, #tpu.memory_space<vmem>>, vector<1x8x4xf32>
    %190 = vector.shape_cast %189 : vector<1x8x4xf32> to vector<8x4xf32>
    %cst_130 = arith.constant dense<0.000000e+00> : vector<320x4xf32>
    %191 = tpu.matmul %188, %190, %cst_130 {dimension_numbers = #tpu.dot_dimension_numbers<[1], [0], [0], [1], [0, 0, 1, 1], [], []>} : vector<320x8xf32>, vector<8x4xf32>, vector<320x4xf32> -> vector<320x4xf32>
    %192 = arith.addf %187, %191 : vector<320x4xf32>
    %193 = vector.broadcast %12 : vector<1x4xf32> to vector<320x4xf32>
    %194 = arith.addf %192, %193 : vector<320x4xf32>
    %195 = vector.extract_strided_slice %194 {offsets = [0, 0], sizes = [32, 4], strides = [1, 1]} : vector<320x4xf32> to vector<32x4xf32>
    %c0_131 = arith.constant 0 : index
    %c256 = arith.constant 256 : index
    %c0_132 = arith.constant 0 : index
    %196 = vector.load %arg7[%c0_131, %c256, %c0_132] : memref<1x1024x4xf32, #tpu.memory_space<vmem>>, vector<1x32x4xf32>
    %197 = vector.shape_cast %196 : vector<1x32x4xf32> to vector<32x4xf32>
    %198 = vector.shape_cast %195 : vector<32x4xf32> to vector<1x32x4xf32>
    tpu.vector_store %arg7[%c0_131, %c256, %c0_132], %198 {strides = array<i32>} : memref<1x1024x4xf32, #tpu.memory_space<vmem>>, vector<1x32x4xf32>,
    %cst_133 = arith.constant dense<0.000000e+00> : vector<4xf32>
    %199 = vector.multi_reduction <add>, %195, %cst_133 [0] : vector<32x4xf32> to vector<4xf32>
    %200 = vector.shape_cast %199 : vector<4xf32> to vector<1x4xf32>
    %201 = arith.addf %144, %200 : vector<1x4xf32>
    %202 = arith.mulf %195, %195 : vector<32x4xf32>
    %cst_134 = arith.constant dense<0.000000e+00> : vector<4xf32>
    %203 = vector.multi_reduction <add>, %202, %cst_134 [0] : vector<32x4xf32> to vector<4xf32>
    %204 = vector.shape_cast %203 : vector<4xf32> to vector<1x4xf32>
    %205 = arith.addf %148, %204 : vector<1x4xf32>
    %206 = vector.extract_strided_slice %194 {offsets = [40, 0], sizes = [32, 4], strides = [1, 1]} : vector<320x4xf32> to vector<32x4xf32>
    %c0_135 = arith.constant 0 : index
    %c288 = arith.constant 288 : index
    %c0_136 = arith.constant 0 : index
    %207 = vector.load %arg7[%c0_135, %c288, %c0_136] : memref<1x1024x4xf32, #tpu.memory_space<vmem>>, vector<1x32x4xf32>
    %208 = vector.shape_cast %207 : vector<1x32x4xf32> to vector<32x4xf32>
    %209 = vector.shape_cast %206 : vector<32x4xf32> to vector<1x32x4xf32>
    tpu.vector_store %arg7[%c0_135, %c288, %c0_136], %209 {strides = array<i32>} : memref<1x1024x4xf32, #tpu.memory_space<vmem>>, vector<1x32x4xf32>,
    %cst_137 = arith.constant dense<0.000000e+00> : vector<4xf32>
    %210 = vector.multi_reduction <add>, %206, %cst_137 [0] : vector<32x4xf32> to vector<4xf32>
    %211 = vector.shape_cast %210 : vector<4xf32> to vector<1x4xf32>
    %212 = arith.addf %201, %211 : vector<1x4xf32>
    %213 = arith.mulf %206, %206 : vector<32x4xf32>
    %cst_138 = arith.constant dense<0.000000e+00> : vector<4xf32>
    %214 = vector.multi_reduction <add>, %213, %cst_138 [0] : vector<32x4xf32> to vector<4xf32>
    %215 = vector.shape_cast %214 : vector<4xf32> to vector<1x4xf32>
    %216 = arith.addf %205, %215 : vector<1x4xf32>
    %217 = vector.extract_strided_slice %194 {offsets = [80, 0], sizes = [32, 4], strides = [1, 1]} : vector<320x4xf32> to vector<32x4xf32>
    %c0_139 = arith.constant 0 : index
    %c320 = arith.constant 320 : index
    %c0_140 = arith.constant 0 : index
    %218 = vector.load %arg7[%c0_139, %c320, %c0_140] : memref<1x1024x4xf32, #tpu.memory_space<vmem>>, vector<1x32x4xf32>
    %219 = vector.shape_cast %218 : vector<1x32x4xf32> to vector<32x4xf32>
    %220 = vector.shape_cast %217 : vector<32x4xf32> to vector<1x32x4xf32>
    tpu.vector_store %arg7[%c0_139, %c320, %c0_140], %220 {strides = array<i32>} : memref<1x1024x4xf32, #tpu.memory_space<vmem>>, vector<1x32x4xf32>,
    %cst_141 = arith.constant dense<0.000000e+00> : vector<4xf32>
    %221 = vector.multi_reduction <add>, %217, %cst_141 [0] : vector<32x4xf32> to vector<4xf32>
    %222 = vector.shape_cast %221 : vector<4xf32> to vector<1x4xf32>
    %223 = arith.addf %212, %222 : vector<1x4xf32>
    %224 = arith.mulf %217, %217 : vector<32x4xf32>
    %cst_142 = arith.constant dense<0.000000e+00> : vector<4xf32>
    %225 = vector.multi_reduction <add>, %224, %cst_142 [0] : vector<32x4xf32> to vector<4xf32>
    %226 = vector.shape_cast %225 : vector<4xf32> to vector<1x4xf32>
    %227 = arith.addf %216, %226 : vector<1x4xf32>
    %228 = vector.extract_strided_slice %194 {offsets = [120, 0], sizes = [32, 4], strides = [1, 1]} : vector<320x4xf32> to vector<32x4xf32>
    %c0_143 = arith.constant 0 : index
    %c352 = arith.constant 352 : index
    %c0_144 = arith.constant 0 : index
    %229 = vector.load %arg7[%c0_143, %c352, %c0_144] : memref<1x1024x4xf32, #tpu.memory_space<vmem>>, vector<1x32x4xf32>
    %230 = vector.shape_cast %229 : vector<1x32x4xf32> to vector<32x4xf32>
    %231 = vector.shape_cast %228 : vector<32x4xf32> to vector<1x32x4xf32>
    tpu.vector_store %arg7[%c0_143, %c352, %c0_144], %231 {strides = array<i32>} : memref<1x1024x4xf32, #tpu.memory_space<vmem>>, vector<1x32x4xf32>,
    %cst_145 = arith.constant dense<0.000000e+00> : vector<4xf32>
    %232 = vector.multi_reduction <add>, %228, %cst_145 [0] : vector<32x4xf32> to vector<4xf32>
    %233 = vector.shape_cast %232 : vector<4xf32> to vector<1x4xf32>
    %234 = arith.addf %223, %233 : vector<1x4xf32>
    %235 = arith.mulf %228, %228 : vector<32x4xf32>
    %cst_146 = arith.constant dense<0.000000e+00> : vector<4xf32>
    %236 = vector.multi_reduction <add>, %235, %cst_146 [0] : vector<32x4xf32> to vector<4xf32>
    %237 = vector.shape_cast %236 : vector<4xf32> to vector<1x4xf32>
    %238 = arith.addf %227, %237 : vector<1x4xf32>
    %239 = vector.extract_strided_slice %194 {offsets = [160, 0], sizes = [32, 4], strides = [1, 1]} : vector<320x4xf32> to vector<32x4xf32>
    %c0_147 = arith.constant 0 : index
    %c384 = arith.constant 384 : index
    %c0_148 = arith.constant 0 : index
    %240 = vector.load %arg7[%c0_147, %c384, %c0_148] : memref<1x1024x4xf32, #tpu.memory_space<vmem>>, vector<1x32x4xf32>
    %241 = vector.shape_cast %240 : vector<1x32x4xf32> to vector<32x4xf32>
    %242 = vector.shape_cast %239 : vector<32x4xf32> to vector<1x32x4xf32>
    tpu.vector_store %arg7[%c0_147, %c384, %c0_148], %242 {strides = array<i32>} : memref<1x1024x4xf32, #tpu.memory_space<vmem>>, vector<1x32x4xf32>,
    %cst_149 = arith.constant dense<0.000000e+00> : vector<4xf32>
    %243 = vector.multi_reduction <add>, %239, %cst_149 [0] : vector<32x4xf32> to vector<4xf32>
    %244 = vector.shape_cast %243 : vector<4xf32> to vector<1x4xf32>
    %245 = arith.addf %234, %244 : vector<1x4xf32>
    %246 = arith.mulf %239, %239 : vector<32x4xf32>
    %cst_150 = arith.constant dense<0.000000e+00> : vector<4xf32>
    %247 = vector.multi_reduction <add>, %246, %cst_150 [0] : vector<32x4xf32> to vector<4xf32>
    %248 = vector.shape_cast %247 : vector<4xf32> to vector<1x4xf32>
    %249 = arith.addf %238, %248 : vector<1x4xf32>
    %250 = vector.extract_strided_slice %194 {offsets = [200, 0], sizes = [32, 4], strides = [1, 1]} : vector<320x4xf32> to vector<32x4xf32>
    %c0_151 = arith.constant 0 : index
    %c416 = arith.constant 416 : index
    %c0_152 = arith.constant 0 : index
    %251 = vector.load %arg7[%c0_151, %c416, %c0_152] : memref<1x1024x4xf32, #tpu.memory_space<vmem>>, vector<1x32x4xf32>
    %252 = vector.shape_cast %251 : vector<1x32x4xf32> to vector<32x4xf32>
    %253 = vector.shape_cast %250 : vector<32x4xf32> to vector<1x32x4xf32>
    tpu.vector_store %arg7[%c0_151, %c416, %c0_152], %253 {strides = array<i32>} : memref<1x1024x4xf32, #tpu.memory_space<vmem>>, vector<1x32x4xf32>,
    %cst_153 = arith.constant dense<0.000000e+00> : vector<4xf32>
    %254 = vector.multi_reduction <add>, %250, %cst_153 [0] : vector<32x4xf32> to vector<4xf32>
    %255 = vector.shape_cast %254 : vector<4xf32> to vector<1x4xf32>
    %256 = arith.addf %245, %255 : vector<1x4xf32>
    %257 = arith.mulf %250, %250 : vector<32x4xf32>
    %cst_154 = arith.constant dense<0.000000e+00> : vector<4xf32>
    %258 = vector.multi_reduction <add>, %257, %cst_154 [0] : vector<32x4xf32> to vector<4xf32>
    %259 = vector.shape_cast %258 : vector<4xf32> to vector<1x4xf32>
    %260 = arith.addf %249, %259 : vector<1x4xf32>
    %261 = vector.extract_strided_slice %194 {offsets = [240, 0], sizes = [32, 4], strides = [1, 1]} : vector<320x4xf32> to vector<32x4xf32>
    %c0_155 = arith.constant 0 : index
    %c448 = arith.constant 448 : index
    %c0_156 = arith.constant 0 : index
    %262 = vector.load %arg7[%c0_155, %c448, %c0_156] : memref<1x1024x4xf32, #tpu.memory_space<vmem>>, vector<1x32x4xf32>
    %263 = vector.shape_cast %262 : vector<1x32x4xf32> to vector<32x4xf32>
    %264 = vector.shape_cast %261 : vector<32x4xf32> to vector<1x32x4xf32>
    tpu.vector_store %arg7[%c0_155, %c448, %c0_156], %264 {strides = array<i32>} : memref<1x1024x4xf32, #tpu.memory_space<vmem>>, vector<1x32x4xf32>,
    %cst_157 = arith.constant dense<0.000000e+00> : vector<4xf32>
    %265 = vector.multi_reduction <add>, %261, %cst_157 [0] : vector<32x4xf32> to vector<4xf32>
    %266 = vector.shape_cast %265 : vector<4xf32> to vector<1x4xf32>
    %267 = arith.addf %256, %266 : vector<1x4xf32>
    %268 = arith.mulf %261, %261 : vector<32x4xf32>
    %cst_158 = arith.constant dense<0.000000e+00> : vector<4xf32>
    %269 = vector.multi_reduction <add>, %268, %cst_158 [0] : vector<32x4xf32> to vector<4xf32>
    %270 = vector.shape_cast %269 : vector<4xf32> to vector<1x4xf32>
    %271 = arith.addf %260, %270 : vector<1x4xf32>
    %272 = vector.extract_strided_slice %194 {offsets = [280, 0], sizes = [32, 4], strides = [1, 1]} : vector<320x4xf32> to vector<32x4xf32>
    %c0_159 = arith.constant 0 : index
    %c480 = arith.constant 480 : index
    %c0_160 = arith.constant 0 : index
    %273 = vector.load %arg7[%c0_159, %c480, %c0_160] : memref<1x1024x4xf32, #tpu.memory_space<vmem>>, vector<1x32x4xf32>
    %274 = vector.shape_cast %273 : vector<1x32x4xf32> to vector<32x4xf32>
    %275 = vector.shape_cast %272 : vector<32x4xf32> to vector<1x32x4xf32>
    tpu.vector_store %arg7[%c0_159, %c480, %c0_160], %275 {strides = array<i32>} : memref<1x1024x4xf32, #tpu.memory_space<vmem>>, vector<1x32x4xf32>,
    %cst_161 = arith.constant dense<0.000000e+00> : vector<4xf32>
    %276 = vector.multi_reduction <add>, %272, %cst_161 [0] : vector<32x4xf32> to vector<4xf32>
    %277 = vector.shape_cast %276 : vector<4xf32> to vector<1x4xf32>
    %278 = arith.addf %267, %277 : vector<1x4xf32>
    %279 = arith.mulf %272, %272 : vector<32x4xf32>
    %cst_162 = arith.constant dense<0.000000e+00> : vector<4xf32>
    %280 = vector.multi_reduction <add>, %279, %cst_162 [0] : vector<32x4xf32> to vector<4xf32>
    %281 = vector.shape_cast %280 : vector<4xf32> to vector<1x4xf32>
    %282 = arith.addf %271, %281 : vector<1x4xf32>
    %c647 = arith.constant 647 : index
    %c0_163 = arith.constant 0 : index
    %283 = vector.load %arg10[%c647, %c0_163] : memref<1400x8xf32, #tpu.memory_space<vmem>>, vector<320x8xf32>
    %c0_164 = arith.constant 0 : index
    %c0_165 = arith.constant 0 : index
    %c0_166 = arith.constant 0 : index
    %284 = vector.load %arg5[%c0_164, %c0_165, %c0_166] : memref<9x8x4xf32, #tpu.memory_space<vmem>>, vector<1x8x4xf32>
    %285 = vector.shape_cast %284 : vector<1x8x4xf32> to vector<8x4xf32>
    %cst_167 = arith.constant dense<0.000000e+00> : vector<320x4xf32>
    %286 = tpu.matmul %283, %285, %cst_167 {dimension_numbers = #tpu.dot_dimension_numbers<[1], [0], [0], [1], [0, 0, 1, 1], [], []>} : vector<320x8xf32>, vector<8x4xf32>, vector<320x4xf32> -> vector<320x4xf32>
    %c648 = arith.constant 648 : index
    %c0_168 = arith.constant 0 : index
    %287 = vector.load %arg10[%c648, %c0_168] : memref<1400x8xf32, #tpu.memory_space<vmem>>, vector<320x8xf32>
    %c1_169 = arith.constant 1 : index
    %c0_170 = arith.constant 0 : index
    %c0_171 = arith.constant 0 : index
    %288 = vector.load %arg5[%c1_169, %c0_170, %c0_171] : memref<9x8x4xf32, #tpu.memory_space<vmem>>, vector<1x8x4xf32>
    %289 = vector.shape_cast %288 : vector<1x8x4xf32> to vector<8x4xf32>
    %cst_172 = arith.constant dense<0.000000e+00> : vector<320x4xf32>
    %290 = tpu.matmul %287, %289, %cst_172 {dimension_numbers = #tpu.dot_dimension_numbers<[1], [0], [0], [1], [0, 0, 1, 1], [], []>} : vector<320x8xf32>, vector<8x4xf32>, vector<320x4xf32> -> vector<320x4xf32>
    %291 = arith.addf %286, %290 : vector<320x4xf32>
    %c649 = arith.constant 649 : index
    %c0_173 = arith.constant 0 : index
    %292 = vector.load %arg10[%c649, %c0_173] : memref<1400x8xf32, #tpu.memory_space<vmem>>, vector<320x8xf32>
    %c2_174 = arith.constant 2 : index
    %c0_175 = arith.constant 0 : index
    %c0_176 = arith.constant 0 : index
    %293 = vector.load %arg5[%c2_174, %c0_175, %c0_176] : memref<9x8x4xf32, #tpu.memory_space<vmem>>, vector<1x8x4xf32>
    %294 = vector.shape_cast %293 : vector<1x8x4xf32> to vector<8x4xf32>
    %cst_177 = arith.constant dense<0.000000e+00> : vector<320x4xf32>
    %295 = tpu.matmul %292, %294, %cst_177 {dimension_numbers = #tpu.dot_dimension_numbers<[1], [0], [0], [1], [0, 0, 1, 1], [], []>} : vector<320x8xf32>, vector<8x4xf32>, vector<320x4xf32> -> vector<320x4xf32>
    %296 = arith.addf %291, %295 : vector<320x4xf32>
    %c687 = arith.constant 687 : index
    %c0_178 = arith.constant 0 : index
    %297 = vector.load %arg10[%c687, %c0_178] : memref<1400x8xf32, #tpu.memory_space<vmem>>, vector<320x8xf32>
    %c3_179 = arith.constant 3 : index
    %c0_180 = arith.constant 0 : index
    %c0_181 = arith.constant 0 : index
    %298 = vector.load %arg5[%c3_179, %c0_180, %c0_181] : memref<9x8x4xf32, #tpu.memory_space<vmem>>, vector<1x8x4xf32>
    %299 = vector.shape_cast %298 : vector<1x8x4xf32> to vector<8x4xf32>
    %cst_182 = arith.constant dense<0.000000e+00> : vector<320x4xf32>
    %300 = tpu.matmul %297, %299, %cst_182 {dimension_numbers = #tpu.dot_dimension_numbers<[1], [0], [0], [1], [0, 0, 1, 1], [], []>} : vector<320x8xf32>, vector<8x4xf32>, vector<320x4xf32> -> vector<320x4xf32>
    %301 = arith.addf %296, %300 : vector<320x4xf32>
    %c688 = arith.constant 688 : index
    %c0_183 = arith.constant 0 : index
    %302 = vector.load %arg10[%c688, %c0_183] : memref<1400x8xf32, #tpu.memory_space<vmem>>, vector<320x8xf32>
    %c4_184 = arith.constant 4 : index
    %c0_185 = arith.constant 0 : index
    %c0_186 = arith.constant 0 : index
    %303 = vector.load %arg5[%c4_184, %c0_185, %c0_186] : memref<9x8x4xf32, #tpu.memory_space<vmem>>, vector<1x8x4xf32>
    %304 = vector.shape_cast %303 : vector<1x8x4xf32> to vector<8x4xf32>
    %cst_187 = arith.constant dense<0.000000e+00> : vector<320x4xf32>
    %305 = tpu.matmul %302, %304, %cst_187 {dimension_numbers = #tpu.dot_dimension_numbers<[1], [0], [0], [1], [0, 0, 1, 1], [], []>} : vector<320x8xf32>, vector<8x4xf32>, vector<320x4xf32> -> vector<320x4xf32>
    %306 = arith.addf %301, %305 : vector<320x4xf32>
    %c689 = arith.constant 689 : index
    %c0_188 = arith.constant 0 : index
    %307 = vector.load %arg10[%c689, %c0_188] : memref<1400x8xf32, #tpu.memory_space<vmem>>, vector<320x8xf32>
    %c5_189 = arith.constant 5 : index
    %c0_190 = arith.constant 0 : index
    %c0_191 = arith.constant 0 : index
    %308 = vector.load %arg5[%c5_189, %c0_190, %c0_191] : memref<9x8x4xf32, #tpu.memory_space<vmem>>, vector<1x8x4xf32>
    %309 = vector.shape_cast %308 : vector<1x8x4xf32> to vector<8x4xf32>
    %cst_192 = arith.constant dense<0.000000e+00> : vector<320x4xf32>
    %310 = tpu.matmul %307, %309, %cst_192 {dimension_numbers = #tpu.dot_dimension_numbers<[1], [0], [0], [1], [0, 0, 1, 1], [], []>} : vector<320x8xf32>, vector<8x4xf32>, vector<320x4xf32> -> vector<320x4xf32>
    %311 = arith.addf %306, %310 : vector<320x4xf32>
    %c727 = arith.constant 727 : index
    %c0_193 = arith.constant 0 : index
    %312 = vector.load %arg10[%c727, %c0_193] : memref<1400x8xf32, #tpu.memory_space<vmem>>, vector<320x8xf32>
    %c6_194 = arith.constant 6 : index
    %c0_195 = arith.constant 0 : index
    %c0_196 = arith.constant 0 : index
    %313 = vector.load %arg5[%c6_194, %c0_195, %c0_196] : memref<9x8x4xf32, #tpu.memory_space<vmem>>, vector<1x8x4xf32>
    %314 = vector.shape_cast %313 : vector<1x8x4xf32> to vector<8x4xf32>
    %cst_197 = arith.constant dense<0.000000e+00> : vector<320x4xf32>
    %315 = tpu.matmul %312, %314, %cst_197 {dimension_numbers = #tpu.dot_dimension_numbers<[1], [0], [0], [1], [0, 0, 1, 1], [], []>} : vector<320x8xf32>, vector<8x4xf32>, vector<320x4xf32> -> vector<320x4xf32>
    %316 = arith.addf %311, %315 : vector<320x4xf32>
    %c728 = arith.constant 728 : index
    %c0_198 = arith.constant 0 : index
    %317 = vector.load %arg10[%c728, %c0_198] : memref<1400x8xf32, #tpu.memory_space<vmem>>, vector<320x8xf32>
    %c7_199 = arith.constant 7 : index
    %c0_200 = arith.constant 0 : index
    %c0_201 = arith.constant 0 : index
    %318 = vector.load %arg5[%c7_199, %c0_200, %c0_201] : memref<9x8x4xf32, #tpu.memory_space<vmem>>, vector<1x8x4xf32>
    %319 = vector.shape_cast %318 : vector<1x8x4xf32> to vector<8x4xf32>
    %cst_202 = arith.constant dense<0.000000e+00> : vector<320x4xf32>
    %320 = tpu.matmul %317, %319, %cst_202 {dimension_numbers = #tpu.dot_dimension_numbers<[1], [0], [0], [1], [0, 0, 1, 1], [], []>} : vector<320x8xf32>, vector<8x4xf32>, vector<320x4xf32> -> vector<320x4xf32>
    %321 = arith.addf %316, %320 : vector<320x4xf32>
    %c729 = arith.constant 729 : index
    %c0_203 = arith.constant 0 : index
    %322 = vector.load %arg10[%c729, %c0_203] : memref<1400x8xf32, #tpu.memory_space<vmem>>, vector<320x8xf32>
    %c8_204 = arith.constant 8 : index
    %c0_205 = arith.constant 0 : index
    %c0_206 = arith.constant 0 : index
    %323 = vector.load %arg5[%c8_204, %c0_205, %c0_206] : memref<9x8x4xf32, #tpu.memory_space<vmem>>, vector<1x8x4xf32>
    %324 = vector.shape_cast %323 : vector<1x8x4xf32> to vector<8x4xf32>
    %cst_207 = arith.constant dense<0.000000e+00> : vector<320x4xf32>
    %325 = tpu.matmul %322, %324, %cst_207 {dimension_numbers = #tpu.dot_dimension_numbers<[1], [0], [0], [1], [0, 0, 1, 1], [], []>} : vector<320x8xf32>, vector<8x4xf32>, vector<320x4xf32> -> vector<320x4xf32>
    %326 = arith.addf %321, %325 : vector<320x4xf32>
    %327 = vector.broadcast %12 : vector<1x4xf32> to vector<320x4xf32>
    %328 = arith.addf %326, %327 : vector<320x4xf32>
    %329 = vector.extract_strided_slice %328 {offsets = [0, 0], sizes = [32, 4], strides = [1, 1]} : vector<320x4xf32> to vector<32x4xf32>
    %c0_208 = arith.constant 0 : index
    %c512 = arith.constant 512 : index
    %c0_209 = arith.constant 0 : index
    %330 = vector.load %arg7[%c0_208, %c512, %c0_209] : memref<1x1024x4xf32, #tpu.memory_space<vmem>>, vector<1x32x4xf32>
    %331 = vector.shape_cast %330 : vector<1x32x4xf32> to vector<32x4xf32>
    %332 = vector.shape_cast %329 : vector<32x4xf32> to vector<1x32x4xf32>
    tpu.vector_store %arg7[%c0_208, %c512, %c0_209], %332 {strides = array<i32>} : memref<1x1024x4xf32, #tpu.memory_space<vmem>>, vector<1x32x4xf32>,
    %cst_210 = arith.constant dense<0.000000e+00> : vector<4xf32>
    %333 = vector.multi_reduction <add>, %329, %cst_210 [0] : vector<32x4xf32> to vector<4xf32>
    %334 = vector.shape_cast %333 : vector<4xf32> to vector<1x4xf32>
    %335 = arith.addf %278, %334 : vector<1x4xf32>
    %336 = arith.mulf %329, %329 : vector<32x4xf32>
    %cst_211 = arith.constant dense<0.000000e+00> : vector<4xf32>
    %337 = vector.multi_reduction <add>, %336, %cst_211 [0] : vector<32x4xf32> to vector<4xf32>
    %338 = vector.shape_cast %337 : vector<4xf32> to vector<1x4xf32>
    %339 = arith.addf %282, %338 : vector<1x4xf32>
    %340 = vector.extract_strided_slice %328 {offsets = [40, 0], sizes = [32, 4], strides = [1, 1]} : vector<320x4xf32> to vector<32x4xf32>
    %c0_212 = arith.constant 0 : index
    %c544 = arith.constant 544 : index
    %c0_213 = arith.constant 0 : index
    %341 = vector.load %arg7[%c0_212, %c544, %c0_213] : memref<1x1024x4xf32, #tpu.memory_space<vmem>>, vector<1x32x4xf32>
    %342 = vector.shape_cast %341 : vector<1x32x4xf32> to vector<32x4xf32>
    %343 = vector.shape_cast %340 : vector<32x4xf32> to vector<1x32x4xf32>
    tpu.vector_store %arg7[%c0_212, %c544, %c0_213], %343 {strides = array<i32>} : memref<1x1024x4xf32, #tpu.memory_space<vmem>>, vector<1x32x4xf32>,
    %cst_214 = arith.constant dense<0.000000e+00> : vector<4xf32>
    %344 = vector.multi_reduction <add>, %340, %cst_214 [0] : vector<32x4xf32> to vector<4xf32>
    %345 = vector.shape_cast %344 : vector<4xf32> to vector<1x4xf32>
    %346 = arith.addf %335, %345 : vector<1x4xf32>
    %347 = arith.mulf %340, %340 : vector<32x4xf32>
    %cst_215 = arith.constant dense<0.000000e+00> : vector<4xf32>
    %348 = vector.multi_reduction <add>, %347, %cst_215 [0] : vector<32x4xf32> to vector<4xf32>
    %349 = vector.shape_cast %348 : vector<4xf32> to vector<1x4xf32>
    %350 = arith.addf %339, %349 : vector<1x4xf32>
    %351 = vector.extract_strided_slice %328 {offsets = [80, 0], sizes = [32, 4], strides = [1, 1]} : vector<320x4xf32> to vector<32x4xf32>
    %c0_216 = arith.constant 0 : index
    %c576 = arith.constant 576 : index
    %c0_217 = arith.constant 0 : index
    %352 = vector.load %arg7[%c0_216, %c576, %c0_217] : memref<1x1024x4xf32, #tpu.memory_space<vmem>>, vector<1x32x4xf32>
    %353 = vector.shape_cast %352 : vector<1x32x4xf32> to vector<32x4xf32>
    %354 = vector.shape_cast %351 : vector<32x4xf32> to vector<1x32x4xf32>
    tpu.vector_store %arg7[%c0_216, %c576, %c0_217], %354 {strides = array<i32>} : memref<1x1024x4xf32, #tpu.memory_space<vmem>>, vector<1x32x4xf32>,
    %cst_218 = arith.constant dense<0.000000e+00> : vector<4xf32>
    %355 = vector.multi_reduction <add>, %351, %cst_218 [0] : vector<32x4xf32> to vector<4xf32>
    %356 = vector.shape_cast %355 : vector<4xf32> to vector<1x4xf32>
    %357 = arith.addf %346, %356 : vector<1x4xf32>
    %358 = arith.mulf %351, %351 : vector<32x4xf32>
    %cst_219 = arith.constant dense<0.000000e+00> : vector<4xf32>
    %359 = vector.multi_reduction <add>, %358, %cst_219 [0] : vector<32x4xf32> to vector<4xf32>
    %360 = vector.shape_cast %359 : vector<4xf32> to vector<1x4xf32>
    %361 = arith.addf %350, %360 : vector<1x4xf32>
    %362 = vector.extract_strided_slice %328 {offsets = [120, 0], sizes = [32, 4], strides = [1, 1]} : vector<320x4xf32> to vector<32x4xf32>
    %c0_220 = arith.constant 0 : index
    %c608 = arith.constant 608 : index
    %c0_221 = arith.constant 0 : index
    %363 = vector.load %arg7[%c0_220, %c608, %c0_221] : memref<1x1024x4xf32, #tpu.memory_space<vmem>>, vector<1x32x4xf32>
    %364 = vector.shape_cast %363 : vector<1x32x4xf32> to vector<32x4xf32>
    %365 = vector.shape_cast %362 : vector<32x4xf32> to vector<1x32x4xf32>
    tpu.vector_store %arg7[%c0_220, %c608, %c0_221], %365 {strides = array<i32>} : memref<1x1024x4xf32, #tpu.memory_space<vmem>>, vector<1x32x4xf32>,
    %cst_222 = arith.constant dense<0.000000e+00> : vector<4xf32>
    %366 = vector.multi_reduction <add>, %362, %cst_222 [0] : vector<32x4xf32> to vector<4xf32>
    %367 = vector.shape_cast %366 : vector<4xf32> to vector<1x4xf32>
    %368 = arith.addf %357, %367 : vector<1x4xf32>
    %369 = arith.mulf %362, %362 : vector<32x4xf32>
    %cst_223 = arith.constant dense<0.000000e+00> : vector<4xf32>
    %370 = vector.multi_reduction <add>, %369, %cst_223 [0] : vector<32x4xf32> to vector<4xf32>
    %371 = vector.shape_cast %370 : vector<4xf32> to vector<1x4xf32>
    %372 = arith.addf %361, %371 : vector<1x4xf32>
    %373 = vector.extract_strided_slice %328 {offsets = [160, 0], sizes = [32, 4], strides = [1, 1]} : vector<320x4xf32> to vector<32x4xf32>
    %c0_224 = arith.constant 0 : index
    %c640 = arith.constant 640 : index
    %c0_225 = arith.constant 0 : index
    %374 = vector.load %arg7[%c0_224, %c640, %c0_225] : memref<1x1024x4xf32, #tpu.memory_space<vmem>>, vector<1x32x4xf32>
    %375 = vector.shape_cast %374 : vector<1x32x4xf32> to vector<32x4xf32>
    %376 = vector.shape_cast %373 : vector<32x4xf32> to vector<1x32x4xf32>
    tpu.vector_store %arg7[%c0_224, %c640, %c0_225], %376 {strides = array<i32>} : memref<1x1024x4xf32, #tpu.memory_space<vmem>>, vector<1x32x4xf32>,
    %cst_226 = arith.constant dense<0.000000e+00> : vector<4xf32>
    %377 = vector.multi_reduction <add>, %373, %cst_226 [0] : vector<32x4xf32> to vector<4xf32>
    %378 = vector.shape_cast %377 : vector<4xf32> to vector<1x4xf32>
    %379 = arith.addf %368, %378 : vector<1x4xf32>
    %380 = arith.mulf %373, %373 : vector<32x4xf32>
    %cst_227 = arith.constant dense<0.000000e+00> : vector<4xf32>
    %381 = vector.multi_reduction <add>, %380, %cst_227 [0] : vector<32x4xf32> to vector<4xf32>
    %382 = vector.shape_cast %381 : vector<4xf32> to vector<1x4xf32>
    %383 = arith.addf %372, %382 : vector<1x4xf32>
    %384 = vector.extract_strided_slice %328 {offsets = [200, 0], sizes = [32, 4], strides = [1, 1]} : vector<320x4xf32> to vector<32x4xf32>
    %c0_228 = arith.constant 0 : index
    %c672 = arith.constant 672 : index
    %c0_229 = arith.constant 0 : index
    %385 = vector.load %arg7[%c0_228, %c672, %c0_229] : memref<1x1024x4xf32, #tpu.memory_space<vmem>>, vector<1x32x4xf32>
    %386 = vector.shape_cast %385 : vector<1x32x4xf32> to vector<32x4xf32>
    %387 = vector.shape_cast %384 : vector<32x4xf32> to vector<1x32x4xf32>
    tpu.vector_store %arg7[%c0_228, %c672, %c0_229], %387 {strides = array<i32>} : memref<1x1024x4xf32, #tpu.memory_space<vmem>>, vector<1x32x4xf32>,
    %cst_230 = arith.constant dense<0.000000e+00> : vector<4xf32>
    %388 = vector.multi_reduction <add>, %384, %cst_230 [0] : vector<32x4xf32> to vector<4xf32>
    %389 = vector.shape_cast %388 : vector<4xf32> to vector<1x4xf32>
    %390 = arith.addf %379, %389 : vector<1x4xf32>
    %391 = arith.mulf %384, %384 : vector<32x4xf32>
    %cst_231 = arith.constant dense<0.000000e+00> : vector<4xf32>
    %392 = vector.multi_reduction <add>, %391, %cst_231 [0] : vector<32x4xf32> to vector<4xf32>
    %393 = vector.shape_cast %392 : vector<4xf32> to vector<1x4xf32>
    %394 = arith.addf %383, %393 : vector<1x4xf32>
    %395 = vector.extract_strided_slice %328 {offsets = [240, 0], sizes = [32, 4], strides = [1, 1]} : vector<320x4xf32> to vector<32x4xf32>
    %c0_232 = arith.constant 0 : index
    %c704 = arith.constant 704 : index
    %c0_233 = arith.constant 0 : index
    %396 = vector.load %arg7[%c0_232, %c704, %c0_233] : memref<1x1024x4xf32, #tpu.memory_space<vmem>>, vector<1x32x4xf32>
    %397 = vector.shape_cast %396 : vector<1x32x4xf32> to vector<32x4xf32>
    %398 = vector.shape_cast %395 : vector<32x4xf32> to vector<1x32x4xf32>
    tpu.vector_store %arg7[%c0_232, %c704, %c0_233], %398 {strides = array<i32>} : memref<1x1024x4xf32, #tpu.memory_space<vmem>>, vector<1x32x4xf32>,
    %cst_234 = arith.constant dense<0.000000e+00> : vector<4xf32>
    %399 = vector.multi_reduction <add>, %395, %cst_234 [0] : vector<32x4xf32> to vector<4xf32>
    %400 = vector.shape_cast %399 : vector<4xf32> to vector<1x4xf32>
    %401 = arith.addf %390, %400 : vector<1x4xf32>
    %402 = arith.mulf %395, %395 : vector<32x4xf32>
    %cst_235 = arith.constant dense<0.000000e+00> : vector<4xf32>
    %403 = vector.multi_reduction <add>, %402, %cst_235 [0] : vector<32x4xf32> to vector<4xf32>
    %404 = vector.shape_cast %403 : vector<4xf32> to vector<1x4xf32>
    %405 = arith.addf %394, %404 : vector<1x4xf32>
    %406 = vector.extract_strided_slice %328 {offsets = [280, 0], sizes = [32, 4], strides = [1, 1]} : vector<320x4xf32> to vector<32x4xf32>
    %c0_236 = arith.constant 0 : index
    %c736 = arith.constant 736 : index
    %c0_237 = arith.constant 0 : index
    %407 = vector.load %arg7[%c0_236, %c736, %c0_237] : memref<1x1024x4xf32, #tpu.memory_space<vmem>>, vector<1x32x4xf32>
    %408 = vector.shape_cast %407 : vector<1x32x4xf32> to vector<32x4xf32>
    %409 = vector.shape_cast %406 : vector<32x4xf32> to vector<1x32x4xf32>
    tpu.vector_store %arg7[%c0_236, %c736, %c0_237], %409 {strides = array<i32>} : memref<1x1024x4xf32, #tpu.memory_space<vmem>>, vector<1x32x4xf32>,
    %cst_238 = arith.constant dense<0.000000e+00> : vector<4xf32>
    %410 = vector.multi_reduction <add>, %406, %cst_238 [0] : vector<32x4xf32> to vector<4xf32>
    %411 = vector.shape_cast %410 : vector<4xf32> to vector<1x4xf32>
    %412 = arith.addf %401, %411 : vector<1x4xf32>
    %413 = arith.mulf %406, %406 : vector<32x4xf32>
    %cst_239 = arith.constant dense<0.000000e+00> : vector<4xf32>
    %414 = vector.multi_reduction <add>, %413, %cst_239 [0] : vector<32x4xf32> to vector<4xf32>
    %415 = vector.shape_cast %414 : vector<4xf32> to vector<1x4xf32>
    %416 = arith.addf %405, %415 : vector<1x4xf32>
    %c967 = arith.constant 967 : index
    %c0_240 = arith.constant 0 : index
    %417 = vector.load %arg10[%c967, %c0_240] : memref<1400x8xf32, #tpu.memory_space<vmem>>, vector<320x8xf32>
    %c0_241 = arith.constant 0 : index
    %c0_242 = arith.constant 0 : index
    %c0_243 = arith.constant 0 : index
    %418 = vector.load %arg5[%c0_241, %c0_242, %c0_243] : memref<9x8x4xf32, #tpu.memory_space<vmem>>, vector<1x8x4xf32>
    %419 = vector.shape_cast %418 : vector<1x8x4xf32> to vector<8x4xf32>
    %cst_244 = arith.constant dense<0.000000e+00> : vector<320x4xf32>
    %420 = tpu.matmul %417, %419, %cst_244 {dimension_numbers = #tpu.dot_dimension_numbers<[1], [0], [0], [1], [0, 0, 1, 1], [], []>} : vector<320x8xf32>, vector<8x4xf32>, vector<320x4xf32> -> vector<320x4xf32>
    %c968 = arith.constant 968 : index
    %c0_245 = arith.constant 0 : index
    %421 = vector.load %arg10[%c968, %c0_245] : memref<1400x8xf32, #tpu.memory_space<vmem>>, vector<320x8xf32>
    %c1_246 = arith.constant 1 : index
    %c0_247 = arith.constant 0 : index
    %c0_248 = arith.constant 0 : index
    %422 = vector.load %arg5[%c1_246, %c0_247, %c0_248] : memref<9x8x4xf32, #tpu.memory_space<vmem>>, vector<1x8x4xf32>
    %423 = vector.shape_cast %422 : vector<1x8x4xf32> to vector<8x4xf32>
    %cst_249 = arith.constant dense<0.000000e+00> : vector<320x4xf32>
    %424 = tpu.matmul %421, %423, %cst_249 {dimension_numbers = #tpu.dot_dimension_numbers<[1], [0], [0], [1], [0, 0, 1, 1], [], []>} : vector<320x8xf32>, vector<8x4xf32>, vector<320x4xf32> -> vector<320x4xf32>
    %425 = arith.addf %420, %424 : vector<320x4xf32>
    %c969 = arith.constant 969 : index
    %c0_250 = arith.constant 0 : index
    %426 = vector.load %arg10[%c969, %c0_250] : memref<1400x8xf32, #tpu.memory_space<vmem>>, vector<320x8xf32>
    %c2_251 = arith.constant 2 : index
    %c0_252 = arith.constant 0 : index
    %c0_253 = arith.constant 0 : index
    %427 = vector.load %arg5[%c2_251, %c0_252, %c0_253] : memref<9x8x4xf32, #tpu.memory_space<vmem>>, vector<1x8x4xf32>
    %428 = vector.shape_cast %427 : vector<1x8x4xf32> to vector<8x4xf32>
    %cst_254 = arith.constant dense<0.000000e+00> : vector<320x4xf32>
    %429 = tpu.matmul %426, %428, %cst_254 {dimension_numbers = #tpu.dot_dimension_numbers<[1], [0], [0], [1], [0, 0, 1, 1], [], []>} : vector<320x8xf32>, vector<8x4xf32>, vector<320x4xf32> -> vector<320x4xf32>
    %430 = arith.addf %425, %429 : vector<320x4xf32>
    %c1007 = arith.constant 1007 : index
    %c0_255 = arith.constant 0 : index
    %431 = vector.load %arg10[%c1007, %c0_255] : memref<1400x8xf32, #tpu.memory_space<vmem>>, vector<320x8xf32>
    %c3_256 = arith.constant 3 : index
    %c0_257 = arith.constant 0 : index
    %c0_258 = arith.constant 0 : index
    %432 = vector.load %arg5[%c3_256, %c0_257, %c0_258] : memref<9x8x4xf32, #tpu.memory_space<vmem>>, vector<1x8x4xf32>
    %433 = vector.shape_cast %432 : vector<1x8x4xf32> to vector<8x4xf32>
    %cst_259 = arith.constant dense<0.000000e+00> : vector<320x4xf32>
    %434 = tpu.matmul %431, %433, %cst_259 {dimension_numbers = #tpu.dot_dimension_numbers<[1], [0], [0], [1], [0, 0, 1, 1], [], []>} : vector<320x8xf32>, vector<8x4xf32>, vector<320x4xf32> -> vector<320x4xf32>
    %435 = arith.addf %430, %434 : vector<320x4xf32>
    %c1008 = arith.constant 1008 : index
    %c0_260 = arith.constant 0 : index
    %436 = vector.load %arg10[%c1008, %c0_260] : memref<1400x8xf32, #tpu.memory_space<vmem>>, vector<320x8xf32>
    %c4_261 = arith.constant 4 : index
    %c0_262 = arith.constant 0 : index
    %c0_263 = arith.constant 0 : index
    %437 = vector.load %arg5[%c4_261, %c0_262, %c0_263] : memref<9x8x4xf32, #tpu.memory_space<vmem>>, vector<1x8x4xf32>
    %438 = vector.shape_cast %437 : vector<1x8x4xf32> to vector<8x4xf32>
    %cst_264 = arith.constant dense<0.000000e+00> : vector<320x4xf32>
    %439 = tpu.matmul %436, %438, %cst_264 {dimension_numbers = #tpu.dot_dimension_numbers<[1], [0], [0], [1], [0, 0, 1, 1], [], []>} : vector<320x8xf32>, vector<8x4xf32>, vector<320x4xf32> -> vector<320x4xf32>
    %440 = arith.addf %435, %439 : vector<320x4xf32>
    %c1009 = arith.constant 1009 : index
    %c0_265 = arith.constant 0 : index
    %441 = vector.load %arg10[%c1009, %c0_265] : memref<1400x8xf32, #tpu.memory_space<vmem>>, vector<320x8xf32>
    %c5_266 = arith.constant 5 : index
    %c0_267 = arith.constant 0 : index
    %c0_268 = arith.constant 0 : index
    %442 = vector.load %arg5[%c5_266, %c0_267, %c0_268] : memref<9x8x4xf32, #tpu.memory_space<vmem>>, vector<1x8x4xf32>
    %443 = vector.shape_cast %442 : vector<1x8x4xf32> to vector<8x4xf32>
    %cst_269 = arith.constant dense<0.000000e+00> : vector<320x4xf32>
    %444 = tpu.matmul %441, %443, %cst_269 {dimension_numbers = #tpu.dot_dimension_numbers<[1], [0], [0], [1], [0, 0, 1, 1], [], []>} : vector<320x8xf32>, vector<8x4xf32>, vector<320x4xf32> -> vector<320x4xf32>
    %445 = arith.addf %440, %444 : vector<320x4xf32>
    %c1047 = arith.constant 1047 : index
    %c0_270 = arith.constant 0 : index
    %446 = vector.load %arg10[%c1047, %c0_270] : memref<1400x8xf32, #tpu.memory_space<vmem>>, vector<320x8xf32>
    %c6_271 = arith.constant 6 : index
    %c0_272 = arith.constant 0 : index
    %c0_273 = arith.constant 0 : index
    %447 = vector.load %arg5[%c6_271, %c0_272, %c0_273] : memref<9x8x4xf32, #tpu.memory_space<vmem>>, vector<1x8x4xf32>
    %448 = vector.shape_cast %447 : vector<1x8x4xf32> to vector<8x4xf32>
    %cst_274 = arith.constant dense<0.000000e+00> : vector<320x4xf32>
    %449 = tpu.matmul %446, %448, %cst_274 {dimension_numbers = #tpu.dot_dimension_numbers<[1], [0], [0], [1], [0, 0, 1, 1], [], []>} : vector<320x8xf32>, vector<8x4xf32>, vector<320x4xf32> -> vector<320x4xf32>
    %450 = arith.addf %445, %449 : vector<320x4xf32>
    %c1048 = arith.constant 1048 : index
    %c0_275 = arith.constant 0 : index
    %451 = vector.load %arg10[%c1048, %c0_275] : memref<1400x8xf32, #tpu.memory_space<vmem>>, vector<320x8xf32>
    %c7_276 = arith.constant 7 : index
    %c0_277 = arith.constant 0 : index
    %c0_278 = arith.constant 0 : index
    %452 = vector.load %arg5[%c7_276, %c0_277, %c0_278] : memref<9x8x4xf32, #tpu.memory_space<vmem>>, vector<1x8x4xf32>
    %453 = vector.shape_cast %452 : vector<1x8x4xf32> to vector<8x4xf32>
    %cst_279 = arith.constant dense<0.000000e+00> : vector<320x4xf32>
    %454 = tpu.matmul %451, %453, %cst_279 {dimension_numbers = #tpu.dot_dimension_numbers<[1], [0], [0], [1], [0, 0, 1, 1], [], []>} : vector<320x8xf32>, vector<8x4xf32>, vector<320x4xf32> -> vector<320x4xf32>
    %455 = arith.addf %450, %454 : vector<320x4xf32>
    %c1049 = arith.constant 1049 : index
    %c0_280 = arith.constant 0 : index
    %456 = vector.load %arg10[%c1049, %c0_280] : memref<1400x8xf32, #tpu.memory_space<vmem>>, vector<320x8xf32>
    %c8_281 = arith.constant 8 : index
    %c0_282 = arith.constant 0 : index
    %c0_283 = arith.constant 0 : index
    %457 = vector.load %arg5[%c8_281, %c0_282, %c0_283] : memref<9x8x4xf32, #tpu.memory_space<vmem>>, vector<1x8x4xf32>
    %458 = vector.shape_cast %457 : vector<1x8x4xf32> to vector<8x4xf32>
    %cst_284 = arith.constant dense<0.000000e+00> : vector<320x4xf32>
    %459 = tpu.matmul %456, %458, %cst_284 {dimension_numbers = #tpu.dot_dimension_numbers<[1], [0], [0], [1], [0, 0, 1, 1], [], []>} : vector<320x8xf32>, vector<8x4xf32>, vector<320x4xf32> -> vector<320x4xf32>
    %460 = arith.addf %455, %459 : vector<320x4xf32>
    %461 = vector.broadcast %12 : vector<1x4xf32> to vector<320x4xf32>
    %462 = arith.addf %460, %461 : vector<320x4xf32>
    %463 = vector.extract_strided_slice %462 {offsets = [0, 0], sizes = [32, 4], strides = [1, 1]} : vector<320x4xf32> to vector<32x4xf32>
    %c0_285 = arith.constant 0 : index
    %c768 = arith.constant 768 : index
    %c0_286 = arith.constant 0 : index
    %464 = vector.load %arg7[%c0_285, %c768, %c0_286] : memref<1x1024x4xf32, #tpu.memory_space<vmem>>, vector<1x32x4xf32>
    %465 = vector.shape_cast %464 : vector<1x32x4xf32> to vector<32x4xf32>
    %466 = vector.shape_cast %463 : vector<32x4xf32> to vector<1x32x4xf32>
    tpu.vector_store %arg7[%c0_285, %c768, %c0_286], %466 {strides = array<i32>} : memref<1x1024x4xf32, #tpu.memory_space<vmem>>, vector<1x32x4xf32>,
    %cst_287 = arith.constant dense<0.000000e+00> : vector<4xf32>
    %467 = vector.multi_reduction <add>, %463, %cst_287 [0] : vector<32x4xf32> to vector<4xf32>
    %468 = vector.shape_cast %467 : vector<4xf32> to vector<1x4xf32>
    %469 = arith.addf %412, %468 : vector<1x4xf32>
    %470 = arith.mulf %463, %463 : vector<32x4xf32>
    %cst_288 = arith.constant dense<0.000000e+00> : vector<4xf32>
    %471 = vector.multi_reduction <add>, %470, %cst_288 [0] : vector<32x4xf32> to vector<4xf32>
    %472 = vector.shape_cast %471 : vector<4xf32> to vector<1x4xf32>
    %473 = arith.addf %416, %472 : vector<1x4xf32>
    %474 = vector.extract_strided_slice %462 {offsets = [40, 0], sizes = [32, 4], strides = [1, 1]} : vector<320x4xf32> to vector<32x4xf32>
    %c0_289 = arith.constant 0 : index
    %c800 = arith.constant 800 : index
    %c0_290 = arith.constant 0 : index
    %475 = vector.load %arg7[%c0_289, %c800, %c0_290] : memref<1x1024x4xf32, #tpu.memory_space<vmem>>, vector<1x32x4xf32>
    %476 = vector.shape_cast %475 : vector<1x32x4xf32> to vector<32x4xf32>
    %477 = vector.shape_cast %474 : vector<32x4xf32> to vector<1x32x4xf32>
    tpu.vector_store %arg7[%c0_289, %c800, %c0_290], %477 {strides = array<i32>} : memref<1x1024x4xf32, #tpu.memory_space<vmem>>, vector<1x32x4xf32>,
    %cst_291 = arith.constant dense<0.000000e+00> : vector<4xf32>
    %478 = vector.multi_reduction <add>, %474, %cst_291 [0] : vector<32x4xf32> to vector<4xf32>
    %479 = vector.shape_cast %478 : vector<4xf32> to vector<1x4xf32>
    %480 = arith.addf %469, %479 : vector<1x4xf32>
    %481 = arith.mulf %474, %474 : vector<32x4xf32>
    %cst_292 = arith.constant dense<0.000000e+00> : vector<4xf32>
    %482 = vector.multi_reduction <add>, %481, %cst_292 [0] : vector<32x4xf32> to vector<4xf32>
    %483 = vector.shape_cast %482 : vector<4xf32> to vector<1x4xf32>
    %484 = arith.addf %473, %483 : vector<1x4xf32>
    %485 = vector.extract_strided_slice %462 {offsets = [80, 0], sizes = [32, 4], strides = [1, 1]} : vector<320x4xf32> to vector<32x4xf32>
    %c0_293 = arith.constant 0 : index
    %c832 = arith.constant 832 : index
    %c0_294 = arith.constant 0 : index
    %486 = vector.load %arg7[%c0_293, %c832, %c0_294] : memref<1x1024x4xf32, #tpu.memory_space<vmem>>, vector<1x32x4xf32>
    %487 = vector.shape_cast %486 : vector<1x32x4xf32> to vector<32x4xf32>
    %488 = vector.shape_cast %485 : vector<32x4xf32> to vector<1x32x4xf32>
    tpu.vector_store %arg7[%c0_293, %c832, %c0_294], %488 {strides = array<i32>} : memref<1x1024x4xf32, #tpu.memory_space<vmem>>, vector<1x32x4xf32>,
    %cst_295 = arith.constant dense<0.000000e+00> : vector<4xf32>
    %489 = vector.multi_reduction <add>, %485, %cst_295 [0] : vector<32x4xf32> to vector<4xf32>
    %490 = vector.shape_cast %489 : vector<4xf32> to vector<1x4xf32>
    %491 = arith.addf %480, %490 : vector<1x4xf32>
    %492 = arith.mulf %485, %485 : vector<32x4xf32>
    %cst_296 = arith.constant dense<0.000000e+00> : vector<4xf32>
    %493 = vector.multi_reduction <add>, %492, %cst_296 [0] : vector<32x4xf32> to vector<4xf32>
    %494 = vector.shape_cast %493 : vector<4xf32> to vector<1x4xf32>
    %495 = arith.addf %484, %494 : vector<1x4xf32>
    %496 = vector.extract_strided_slice %462 {offsets = [120, 0], sizes = [32, 4], strides = [1, 1]} : vector<320x4xf32> to vector<32x4xf32>
    %c0_297 = arith.constant 0 : index
    %c864 = arith.constant 864 : index
    %c0_298 = arith.constant 0 : index
    %497 = vector.load %arg7[%c0_297, %c864, %c0_298] : memref<1x1024x4xf32, #tpu.memory_space<vmem>>, vector<1x32x4xf32>
    %498 = vector.shape_cast %497 : vector<1x32x4xf32> to vector<32x4xf32>
    %499 = vector.shape_cast %496 : vector<32x4xf32> to vector<1x32x4xf32>
    tpu.vector_store %arg7[%c0_297, %c864, %c0_298], %499 {strides = array<i32>} : memref<1x1024x4xf32, #tpu.memory_space<vmem>>, vector<1x32x4xf32>,
    %cst_299 = arith.constant dense<0.000000e+00> : vector<4xf32>
    %500 = vector.multi_reduction <add>, %496, %cst_299 [0] : vector<32x4xf32> to vector<4xf32>
    %501 = vector.shape_cast %500 : vector<4xf32> to vector<1x4xf32>
    %502 = arith.addf %491, %501 : vector<1x4xf32>
    %503 = arith.mulf %496, %496 : vector<32x4xf32>
    %cst_300 = arith.constant dense<0.000000e+00> : vector<4xf32>
    %504 = vector.multi_reduction <add>, %503, %cst_300 [0] : vector<32x4xf32> to vector<4xf32>
    %505 = vector.shape_cast %504 : vector<4xf32> to vector<1x4xf32>
    %506 = arith.addf %495, %505 : vector<1x4xf32>
    %507 = vector.extract_strided_slice %462 {offsets = [160, 0], sizes = [32, 4], strides = [1, 1]} : vector<320x4xf32> to vector<32x4xf32>
    %c0_301 = arith.constant 0 : index
    %c896 = arith.constant 896 : index
    %c0_302 = arith.constant 0 : index
    %508 = vector.load %arg7[%c0_301, %c896, %c0_302] : memref<1x1024x4xf32, #tpu.memory_space<vmem>>, vector<1x32x4xf32>
    %509 = vector.shape_cast %508 : vector<1x32x4xf32> to vector<32x4xf32>
    %510 = vector.shape_cast %507 : vector<32x4xf32> to vector<1x32x4xf32>
    tpu.vector_store %arg7[%c0_301, %c896, %c0_302], %510 {strides = array<i32>} : memref<1x1024x4xf32, #tpu.memory_space<vmem>>, vector<1x32x4xf32>,
    %cst_303 = arith.constant dense<0.000000e+00> : vector<4xf32>
    %511 = vector.multi_reduction <add>, %507, %cst_303 [0] : vector<32x4xf32> to vector<4xf32>
    %512 = vector.shape_cast %511 : vector<4xf32> to vector<1x4xf32>
    %513 = arith.addf %502, %512 : vector<1x4xf32>
    %514 = arith.mulf %507, %507 : vector<32x4xf32>
    %cst_304 = arith.constant dense<0.000000e+00> : vector<4xf32>
    %515 = vector.multi_reduction <add>, %514, %cst_304 [0] : vector<32x4xf32> to vector<4xf32>
    %516 = vector.shape_cast %515 : vector<4xf32> to vector<1x4xf32>
    %517 = arith.addf %506, %516 : vector<1x4xf32>
    %518 = vector.extract_strided_slice %462 {offsets = [200, 0], sizes = [32, 4], strides = [1, 1]} : vector<320x4xf32> to vector<32x4xf32>
    %c0_305 = arith.constant 0 : index
    %c928 = arith.constant 928 : index
    %c0_306 = arith.constant 0 : index
    %519 = vector.load %arg7[%c0_305, %c928, %c0_306] : memref<1x1024x4xf32, #tpu.memory_space<vmem>>, vector<1x32x4xf32>
    %520 = vector.shape_cast %519 : vector<1x32x4xf32> to vector<32x4xf32>
    %521 = vector.shape_cast %518 : vector<32x4xf32> to vector<1x32x4xf32>
    tpu.vector_store %arg7[%c0_305, %c928, %c0_306], %521 {strides = array<i32>} : memref<1x1024x4xf32, #tpu.memory_space<vmem>>, vector<1x32x4xf32>,
    %cst_307 = arith.constant dense<0.000000e+00> : vector<4xf32>
    %522 = vector.multi_reduction <add>, %518, %cst_307 [0] : vector<32x4xf32> to vector<4xf32>
    %523 = vector.shape_cast %522 : vector<4xf32> to vector<1x4xf32>
    %524 = arith.addf %513, %523 : vector<1x4xf32>
    %525 = arith.mulf %518, %518 : vector<32x4xf32>
    %cst_308 = arith.constant dense<0.000000e+00> : vector<4xf32>
    %526 = vector.multi_reduction <add>, %525, %cst_308 [0] : vector<32x4xf32> to vector<4xf32>
    %527 = vector.shape_cast %526 : vector<4xf32> to vector<1x4xf32>
    %528 = arith.addf %517, %527 : vector<1x4xf32>
    %529 = vector.extract_strided_slice %462 {offsets = [240, 0], sizes = [32, 4], strides = [1, 1]} : vector<320x4xf32> to vector<32x4xf32>
    %c0_309 = arith.constant 0 : index
    %c960 = arith.constant 960 : index
    %c0_310 = arith.constant 0 : index
    %530 = vector.load %arg7[%c0_309, %c960, %c0_310] : memref<1x1024x4xf32, #tpu.memory_space<vmem>>, vector<1x32x4xf32>
    %531 = vector.shape_cast %530 : vector<1x32x4xf32> to vector<32x4xf32>
    %532 = vector.shape_cast %529 : vector<32x4xf32> to vector<1x32x4xf32>
    tpu.vector_store %arg7[%c0_309, %c960, %c0_310], %532 {strides = array<i32>} : memref<1x1024x4xf32, #tpu.memory_space<vmem>>, vector<1x32x4xf32>,
    %cst_311 = arith.constant dense<0.000000e+00> : vector<4xf32>
    %533 = vector.multi_reduction <add>, %529, %cst_311 [0] : vector<32x4xf32> to vector<4xf32>
    %534 = vector.shape_cast %533 : vector<4xf32> to vector<1x4xf32>
    %535 = arith.addf %524, %534 : vector<1x4xf32>
    %536 = arith.mulf %529, %529 : vector<32x4xf32>
    %cst_312 = arith.constant dense<0.000000e+00> : vector<4xf32>
    %537 = vector.multi_reduction <add>, %536, %cst_312 [0] : vector<32x4xf32> to vector<4xf32>
    %538 = vector.shape_cast %537 : vector<4xf32> to vector<1x4xf32>
    %539 = arith.addf %528, %538 : vector<1x4xf32>
    %540 = vector.extract_strided_slice %462 {offsets = [280, 0], sizes = [32, 4], strides = [1, 1]} : vector<320x4xf32> to vector<32x4xf32>
    %c0_313 = arith.constant 0 : index
    %c992 = arith.constant 992 : index
    %c0_314 = arith.constant 0 : index
    %541 = vector.load %arg7[%c0_313, %c992, %c0_314] : memref<1x1024x4xf32, #tpu.memory_space<vmem>>, vector<1x32x4xf32>
    %542 = vector.shape_cast %541 : vector<1x32x4xf32> to vector<32x4xf32>
    %543 = vector.shape_cast %540 : vector<32x4xf32> to vector<1x32x4xf32>
    tpu.vector_store %arg7[%c0_313, %c992, %c0_314], %543 {strides = array<i32>} : memref<1x1024x4xf32, #tpu.memory_space<vmem>>, vector<1x32x4xf32>,
    %cst_315 = arith.constant dense<0.000000e+00> : vector<4xf32>
    %544 = vector.multi_reduction <add>, %540, %cst_315 [0] : vector<32x4xf32> to vector<4xf32>
    %545 = vector.shape_cast %544 : vector<4xf32> to vector<1x4xf32>
    %546 = arith.addf %535, %545 : vector<1x4xf32>
    %547 = arith.mulf %540, %540 : vector<32x4xf32>
    %cst_316 = arith.constant dense<0.000000e+00> : vector<4xf32>
    %548 = vector.multi_reduction <add>, %547, %cst_316 [0] : vector<32x4xf32> to vector<4xf32>
    %549 = vector.shape_cast %548 : vector<4xf32> to vector<1x4xf32>
    %550 = arith.addf %539, %549 : vector<1x4xf32>
    %c0_317 = arith.constant 0 : index
    %c0_318 = arith.constant 0 : index
    %c0_319 = arith.constant 0 : index
    %551 = vector.load %arg8[%c0_317, %c0_318, %c0_319] : memref<1x1x4xf32, #tpu.memory_space<vmem>>, vector<1x1x4xf32>
    %552 = vector.shape_cast %551 : vector<1x1x4xf32> to vector<1x4xf32>
    %553 = vector.shape_cast %546 : vector<1x4xf32> to vector<1x1x4xf32>
    tpu.vector_store %arg8[%c0_317, %c0_318, %c0_319], %553 {strides = array<i32>} : memref<1x1x4xf32, #tpu.memory_space<vmem>>, vector<1x1x4xf32>,
    %c0_320 = arith.constant 0 : index
    %c0_321 = arith.constant 0 : index
    %c0_322 = arith.constant 0 : index
    %554 = vector.load %arg9[%c0_320, %c0_321, %c0_322] : memref<1x1x4xf32, #tpu.memory_space<vmem>>, vector<1x1x4xf32>
    %555 = vector.shape_cast %554 : vector<1x1x4xf32> to vector<1x4xf32>
    %556 = vector.shape_cast %550 : vector<1x4xf32> to vector<1x1x4xf32>
    tpu.vector_store %arg9[%c0_320, %c0_321, %c0_322], %556 {strides = array<i32>} : memref<1x1x4xf32, #tpu.memory_space<vmem>>, vector<1x1x4xf32>,
    return
  }
  func.func @transform_0(%arg0: i32) -> (i32, i32, i32) {
    %c0_i32 = arith.constant 0 : i32
    %c0_i32_0 = arith.constant 0 : i32
    %c0_i32_1 = arith.constant 0 : i32
    return %arg0, %c0_i32, %c0_i32_0 : i32, i32, i32
  }
  func.func @transform_1(%arg0: i32) -> (i32, i32) {
    %c0_i32 = arith.constant 0 : i32
    %c0_i32_0 = arith.constant 0 : i32
    %c0_i32_1 = arith.constant 0 : i32
    return %c0_i32, %c0_i32_0 : i32, i32
  }
  func.func @transform_2(%arg0: i32) -> (i32, i32) {
    %c0_i32 = arith.constant 0 : i32
    %c0_i32_0 = arith.constant 0 : i32
    %c0_i32_1 = arith.constant 0 : i32
    return %c0_i32, %c0_i32_0 : i32, i32
  }
  func.func @transform_3(%arg0: i32) -> (i32, i32) {
    %c0_i32 = arith.constant 0 : i32
    %c0_i32_0 = arith.constant 0 : i32
    %c0_i32_1 = arith.constant 0 : i32
    return %c0_i32, %c0_i32_0 : i32, i32
  }
  func.func @transform_4(%arg0: i32) -> (i32, i32, i32) {
    %c0_i32 = arith.constant 0 : i32
    %c0_i32_0 = arith.constant 0 : i32
    %c0_i32_1 = arith.constant 0 : i32
    %c0_i32_2 = arith.constant 0 : i32
    return %c0_i32, %c0_i32_0, %c0_i32_1 : i32, i32, i32
  }
  func.func @transform_5(%arg0: i32) -> (i32, i32) {
    %c0_i32 = arith.constant 0 : i32
    %c0_i32_0 = arith.constant 0 : i32
    %c0_i32_1 = arith.constant 0 : i32
    return %c0_i32, %c0_i32_0 : i32, i32
  }
  func.func @transform_6(%arg0: i32) -> (i32, i32, i32) {
    %c0_i32 = arith.constant 0 : i32
    %c0_i32_0 = arith.constant 0 : i32
    %c0_i32_1 = arith.constant 0 : i32
    return %arg0, %c0_i32, %c0_i32_0 : i32, i32, i32
  }
  func.func @transform_7(%arg0: i32) -> (i32, i32, i32) {
    %c0_i32 = arith.constant 0 : i32
    %c0_i32_0 = arith.constant 0 : i32
    %c0_i32_1 = arith.constant 0 : i32
    return %arg0, %c0_i32, %c0_i32_0 : i32, i32, i32
  }
  func.func @transform_8(%arg0: i32) -> (i32, i32, i32) {
    %c0_i32 = arith.constant 0 : i32
    %c0_i32_0 = arith.constant 0 : i32
    %c0_i32_1 = arith.constant 0 : i32
    return %arg0, %c0_i32, %c0_i32_0 : i32, i32, i32
  }
}

</mosaic_0001>

<bundles_post_ra>
// kernel: tpu_custom_call.1
= control target key start
LH: loop header
LB: loop body
LE: loop exit
PB: predicated region body
PF: predicated region fallthrough
CT: control target
= control target key end

     0   :  { %s28305_s0 = inlined_call_operand.vmem [shape: f32[2,256,8], index: 0, kind: input, shape index: {}]   ;;  %s28306_s1 = inlined_call_operand.vmem [shape: f32[40,16], index: 1, kind: input, shape index: {}]   ;;  %s28307_s2 = inlined_call_operand.vmem [shape: f32[1,8], index: 2, kind: input, shape index: {}]   ;;  %s28308_s3 = inlined_call_operand.vmem [shape: f32[1,8], index: 3, kind: input, shape index: {}]   ;;  %s28309_s4 = inlined_call_operand.vmem [shape: f32[9,8,4], index: 4, kind: input, shape index: {}]   ;;  %s28310_s5 = inlined_call_operand.vmem [shape: f32[1,4], index: 5, kind: input, shape index: {}]   ;;  %s28311_s6 = inlined_call_operand.vmem [shape: f32[2,1024,4], index: 6, kind: output, shape index: {0}]   ;;  %s28312_s7 = inlined_call_operand.hbm [shape: f32[2,1,4], index: 7, kind: output, shape index: {1}]   ;;  %s28313_s8 = inlined_call_operand.hbm [shape: f32[2,1,4], index: 8, kind: output, shape index: {2}]  }
   0x1   :  { %28337 = sst [smem:[#allocation30_spill]] %s28306_s1 }
   0x2   :  { %28338 = sst [smem:[#allocation31_spill]] %s28307_s2 }
   0x3   :  { %14 = vsyncpa [#allocation4], 0 }
   0x4   :  { %16 = vsyncpa [#allocation4 + $0x1], 0 }
   0x5   :  { %17 = vsyncpa [#allocation6], 0 }
   0x6   :  { %19 = vsyncpa [#allocation6 + $0x1], 0  ;;  %s24132_s27 = smov 0   ;;  %s24134_s28 = smov 0  }
   0x7   :  { %s24136_s29 = smov 0   ;;  %s24138_s30 = smov 0  }
   0x8 LB: > { %s24153_s9 = sadd.s32 4294967295, %s24075_s30   ;;  %s17902_s10 = sadd.s32 4294967294, %s24075_s30   ;;  %s24075_s30 = sphi %s24138_s30, %s28416_s30   ;;  %s24071_s29 = sphi %s24136_s29, %s28415_s29   ;;  %s24067_s28 = sphi %s24134_s28, %s28414_s28   ;;  %s24063_s27 = sphi %s24132_s27, %s28413_s27  }
   0x9   : > { %s24157_s11 = sadd.s32 1, %s24075_s30   ;;  %s189_s12 = sadd.s32 1, %s24071_s29 }
   0xa   : > { %s186_s13 = ssub.s32 %s24075_s30, %s24157_s11  ;;  %p199_p0 = scmp.ne.s32.totalorder %s24071_s29, %s24067_s28 }
   0xb   : > { %p187_p1 = scmp.eq.s32.totalorder %s186_s13, 0  ;;  %p200_p2 = scmp.eq.s32.totalorder %s24153_s9, 1 }
   0xc   : > { %p205_p3 = scmp.ne.s32.totalorder %s24067_s28, %s24063_s27  ;;  %p206_p4 = scmp.eq.s32.totalorder %s17902_s10, 1 }
   0xd   : > { %s24168_s14 = scalar_select %p187_p1, %s24071_s29, %s189_s12  }
   0xe   : > { %p24170_p5 = por %p200_p2, %p199_p0  ;;  %p24174_p6 = por %p206_p4, %p205_p3 }
   0xf   : > { %p17905_p7 = scmp.ge.s32.totalorder %s24075_s30, 1  ;;  %p273_p8 = scmp.lt.s32.totalorder %s24075_s30, 3 }
  0x11   : > { %p274_p9 = pnand %p17905_p7, %p273_p8 }
  0x13   : > { %277 = sbr.rel (%p274_p9) target bundleno = 2044 (0x7fc), region = 44 }
  0x1a   : > { %s24181_s17 = sand.u32 1, %s24067_s28   ;;  %p315_p10 = scmp.lt.s32.totalorder %s24153_s9, 1  ;;  %vm325_vm0 = vcmask 64512   ;;  %v24081_v2 = vmov 0.0   ;;  %v24232_v7 = vld [vmem:[%s28308_s3] ss:$0 sm:$0xff] }
  0x1b   : > { %s28341_s1 = sld [smem:[#allocation30_spill]]  ;;  %326 = vst.msk [vmem:[#allocation2] sm:$0xff] %vm325_vm0, %v24081_v2  ;;  %327 = vst.msk [vmem:[#allocation2 + $0x8] sm:$0xff] %vm325_vm0, %v24081_v2  ;;  %s28342_s2 = sld [smem:[#allocation31_spill]] }
  0x1c   : > { %328 = vst.msk [vmem:[#allocation2 + $0x10] sm:$0xff] %vm325_vm0, %v24081_v2  ;;  %329 = vst.msk [vmem:[#allocation2 + $0x18] sm:$0xff] %vm325_vm0, %v24081_v2  ;;  %s316_s12 = scalar_select %p315_p10, %s24153_s9, 1 }
  0x1d   : > { %330 = vst.msk [vmem:[#allocation2 + $0x20] sm:$0xff] %vm325_vm0, %v24081_v2  ;;  %331 = vst.msk [vmem:[#allocation2 + $0x528] sm:$0xff] %vm325_vm0, %v24081_v2  ;;  %s308_s13 = scalar_lea.vmem [#allocation3], %s24181_s17  ;;  %s314_s18 = scalar_lea.vmem [#allocation5], %s24181_s17 }
  0x1e   : > { %332 = vst.msk [vmem:[#allocation2 + $0x530] sm:$0xff] %vm325_vm0, %v24081_v2  ;;  %333 = vst.msk [vmem:[#allocation2 + $0x538] sm:$0xff] %vm325_vm0, %v24081_v2  ;;  %s19409_s21 = sshll.u32 %s316_s12, 8  ;;  %s19410_s22 = sshll.u32 %s316_s12, 10 }
  0x1f   : > { %334 = vst.msk [vmem:[#allocation2 + $0x540] sm:$0xff] %vm325_vm0, %v24081_v2  ;;  %335 = vst.msk [vmem:[#allocation2 + $0x548] sm:$0xff] %vm325_vm0, %v24081_v2  ;;  %s24237_s25 = scalar_lea.vmem %s28305_s0, %s19409_s21 }
  0x20   : > { %336 = vst.msk [vmem:[#allocation2 + $0x550] sm:$0xff] %vm325_vm0, %v24081_v2  ;;  %337 = vst.msk [vmem:[#allocation2 + $0x558] sm:$0xff] %vm325_vm0, %v24081_v2 }
  0x21   : > { %v24187_v0 = vld [vmem:[%s28341_s1] sm:$0xff]  ;;  %v24192_v1 = vld [vmem:[%s28341_s1 + $0x8] sm:$0xff]  ;;  %v24209_v3 = vld [vmem:[%s28341_s1 + $0x10] sm:$0xff] }
  0x22   : > { %v24214_v4 = vld [vmem:[%s28341_s1 + $0x18] sm:$0xff]  ;;  %v24219_v5 = vld [vmem:[%s28341_s1 + $0x20] sm:$0xff]  ;;  %s24242_s1 = scalar_lea.vmem %s28311_s6, %s19410_s22 }
  0x23   : > { %v24227_v6 = vld [vmem:[%s28342_s2] ss:$0 sm:$0xff]  ;;  %s24246_s2 = smov 0  }
  0x24 LB: >> { %v24082_v8 = vmov 0.0|0.0   ;;  %s17912_s12 = sshll.u32 %s24079_s2, 4  ;;  %vm24083_vm1 = vmmov 0   ;;  %v24084_v9 = vmov 0.0   ;;  %vm376_vm2 = vcmask 130048   ;;  %s17919_s20 = smul.u32 80, %s24079_s2  ;;  %s24079_s2 = sphi %s24246_s2, %s365_s2  }
  0x25   : >> { %23145 = vmatprep.subr.bf16.mxu0 %v24082_v8  ;;  %23148 = vmatprep.subr.bf16.mxu1 %v24082_v8  ;;  %s367_s19 = scalar_lea.vmem %s24237_s25, %s17912_s12  ;;  %s365_s2 = sadd.s32 1, %s24079_s2  }
  0x26   : >> { %20898 = vmatprep.mubr.msk.f32.mxu0 %vm24083_vm1, %v24084_v9  ;;  %20907 = vmatprep.mubr.msk.f32.mxu1 %vm24083_vm1, %v24084_v9  ;;  %v368_v10 = vld [vmem:[%s367_s19] sm:$0xff]  ;;  %v369_v11 = vld [vmem:[%s367_s19 + $0x8] sm:$0xff]  ;;  %s17836_s21 = scalar_lea.vmem [#allocation2], %s17919_s20  ;;  %p362_p11 = scmp.ge.s32.totalorder %s365_s2, 16  }
  0x27   : >> { %v370_v12 = vmul.f32 %v24227_v6, %v368_v10  ;;  %v371_v13 = vmul.f32 %v24227_v6, %v369_v11  ;;  %v17932_v29 = vld [vmem:[%s28309_s4 + $0x8] sm:$0xff] (%p362_p11)  ;;  %v539_v33 = vld [vmem:[%s28309_s4] sm:$0xff] (%p362_p11)  ;;  %v24317_v61 = vld [vmem:[%s28309_s4 + $0x10] sm:$0xff] (%p362_p11)  ;;  %vm4531_vm3 = vcmask (%p362_p11), 31744   ;;  %s17766_s22 = sshll.u32 (%p362_p11), %s308_s13, 4  ;;  %vm17738_vm4 = vcmask (%p362_p11), 24576   ;;  %s28229_s22 = int_to_ptr.vmem [resolvable:$true] %s17766_s22 }
  0x28   : > { %s17779_s23 = sshll.u32 (%p362_p11), %s314_s18, 4  ;;  %s17747_s12 = scalar_lea.sflag (%p362_p11), [#allocation4], %s24181_s17  ;;  %s28239_s23 = int_to_ptr.vmem [resolvable:$true] %s17779_s23 }
  0x29   : >> { %v372_v14 = vadd.f32 %v24232_v7, %v370_v12  ;;  %v373_v15 = vadd.f32 %v24232_v7, %v371_v13  ;;  %s23977_s19 = scalar_lea.vmem (%p362_p11), %s28229_s22, 16  ;;  %s24085_s20 = smov (%p362_p11), [#allocation3]  }
  0x2a   : > { %p23978_p12 = scmp.ne.s32.totalorder (%p362_p11), %s28229_s22, %s23977_s19 }
  0x2b   : >> { %v374_v16 = vmax.f32 %v372_v14, 0.0  ;;  %v375_v17 = vmax.f32 %v373_v15, 0.0 }
  0x2c   : > { %p23979_p13 = pnand (%p362_p11), %p23978_p12, %p24170_p5 }
  0x2d   : >> { %v23146_v18 = vpack.c.bf16 %v375_v17, %v374_v16 }
  0x2e   : > { %p23980_p0 = pneg (%p362_p11), %p23979_p13 }
  0x2f   : >> { %23147 = vmatpush3.bf16.msra.mxu0 %v23146_v18  ;;  %23149 = vmatpush3.bf16.msra.mxu1 %v23146_v18 }
  0x30   : > { %20913 = vmatprep.subr.mxu0 (%p362_p11), %v17932_v29  ;;  %21471 = vmatprep.subr.mxu1 (%p362_p11), %v17932_v29 }
  0x32   : >> { %20899 = vmatmul.mubr.msk.f32.vlgmr.msra.gmra.mrb[0].mxu0 %vm376_vm2, %v24187_v0  ;;  %20908 = vmatmul.mubr.msk.f32.vlgmr.msra.gmra.mrb[0].mxu1 %vm376_vm2, %v24214_v4 }
  0x33   : >> { %20901 = vmatprep.mubr.msk.f32.mxu0 %vm24083_vm1, %v24084_v9  ;;  %20910 = vmatprep.mubr.msk.f32.mxu1 %vm24083_vm1, %v24084_v9 }
  0x34   : > { %20914 = vmatpush3.msra.mxu0 (%p362_p11), %v17932_v29  ;;  %21472 = vmatpush3.msra.mxu1 (%p362_p11), %v17932_v29 }
  0x35   : > { %20975 = vmatprep.subr.mxu0 (%p362_p11), %v539_v33  ;;  %21533 = vmatprep.subr.mxu1 (%p362_p11), %v539_v33 }
  0x36   : >> { %20902 = vmatmul.mubr.msk.f32.gmra.mrb[2].mxu0 %vm376_vm2, %v24192_v1  ;;  %20911 = vmatmul.mubr.msk.f32.gmra.mrb[2].mxu1 %vm376_vm2, %v24219_v5 }
  0x37   : >> { %20904 = vmatprep.mubr.msk.f32.mxu0 %vm24083_vm1, %v24084_v9 }
  0x3a   : >> { %20905 = vmatmul.mubr.msk.f32.gmra.mrb[4].mxu0 %vm376_vm2, %v24209_v3 }
 0x105   : >> { %v458_v19 = vpop.f32.mrb[0].mxu0  ;;  %v473_v20 = vpop.f32.mrb[0].mxu1 }
 0x106   : >> { %17920 = vst.msk [vmem:[%s17836_s21 + $0x28] sm:$0xff] %vm325_vm0, %v458_v19  ;;  %17927 = vst.msk [vmem:[%s17836_s21 + $0x50] sm:$0xff] %vm325_vm0, %v458_v19  ;;  %v20900_v21 = vpop.f32.mrb[1].mxu0  ;;  %v20909_v22 = vpop.f32.mrb[1].mxu1 }
 0x107   : >> { %17923 = vst.msk [vmem:[%s17836_s21 + $0x40] sm:$0xff] %vm325_vm0, %v473_v20  ;;  %17930 = vst.msk [vmem:[%s17836_s21 + $0x68] sm:$0xff] %vm325_vm0, %v473_v20 }
 0x108   : > { %364 = sbr.rel (!%p362_p11) target bundleno = 36 (0x24), region = 126 }
 0x109   : >> { %v463_v23 = vpop.f32.mrb[2].mxu0  ;;  %v478_v24 = vpop.f32.mrb[2].mxu1 }
 0x10a   : >> { %17921 = vst.msk [vmem:[%s17836_s21 + $0x30] sm:$0xff] %vm325_vm0, %v463_v23  ;;  %17928 = vst.msk [vmem:[%s17836_s21 + $0x58] sm:$0xff] %vm325_vm0, %v463_v23  ;;  %v20903_v25 = vpop.f32.mrb[3].mxu0  ;;  %v20912_v26 = vpop.f32.mrb[3].mxu1 }
 0x10b   : >> { %17924 = vst.msk [vmem:[%s17836_s21 + $0x48] sm:$0xff] %vm325_vm0, %v478_v24  ;;  %17931 = vst.msk [vmem:[%s17836_s21 + $0x70] sm:$0xff] %vm325_vm0, %v478_v24 }
 0x10d   : >> { %v468_v27 = vpop.f32.mrb[4].mxu0 }
 0x10e   : >> { %17922 = vst.msk [vmem:[%s17836_s21 + $0x38] sm:$0xff] %vm325_vm0, %v468_v27  ;;  %17929 = vst.msk [vmem:[%s17836_s21 + $0x60] sm:$0xff] %vm325_vm0, %v468_v27  ;;  %v20906_v28 = vpop.f32.mrb[5].mxu0  ;;  %s23981_s21 = sshll.u32 (%p362_p11), %s24085_s20, 4  ;;  %s23982_s21 = int_to_ptr.vmem [resolvable:$false] %s23981_s21 }
 0x10f   : > { %s23983_s24 = scalar_lea.vmem %s23982_s21, 32  ;;  %p23984_p1 = scmp.lt.s32.totalorder %s28229_s22, %s23982_s21 }
 0x110   : > { %p23985_p2 = scmp.lt.s32.totalorder %s23983_s24, %s23977_s19 }
 0x112   : > { %p23986_p3 = por %p23985_p2, %p23984_p1 }
 0x114   : > { %p23987_p4 = pnand %p23986_p3, %p23980_p0 }
 0x115   : > { %v540_v30 = vld [vmem:[#allocation2 + $0x8] sm:$0xff]  ;;  %v541_v32 = vld [vmem:[#allocation2 + $0x10] sm:$0xff]  ;;  %v542_v35 = vld [vmem:[#allocation2 + $0x18] sm:$0xff] }
 0x116   : > { %v4861_v31 = vld [vmem:[#allocation2 + $0x148] sm:$0xff]  ;;  %20915 = vmatprep.mubr.msk.f32.mxu0 %vm325_vm0, %v540_v30  ;;  %v4862_v34 = vld [vmem:[#allocation2 + $0x150] sm:$0xff]  ;;  %v4863_v36 = vld [vmem:[#allocation2 + $0x158] sm:$0xff] }
 0x117   : > { %21473 = vmatprep.mubr.msk.f32.mxu1 %vm325_vm0, %v4861_v31  ;;  %20916 = vmatmul.mubr.msk.f32.vlgmr.msra.gmra.mrb[0].mxu0 %vm325_vm0, %v541_v32  ;;  %v543_v37 = vld [vmem:[#allocation2 + $0x20] sm:$0xff]  ;;  %v544_v39 = vld [vmem:[#allocation2 + $0x28] sm:$0xff]  ;;  %v545_v41 = vld [vmem:[#allocation2 + $0x30] sm:$0xff] }
 0x118   : > { %21474 = vmatmul.mubr.msk.f32.vlgmr.msra.gmra.mrb[0].mxu1 %vm325_vm0, %v4862_v34  ;;  %20976 = vmatpush3.msra.mxu0 %v539_v33  ;;  %v4864_v38 = vld [vmem:[#allocation2 + $0x160] sm:$0xff]  ;;  %v4865_v40 = vld [vmem:[#allocation2 + $0x168] sm:$0xff]  ;;  %v4866_v42 = vld [vmem:[#allocation2 + $0x170] sm:$0xff] }
 0x119   : > { %20918 = vmatprep.mubr.msk.f32.mxu0 %vm325_vm0, %v542_v35  ;;  %21476 = vmatprep.mubr.msk.f32.mxu1 %vm325_vm0, %v4863_v36  ;;  %v546_v43 = vld [vmem:[#allocation2 + $0x38] sm:$0xff]  ;;  %v547_v45 = vld [vmem:[#allocation2 + $0x40] sm:$0xff]  ;;  %v548_v47 = vld [vmem:[#allocation2 + $0x48] sm:$0xff] }
 0x11a   : > { %21534 = vmatpush3.msra.mxu1 %v539_v33  ;;  %v4867_v44 = vld [vmem:[#allocation2 + $0x178] sm:$0xff]  ;;  %v4868_v46 = vld [vmem:[#allocation2 + $0x180] sm:$0xff]  ;;  %v4869_v48 = vld [vmem:[#allocation2 + $0x188] sm:$0xff]  ;;  %21037 = vmatprep.subr.mxu0 %v24317_v61 }
 0x11b   : > { %20919 = vmatmul.mubr.msk.f32.gmra.mrb[2].mxu0 %vm325_vm0, %v543_v37  ;;  %v549_v49 = vld [vmem:[#allocation2 + $0x50] sm:$0xff]  ;;  %v550_v51 = vld [vmem:[#allocation2 + $0x58] sm:$0xff]  ;;  %v551_v53 = vld [vmem:[#allocation2 + $0x60] sm:$0xff]  ;;  %21595 = vmatprep.subr.mxu1 %v24317_v61 }
 0x11c   : > { %21477 = vmatmul.mubr.msk.f32.gmra.mrb[2].mxu1 %vm325_vm0, %v4864_v38  ;;  %20921 = vmatprep.mubr.msk.f32.mxu0 %vm325_vm0, %v544_v39  ;;  %v4870_v50 = vld [vmem:[#allocation2 + $0x190] sm:$0xff]  ;;  %v4871_v52 = vld [vmem:[#allocation2 + $0x198] sm:$0xff]  ;;  %v4872_v54 = vld [vmem:[#allocation2 + $0x1a0] sm:$0xff] }
 0x11d   : > { %21479 = vmatprep.mubr.msk.f32.mxu1 %vm325_vm0, %v4865_v40  ;;  %v552_v55 = vld [vmem:[#allocation2 + $0x68] sm:$0xff]  ;;  %v553_v57 = vld [vmem:[#allocation2 + $0x70] sm:$0xff]  ;;  %v554_v59 = vld [vmem:[#allocation2 + $0x78] sm:$0xff] }
 0x11e   : > { %v4873_v56 = vld [vmem:[#allocation2 + $0x1a8] sm:$0xff]  ;;  %v4874_v58 = vld [vmem:[#allocation2 + $0x1b0] sm:$0xff]  ;;  %v4875_v60 = vld [vmem:[#allocation2 + $0x1b8] sm:$0xff] }
 0x11f   : > { %20922 = vmatmul.mubr.msk.f32.gmra.mrb[4].mxu0 %vm325_vm0, %v545_v41  ;;  %v555_v62 = vld [vmem:[#allocation2 + $0x80] sm:$0xff]  ;;  %v556_v0 = vld [vmem:[#allocation2 + $0x88] sm:$0xff]  ;;  %v557_v2 = vld [vmem:[#allocation2 + $0x90] sm:$0xff] }
 0x120   : > { %21480 = vmatmul.mubr.msk.f32.gmra.mrb[4].mxu1 %vm325_vm0, %v4866_v42  ;;  %20924 = vmatprep.mubr.msk.f32.mxu0 %vm325_vm0, %v546_v43  ;;  %v4876_v63 = vld [vmem:[#allocation2 + $0x1c0] sm:$0xff]  ;;  %v4877_v1 = vld [vmem:[#allocation2 + $0x1c8] sm:$0xff]  ;;  %v4878_v3 = vld [vmem:[#allocation2 + $0x1d0] sm:$0xff] }
 0x121   : > { %21482 = vmatprep.mubr.msk.f32.mxu1 %vm325_vm0, %v4867_v44  ;;  %v558_v4 = vld [vmem:[#allocation2 + $0x98] sm:$0xff]  ;;  %v559_v6 = vld [vmem:[#allocation2 + $0xa0] sm:$0xff]  ;;  %v560_v8 = vld [vmem:[#allocation2 + $0xa8] sm:$0xff] }
 0x122   : > { %v4879_v5 = vld [vmem:[#allocation2 + $0x1d8] sm:$0xff]  ;;  %v4880_v7 = vld [vmem:[#allocation2 + $0x1e0] sm:$0xff]  ;;  %v4881_v9 = vld [vmem:[#allocation2 + $0x1e8] sm:$0xff] }
 0x123   : > { %20925 = vmatmul.mubr.msk.f32.gmra.mrb[6].mxu0 %vm325_vm0, %v547_v45  ;;  %v561_v10 = vld [vmem:[#allocation2 + $0xb0] sm:$0xff]  ;;  %v562_v12 = vld [vmem:[#allocation2 + $0xb8] sm:$0xff]  ;;  %v563_v14 = vld [vmem:[#allocation2 + $0xc0] sm:$0xff] }
 0x124   : > { %21483 = vmatmul.mubr.msk.f32.gmra.mrb[6].mxu1 %vm325_vm0, %v4868_v46  ;;  %20927 = vmatprep.mubr.msk.f32.mxu0 %vm325_vm0, %v548_v47  ;;  %v4882_v11 = vld [vmem:[#allocation2 + $0x1f0] sm:$0xff]  ;;  %v4883_v13 = vld [vmem:[#allocation2 + $0x1f8] sm:$0xff]  ;;  %v4884_v15 = vld [vmem:[#allocation2 + $0x200] sm:$0xff] }
 0x125   : > { %21485 = vmatprep.mubr.msk.f32.mxu1 %vm325_vm0, %v4869_v48  ;;  %v564_v16 = vld [vmem:[#allocation2 + $0xc8] sm:$0xff]  ;;  %v565_v18 = vld [vmem:[#allocation2 + $0xd0] sm:$0xff]  ;;  %v566_v20 = vld [vmem:[#allocation2 + $0xd8] sm:$0xff] }
 0x126   : > { %v4885_v17 = vld [vmem:[#allocation2 + $0x208] sm:$0xff]  ;;  %v4886_v19 = vld [vmem:[#allocation2 + $0x210] sm:$0xff]  ;;  %v4887_v21 = vld [vmem:[#allocation2 + $0x218] sm:$0xff] }
 0x127   : > { %20928 = vmatmul.mubr.msk.f32.gmra.mrb[8].mxu0 %vm325_vm0, %v549_v49  ;;  %v567_v22 = vld [vmem:[#allocation2 + $0xe0] sm:$0xff]  ;;  %v568_v24 = vld [vmem:[#allocation2 + $0xe8] sm:$0xff]  ;;  %v569_v26 = vld [vmem:[#allocation2 + $0xf0] sm:$0xff] }
 0x128   : > { %21486 = vmatmul.mubr.msk.f32.gmra.mrb[8].mxu1 %vm325_vm0, %v4870_v50  ;;  %20930 = vmatprep.mubr.msk.f32.mxu0 %vm325_vm0, %v550_v51  ;;  %v4888_v23 = vld [vmem:[#allocation2 + $0x220] sm:$0xff]  ;;  %v4889_v25 = vld [vmem:[#allocation2 + $0x228] sm:$0xff]  ;;  %v4890_v27 = vld [vmem:[#allocation2 + $0x230] sm:$0xff] }
 0x129   : > { %21488 = vmatprep.mubr.msk.f32.mxu1 %vm325_vm0, %v4871_v52  ;;  %v570_v28 = vld [vmem:[#allocation2 + $0xf8] sm:$0xff]  ;;  %v571_v30 = vld [vmem:[#allocation2 + $0x100] sm:$0xff]  ;;  %v572_v32 = vld [vmem:[#allocation2 + $0x108] sm:$0xff] }
 0x12a   : > { %v4891_v29 = vld [vmem:[#allocation2 + $0x238] sm:$0xff]  ;;  %v4892_v31 = vld [vmem:[#allocation2 + $0x240] sm:$0xff]  ;;  %v4893_v33 = vld [vmem:[#allocation2 + $0x248] sm:$0xff] }
 0x12b   : > { %20931 = vmatmul.mubr.msk.f32.gmra.mrb[10].mxu0 %vm325_vm0, %v551_v53  ;;  %v573_v34 = vld [vmem:[#allocation2 + $0x110] sm:$0xff]  ;;  %v574_v36 = vld [vmem:[#allocation2 + $0x118] sm:$0xff]  ;;  %v575_v38 = vld [vmem:[#allocation2 + $0x120] sm:$0xff] }
 0x12c   : > { %21489 = vmatmul.mubr.msk.f32.gmra.mrb[10].mxu1 %vm325_vm0, %v4872_v54  ;;  %20933 = vmatprep.mubr.msk.f32.mxu0 %vm325_vm0, %v552_v55  ;;  %v4894_v35 = vld [vmem:[#allocation2 + $0x250] sm:$0xff]  ;;  %v4895_v37 = vld [vmem:[#allocation2 + $0x258] sm:$0xff]  ;;  %v4896_v39 = vld [vmem:[#allocation2 + $0x260] sm:$0xff] }
 0x12d   : > { %21491 = vmatprep.mubr.msk.f32.mxu1 %vm325_vm0, %v4873_v56  ;;  %v576_v40 = vld [vmem:[#allocation2 + $0x128] sm:$0xff]  ;;  %v577_v42 = vld [vmem:[#allocation2 + $0x130] sm:$0xff]  ;;  %v578_v44 = vld [vmem:[#allocation2 + $0x138] sm:$0xff] }
 0x12e   : > { %v4897_v41 = vld [vmem:[#allocation2 + $0x268] sm:$0xff]  ;;  %v4898_v43 = vld [vmem:[#allocation2 + $0x270] sm:$0xff]  ;;  %v4899_v45 = vld [vmem:[#allocation2 + $0x278] sm:$0xff] }
 0x12f   : > { %20934 = vmatmul.mubr.msk.f32.gmra.mrb[12].mxu0 %vm325_vm0, %v553_v57  ;;  %v579_v46 = vld [vmem:[#allocation2 + $0x140] sm:$0xff]  ;;  %v500_v50 = vld [vmem:[#allocation2 + $0xf] sm:$0xff]  ;;  %v501_v52 = vld [vmem:[#allocation2 + $0x17] sm:$0xff] }
 0x130   : > { %21492 = vmatmul.mubr.msk.f32.gmra.mrb[12].mxu1 %vm325_vm0, %v4874_v58  ;;  %20936 = vmatprep.mubr.msk.f32.mxu0 %vm325_vm0, %v554_v59  ;;  %v4900_v47 = vld [vmem:[#allocation2 + $0x280] sm:$0xff]  ;;  %v4821_v51 = vld [vmem:[#allocation2 + $0x14f] sm:$0xff]  ;;  %v4822_v53 = vld [vmem:[#allocation2 + $0x157] sm:$0xff] }
 0x131   : > { %21494 = vmatprep.mubr.msk.f32.mxu1 %vm325_vm0, %v4875_v60  ;;  %v499_v48 = vld [vmem:[#allocation2 + $0x7] sm:$0xff]  ;;  %v24380_v54 = vld [vmem:[%s28309_s4 + $0x18] sm:$0xff]  ;;  %v24392_v59 = vld [vmem:[#allocation2 + $0x2f] sm:$0xff] }
 0x132   : > { %v4820_v49 = vld [vmem:[#allocation2 + $0x147] sm:$0xff]  ;;  %v502_v55 = vld [vmem:[#allocation2 + $0x1f] sm:$0xff]  ;;  %v24395_v60 = vld [vmem:[#allocation2 + $0x16f] sm:$0xff] }
 0x133   : > { %20937 = vmatmul.mubr.msk.f32.gmra.mrb[14].mxu0 %vm325_vm0, %v555_v62  ;;  %v4823_v56 = vld [vmem:[#allocation2 + $0x15f] sm:$0xff]  ;;  %v503_v57 = vld [vmem:[#allocation2 + $0x27] sm:$0xff]  ;;  %v24397_v62 = vld [vmem:[#allocation2 + $0x37] sm:$0xff] }
 0x134   : > { %21495 = vmatmul.mubr.msk.f32.gmra.mrb[14].mxu1 %vm325_vm0, %v4876_v63  ;;  %20939 = vmatprep.mubr.msk.f32.mxu0 %vm325_vm0, %v556_v0  ;;  %v4824_v58 = vld [vmem:[#allocation2 + $0x167] sm:$0xff]  ;;  %v24399_v63 = vld [vmem:[#allocation2 + $0x177] sm:$0xff]  ;;  %v24411_v0 = vld [vmem:[#allocation2 + $0x17f] sm:$0xff] }
 0x135   : > { %21497 = vmatprep.mubr.msk.f32.mxu1 %vm325_vm0, %v4877_v1  ;;  %v24413_v1 = vld [vmem:[#allocation2 + $0x47] sm:$0xff] }
 0x137   : > { %20940 = vmatmul.mubr.msk.f32.gmra.mrb[16].mxu0 %vm325_vm0, %v557_v2  ;;  %v24415_v2 = vld [vmem:[#allocation2 + $0x187] sm:$0xff] }
 0x138   : > { %21498 = vmatmul.mubr.msk.f32.gmra.mrb[16].mxu1 %vm325_vm0, %v4878_v3  ;;  %20942 = vmatprep.mubr.msk.f32.mxu0 %vm325_vm0, %v558_v4  ;;  %v24423_v3 = vld [vmem:[#allocation2 + $0x4f] sm:$0xff] }
 0x139   : > { %21500 = vmatprep.mubr.msk.f32.mxu1 %vm325_vm0, %v4879_v5  ;;  %v24427_v4 = vld [vmem:[#allocation2 + $0x18f] sm:$0xff]  ;;  %v24429_v5 = vld [vmem:[#allocation2 + $0x57] sm:$0xff] }
 0x13b   : > { %20943 = vmatmul.mubr.msk.f32.gmra.mrb[18].mxu0 %vm325_vm0, %v559_v6  ;;  %v24431_v6 = vld [vmem:[#allocation2 + $0x197] sm:$0xff] }
 0x13c   : > { %21501 = vmatmul.mubr.msk.f32.gmra.mrb[18].mxu1 %vm325_vm0, %v4880_v7  ;;  %20945 = vmatprep.mubr.msk.f32.mxu0 %vm325_vm0, %v560_v8  ;;  %v24439_v7 = vld [vmem:[#allocation2 + $0x5f] sm:$0xff] }
 0x13d   : > { %21503 = vmatprep.mubr.msk.f32.mxu1 %vm325_vm0, %v4881_v9  ;;  %v24443_v8 = vld [vmem:[#allocation2 + $0x19f] sm:$0xff]  ;;  %v24445_v9 = vld [vmem:[#allocation2 + $0x67] sm:$0xff] }
 0x13f   : > { %20946 = vmatmul.mubr.msk.f32.gmra.mrb[20].mxu0 %vm325_vm0, %v561_v10  ;;  %v24447_v10 = vld [vmem:[#allocation2 + $0x1a7] sm:$0xff] }
 0x140   : > { %21504 = vmatmul.mubr.msk.f32.gmra.mrb[20].mxu1 %vm325_vm0, %v4882_v11  ;;  %20948 = vmatprep.mubr.msk.f32.mxu0 %vm325_vm0, %v562_v12  ;;  %v24455_v11 = vld [vmem:[#allocation2 + $0x6f] sm:$0xff] }
 0x141   : > { %21506 = vmatprep.mubr.msk.f32.mxu1 %vm325_vm0, %v4883_v13  ;;  %v24459_v12 = vld [vmem:[#allocation2 + $0x1af] sm:$0xff]  ;;  %v24461_v13 = vld [vmem:[#allocation2 + $0x77] sm:$0xff] }
 0x143   : > { %20949 = vmatmul.mubr.msk.f32.gmra.mrb[22].mxu0 %vm325_vm0, %v563_v14  ;;  %v24463_v14 = vld [vmem:[#allocation2 + $0x1b7] sm:$0xff] }
 0x144   : > { %21507 = vmatmul.mubr.msk.f32.gmra.mrb[22].mxu1 %vm325_vm0, %v4884_v15  ;;  %20951 = vmatprep.mubr.msk.f32.mxu0 %vm325_vm0, %v564_v16  ;;  %v24471_v15 = vld [vmem:[#allocation2 + $0x7f] sm:$0xff] }
 0x145   : > { %21509 = vmatprep.mubr.msk.f32.mxu1 %vm325_vm0, %v4885_v17  ;;  %v24475_v16 = vld [vmem:[#allocation2 + $0x1bf] sm:$0xff]  ;;  %v24477_v17 = vld [vmem:[#allocation2 + $0x87] sm:$0xff] }
 0x147   : > { %20952 = vmatmul.mubr.msk.f32.gmra.mrb[24].mxu0 %vm325_vm0, %v565_v18  ;;  %v24479_v18 = vld [vmem:[#allocation2 + $0x1c7] sm:$0xff] }
 0x148   : > { %21510 = vmatmul.mubr.msk.f32.gmra.mrb[24].mxu1 %vm325_vm0, %v4886_v19  ;;  %20954 = vmatprep.mubr.msk.f32.mxu0 %vm325_vm0, %v566_v20  ;;  %v24487_v19 = vld [vmem:[#allocation2 + $0x8f] sm:$0xff] }
 0x149   : > { %21512 = vmatprep.mubr.msk.f32.mxu1 %vm325_vm0, %v4887_v21  ;;  %v24491_v20 = vld [vmem:[#allocation2 + $0x1cf] sm:$0xff]  ;;  %v24493_v21 = vld [vmem:[#allocation2 + $0x97] sm:$0xff] }
 0x14b   : > { %20955 = vmatmul.mubr.msk.f32.gmra.mrb[26].mxu0 %vm325_vm0, %v567_v22  ;;  %v24495_v22 = vld [vmem:[#allocation2 + $0x1d7] sm:$0xff] }
 0x14c   : > { %21513 = vmatmul.mubr.msk.f32.gmra.mrb[26].mxu1 %vm325_vm0, %v4888_v23  ;;  %20957 = vmatprep.mubr.msk.f32.mxu0 %vm325_vm0, %v568_v24  ;;  %v24503_v23 = vld [vmem:[#allocation2 + $0x9f] sm:$0xff] }
 0x14d   : > { %21515 = vmatprep.mubr.msk.f32.mxu1 %vm325_vm0, %v4889_v25  ;;  %v24507_v24 = vld [vmem:[#allocation2 + $0x1df] sm:$0xff]  ;;  %v24509_v25 = vld [vmem:[#allocation2 + $0xa7] sm:$0xff] }
 0x14f   : > { %20958 = vmatmul.mubr.msk.f32.gmra.mrb[28].mxu0 %vm325_vm0, %v569_v26  ;;  %v24511_v26 = vld [vmem:[#allocation2 + $0x1e7] sm:$0xff] }
 0x150   : > { %21516 = vmatmul.mubr.msk.f32.gmra.mrb[28].mxu1 %vm325_vm0, %v4890_v27  ;;  %20960 = vmatprep.mubr.msk.f32.mxu0 %vm325_vm0, %v570_v28  ;;  %v24519_v27 = vld [vmem:[#allocation2 + $0xaf] sm:$0xff] }
 0x151   : > { %21518 = vmatprep.mubr.msk.f32.mxu1 %vm325_vm0, %v4891_v29  ;;  %v24523_v28 = vld [vmem:[#allocation2 + $0x1ef] sm:$0xff]  ;;  %v24525_v29 = vld [vmem:[#allocation2 + $0xb7] sm:$0xff] }
 0x153   : > { %20961 = vmatmul.mubr.msk.f32.gmra.mrb[30].mxu0 %vm325_vm0, %v571_v30  ;;  %v24527_v30 = vld [vmem:[#allocation2 + $0x1f7] sm:$0xff] }
 0x154   : > { %21519 = vmatmul.mubr.msk.f32.gmra.mrb[30].mxu1 %vm325_vm0, %v4892_v31  ;;  %20963 = vmatprep.mubr.msk.f32.mxu0 %vm325_vm0, %v572_v32  ;;  %v24535_v31 = vld [vmem:[#allocation2 + $0xbf] sm:$0xff] }
 0x155   : > { %21521 = vmatprep.mubr.msk.f32.mxu1 %vm325_vm0, %v4893_v33  ;;  %v24539_v32 = vld [vmem:[#allocation2 + $0x1ff] sm:$0xff]  ;;  %v24541_v33 = vld [vmem:[#allocation2 + $0xc7] sm:$0xff] }
 0x157   : > { %20964 = vmatmul.mubr.msk.f32.gmra.mrb[32].mxu0 %vm325_vm0, %v573_v34  ;;  %v24543_v34 = vld [vmem:[#allocation2 + $0x207] sm:$0xff] }
 0x158   : > { %21522 = vmatmul.mubr.msk.f32.gmra.mrb[32].mxu1 %vm325_vm0, %v4894_v35  ;;  %20966 = vmatprep.mubr.msk.f32.mxu0 %vm325_vm0, %v574_v36  ;;  %v24551_v35 = vld [vmem:[#allocation2 + $0xcf] sm:$0xff] }
 0x159   : > { %21524 = vmatprep.mubr.msk.f32.mxu1 %vm325_vm0, %v4895_v37  ;;  %v24555_v36 = vld [vmem:[#allocation2 + $0x20f] sm:$0xff]  ;;  %v24557_v37 = vld [vmem:[#allocation2 + $0xd7] sm:$0xff] }
 0x15b   : > { %20967 = vmatmul.mubr.msk.f32.gmra.mrb[34].mxu0 %vm325_vm0, %v575_v38  ;;  %v24559_v38 = vld [vmem:[#allocation2 + $0x217] sm:$0xff] }
 0x15c   : > { %21525 = vmatmul.mubr.msk.f32.gmra.mrb[34].mxu1 %vm325_vm0, %v4896_v39  ;;  %20969 = vmatprep.mubr.msk.f32.mxu0 %vm325_vm0, %v576_v40  ;;  %v24567_v39 = vld [vmem:[#allocation2 + $0xdf] sm:$0xff] }
 0x15d   : > { %21527 = vmatprep.mubr.msk.f32.mxu1 %vm325_vm0, %v4897_v41  ;;  %v24571_v40 = vld [vmem:[#allocation2 + $0x21f] sm:$0xff]  ;;  %v24573_v41 = vld [vmem:[#allocation2 + $0xe7] sm:$0xff] }
 0x15f   : > { %20970 = vmatmul.mubr.msk.f32.gmra.mrb[36].mxu0 %vm325_vm0, %v577_v42  ;;  %v24575_v42 = vld [vmem:[#allocation2 + $0x227] sm:$0xff] }
 0x160   : > { %21528 = vmatmul.mubr.msk.f32.gmra.mrb[36].mxu1 %vm325_vm0, %v4898_v43  ;;  %20972 = vmatprep.mubr.msk.f32.mxu0 %vm325_vm0, %v578_v44  ;;  %v24583_v43 = vld [vmem:[#allocation2 + $0xef] sm:$0xff] }
 0x161   : > { %21530 = vmatprep.mubr.msk.f32.mxu1 %vm325_vm0, %v4899_v45  ;;  %v24587_v44 = vld [vmem:[#allocation2 + $0x22f] sm:$0xff]  ;;  %v24589_v45 = vld [vmem:[#allocation2 + $0xf7] sm:$0xff] }
 0x163   : > { %20973 = vmatmul.mubr.msk.f32.gmra.mrb[38].mxu0 %vm325_vm0, %v579_v46  ;;  %v24591_v46 = vld [vmem:[#allocation2 + $0x237] sm:$0xff] }
 0x164   : > { %21531 = vmatmul.mubr.msk.f32.gmra.mrb[38].mxu1 %vm325_vm0, %v4900_v47  ;;  %20977 = vmatprep.mubr.msk.f32.mxu0 %vm325_vm0, %v499_v48  ;;  %28343 = vst [vmem:[#allocation9_spill] sm:$0xff] %v24591_v46  ;;  %v24599_v47 = vld [vmem:[#allocation2 + $0xff] sm:$0xff] }
 0x165   : > { %21535 = vmatprep.mubr.msk.f32.mxu1 %vm325_vm0, %v4820_v49  ;;  %28344 = vst [vmem:[#allocation10_spill] sm:$0xff] %v24599_v47  ;;  %v24603_v48 = vld [vmem:[#allocation2 + $0x23f] sm:$0xff]  ;;  %v24605_v49 = vld [vmem:[#allocation2 + $0x107] sm:$0xff] }
 0x166   : > { %28345 = vst [vmem:[#allocation11_spill] sm:$0xff] %v24603_v48  ;;  %28346 = vst [vmem:[#allocation12_spill] sm:$0xff] %v24605_v49 }
 0x167   : > { %20978 = vmatmul.mubr.msk.f32.vlgmr.msra.gmra.mrb[0].mxu0 %vm325_vm0, %v500_v50  ;;  %v24607_v50 = vld [vmem:[#allocation2 + $0x247] sm:$0xff] }
 0x168   : > { %21536 = vmatmul.mubr.msk.f32.vlgmr.msra.gmra.mrb[0].mxu1 %vm325_vm0, %v4821_v51  ;;  %21038 = vmatpush3.msra.mxu0 %v24317_v61  ;;  %28347 = vst [vmem:[#allocation13_spill] sm:$0xff] %v24607_v50  ;;  %v24615_v51 = vld [vmem:[#allocation2 + $0x10f] sm:$0xff] }
 0x169   : > { %20980 = vmatprep.mubr.msk.f32.mxu0 %vm325_vm0, %v501_v52  ;;  %21538 = vmatprep.mubr.msk.f32.mxu1 %vm325_vm0, %v4822_v53  ;;  %28348 = vst [vmem:[#allocation14_spill] sm:$0xff] %v24615_v51  ;;  %v24619_v52 = vld [vmem:[#allocation2 + $0x24f] sm:$0xff]  ;;  %v24621_v53 = vld [vmem:[#allocation2 + $0x117] sm:$0xff] }
 0x16a   : > { %21596 = vmatpush3.msra.mxu1 %v24317_v61  ;;  %21099 = vmatprep.subr.mxu0 %v24380_v54  ;;  %v24407_v61 = vld [vmem:[#allocation2 + $0x3f] sm:$0xff]  ;;  %28349 = vst [vmem:[#allocation15_spill] sm:$0xff] %v24619_v52  ;;  %28350 = vst [vmem:[#allocation16_spill] sm:$0xff] %v24621_v53 }
 0x16b   : > { %20981 = vmatmul.mubr.msk.f32.gmra.mrb[2].mxu0 %vm325_vm0, %v502_v55  ;;  %21657 = vmatprep.subr.mxu1 %v24380_v54  ;;  %v24623_v55 = vld [vmem:[#allocation2 + $0x257] sm:$0xff] }
 0x16c   : > { %21539 = vmatmul.mubr.msk.f32.gmra.mrb[2].mxu1 %vm325_vm0, %v4823_v56  ;;  %20983 = vmatprep.mubr.msk.f32.mxu0 %vm325_vm0, %v503_v57  ;;  %28351 = vst [vmem:[#allocation17_spill] sm:$0xff] %v24623_v55  ;;  %v24631_v56 = vld [vmem:[#allocation2 + $0x11f] sm:$0xff] }
 0x16d   : > { %21541 = vmatprep.mubr.msk.f32.mxu1 %vm325_vm0, %v4824_v58  ;;  %28352 = vst [vmem:[#allocation18_spill] sm:$0xff] %v24631_v56  ;;  %v24635_v57 = vld [vmem:[#allocation2 + $0x25f] sm:$0xff]  ;;  %v24637_v58 = vld [vmem:[#allocation2 + $0x127] sm:$0xff] }
 0x16e   : > { %28353 = vst [vmem:[#allocation19_spill] sm:$0xff] %v24635_v57  ;;  %28354 = vst [vmem:[#allocation20_spill] sm:$0xff] %v24637_v58 }
 0x16f   : > { %20984 = vmatmul.mubr.msk.f32.gmra.mrb[40].mxu0 %vm325_vm0, %v24392_v59 }
 0x170   : > { %21542 = vmatmul.mubr.msk.f32.gmra.mrb[40].mxu1 %vm325_vm0, %v24395_v60  ;;  %20986 = vmatprep.mubr.msk.f32.mxu0 %vm325_vm0, %v24397_v62 }
 0x171   : > { %21544 = vmatprep.mubr.msk.f32.mxu1 %vm325_vm0, %v24399_v63 }
 0x173   : > { %20987 = vmatmul.mubr.msk.f32.gmra.mrb[6].mxu0 %vm325_vm0, %v24407_v61 }
 0x174   : > { %21545 = vmatmul.mubr.msk.f32.gmra.mrb[6].mxu1 %vm325_vm0, %v24411_v0  ;;  %20989 = vmatprep.mubr.msk.f32.mxu0 %vm325_vm0, %v24413_v1 }
 0x175   : > { %21547 = vmatprep.mubr.msk.f32.mxu1 %vm325_vm0, %v24415_v2 }
 0x177   : > { %20990 = vmatmul.mubr.msk.f32.gmra.mrb[42].mxu0 %vm325_vm0, %v24423_v3 }
 0x178   : > { %21548 = vmatmul.mubr.msk.f32.gmra.mrb[42].mxu1 %vm325_vm0, %v24427_v4  ;;  %20992 = vmatprep.mubr.msk.f32.mxu0 %vm325_vm0, %v24429_v5 }
 0x179   : > { %21550 = vmatprep.mubr.msk.f32.mxu1 %vm325_vm0, %v24431_v6 }
 0x17b   : > { %20993 = vmatmul.mubr.msk.f32.gmra.mrb[10].mxu0 %vm325_vm0, %v24439_v7 }
 0x17c   : > { %21551 = vmatmul.mubr.msk.f32.gmra.mrb[10].mxu1 %vm325_vm0, %v24443_v8  ;;  %20995 = vmatprep.mubr.msk.f32.mxu0 %vm325_vm0, %v24445_v9 }
 0x17d   : > { %21553 = vmatprep.mubr.msk.f32.mxu1 %vm325_vm0, %v24447_v10 }
 0x17f   : > { %20996 = vmatmul.mubr.msk.f32.gmra.mrb[12].mxu0 %vm325_vm0, %v24455_v11 }
 0x180   : > { %21554 = vmatmul.mubr.msk.f32.gmra.mrb[12].mxu1 %vm325_vm0, %v24459_v12  ;;  %20998 = vmatprep.mubr.msk.f32.mxu0 %vm325_vm0, %v24461_v13 }
 0x181   : > { %21556 = vmatprep.mubr.msk.f32.mxu1 %vm325_vm0, %v24463_v14 }
 0x183   : > { %20999 = vmatmul.mubr.msk.f32.gmra.mrb[44].mxu0 %vm325_vm0, %v24471_v15 }
 0x184   : > { %21557 = vmatmul.mubr.msk.f32.gmra.mrb[44].mxu1 %vm325_vm0, %v24475_v16  ;;  %21001 = vmatprep.mubr.msk.f32.mxu0 %vm325_vm0, %v24477_v17 }
 0x185   : > { %21559 = vmatprep.mubr.msk.f32.mxu1 %vm325_vm0, %v24479_v18 }
 0x187   : > { %21002 = vmatmul.mubr.msk.f32.gmra.mrb[16].mxu0 %vm325_vm0, %v24487_v19 }
 0x188   : > { %21560 = vmatmul.mubr.msk.f32.gmra.mrb[16].mxu1 %vm325_vm0, %v24491_v20  ;;  %21004 = vmatprep.mubr.msk.f32.mxu0 %vm325_vm0, %v24493_v21 }
 0x189   : > { %21562 = vmatprep.mubr.msk.f32.mxu1 %vm325_vm0, %v24495_v22 }
 0x18b   : > { %21005 = vmatmul.mubr.msk.f32.gmra.mrb[46].mxu0 %vm325_vm0, %v24503_v23 }
 0x18c   : > { %21563 = vmatmul.mubr.msk.f32.gmra.mrb[46].mxu1 %vm325_vm0, %v24507_v24  ;;  %21007 = vmatprep.mubr.msk.f32.mxu0 %vm325_vm0, %v24509_v25 }
 0x18d   : > { %21565 = vmatprep.mubr.msk.f32.mxu1 %vm325_vm0, %v24511_v26 }
 0x18f   : > { %21008 = vmatmul.mubr.msk.f32.gmra.mrb[20].mxu0 %vm325_vm0, %v24519_v27 }
 0x190   : > { %21566 = vmatmul.mubr.msk.f32.gmra.mrb[20].mxu1 %vm325_vm0, %v24523_v28  ;;  %21010 = vmatprep.mubr.msk.f32.mxu0 %vm325_vm0, %v24525_v29 }
 0x191   : > { %21568 = vmatprep.mubr.msk.f32.mxu1 %vm325_vm0, %v24527_v30 }
 0x193   : > { %21011 = vmatmul.mubr.msk.f32.gmra.mrb[22].mxu0 %vm325_vm0, %v24535_v31 }
 0x194   : > { %21569 = vmatmul.mubr.msk.f32.gmra.mrb[22].mxu1 %vm325_vm0, %v24539_v32  ;;  %21013 = vmatprep.mubr.msk.f32.mxu0 %vm325_vm0, %v24541_v33 }
 0x195   : > { %21571 = vmatprep.mubr.msk.f32.mxu1 %vm325_vm0, %v24543_v34 }
 0x197   : > { %21014 = vmatmul.mubr.msk.f32.gmra.mrb[48].mxu0 %vm325_vm0, %v24551_v35 }
 0x198   : > { %21572 = vmatmul.mubr.msk.f32.gmra.mrb[48].mxu1 %vm325_vm0, %v24555_v36  ;;  %21016 = vmatprep.mubr.msk.f32.mxu0 %vm325_vm0, %v24557_v37 }
 0x199   : > { %21574 = vmatprep.mubr.msk.f32.mxu1 %vm325_vm0, %v24559_v38 }
 0x19b   : > { %21017 = vmatmul.mubr.msk.f32.gmra.mrb[26].mxu0 %vm325_vm0, %v24567_v39 }
 0x19c   : > { %21575 = vmatmul.mubr.msk.f32.gmra.mrb[26].mxu1 %vm325_vm0, %v24571_v40  ;;  %21019 = vmatprep.mubr.msk.f32.mxu0 %vm325_vm0, %v24573_v41 }
 0x19d   : > { %21577 = vmatprep.mubr.msk.f32.mxu1 %vm325_vm0, %v24575_v42 }
 0x19f   : > { %21020 = vmatmul.mubr.msk.f32.gmra.mrb[50].mxu0 %vm325_vm0, %v24583_v43 }
 0x1a0   : > { %21578 = vmatmul.mubr.msk.f32.gmra.mrb[50].mxu1 %vm325_vm0, %v24587_v44  ;;  %21022 = vmatprep.mubr.msk.f32.mxu0 %vm325_vm0, %v24589_v45 }
 0x1a1   : > { %21580 = vmatprep.mubr.msk.f32.mxu1 %vm325_vm0, %v24591_v46  ;;  %v5690_v46 = vld [vmem:[#allocation2 + $0x259] sm:$0xff] }
 0x1a3   : > { %21023 = vmatmul.mubr.msk.f32.gmra.mrb[30].mxu0 %vm325_vm0, %v24599_v47 }
 0x1a4   : > { %21581 = vmatmul.mubr.msk.f32.gmra.mrb[30].mxu1 %vm325_vm0, %v24603_v48  ;;  %21025 = vmatprep.mubr.msk.f32.mxu0 %vm325_vm0, %v24605_v49  ;;  %v5658_v49 = vld [vmem:[#allocation2 + $0x159] sm:$0xff]  ;;  %v1344_v48 = vld [vmem:[#allocation2 + $0x49] sm:$0xff] }
 0x1a5   : > { %21583 = vmatprep.mubr.msk.f32.mxu1 %vm325_vm0, %v24607_v50  ;;  %v24639_v50 = vld [vmem:[#allocation2 + $0x267] sm:$0xff] }
 0x1a6   : > { %28355 = vst [vmem:[#allocation21_spill] sm:$0xff] %v24639_v50 }
 0x1a7   : > { %21026 = vmatmul.mubr.msk.f32.gmra.mrb[32].mxu0 %vm325_vm0, %v24615_v51  ;;  %v24655_v51 = vld [vmem:[#allocation2 + $0x277] sm:$0xff] }
 0x1a8   : > { %21584 = vmatmul.mubr.msk.f32.gmra.mrb[32].mxu1 %vm325_vm0, %v24619_v52  ;;  %21028 = vmatprep.mubr.msk.f32.mxu0 %vm325_vm0, %v24621_v53  ;;  %v24647_v53 = vld [vmem:[#allocation2 + $0x12f] sm:$0xff]  ;;  %v24653_v52 = vld [vmem:[#allocation2 + $0x137] sm:$0xff]  ;;  %28359 = vst [vmem:[#allocation25_spill] sm:$0xff] %v24655_v51 }
 0x1a9   : > { %21586 = vmatprep.mubr.msk.f32.mxu1 %vm325_vm0, %v24623_v55  ;;  %28356 = vst [vmem:[#allocation22_spill] sm:$0xff] %v24647_v53  ;;  %v24651_v55 = vld [vmem:[#allocation2 + $0x26f] sm:$0xff]  ;;  %28358 = vst [vmem:[#allocation24_spill] sm:$0xff] %v24653_v52 }
 0x1aa   : > { %28357 = vst [vmem:[#allocation23_spill] sm:$0xff] %v24651_v55 }
 0x1ab   : > { %21029 = vmatmul.mubr.msk.f32.gmra.mrb[52].mxu0 %vm325_vm0, %v24631_v56  ;;  %v5656_v56 = vld [vmem:[#allocation2 + $0x149] sm:$0xff] }
 0x1ac   : > { %21587 = vmatmul.mubr.msk.f32.gmra.mrb[52].mxu1 %vm325_vm0, %v24635_v57  ;;  %21031 = vmatprep.mubr.msk.f32.mxu0 %vm325_vm0, %v24637_v58  ;;  %v24663_v58 = vld [vmem:[#allocation2 + $0x13f] sm:$0xff]  ;;  %v1336_v57 = vld [vmem:[#allocation2 + $0x9] sm:$0xff] }
 0x1ad   : > { %21589 = vmatprep.mubr.msk.f32.mxu1 %vm325_vm0, %v24639_v50  ;;  %28360 = vst [vmem:[#allocation26_spill] sm:$0xff] %v24663_v58  ;;  %v24667_v50 = vld [vmem:[#allocation2 + $0x27f] sm:$0xff] }
 0x1ae   : > { %28361 = vst [vmem:[#allocation27_spill] sm:$0xff] %v24667_v50 }
 0x1af   : > { %21032 = vmatmul.mubr.msk.f32.gmra.mrb[36].mxu0 %vm325_vm0, %v24647_v53  ;;  %v1338_v53 = vld [vmem:[#allocation2 + $0x19] sm:$0xff] }
 0x1b0   : > { %21590 = vmatmul.mubr.msk.f32.gmra.mrb[36].mxu1 %vm325_vm0, %v24651_v55  ;;  %21034 = vmatprep.mubr.msk.f32.mxu0 %vm325_vm0, %v24653_v52  ;;  %v1337_v55 = vld [vmem:[#allocation2 + $0x11] sm:$0xff] }
 0x1b1   : > { %21592 = vmatprep.mubr.msk.f32.mxu1 %vm325_vm0, %v24655_v51  ;;  %v5657_v52 = vld [vmem:[#allocation2 + $0x151] sm:$0xff]  ;;  %v24679_v51 = vld [vmem:[%s28309_s4 + $0x20] sm:$0xff] }
 0x1b3   : > { %21035 = vmatmul.mubr.msk.f32.gmra.mrb[54].mxu0 %vm325_vm0, %v24663_v58  ;;  %v5660_v58 = vld [vmem:[#allocation2 + $0x169] sm:$0xff] }
 0x1b4   : > { %21593 = vmatmul.mubr.msk.f32.gmra.mrb[54].mxu1 %vm325_vm0, %v24667_v50  ;;  %21039 = vmatprep.mubr.msk.f32.mxu0 %vm325_vm0, %v1336_v57  ;;  %v1339_v50 = vld [vmem:[#allocation2 + $0x21] sm:$0xff]  ;;  %v1340_v57 = vld [vmem:[#allocation2 + $0x29] sm:$0xff] }
 0x1b5   : > { %21597 = vmatprep.mubr.msk.f32.mxu1 %vm325_vm0, %v5656_v56  ;;  %v5659_v56 = vld [vmem:[#allocation2 + $0x161] sm:$0xff] }
 0x1b7   : > { %21040 = vmatmul.mubr.msk.f32.vlgmr.msra.gmra.mrb[0].mxu0 %vm325_vm0, %v1337_v55  ;;  %v5662_v55 = vld [vmem:[#allocation2 + $0x179] sm:$0xff] }
 0x1b8   : > { %21598 = vmatmul.mubr.msk.f32.vlgmr.msra.gmra.mrb[0].mxu1 %vm325_vm0, %v5657_v52  ;;  %21100 = vmatpush3.msra.mxu0 %v24380_v54  ;;  %v1341_v52 = vld [vmem:[#allocation2 + $0x31] sm:$0xff] }
 0x1b9   : > { %21042 = vmatprep.mubr.msk.f32.mxu0 %vm325_vm0, %v1338_v53  ;;  %21600 = vmatprep.mubr.msk.f32.mxu1 %vm325_vm0, %v5658_v49  ;;  %v5661_v53 = vld [vmem:[#allocation2 + $0x171] sm:$0xff]  ;;  %v1342_v49 = vld [vmem:[#allocation2 + $0x39] sm:$0xff] }
 0x1ba   : > { %21658 = vmatpush3.msra.mxu1 %v24380_v54  ;;  %21161 = vmatprep.subr.mxu0 %v24679_v51  ;;  %v1343_v54 = vld [vmem:[#allocation2 + $0x41] sm:$0xff] }
 0x1bb   : > { %21043 = vmatmul.mubr.msk.f32.gmra.mrb[2].mxu0 %vm325_vm0, %v1339_v50  ;;  %21719 = vmatprep.subr.mxu1 %v24679_v51  ;;  %v5663_v50 = vld [vmem:[#allocation2 + $0x181] sm:$0xff] }
 0x1bc   : > { %21601 = vmatmul.mubr.msk.f32.gmra.mrb[2].mxu1 %vm325_vm0, %v5659_v56  ;;  %21045 = vmatprep.mubr.msk.f32.mxu0 %vm325_vm0, %v1340_v57  ;;  %v5664_v56 = vld [vmem:[#allocation2 + $0x189] sm:$0xff]  ;;  %v5665_v57 = vld [vmem:[#allocation2 + $0x191] sm:$0xff] }
 0x1bd   : > { %21603 = vmatprep.mubr.msk.f32.mxu1 %vm325_vm0, %v5660_v58  ;;  %v1345_v58 = vld [vmem:[#allocation2 + $0x51] sm:$0xff] }
 0x1bf   : > { %21046 = vmatmul.mubr.msk.f32.gmra.mrb[56].mxu0 %vm325_vm0, %v1341_v52  ;;  %v1346_v52 = vld [vmem:[#allocation2 + $0x59] sm:$0xff] }
 0x1c0   : > { %21604 = vmatmul.mubr.msk.f32.gmra.mrb[56].mxu1 %vm325_vm0, %v5661_v53  ;;  %21048 = vmatprep.mubr.msk.f32.mxu0 %vm325_vm0, %v1342_v49  ;;  %v5666_v53 = vld [vmem:[#allocation2 + $0x199] sm:$0xff]  ;;  %v1347_v49 = vld [vmem:[#allocation2 + $0x61] sm:$0xff] }
 0x1c1   : > { %21606 = vmatprep.mubr.msk.f32.mxu1 %vm325_vm0, %v5662_v55  ;;  %v5667_v55 = vld [vmem:[#allocation2 + $0x1a1] sm:$0xff] }
 0x1c3   : > { %21049 = vmatmul.mubr.msk.f32.gmra.mrb[6].mxu0 %vm325_vm0, %v1343_v54  ;;  %v1348_v54 = vld [vmem:[#allocation2 + $0x69] sm:$0xff] }
 0x1c4   : > { %21607 = vmatmul.mubr.msk.f32.gmra.mrb[6].mxu1 %vm325_vm0, %v5663_v50  ;;  %21051 = vmatprep.mubr.msk.f32.mxu0 %vm325_vm0, %v1344_v48  ;;  %v5668_v50 = vld [vmem:[#allocation2 + $0x1a9] sm:$0xff]  ;;  %v1349_v48 = vld [vmem:[#allocation2 + $0x71] sm:$0xff] }
 0x1c5   : > { %21609 = vmatprep.mubr.msk.f32.mxu1 %vm325_vm0, %v5664_v56  ;;  %v5669_v56 = vld [vmem:[#allocation2 + $0x1b1] sm:$0xff] }
 0x1c7   : > { %21052 = vmatmul.mubr.msk.f32.gmra.mrb[58].mxu0 %vm325_vm0, %v1345_v58  ;;  %v1350_v58 = vld [vmem:[#allocation2 + $0x79] sm:$0xff] }
 0x1c8   : > { %21610 = vmatmul.mubr.msk.f32.gmra.mrb[58].mxu1 %vm325_vm0, %v5665_v57  ;;  %21054 = vmatprep.mubr.msk.f32.mxu0 %vm325_vm0, %v1346_v52  ;;  %v5670_v57 = vld [vmem:[#allocation2 + $0x1b9] sm:$0xff]  ;;  %v1351_v52 = vld [vmem:[#allocation2 + $0x81] sm:$0xff] }
 0x1c9   : > { %21612 = vmatprep.mubr.msk.f32.mxu1 %vm325_vm0, %v5666_v53  ;;  %v5671_v53 = vld [vmem:[#allocation2 + $0x1c1] sm:$0xff] }
 0x1cb   : > { %21055 = vmatmul.mubr.msk.f32.gmra.mrb[10].mxu0 %vm325_vm0, %v1347_v49  ;;  %v1352_v49 = vld [vmem:[#allocation2 + $0x89] sm:$0xff] }
 0x1cc   : > { %21613 = vmatmul.mubr.msk.f32.gmra.mrb[10].mxu1 %vm325_vm0, %v5667_v55  ;;  %21057 = vmatprep.mubr.msk.f32.mxu0 %vm325_vm0, %v1348_v54  ;;  %v5672_v55 = vld [vmem:[#allocation2 + $0x1c9] sm:$0xff]  ;;  %v1353_v54 = vld [vmem:[#allocation2 + $0x91] sm:$0xff] }
 0x1cd   : > { %21615 = vmatprep.mubr.msk.f32.mxu1 %vm325_vm0, %v5668_v50  ;;  %v5673_v50 = vld [vmem:[#allocation2 + $0x1d1] sm:$0xff] }
 0x1cf   : > { %21058 = vmatmul.mubr.msk.f32.gmra.mrb[12].mxu0 %vm325_vm0, %v1349_v48  ;;  %v1354_v48 = vld [vmem:[#allocation2 + $0x99] sm:$0xff] }
 0x1d0   : > { %21616 = vmatmul.mubr.msk.f32.gmra.mrb[12].mxu1 %vm325_vm0, %v5669_v56  ;;  %21060 = vmatprep.mubr.msk.f32.mxu0 %vm325_vm0, %v1350_v58  ;;  %v5674_v56 = vld [vmem:[#allocation2 + $0x1d9] sm:$0xff]  ;;  %v1355_v58 = vld [vmem:[#allocation2 + $0xa1] sm:$0xff] }
 0x1d1   : > { %21618 = vmatprep.mubr.msk.f32.mxu1 %vm325_vm0, %v5670_v57  ;;  %v5675_v57 = vld [vmem:[#allocation2 + $0x1e1] sm:$0xff] }
 0x1d3   : > { %21061 = vmatmul.mubr.msk.f32.gmra.mrb[60].mxu0 %vm325_vm0, %v1351_v52  ;;  %v1356_v52 = vld [vmem:[#allocation2 + $0xa9] sm:$0xff] }
 0x1d4   : > { %21619 = vmatmul.mubr.msk.f32.gmra.mrb[60].mxu1 %vm325_vm0, %v5671_v53  ;;  %21063 = vmatprep.mubr.msk.f32.mxu0 %vm325_vm0, %v1352_v49  ;;  %v5676_v53 = vld [vmem:[#allocation2 + $0x1e9] sm:$0xff]  ;;  %v1357_v49 = vld [vmem:[#allocation2 + $0xb1] sm:$0xff] }
 0x1d5   : > { %21621 = vmatprep.mubr.msk.f32.mxu1 %vm325_vm0, %v5672_v55  ;;  %v5677_v55 = vld [vmem:[#allocation2 + $0x1f1] sm:$0xff] }
 0x1d7   : > { %21064 = vmatmul.mubr.msk.f32.gmra.mrb[16].mxu0 %vm325_vm0, %v1353_v54  ;;  %v1358_v54 = vld [vmem:[#allocation2 + $0xb9] sm:$0xff] }
 0x1d8   : > { %21622 = vmatmul.mubr.msk.f32.gmra.mrb[16].mxu1 %vm325_vm0, %v5673_v50  ;;  %21066 = vmatprep.mubr.msk.f32.mxu0 %vm325_vm0, %v1354_v48  ;;  %v5678_v50 = vld [vmem:[#allocation2 + $0x1f9] sm:$0xff]  ;;  %v1359_v48 = vld [vmem:[#allocation2 + $0xc1] sm:$0xff] }
 0x1d9   : > { %21624 = vmatprep.mubr.msk.f32.mxu1 %vm325_vm0, %v5674_v56  ;;  %v5679_v56 = vld [vmem:[#allocation2 + $0x201] sm:$0xff] }
 0x1db   : > { %21067 = vmatmul.mubr.msk.f32.gmra.mrb[62].mxu0 %vm325_vm0, %v1355_v58  ;;  %v1360_v58 = vld [vmem:[#allocation2 + $0xc9] sm:$0xff] }
 0x1dc   : > { %21625 = vmatmul.mubr.msk.f32.gmra.mrb[62].mxu1 %vm325_vm0, %v5675_v57  ;;  %21069 = vmatprep.mubr.msk.f32.mxu0 %vm325_vm0, %v1356_v52  ;;  %v5680_v57 = vld [vmem:[#allocation2 + $0x209] sm:$0xff]  ;;  %v1361_v52 = vld [vmem:[#allocation2 + $0xd1] sm:$0xff] }
 0x1dd   : > { %21627 = vmatprep.mubr.msk.f32.mxu1 %vm325_vm0, %v5676_v53  ;;  %v5681_v53 = vld [vmem:[#allocation2 + $0x211] sm:$0xff] }
 0x1df   : > { %21070 = vmatmul.mubr.msk.f32.gmra.mrb[20].mxu0 %vm325_vm0, %v1357_v49  ;;  %v1362_v49 = vld [vmem:[#allocation2 + $0xd9] sm:$0xff] }
 0x1e0   : > { %21628 = vmatmul.mubr.msk.f32.gmra.mrb[20].mxu1 %vm325_vm0, %v5677_v55  ;;  %21072 = vmatprep.mubr.msk.f32.mxu0 %vm325_vm0, %v1358_v54  ;;  %v5682_v55 = vld [vmem:[#allocation2 + $0x219] sm:$0xff]  ;;  %v1363_v54 = vld [vmem:[#allocation2 + $0xe1] sm:$0xff] }
 0x1e1   : > { %21630 = vmatprep.mubr.msk.f32.mxu1 %vm325_vm0, %v5678_v50  ;;  %v5683_v50 = vld [vmem:[#allocation2 + $0x221] sm:$0xff] }
 0x1e3   : > { %21073 = vmatmul.mubr.msk.f32.gmra.mrb[22].mxu0 %vm325_vm0, %v1359_v48  ;;  %v1364_v48 = vld [vmem:[#allocation2 + $0xe9] sm:$0xff] }
 0x1e4   : > { %21631 = vmatmul.mubr.msk.f32.gmra.mrb[22].mxu1 %vm325_vm0, %v5679_v56  ;;  %21075 = vmatprep.mubr.msk.f32.mxu0 %vm325_vm0, %v1360_v58  ;;  %v5684_v56 = vld [vmem:[#allocation2 + $0x229] sm:$0xff]  ;;  %v1365_v58 = vld [vmem:[#allocation2 + $0xf1] sm:$0xff] }
 0x1e5   : > { %21633 = vmatprep.mubr.msk.f32.mxu1 %vm325_vm0, %v5680_v57  ;;  %v5685_v57 = vld [vmem:[#allocation2 + $0x231] sm:$0xff] }
 0x1e7   : > { %21076 = vmatmul.mubr.msk.f32.gmra.mrb[64].mxu0 %vm325_vm0, %v1361_v52  ;;  %v1366_v52 = vld [vmem:[#allocation2 + $0xf9] sm:$0xff] }
 0x1e8   : > { %21634 = vmatmul.mubr.msk.f32.gmra.mrb[64].mxu1 %vm325_vm0, %v5681_v53  ;;  %21078 = vmatprep.mubr.msk.f32.mxu0 %vm325_vm0, %v1362_v49  ;;  %v5686_v53 = vld [vmem:[#allocation2 + $0x239] sm:$0xff]  ;;  %v1367_v49 = vld [vmem:[#allocation2 + $0x101] sm:$0xff] }
 0x1e9   : > { %21636 = vmatprep.mubr.msk.f32.mxu1 %vm325_vm0, %v5682_v55  ;;  %v5687_v55 = vld [vmem:[#allocation2 + $0x241] sm:$0xff] }
 0x1eb   : > { %21079 = vmatmul.mubr.msk.f32.gmra.mrb[26].mxu0 %vm325_vm0, %v1363_v54  ;;  %v1368_v54 = vld [vmem:[#allocation2 + $0x109] sm:$0xff] }
 0x1ec   : > { %21637 = vmatmul.mubr.msk.f32.gmra.mrb[26].mxu1 %vm325_vm0, %v5683_v50  ;;  %21081 = vmatprep.mubr.msk.f32.mxu0 %vm325_vm0, %v1364_v48  ;;  %v5688_v48 = vld [vmem:[#allocation2 + $0x249] sm:$0xff] }
 0x1ed   : > { %21639 = vmatprep.mubr.msk.f32.mxu1 %vm325_vm0, %v5684_v56 }
 0x1ef   : > { %21082 = vmatmul.mubr.msk.f32.gmra.mrb[66].mxu0 %vm325_vm0, %v1365_v58  ;;  %v1369_v58 = vld [vmem:[#allocation2 + $0x111] sm:$0xff] }
 0x1f0   : > { %21640 = vmatmul.mubr.msk.f32.gmra.mrb[66].mxu1 %vm325_vm0, %v5685_v57  ;;  %21084 = vmatprep.mubr.msk.f32.mxu0 %vm325_vm0, %v1366_v52  ;;  %v5689_v52 = vld [vmem:[#allocation2 + $0x251] sm:$0xff] }
 0x1f1   : > { %21642 = vmatprep.mubr.msk.f32.mxu1 %vm325_vm0, %v5686_v53  ;;  %v1370_v53 = vld [vmem:[#allocation2 + $0x119] sm:$0xff] }
 0x1f2   : > { %v24744_v50 = vpop.f32.mrb[4].mxu0 }
 0x1f3   : > { %28362 = vst [vmem:[#allocation28_spill] sm:$0xff] %v24744_v50  ;;  %v788_v47 = vpop.f32.mrb[5].mxu0  ;;  %21085 = vmatmul.mubr.msk.f32.gmra.mrb[30].mxu0 %vm325_vm0, %v1367_v49  ;;  %v24747_v56 = vpop.f32.mrb[4].mxu1  ;;  %v5691_v49 = vld [vmem:[#allocation2 + $0x261] sm:$0xff] }
 0x1f4   : > { %28363 = vst [vmem:[#allocation29_spill] sm:$0xff] %v24747_v56  ;;  %21643 = vmatmul.mubr.msk.f32.gmra.mrb[30].mxu1 %vm325_vm0, %v5687_v55  ;;  %21087 = vmatprep.mubr.msk.f32.mxu0 %vm325_vm0, %v1368_v54  ;;  %v5108_v57 = vpop.f32.mrb[5].mxu1  ;;  %v1371_v47 = vld [vmem:[#allocation2 + $0x121] sm:$0xff]  ;;  %v1372_v55 = vld [vmem:[#allocation2 + $0x129] sm:$0xff] }
 0x1f5   : > { %21645 = vmatprep.mubr.msk.f32.mxu1 %vm325_vm0, %v5688_v48  ;;  %v5692_v54 = vld [vmem:[#allocation2 + $0x269] sm:$0xff] }
 0x1f7   : > { %21088 = vmatmul.mubr.msk.f32.gmra.mrb[32].mxu0 %vm325_vm0, %v1369_v58  ;;  %v1373_v58 = vld [vmem:[#allocation2 + $0x131] sm:$0xff] }
 0x1f8   : > { %21646 = vmatmul.mubr.msk.f32.gmra.mrb[32].mxu1 %vm325_vm0, %v5689_v52  ;;  %21090 = vmatprep.mubr.msk.f32.mxu0 %vm325_vm0, %v1370_v53  ;;  %v5693_v52 = vld [vmem:[#allocation2 + $0x271] sm:$0xff]  ;;  %v5694_v53 = vld [vmem:[#allocation2 + $0x279] sm:$0xff] }
 0x1f9   : > { %21648 = vmatprep.mubr.msk.f32.mxu1 %vm325_vm0, %v5690_v46  ;;  %v1374_v46 = vld [vmem:[#allocation2 + $0x139] sm:$0xff] }
 0x1fa   : > { %v20929_v56 = vpop.f32.mrb[8].mxu0 }
 0x1fb   : > { %v24756_v50 = vpop.f32.mrb[9].mxu0  ;;  %21091 = vmatmul.mubr.msk.f32.gmra.mrb[68].mxu0 %vm325_vm0, %v1371_v47  ;;  %v21487_v48 = vpop.f32.mrb[8].mxu1  ;;  %v1375_v56 = vld [vmem:[#allocation2 + $0x141] sm:$0xff] }
 0x1fc   : > { %21649 = vmatmul.mubr.msk.f32.gmra.mrb[68].mxu1 %vm325_vm0, %v5691_v49  ;;  %21093 = vmatprep.mubr.msk.f32.mxu0 %vm325_vm0, %v1372_v55  ;;  %v24761_v57 = vpop.f32.mrb[9].mxu1  ;;  %v5695_v47 = vld [vmem:[#allocation2 + $0x281] sm:$0xff] }
 0x1fd   : > { %21651 = vmatprep.mubr.msk.f32.mxu1 %vm325_vm0, %v5692_v54  ;;  %v24783_v48 = vld [vmem:[%s28309_s4 + $0x28] sm:$0xff] }
 0x1ff   : > { %21094 = vmatmul.mubr.msk.f32.gmra.mrb[36].mxu0 %vm325_vm0, %v1373_v58  ;;  %v6142_v58 = vld [vmem:[#allocation2 + $0x28f] sm:$0xff] }
 0x200   : > { %21652 = vmatmul.mubr.msk.f32.gmra.mrb[36].mxu1 %vm325_vm0, %v5693_v52  ;;  %21096 = vmatprep.mubr.msk.f32.mxu0 %vm325_vm0, %v1374_v46 }
 0x201   : > { %21654 = vmatprep.mubr.msk.f32.mxu1 %vm325_vm0, %v5694_v53 }
 0x203   : > { %21097 = vmatmul.mubr.msk.f32.gmra.mrb[70].mxu0 %vm325_vm0, %v1375_v56 }
 0x204   : > { %21655 = vmatmul.mubr.msk.f32.gmra.mrb[70].mxu1 %vm325_vm0, %v5695_v47  ;;  %21101 = vmatprep.mubr.msk.f32.mxu0 %vm325_vm0, %v24392_v59  ;;  %v1824_v47 = vld [vmem:[#allocation2 + $0x157] sm:$0xff] }
 0x205   : > { %21659 = vmatprep.mubr.msk.f32.mxu1 %vm325_vm0, %v24395_v60 }
 0x206   : > { %v24774_v49 = vpop.f32.mrb[14].mxu0 }
 0x207   : > { %v836_v55 = vpop.f32.mrb[15].mxu0  ;;  %21102 = vmatmul.mubr.msk.f32.vlgmr.msra.gmra.mrb[0].mxu0 %vm325_vm0, %v24397_v62  ;;  %v24778_v54 = vpop.f32.mrb[14].mxu1 }
 0x208   : > { %21660 = vmatmul.mubr.msk.f32.vlgmr.msra.gmra.mrb[0].mxu1 %vm325_vm0, %v24399_v63  ;;  %21162 = vmatpush3.msra.mxu0 %v24679_v51  ;;  %v5156_v59 = vpop.f32.mrb[15].mxu1 }
 0x209   : > { %21104 = vmatprep.mubr.msk.f32.mxu0 %vm325_vm0, %v24407_v61  ;;  %21662 = vmatprep.mubr.msk.f32.mxu1 %vm325_vm0, %v24411_v0  ;;  %v6143_v59 = vld [vmem:[#allocation2 + $0x297] sm:$0xff] }
 0x20a   : > { %21720 = vmatpush3.msra.mxu1 %v24679_v51  ;;  %21223 = vmatprep.subr.mxu0 %v24783_v48 }
 0x20b   : > { %21105 = vmatmul.mubr.msk.f32.gmra.mrb[2].mxu0 %vm325_vm0, %v24413_v1  ;;  %21781 = vmatprep.subr.mxu1 %v24783_v48 }
 0x20c   : > { %21663 = vmatmul.mubr.msk.f32.gmra.mrb[2].mxu1 %vm325_vm0, %v24415_v2  ;;  %21107 = vmatprep.mubr.msk.f32.mxu0 %vm325_vm0, %v24423_v3 }
 0x20d   : > { %21665 = vmatprep.mubr.msk.f32.mxu1 %vm325_vm0, %v24427_v4 }
 0x20e   : > { %v20944_v60 = vpop.f32.mrb[18].mxu0 }
 0x20f   : > { %v24803_v62 = vpop.f32.mrb[19].mxu0  ;;  %21108 = vmatmul.mubr.msk.f32.gmra.mrb[72].mxu0 %vm325_vm0, %v24429_v5  ;;  %v21502_v63 = vpop.f32.mrb[18].mxu1  ;;  %v1825_v60 = vld [vmem:[#allocation2 + $0x15f] sm:$0xff] }
 0x210   : > { %21666 = vmatmul.mubr.msk.f32.gmra.mrb[72].mxu1 %vm325_vm0, %v24431_v6  ;;  %21110 = vmatprep.mubr.msk.f32.mxu0 %vm325_vm0, %v24439_v7  ;;  %v24811_v61 = vpop.f32.mrb[19].mxu1  ;;  %v6144_v63 = vld [vmem:[#allocation2 + $0x29f] sm:$0xff] }
 0x211   : > { %21668 = vmatprep.mubr.msk.f32.mxu1 %vm325_vm0, %v24443_v8 }
 0x213   : > { %21111 = vmatmul.mubr.msk.f32.gmra.mrb[6].mxu0 %vm325_vm0, %v24445_v9 }
 0x214   : > { %21669 = vmatmul.mubr.msk.f32.gmra.mrb[6].mxu1 %vm325_vm0, %v24447_v10  ;;  %21113 = vmatprep.mubr.msk.f32.mxu0 %vm325_vm0, %v24455_v11 }
 0x215   : > { %21671 = vmatprep.mubr.msk.f32.mxu1 %vm325_vm0, %v24459_v12 }
 0x217   : > { %21114 = vmatmul.mubr.msk.f32.gmra.mrb[74].mxu0 %vm325_vm0, %v24461_v13 }
 0x218   : > { %21672 = vmatmul.mubr.msk.f32.gmra.mrb[74].mxu1 %vm325_vm0, %v24463_v14  ;;  %21116 = vmatprep.mubr.msk.f32.mxu0 %vm325_vm0, %v24471_v15  ;;  %v28364_v15 = vld [vmem:[#allocation9_spill] sm:$0xff] }
 0x219   : > { %21674 = vmatprep.mubr.msk.f32.mxu1 %vm325_vm0, %v24475_v16  ;;  %v28365_v16 = vld [vmem:[#allocation10_spill] sm:$0xff] }
 0x21a   : > { %v24831_v0 = vpop.f32.mrb[24].mxu0 }
 0x21b   : > { %v884_v1 = vpop.f32.mrb[25].mxu0  ;;  %21117 = vmatmul.mubr.msk.f32.gmra.mrb[10].mxu0 %vm325_vm0, %v24477_v17  ;;  %v24835_v2 = vpop.f32.mrb[24].mxu1 }
 0x21c   : > { %21675 = vmatmul.mubr.msk.f32.gmra.mrb[10].mxu1 %vm325_vm0, %v24479_v18  ;;  %21119 = vmatprep.mubr.msk.f32.mxu0 %vm325_vm0, %v24487_v19  ;;  %v5204_v3 = vpop.f32.mrb[25].mxu1  ;;  %v28366_v18 = vld [vmem:[#allocation11_spill] sm:$0xff]  ;;  %v28367_v19 = vld [vmem:[#allocation12_spill] sm:$0xff] }
 0x21d   : > { %21677 = vmatprep.mubr.msk.f32.mxu1 %vm325_vm0, %v24491_v20  ;;  %v28368_v20 = vld [vmem:[#allocation13_spill] sm:$0xff]  ;;  %v6145_v1 = vld [vmem:[#allocation2 + $0x2a7] sm:$0xff]  ;;  %v2238_v3 = vld [vmem:[#allocation2 + $0x30] sm:$0xff] }
 0x21f   : > { %21120 = vmatmul.mubr.msk.f32.gmra.mrb[12].mxu0 %vm325_vm0, %v24493_v21  ;;  %v28369_v21 = vld [vmem:[#allocation14_spill] sm:$0xff] }
 0x220   : > { %21678 = vmatmul.mubr.msk.f32.gmra.mrb[12].mxu1 %vm325_vm0, %v24495_v22  ;;  %21122 = vmatprep.mubr.msk.f32.mxu0 %vm325_vm0, %v24503_v23  ;;  %v28370_v22 = vld [vmem:[#allocation15_spill] sm:$0xff]  ;;  %v28371_v23 = vld [vmem:[#allocation16_spill] sm:$0xff] }
 0x221   : > { %21680 = vmatprep.mubr.msk.f32.mxu1 %vm325_vm0, %v24507_v24  ;;  %v28372_v24 = vld [vmem:[#allocation17_spill] sm:$0xff] }
 0x222   : > { %v20959_v4 = vpop.f32.mrb[28].mxu0 }
 0x223   : > { %v24851_v5 = vpop.f32.mrb[29].mxu0  ;;  %21123 = vmatmul.mubr.msk.f32.gmra.mrb[76].mxu0 %vm325_vm0, %v24509_v25  ;;  %v21517_v6 = vpop.f32.mrb[28].mxu1  ;;  %v28373_v25 = vld [vmem:[#allocation18_spill] sm:$0xff]  ;;  %v6556_v4 = vld [vmem:[#allocation2 + $0x170] sm:$0xff] }
 0x224   : > { %21681 = vmatmul.mubr.msk.f32.gmra.mrb[76].mxu1 %vm325_vm0, %v24511_v26  ;;  %21125 = vmatprep.mubr.msk.f32.mxu0 %vm325_vm0, %v24519_v27  ;;  %v24859_v7 = vpop.f32.mrb[29].mxu1  ;;  %v28374_v26 = vld [vmem:[#allocation19_spill] sm:$0xff]  ;;  %v6557_v6 = vld [vmem:[#allocation2 + $0x178] sm:$0xff] }
 0x225   : > { %21683 = vmatprep.mubr.msk.f32.mxu1 %vm325_vm0, %v24523_v28  ;;  %v28375_v28 = vld [vmem:[#allocation28_spill] sm:$0xff] }
 0x227   : > { %21126 = vmatmul.mubr.msk.f32.gmra.mrb[16].mxu0 %vm325_vm0, %v24525_v29 }
 0x228   : > { %21684 = vmatmul.mubr.msk.f32.gmra.mrb[16].mxu1 %vm325_vm0, %v24527_v30  ;;  %21128 = vmatprep.mubr.msk.f32.mxu0 %vm325_vm0, %v24535_v31 }
 0x229   : > { %21686 = vmatprep.mubr.msk.f32.mxu1 %vm325_vm0, %v24539_v32  ;;  %v28376_v32 = vld [vmem:[#allocation20_spill] sm:$0xff] }
 0x22b   : > { %21129 = vmatmul.mubr.msk.f32.gmra.mrb[78].mxu0 %vm325_vm0, %v24541_v33  ;;  %v28377_v33 = vld [vmem:[#allocation29_spill] sm:$0xff] }
 0x22c   : > { %21687 = vmatmul.mubr.msk.f32.gmra.mrb[78].mxu1 %vm325_vm0, %v24543_v34  ;;  %21131 = vmatprep.mubr.msk.f32.mxu0 %vm325_vm0, %v24551_v35  ;;  %v28378_v35 = vld [vmem:[#allocation21_spill] sm:$0xff] }
 0x22d   : > { %21689 = vmatprep.mubr.msk.f32.mxu1 %vm325_vm0, %v24555_v36  ;;  %v28379_v36 = vld [vmem:[#allocation22_spill] sm:$0xff] }
 0x22e   : > { %v24879_v8 = vpop.f32.mrb[34].mxu0 }
 0x22f   : > { %v932_v9 = vpop.f32.mrb[35].mxu0  ;;  %21132 = vmatmul.mubr.msk.f32.gmra.mrb[20].mxu0 %vm325_vm0, %v24557_v37  ;;  %v24883_v10 = vpop.f32.mrb[34].mxu1 }
 0x230   : > { %21690 = vmatmul.mubr.msk.f32.gmra.mrb[20].mxu1 %vm325_vm0, %v24559_v38  ;;  %21134 = vmatprep.mubr.msk.f32.mxu0 %vm325_vm0, %v24567_v39  ;;  %v5252_v11 = vpop.f32.mrb[35].mxu1  ;;  %v28380_v38 = vld [vmem:[#allocation23_spill] sm:$0xff]  ;;  %v28381_v39 = vld [vmem:[#allocation24_spill] sm:$0xff] }
 0x231   : > { %21692 = vmatprep.mubr.msk.f32.mxu1 %vm325_vm0, %v24571_v40  ;;  %v28382_v40 = vld [vmem:[#allocation25_spill] sm:$0xff] }
 0x232   : > { %v2240_v11 = vld [vmem:[#allocation2 + $0x40] sm:$0xff] }
 0x233   : > { %21135 = vmatmul.mubr.msk.f32.gmra.mrb[22].mxu0 %vm325_vm0, %v24573_v41  ;;  %v28383_v41 = vld [vmem:[#allocation26_spill] sm:$0xff] }
 0x234   : > { %21693 = vmatmul.mubr.msk.f32.gmra.mrb[22].mxu1 %vm325_vm0, %v24575_v42  ;;  %21137 = vmatprep.mubr.msk.f32.mxu0 %vm325_vm0, %v24583_v43  ;;  %v1822_v42 = vld [vmem:[#allocation2 + $0x147] sm:$0xff] }
 0x235   : > { %21695 = vmatprep.mubr.msk.f32.mxu1 %vm325_vm0, %v24587_v44  ;;  %v28384_v43 = vld [vmem:[#allocation27_spill] sm:$0xff] }
 0x236   : > { %v20974_v12 = vpop.f32.mrb[38].mxu0  ;;  %v6141_v44 = vld [vmem:[#allocation2 + $0x287] sm:$0xff] }
 0x237   : > { %v24899_v13 = vpop.f32.mrb[39].mxu0  ;;  %21138 = vmatmul.mubr.msk.f32.gmra.mrb[80].mxu0 %vm325_vm0, %v24589_v45  ;;  %v21532_v14 = vpop.f32.mrb[38].mxu1  ;;  %v1823_v45 = vld [vmem:[#allocation2 + $0x14f] sm:$0xff]  ;;  %v6558_v12 = vld [vmem:[#allocation2 + $0x180] sm:$0xff] }
 0x238   : > { %21696 = vmatmul.mubr.msk.f32.gmra.mrb[80].mxu1 %vm325_vm0, %v28364_v15  ;;  %21140 = vmatprep.mubr.msk.f32.mxu0 %vm325_vm0, %v28365_v16  ;;  %v24907_v17 = vpop.f32.mrb[39].mxu1 }
 0x239   : > { %21698 = vmatprep.mubr.msk.f32.mxu1 %vm325_vm0, %v28366_v18  ;;  %v24974_v18 = vld [vmem:[%s28309_s4 + $0x30] sm:$0xff] }
 0x23b   : > { %21141 = vmatmul.mubr.msk.f32.gmra.mrb[26].mxu0 %vm325_vm0, %v28367_v19 }
 0x23c   : > { %21699 = vmatmul.mubr.msk.f32.gmra.mrb[26].mxu1 %vm325_vm0, %v28368_v20  ;;  %21143 = vmatprep.mubr.msk.f32.mxu0 %vm325_vm0, %v28369_v21  ;;  %v2241_v20 = vld [vmem:[#allocation2 + $0x48] sm:$0xff] }
 0x23d   : > { %21701 = vmatprep.mubr.msk.f32.mxu1 %vm325_vm0, %v28370_v22  ;;  %v2242_v22 = vld [vmem:[#allocation2 + $0x50] sm:$0xff] }
 0x23f   : > { %21144 = vmatmul.mubr.msk.f32.gmra.mrb[82].mxu0 %vm325_vm0, %v28371_v23  ;;  %v6560_v23 = vld [vmem:[#allocation2 + $0x190] sm:$0xff] }
 0x240   : > { %21702 = vmatmul.mubr.msk.f32.gmra.mrb[82].mxu1 %vm325_vm0, %v28372_v24  ;;  %21146 = vmatprep.mubr.msk.f32.mxu0 %vm325_vm0, %v28373_v25  ;;  %v6561_v24 = vld [vmem:[#allocation2 + $0x198] sm:$0xff]  ;;  %v2244_v25 = vld [vmem:[#allocation2 + $0x60] sm:$0xff] }
 0x241   : > { %21704 = vmatprep.mubr.msk.f32.mxu1 %vm325_vm0, %v28374_v26 }
 0x242   : > { %v20985_v27 = vpop.f32.mrb[40].mxu0 }
 0x243   : > { %v24928_v29 = vadd.f32 %v20985_v27, %v28375_v28  ;;  %v21543_v30 = vpop.f32.mrb[40].mxu1  ;;  %v1165_v31 = vpop.f32.mrb[41].mxu0  ;;  %21147 = vmatmul.mubr.msk.f32.gmra.mrb[30].mxu0 %vm325_vm0, %v28376_v32  ;;  %v6562_v27 = vld [vmem:[#allocation2 + $0x1a0] sm:$0xff]  ;;  %v2245_v32 = vld [vmem:[#allocation2 + $0x68] sm:$0xff] }
 0x244   : > { %v24933_v34 = vadd.f32 %v21543_v30, %v28377_v33  ;;  %21705 = vmatmul.mubr.msk.f32.gmra.mrb[30].mxu1 %vm325_vm0, %v28378_v35  ;;  %21149 = vmatprep.mubr.msk.f32.mxu0 %vm325_vm0, %v28379_v36  ;;  %v5485_v37 = vpop.f32.mrb[41].mxu1  ;;  %v6563_v35 = vld [vmem:[#allocation2 + $0x1a8] sm:$0xff]  ;;  %v2246_v36 = vld [vmem:[#allocation2 + $0x70] sm:$0xff] }
 0x245   : > { %21707 = vmatprep.mubr.msk.f32.mxu1 %vm325_vm0, %v28380_v38  ;;  %v6564_v37 = vld [vmem:[#allocation2 + $0x1b0] sm:$0xff]  ;;  %v6565_v38 = vld [vmem:[#allocation2 + $0x1b8] sm:$0xff] }
 0x247   : > { %21150 = vmatmul.mubr.msk.f32.gmra.mrb[32].mxu0 %vm325_vm0, %v28381_v39  ;;  %v2248_v39 = vld [vmem:[#allocation2 + $0x80] sm:$0xff] }
 0x248   : > { %21708 = vmatmul.mubr.msk.f32.gmra.mrb[32].mxu1 %vm325_vm0, %v28382_v40  ;;  %21152 = vmatprep.mubr.msk.f32.mxu0 %vm325_vm0, %v28383_v41  ;;  %v6566_v40 = vld [vmem:[#allocation2 + $0x1c0] sm:$0xff]  ;;  %v6567_v41 = vld [vmem:[#allocation2 + $0x1c8] sm:$0xff] }
 0x249   : > { %21710 = vmatprep.mubr.msk.f32.mxu1 %vm325_vm0, %v28384_v43 }
 0x24a   : > { %v20991_v51 = vpop.f32.mrb[42].mxu0 }
 0x24b   : > { %v21549_v52 = vpop.f32.mrb[42].mxu1  ;;  %v1184_v46 = vpop.f32.mrb[43].mxu0  ;;  %21153 = vmatmul.mubr.msk.f32.gmra.mrb[84].mxu0 %vm325_vm0, %v1822_v42  ;;  %v2250_v42 = vld [vmem:[#allocation2 + $0x90] sm:$0xff] }
 0x24c   : > { %v24951_v53 = vadd.f32 %v1184_v46, %v24756_v50  ;;  %v5504_v56 = vpop.f32.mrb[43].mxu1  ;;  %21711 = vmatmul.mubr.msk.f32.gmra.mrb[84].mxu1 %vm325_vm0, %v6141_v44  ;;  %21155 = vmatprep.mubr.msk.f32.mxu0 %vm325_vm0, %v1823_v45  ;;  %v1826_v50 = vld [vmem:[#allocation2 + $0x167] sm:$0xff]  ;;  %v6568_v44 = vld [vmem:[#allocation2 + $0x1d0] sm:$0xff]  ;;  %v2251_v46 = vld [vmem:[#allocation2 + $0x98] sm:$0xff] }
 0x24d   : > { %v24956_v55 = vadd.f32 %v5504_v56, %v24761_v57  ;;  %21713 = vmatprep.mubr.msk.f32.mxu1 %vm325_vm0, %v6142_v58  ;;  %v2239_v57 = vld [vmem:[#allocation2 + $0x38] sm:$0xff] }
 0x24f   : > { %21156 = vmatmul.mubr.msk.f32.gmra.mrb[36].mxu0 %vm325_vm0, %v1824_v47  ;;  %v6569_v47 = vld [vmem:[#allocation2 + $0x1d8] sm:$0xff] }
 0x250   : > { %21714 = vmatmul.mubr.msk.f32.gmra.mrb[36].mxu1 %vm325_vm0, %v6143_v59  ;;  %21158 = vmatprep.mubr.msk.f32.mxu0 %vm325_vm0, %v1825_v60  ;;  %v2252_v59 = vld [vmem:[#allocation2 + $0xa0] sm:$0xff] }
 0x251   : > { %21716 = vmatprep.mubr.msk.f32.mxu1 %vm325_vm0, %v6144_v63  ;;  %v6570_v60 = vld [vmem:[#allocation2 + $0x1e0] sm:$0xff]  ;;  %v2254_v63 = vld [vmem:[#allocation2 + $0xb0] sm:$0xff] }
 0x253   : > { %21159 = vmatmul.mubr.msk.f32.gmra.mrb[86].mxu0 %vm325_vm0, %v1826_v50 }
 0x254   : > { %21717 = vmatmul.mubr.msk.f32.gmra.mrb[86].mxu1 %vm325_vm0, %v6145_v1  ;;  %21163 = vmatprep.mubr.msk.f32.mxu0 %vm325_vm0, %v2238_v3  ;;  %v6572_v1 = vld [vmem:[#allocation2 + $0x1f0] sm:$0xff] }
 0x255   : > { %21721 = vmatprep.mubr.msk.f32.mxu1 %vm325_vm0, %v6556_v4 }
 0x256   : > { %v21000_v9 = vpop.f32.mrb[44].mxu0 }
 0x257   : > { %v24968_v14 = vadd.f32 %v21000_v9, %v24774_v49  ;;  %v21558_v15 = vpop.f32.mrb[44].mxu1  ;;  %v1213_v16 = vpop.f32.mrb[45].mxu0  ;;  %21164 = vmatmul.mubr.msk.f32.vlgmr.msra.gmra.mrb[0].mxu0 %vm325_vm0, %v2239_v57  ;;  %v6559_v49 = vld [vmem:[#allocation2 + $0x188] sm:$0xff]  ;;  %v2255_v9 = vld [vmem:[#allocation2 + $0xb8] sm:$0xff] }
 0x258   : > { %v24977_v19 = vadd.f32 %v21558_v15, %v24778_v54  ;;  %21722 = vmatmul.mubr.msk.f32.vlgmr.msra.gmra.mrb[0].mxu1 %vm325_vm0, %v6557_v6  ;;  %21224 = vmatpush3.msra.mxu0 %v24783_v48  ;;  %v5533_v21 = vpop.f32.mrb[45].mxu1  ;;  %v2243_v54 = vld [vmem:[#allocation2 + $0x58] sm:$0xff]  ;;  %v2256_v15 = vld [vmem:[#allocation2 + $0xc0] sm:$0xff] }
 0x259   : > { %21166 = vmatprep.mubr.msk.f32.mxu0 %vm325_vm0, %v2240_v11  ;;  %21724 = vmatprep.mubr.msk.f32.mxu1 %vm325_vm0, %v6558_v12  ;;  %v6573_v12 = vld [vmem:[#allocation2 + $0x1f8] sm:$0xff]  ;;  %v6574_v16 = vld [vmem:[#allocation2 + $0x200] sm:$0xff]  ;;  %v2258_v21 = vld [vmem:[#allocation2 + $0xd0] sm:$0xff] }
 0x25a   : > { %21782 = vmatpush3.msra.mxu1 %v24783_v48  ;;  %21285 = vmatprep.subr.mxu0 %v24974_v18 }
 0x25b   : > { %21167 = vmatmul.mubr.msk.f32.gmra.mrb[2].mxu0 %vm325_vm0, %v2241_v20  ;;  %21843 = vmatprep.subr.mxu1 %v24974_v18  ;;  %v6575_v20 = vld [vmem:[#allocation2 + $0x208] sm:$0xff] }
 0x25c   : > { %21725 = vmatmul.mubr.msk.f32.gmra.mrb[2].mxu1 %vm325_vm0, %v6559_v49  ;;  %21169 = vmatprep.mubr.msk.f32.mxu0 %vm325_vm0, %v2242_v22  ;;  %v6576_v49 = vld [vmem:[#allocation2 + $0x210] sm:$0xff]  ;;  %v6577_v22 = vld [vmem:[#allocation2 + $0x218] sm:$0xff] }
 0x25d   : > { %21727 = vmatprep.mubr.msk.f32.mxu1 %vm325_vm0, %v6560_v23  ;;  %v2260_v23 = vld [vmem:[#allocation2 + $0xe0] sm:$0xff] }
 0x25e   : > { %v21006_v26 = vpop.f32.mrb[46].mxu0 }
 0x25f   : > { %v21564_v28 = vpop.f32.mrb[46].mxu1  ;;  %v1232_v30 = vpop.f32.mrb[47].mxu0  ;;  %21170 = vmatmul.mubr.msk.f32.gmra.mrb[88].mxu0 %vm325_vm0, %v2243_v54 }
 0x260   : > { %v24992_v48 = vadd.f32 %v1232_v30, %v24803_v62  ;;  %v5552_v31 = vpop.f32.mrb[47].mxu1  ;;  %21728 = vmatmul.mubr.msk.f32.gmra.mrb[88].mxu1 %vm325_vm0, %v6561_v24  ;;  %21172 = vmatprep.mubr.msk.f32.mxu0 %vm325_vm0, %v2244_v25  ;;  %v2247_v62 = vld [vmem:[#allocation2 + $0x78] sm:$0xff]  ;;  %v6578_v24 = vld [vmem:[#allocation2 + $0x220] sm:$0xff]  ;;  %v2261_v30 = vld [vmem:[#allocation2 + $0xe8] sm:$0xff] }
 0x261   : > { %v24997_v33 = vadd.f32 %v5552_v31, %v24811_v61  ;;  %21730 = vmatprep.mubr.msk.f32.mxu1 %vm325_vm0, %v6562_v27  ;;  %v2249_v61 = vld [vmem:[#allocation2 + $0x88] sm:$0xff] }
 0x263   : > { %21173 = vmatmul.mubr.msk.f32.gmra.mrb[6].mxu0 %vm325_vm0, %v2245_v32  ;;  %v6579_v32 = vld [vmem:[#allocation2 + $0x228] sm:$0xff] }
 0x264   : > { %21731 = vmatmul.mubr.msk.f32.gmra.mrb[6].mxu1 %vm325_vm0, %v6563_v35  ;;  %21175 = vmatprep.mubr.msk.f32.mxu0 %vm325_vm0, %v2246_v36  ;;  %v2262_v35 = vld [vmem:[#allocation2 + $0xf0] sm:$0xff] }
 0x265   : > { %21733 = vmatprep.mubr.msk.f32.mxu1 %vm325_vm0, %v6564_v37  ;;  %v6580_v36 = vld [vmem:[#allocation2 + $0x230] sm:$0xff]  ;;  %v2264_v37 = vld [vmem:[#allocation2 + $0x100] sm:$0xff] }
 0x267   : > { %21176 = vmatmul.mubr.msk.f32.gmra.mrb[90].mxu0 %vm325_vm0, %v2247_v62 }
 0x268   : > { %21734 = vmatmul.mubr.msk.f32.gmra.mrb[90].mxu1 %vm325_vm0, %v6565_v38  ;;  %21178 = vmatprep.mubr.msk.f32.mxu0 %vm325_vm0, %v2248_v39  ;;  %v6582_v38 = vld [vmem:[#allocation2 + $0x240] sm:$0xff] }
 0x269   : > { %21736 = vmatprep.mubr.msk.f32.mxu1 %vm325_vm0, %v6566_v40 }
 0x26a   : > { %v21015_v43 = vpop.f32.mrb[48].mxu0 }
 0x26b   : > { %v25009_v45 = vadd.f32 %v21015_v43, %v24831_v0  ;;  %v21573_v51 = vpop.f32.mrb[48].mxu1  ;;  %v1261_v58 = vpop.f32.mrb[49].mxu0  ;;  %21179 = vmatmul.mubr.msk.f32.gmra.mrb[10].mxu0 %vm325_vm0, %v2249_v61  ;;  %v2253_v0 = vld [vmem:[#allocation2 + $0xa8] sm:$0xff] }
 0x26c   : > { %v25013_v52 = vadd.f32 %v21573_v51, %v24835_v2  ;;  %21737 = vmatmul.mubr.msk.f32.gmra.mrb[10].mxu1 %vm325_vm0, %v6567_v41  ;;  %21181 = vmatprep.mubr.msk.f32.mxu0 %vm325_vm0, %v2250_v42  ;;  %v5581_v56 = vpop.f32.mrb[49].mxu1  ;;  %v6571_v2 = vld [vmem:[#allocation2 + $0x1e8] sm:$0xff]  ;;  %v2266_v51 = vld [vmem:[#allocation2 + $0x110] sm:$0xff] }
 0x26d   : > { %21739 = vmatprep.mubr.msk.f32.mxu1 %vm325_vm0, %v6568_v44  ;;  %v2265_v42 = vld [vmem:[#allocation2 + $0x108] sm:$0xff]  ;;  %v6584_v58 = vld [vmem:[#allocation2 + $0x250] sm:$0xff]  ;;  %v2268_v56 = vld [vmem:[#allocation2 + $0x120] sm:$0xff] }
 0x26e   : > { %v6583_v44 = vld [vmem:[#allocation2 + $0x248] sm:$0xff] }
 0x26f   : > { %21182 = vmatmul.mubr.msk.f32.gmra.mrb[12].mxu0 %vm325_vm0, %v2251_v46  ;;  %v6585_v46 = vld [vmem:[#allocation2 + $0x258] sm:$0xff] }
 0x270   : > { %21740 = vmatmul.mubr.msk.f32.gmra.mrb[12].mxu1 %vm325_vm0, %v6569_v47  ;;  %21184 = vmatprep.mubr.msk.f32.mxu0 %vm325_vm0, %v2252_v59  ;;  %v6586_v47 = vld [vmem:[#allocation2 + $0x260] sm:$0xff]  ;;  %v6587_v59 = vld [vmem:[#allocation2 + $0x268] sm:$0xff] }
 0x271   : > { %21742 = vmatprep.mubr.msk.f32.mxu1 %vm325_vm0, %v6570_v60  ;;  %v2270_v60 = vld [vmem:[#allocation2 + $0x130] sm:$0xff] }
 0x272   : > { %v21021_v50 = vpop.f32.mrb[50].mxu0 }
 0x273   : > { %v21579_v3 = vpop.f32.mrb[50].mxu1  ;;  %v1280_v4 = vpop.f32.mrb[51].mxu0  ;;  %21185 = vmatmul.mubr.msk.f32.gmra.mrb[92].mxu0 %vm325_vm0, %v2253_v0 }
 0x274   : > { %v25024_v57 = vadd.f32 %v1280_v4, %v24851_v5  ;;  %v5600_v6 = vpop.f32.mrb[51].mxu1  ;;  %21743 = vmatmul.mubr.msk.f32.gmra.mrb[92].mxu1 %vm325_vm0, %v6571_v2  ;;  %21187 = vmatprep.mubr.msk.f32.mxu0 %vm325_vm0, %v2254_v63  ;;  %v2257_v5 = vld [vmem:[#allocation2 + $0xc8] sm:$0xff]  ;;  %v6588_v2 = vld [vmem:[#allocation2 + $0x270] sm:$0xff]  ;;  %v2271_v4 = vld [vmem:[#allocation2 + $0x138] sm:$0xff] }
 0x275   : > { %v25029_v11 = vadd.f32 %v5600_v6, %v24859_v7  ;;  %21745 = vmatprep.mubr.msk.f32.mxu1 %vm325_vm0, %v6572_v1  ;;  %v2259_v7 = vld [vmem:[#allocation2 + $0xd8] sm:$0xff] }
 0x277   : > { %21188 = vmatmul.mubr.msk.f32.gmra.mrb[16].mxu0 %vm325_vm0, %v2255_v9  ;;  %v6589_v9 = vld [vmem:[#allocation2 + $0x278] sm:$0xff] }
 0x278   : > { %21746 = vmatmul.mubr.msk.f32.gmra.mrb[16].mxu1 %vm325_vm0, %v6573_v12  ;;  %21190 = vmatprep.mubr.msk.f32.mxu0 %vm325_vm0, %v2256_v15  ;;  %v2272_v12 = vld [vmem:[#allocation2 + $0x140] sm:$0xff] }
 0x279   : > { %21748 = vmatprep.mubr.msk.f32.mxu1 %vm325_vm0, %v6574_v16  ;;  %v6590_v15 = vld [vmem:[#allocation2 + $0x280] sm:$0xff]  ;;  %v2274_v16 = vld [vmem:[#allocation2 + $0x150] sm:$0xff] }
 0x27b   : > { %21191 = vmatmul.mubr.msk.f32.gmra.mrb[94].mxu0 %vm325_vm0, %v2257_v5 }
 0x27c   : > { %21749 = vmatmul.mubr.msk.f32.gmra.mrb[94].mxu1 %vm325_vm0, %v6575_v20  ;;  %21193 = vmatprep.mubr.msk.f32.mxu0 %vm325_vm0, %v2258_v21  ;;  %v6592_v20 = vld [vmem:[#allocation2 + $0x290] sm:$0xff] }
 0x27d   : > { %21751 = vmatprep.mubr.msk.f32.mxu1 %vm325_vm0, %v6576_v49 }
 0x27e   : > { %v21030_v54 = vpop.f32.mrb[52].mxu0 }
 0x27f   : > { %v25041_v25 = vadd.f32 %v21030_v54, %v24879_v8  ;;  %v21588_v26 = vpop.f32.mrb[52].mxu1  ;;  %v1309_v27 = vpop.f32.mrb[53].mxu0  ;;  %21194 = vmatmul.mubr.msk.f32.gmra.mrb[20].mxu0 %vm325_vm0, %v2259_v7  ;;  %v2263_v8 = vld [vmem:[#allocation2 + $0xf8] sm:$0xff] }
 0x280   : > { %v25045_v28 = vadd.f32 %v21588_v26, %v24883_v10  ;;  %21752 = vmatmul.mubr.msk.f32.gmra.mrb[20].mxu1 %vm325_vm0, %v6577_v22  ;;  %21196 = vmatprep.mubr.msk.f32.mxu0 %vm325_vm0, %v2260_v23  ;;  %v5629_v31 = vpop.f32.mrb[53].mxu1  ;;  %v6581_v10 = vld [vmem:[#allocation2 + $0x238] sm:$0xff]  ;;  %v2276_v26 = vld [vmem:[#allocation2 + $0x160] sm:$0xff] }
 0x281   : > { %21754 = vmatprep.mubr.msk.f32.mxu1 %vm325_vm0, %v6578_v24  ;;  %v2275_v23 = vld [vmem:[#allocation2 + $0x158] sm:$0xff]  ;;  %v6594_v27 = vld [vmem:[#allocation2 + $0x2a0] sm:$0xff] }
 0x282   : > { %v6593_v24 = vld [vmem:[#allocation2 + $0x298] sm:$0xff] }
 0x283   : > { %21197 = vmatmul.mubr.msk.f32.gmra.mrb[22].mxu0 %vm325_vm0, %v2261_v30  ;;  %v6595_v30 = vld [vmem:[#allocation2 + $0x2a8] sm:$0xff]  ;;  %v2689_v31 = vld [vmem:[#allocation2 + $0x31] sm:$0xff] }
 0x284   : > { %21755 = vmatmul.mubr.msk.f32.gmra.mrb[22].mxu1 %vm325_vm0, %v6579_v32  ;;  %21199 = vmatprep.mubr.msk.f32.mxu0 %vm325_vm0, %v2262_v35  ;;  %v7006_v32 = vld [vmem:[#allocation2 + $0x171] sm:$0xff]  ;;  %v7007_v35 = vld [vmem:[#allocation2 + $0x179] sm:$0xff] }
 0x285   : > { %21757 = vmatprep.mubr.msk.f32.mxu1 %vm325_vm0, %v6580_v36 }
 0x286   : > { %v21036_v62 = vpop.f32.mrb[54].mxu0 }
 0x287   : > { %v21594_v39 = vpop.f32.mrb[54].mxu1  ;;  %v1328_v40 = vpop.f32.mrb[55].mxu0  ;;  %21200 = vmatmul.mubr.msk.f32.gmra.mrb[96].mxu0 %vm325_vm0, %v2263_v8  ;;  %v2691_v8 = vld [vmem:[#allocation2 + $0x41] sm:$0xff] }
 0x288   : > { %v25056_v61 = vadd.f32 %v1328_v40, %v24899_v13  ;;  %v5648_v41 = vpop.f32.mrb[55].mxu1  ;;  %21758 = vmatmul.mubr.msk.f32.gmra.mrb[96].mxu1 %vm325_vm0, %v6581_v10  ;;  %21202 = vmatprep.mubr.msk.f32.mxu0 %vm325_vm0, %v2264_v37  ;;  %v2267_v13 = vld [vmem:[#allocation2 + $0x118] sm:$0xff]  ;;  %v7008_v10 = vld [vmem:[#allocation2 + $0x181] sm:$0xff] }
 0x289   : > { %v25061_v43 = vadd.f32 %v5648_v41, %v24907_v17  ;;  %21760 = vmatprep.mubr.msk.f32.mxu1 %vm325_vm0, %v6582_v38  ;;  %v2269_v17 = vld [vmem:[#allocation2 + $0x128] sm:$0xff]  ;;  %v25111_v39 = vld [vmem:[%s28309_s4 + $0x38] sm:$0xff] }
 0x28a   : > { %v2692_v41 = vld [vmem:[#allocation2 + $0x49] sm:$0xff] }
 0x28b   : > { %21203 = vmatmul.mubr.msk.f32.gmra.mrb[26].mxu0 %vm325_vm0, %v2265_v42 }
 0x28c   : > { %21761 = vmatmul.mubr.msk.f32.gmra.mrb[26].mxu1 %vm325_vm0, %v6583_v44  ;;  %21205 = vmatprep.mubr.msk.f32.mxu0 %vm325_vm0, %v2266_v51  ;;  %v2693_v44 = vld [vmem:[#allocation2 + $0x51] sm:$0xff] }
 0x28d   : > { %21763 = vmatprep.mubr.msk.f32.mxu1 %vm325_vm0, %v6584_v58  ;;  %v7010_v51 = vld [vmem:[#allocation2 + $0x191] sm:$0xff]  ;;  %v7011_v58 = vld [vmem:[#allocation2 + $0x199] sm:$0xff] }
 0x28f   : > { %21206 = vmatmul.mubr.msk.f32.gmra.mrb[98].mxu0 %vm325_vm0, %v2267_v13  ;;  %v2695_v13 = vld [vmem:[#allocation2 + $0x61] sm:$0xff] }
 0x290   : > { %21764 = vmatmul.mubr.msk.f32.gmra.mrb[98].mxu1 %vm325_vm0, %v6585_v46  ;;  %21208 = vmatprep.mubr.msk.f32.mxu0 %vm325_vm0, %v2268_v56  ;;  %v7012_v56 = vld [vmem:[#allocation2 + $0x1a1] sm:$0xff] }
 0x291   : > { %21766 = vmatprep.mubr.msk.f32.mxu1 %vm325_vm0, %v6586_v47 }
 0x292   : > { %v21047_v0 = vpop.f32.mrb[56].mxu0 }
 0x293   : > { %v25073_v63 = vadd.f32 %v21047_v0, %v24928_v29  ;;  %v21605_v50 = vpop.f32.mrb[56].mxu1  ;;  %v1584_v1 = vpop.f32.mrb[57].mxu0  ;;  %21209 = vmatmul.mubr.msk.f32.gmra.mrb[30].mxu0 %vm325_vm0, %v2269_v17  ;;  %v2273_v29 = vld [vmem:[#allocation2 + $0x148] sm:$0xff] }
 0x294   : > { %v25077_v3 = vadd.f32 %v21605_v50, %v24933_v34  ;;  %21767 = vmatmul.mubr.msk.f32.gmra.mrb[30].mxu1 %vm325_vm0, %v6587_v59  ;;  %21211 = vmatprep.mubr.msk.f32.mxu0 %vm325_vm0, %v2270_v60  ;;  %v5903_v6 = vpop.f32.mrb[57].mxu1  ;;  %v6591_v34 = vld [vmem:[#allocation2 + $0x288] sm:$0xff]  ;;  %v2697_v50 = vld [vmem:[#allocation2 + $0x71] sm:$0xff] }
 0x295   : > { %21769 = vmatprep.mubr.msk.f32.mxu1 %vm325_vm0, %v6588_v2  ;;  %v2696_v60 = vld [vmem:[#allocation2 + $0x69] sm:$0xff]  ;;  %v7014_v1 = vld [vmem:[#allocation2 + $0x1b1] sm:$0xff]  ;;  %v2699_v6 = vld [vmem:[#allocation2 + $0x81] sm:$0xff] }
 0x296   : > { %v7013_v2 = vld [vmem:[#allocation2 + $0x1a9] sm:$0xff] }
 0x297   : > { %21212 = vmatmul.mubr.msk.f32.gmra.mrb[32].mxu0 %vm325_vm0, %v2271_v4  ;;  %v7015_v4 = vld [vmem:[#allocation2 + $0x1b9] sm:$0xff] }
 0x298   : > { %21770 = vmatmul.mubr.msk.f32.gmra.mrb[32].mxu1 %vm325_vm0, %v6589_v9  ;;  %21214 = vmatprep.mubr.msk.f32.mxu0 %vm325_vm0, %v2272_v12  ;;  %v7016_v9 = vld [vmem:[#allocation2 + $0x1c1] sm:$0xff]  ;;  %v7017_v12 = vld [vmem:[#allocation2 + $0x1c9] sm:$0xff] }
 0x299   : > { %21772 = vmatprep.mubr.msk.f32.mxu1 %vm325_vm0, %v6590_v15  ;;  %v2701_v15 = vld [vmem:[#allocation2 + $0x91] sm:$0xff] }
 0x29a   : > { %v21053_v5 = vpop.f32.mrb[58].mxu0 }
 0x29b   : > { %v21611_v21 = vpop.f32.mrb[58].mxu1  ;;  %v1603_v49 = vpop.f32.mrb[59].mxu0  ;;  %21215 = vmatmul.mubr.msk.f32.gmra.mrb[100].mxu0 %vm325_vm0, %v2273_v29 }
 0x29c   : > { %v25088_v7 = vadd.f32 %v1603_v49, %v24951_v53  ;;  %v5922_v22 = vpop.f32.mrb[59].mxu1  ;;  %21773 = vmatmul.mubr.msk.f32.gmra.mrb[100].mxu1 %vm325_vm0, %v6591_v34  ;;  %21217 = vmatprep.mubr.msk.f32.mxu0 %vm325_vm0, %v2274_v16  ;;  %v2277_v53 = vld [vmem:[#allocation2 + $0x168] sm:$0xff]  ;;  %v7018_v34 = vld [vmem:[#allocation2 + $0x1d1] sm:$0xff]  ;;  %v2702_v49 = vld [vmem:[#allocation2 + $0x99] sm:$0xff] }
 0x29d   : > { %v25093_v54 = vadd.f32 %v5922_v22, %v24956_v55  ;;  %21775 = vmatprep.mubr.msk.f32.mxu1 %vm325_vm0, %v6592_v20  ;;  %v2690_v55 = vld [vmem:[#allocation2 + $0x39] sm:$0xff] }
 0x29f   : > { %21218 = vmatmul.mubr.msk.f32.gmra.mrb[36].mxu0 %vm325_vm0, %v2275_v23  ;;  %v7019_v23 = vld [vmem:[#allocation2 + $0x1d9] sm:$0xff] }
 0x2a0   : > { %21776 = vmatmul.mubr.msk.f32.gmra.mrb[36].mxu1 %vm325_vm0, %v6593_v24  ;;  %21220 = vmatprep.mubr.msk.f32.mxu0 %vm325_vm0, %v2276_v26  ;;  %v2703_v24 = vld [vmem:[#allocation2 + $0xa1] sm:$0xff] }
 0x2a1   : > { %21778 = vmatprep.mubr.msk.f32.mxu1 %vm325_vm0, %v6594_v27  ;;  %v7020_v26 = vld [vmem:[#allocation2 + $0x1e1] sm:$0xff]  ;;  %v2705_v27 = vld [vmem:[#allocation2 + $0xb1] sm:$0xff] }
 0x2a3   : > { %21221 = vmatmul.mubr.msk.f32.gmra.mrb[102].mxu0 %vm325_vm0, %v2277_v53 }
 0x2a4   : > { %21779 = vmatmul.mubr.msk.f32.gmra.mrb[102].mxu1 %vm325_vm0, %v6595_v30  ;;  %21225 = vmatprep.mubr.msk.f32.mxu0 %vm325_vm0, %v2689_v31  ;;  %v7022_v30 = vld [vmem:[#allocation2 + $0x1f1] sm:$0xff] }
 0x2a5   : > { %21783 = vmatprep.mubr.msk.f32.mxu1 %vm325_vm0, %v7006_v32 }
 0x2a6   : > { %v21062_v36 = vpop.f32.mrb[60].mxu0 }
 0x2a7   : > { %v25105_v37 = vadd.f32 %v21062_v36, %v24968_v14  ;;  %v21620_v62 = vpop.f32.mrb[60].mxu1  ;;  %v1632_v38 = vpop.f32.mrb[61].mxu0  ;;  %21226 = vmatmul.mubr.msk.f32.vlgmr.msra.gmra.mrb[0].mxu0 %vm325_vm0, %v2690_v55  ;;  %v7009_v14 = vld [vmem:[#allocation2 + $0x189] sm:$0xff]  ;;  %v2706_v36 = vld [vmem:[#allocation2 + $0xb9] sm:$0xff] }
 0x2a8   : > { %v25114_v40 = vadd.f32 %v21620_v62, %v24977_v19  ;;  %21784 = vmatmul.mubr.msk.f32.vlgmr.msra.gmra.mrb[0].mxu1 %vm325_vm0, %v7007_v35  ;;  %21286 = vmatpush3.msra.mxu0 %v24974_v18  ;;  %v5951_v42 = vpop.f32.mrb[61].mxu1  ;;  %v2694_v19 = vld [vmem:[#allocation2 + $0x59] sm:$0xff]  ;;  %v2707_v62 = vld [vmem:[#allocation2 + $0xc1] sm:$0xff] }
 0x2a9   : > { %21228 = vmatprep.mubr.msk.f32.mxu0 %vm325_vm0, %v2691_v8  ;;  %21786 = vmatprep.mubr.msk.f32.mxu1 %vm325_vm0, %v7008_v10  ;;  %v7023_v10 = vld [vmem:[#allocation2 + $0x1f9] sm:$0xff]  ;;  %v7024_v38 = vld [vmem:[#allocation2 + $0x201] sm:$0xff]  ;;  %v2709_v42 = vld [vmem:[#allocation2 + $0xd1] sm:$0xff] }
 0x2aa   : > { %21844 = vmatpush3.msra.mxu1 %v24974_v18  ;;  %21347 = vmatprep.subr.mxu0 %v25111_v39 }
 0x2ab   : > { %21229 = vmatmul.mubr.msk.f32.gmra.mrb[2].mxu0 %vm325_vm0, %v2692_v41  ;;  %21905 = vmatprep.subr.mxu1 %v25111_v39  ;;  %v7025_v41 = vld [vmem:[#allocation2 + $0x209] sm:$0xff] }
 0x2ac   : > { %21787 = vmatmul.mubr.msk.f32.gmra.mrb[2].mxu1 %vm325_vm0, %v7009_v14  ;;  %21231 = vmatprep.mubr.msk.f32.mxu0 %vm325_vm0, %v2693_v44  ;;  %v7026_v14 = vld [vmem:[#allocation2 + $0x211] sm:$0xff]  ;;  %v7027_v44 = vld [vmem:[#allocation2 + $0x219] sm:$0xff] }
 0x2ad   : > { %21789 = vmatprep.mubr.msk.f32.mxu1 %vm325_vm0, %v7010_v51  ;;  %v2711_v51 = vld [vmem:[#allocation2 + $0xe1] sm:$0xff] }
 0x2ae   : > { %v21068_v46 = vpop.f32.mrb[62].mxu0 }
 0x2af   : > { %v21626_v47 = vpop.f32.mrb[62].mxu1  ;;  %v1651_v17 = vpop.f32.mrb[63].mxu0  ;;  %21232 = vmatmul.mubr.msk.f32.gmra.mrb[104].mxu0 %vm325_vm0, %v2694_v19 }
 0x2b0   : > { %v25129_v18 = vadd.f32 %v1651_v17, %v24992_v48  ;;  %v5970_v59 = vpop.f32.mrb[63].mxu1  ;;  %21790 = vmatmul.mubr.msk.f32.gmra.mrb[104].mxu1 %vm325_vm0, %v7011_v58  ;;  %21234 = vmatprep.mubr.msk.f32.mxu0 %vm325_vm0, %v2695_v13  ;;  %v2698_v48 = vld [vmem:[#allocation2 + $0x79] sm:$0xff]  ;;  %v7028_v58 = vld [vmem:[#allocation2 + $0x221] sm:$0xff]  ;;  %v2712_v17 = vld [vmem:[#allocation2 + $0xe9] sm:$0xff] }
 0x2b1   : > { %v25134_v0 = vadd.f32 %v5970_v59, %v24997_v33  ;;  %21792 = vmatprep.mubr.msk.f32.mxu1 %vm325_vm0, %v7012_v56  ;;  %v2700_v33 = vld [vmem:[#allocation2 + $0x89] sm:$0xff] }
 0x2b3   : > { %21235 = vmatmul.mubr.msk.f32.gmra.mrb[6].mxu0 %vm325_vm0, %v2696_v60  ;;  %v7029_v60 = vld [vmem:[#allocation2 + $0x229] sm:$0xff] }
 0x2b4   : > { %21793 = vmatmul.mubr.msk.f32.gmra.mrb[6].mxu1 %vm325_vm0, %v7013_v2  ;;  %21237 = vmatprep.mubr.msk.f32.mxu0 %vm325_vm0, %v2697_v50  ;;  %v2713_v2 = vld [vmem:[#allocation2 + $0xf1] sm:$0xff] }
 0x2b5   : > { %21795 = vmatprep.mubr.msk.f32.mxu1 %vm325_vm0, %v7014_v1  ;;  %v7030_v50 = vld [vmem:[#allocation2 + $0x231] sm:$0xff]  ;;  %v2715_v1 = vld [vmem:[#allocation2 + $0x101] sm:$0xff] }
 0x2b7   : > { %21238 = vmatmul.mubr.msk.f32.gmra.mrb[106].mxu0 %vm325_vm0, %v2698_v48 }
 0x2b8   : > { %21796 = vmatmul.mubr.msk.f32.gmra.mrb[106].mxu1 %vm325_vm0, %v7015_v4  ;;  %21240 = vmatprep.mubr.msk.f32.mxu0 %vm325_vm0, %v2699_v6  ;;  %v7032_v4 = vld [vmem:[#allocation2 + $0x241] sm:$0xff] }
 0x2b9   : > { %21798 = vmatprep.mubr.msk.f32.mxu1 %vm325_vm0, %v7016_v9 }
 0x2ba   : > { %v21077_v29 = vpop.f32.mrb[64].mxu0 }
 0x2bb   : > { %v25146_v16 = vadd.f32 %v21077_v29, %v25009_v45  ;;  %v21635_v5 = vpop.f32.mrb[64].mxu1  ;;  %v1680_v20 = vpop.f32.mrb[65].mxu0  ;;  %21241 = vmatmul.mubr.msk.f32.gmra.mrb[10].mxu0 %vm325_vm0, %v2700_v33  ;;  %v2704_v45 = vld [vmem:[#allocation2 + $0xa9] sm:$0xff] }
 0x2bc   : > { %v25150_v21 = vadd.f32 %v21635_v5, %v25013_v52  ;;  %21799 = vmatmul.mubr.msk.f32.gmra.mrb[10].mxu1 %vm325_vm0, %v7017_v12  ;;  %21243 = vmatprep.mubr.msk.f32.mxu0 %vm325_vm0, %v2701_v15  ;;  %v5999_v22 = vpop.f32.mrb[65].mxu1  ;;  %v7021_v52 = vld [vmem:[#allocation2 + $0x1e9] sm:$0xff]  ;;  %v2717_v5 = vld [vmem:[#allocation2 + $0x111] sm:$0xff] }
 0x2bd   : > { %21801 = vmatprep.mubr.msk.f32.mxu1 %vm325_vm0, %v7018_v34  ;;  %v2716_v15 = vld [vmem:[#allocation2 + $0x109] sm:$0xff]  ;;  %v7034_v20 = vld [vmem:[#allocation2 + $0x251] sm:$0xff]  ;;  %v2719_v22 = vld [vmem:[#allocation2 + $0x121] sm:$0xff] }
 0x2be   : > { %v7033_v34 = vld [vmem:[#allocation2 + $0x249] sm:$0xff] }
 0x2bf   : > { %21244 = vmatmul.mubr.msk.f32.gmra.mrb[12].mxu0 %vm325_vm0, %v2702_v49  ;;  %v7035_v49 = vld [vmem:[#allocation2 + $0x259] sm:$0xff] }
 0x2c0   : > { %21802 = vmatmul.mubr.msk.f32.gmra.mrb[12].mxu1 %vm325_vm0, %v7019_v23  ;;  %21246 = vmatprep.mubr.msk.f32.mxu0 %vm325_vm0, %v2703_v24  ;;  %v7036_v23 = vld [vmem:[#allocation2 + $0x261] sm:$0xff]  ;;  %v7037_v24 = vld [vmem:[#allocation2 + $0x269] sm:$0xff] }
 0x2c1   : > { %21804 = vmatprep.mubr.msk.f32.mxu1 %vm325_vm0, %v7020_v26  ;;  %v2721_v26 = vld [vmem:[#allocation2 + $0x131] sm:$0xff] }
 0x2c2   : > { %v21083_v53 = vpop.f32.mrb[66].mxu0 }
 0x2c3   : > { %v21641_v31 = vpop.f32.mrb[66].mxu1  ;;  %v1699_v32 = vpop.f32.mrb[67].mxu0  ;;  %21247 = vmatmul.mubr.msk.f32.gmra.mrb[108].mxu0 %vm325_vm0, %v2704_v45 }
 0x2c4   : > { %v25161_v55 = vadd.f32 %v1699_v32, %v25024_v57  ;;  %v6018_v35 = vpop.f32.mrb[67].mxu1  ;;  %21805 = vmatmul.mubr.msk.f32.gmra.mrb[108].mxu1 %vm325_vm0, %v7021_v52  ;;  %21249 = vmatprep.mubr.msk.f32.mxu0 %vm325_vm0, %v2705_v27  ;;  %v2708_v57 = vld [vmem:[#allocation2 + $0xc9] sm:$0xff]  ;;  %v7038_v52 = vld [vmem:[#allocation2 + $0x271] sm:$0xff]  ;;  %v2722_v32 = vld [vmem:[#allocation2 + $0x139] sm:$0xff] }
 0x2c5   : > { %v25166_v8 = vadd.f32 %v6018_v35, %v25029_v11  ;;  %21807 = vmatprep.mubr.msk.f32.mxu1 %vm325_vm0, %v7022_v30  ;;  %v2710_v11 = vld [vmem:[#allocation2 + $0xd9] sm:$0xff] }
 0x2c7   : > { %21250 = vmatmul.mubr.msk.f32.gmra.mrb[16].mxu0 %vm325_vm0, %v2706_v36  ;;  %v7039_v36 = vld [vmem:[#allocation2 + $0x279] sm:$0xff] }
 0x2c8   : > { %21808 = vmatmul.mubr.msk.f32.gmra.mrb[16].mxu1 %vm325_vm0, %v7023_v10  ;;  %21252 = vmatprep.mubr.msk.f32.mxu0 %vm325_vm0, %v2707_v62  ;;  %v2723_v10 = vld [vmem:[#allocation2 + $0x141] sm:$0xff] }
 0x2c9   : > { %21810 = vmatprep.mubr.msk.f32.mxu1 %vm325_vm0, %v7024_v38  ;;  %v7040_v62 = vld [vmem:[#allocation2 + $0x281] sm:$0xff]  ;;  %v2725_v38 = vld [vmem:[#allocation2 + $0x151] sm:$0xff] }
 0x2cb   : > { %21253 = vmatmul.mubr.msk.f32.gmra.mrb[110].mxu0 %vm325_vm0, %v2708_v57 }
 0x2cc   : > { %21811 = vmatmul.mubr.msk.f32.gmra.mrb[110].mxu1 %vm325_vm0, %v7025_v41  ;;  %21255 = vmatprep.mubr.msk.f32.mxu0 %vm325_vm0, %v2709_v42  ;;  %v7042_v41 = vld [vmem:[#allocation2 + $0x291] sm:$0xff] }
 0x2cd   : > { %21813 = vmatprep.mubr.msk.f32.mxu1 %vm325_vm0, %v7026_v14 }
 0x2ce   : > { %v21092_v19 = vpop.f32.mrb[68].mxu0 }
 0x2cf   : > { %v25178_v13 = vadd.f32 %v21092_v19, %v25041_v25  ;;  %v21650_v46 = vpop.f32.mrb[68].mxu1  ;;  %v1728_v56 = vpop.f32.mrb[69].mxu0  ;;  %21256 = vmatmul.mubr.msk.f32.gmra.mrb[20].mxu0 %vm325_vm0, %v2710_v11  ;;  %v2714_v25 = vld [vmem:[#allocation2 + $0xf9] sm:$0xff] }
 0x2d0   : > { %v25182_v47 = vadd.f32 %v21650_v46, %v25045_v28  ;;  %21814 = vmatmul.mubr.msk.f32.gmra.mrb[20].mxu1 %vm325_vm0, %v7027_v44  ;;  %21258 = vmatprep.mubr.msk.f32.mxu0 %vm325_vm0, %v2711_v51  ;;  %v6047_v59 = vpop.f32.mrb[69].mxu1  ;;  %v7031_v28 = vld [vmem:[#allocation2 + $0x239] sm:$0xff]  ;;  %v2727_v46 = vld [vmem:[#allocation2 + $0x161] sm:$0xff] }
 0x2d1   : > { %21816 = vmatprep.mubr.msk.f32.mxu1 %vm325_vm0, %v7028_v58  ;;  %v2726_v51 = vld [vmem:[#allocation2 + $0x159] sm:$0xff]  ;;  %v7044_v56 = vld [vmem:[#allocation2 + $0x2a1] sm:$0xff] }
 0x2d2   : > { %v7043_v58 = vld [vmem:[#allocation2 + $0x299] sm:$0xff] }
 0x2d3   : > { %21259 = vmatmul.mubr.msk.f32.gmra.mrb[22].mxu0 %vm325_vm0, %v2712_v17  ;;  %v7045_v17 = vld [vmem:[#allocation2 + $0x2a9] sm:$0xff]  ;;  %v3140_v59 = vld [vmem:[#allocation2 + $0x57] sm:$0xff] }
 0x2d4   : > { %21817 = vmatmul.mubr.msk.f32.gmra.mrb[22].mxu1 %vm325_vm0, %v7029_v60  ;;  %21261 = vmatprep.mubr.msk.f32.mxu0 %vm325_vm0, %v2713_v2  ;;  %v7456_v60 = vld [vmem:[#allocation2 + $0x197] sm:$0xff]  ;;  %v7457_v2 = vld [vmem:[#allocation2 + $0x19f] sm:$0xff] }
 0x2d5   : > { %21819 = vmatprep.mubr.msk.f32.mxu1 %vm325_vm0, %v7030_v50 }
 0x2d6   : > { %v21098_v48 = vpop.f32.mrb[70].mxu0 }
 0x2d7   : > { %v21656_v6 = vpop.f32.mrb[70].mxu1  ;;  %v1747_v9 = vpop.f32.mrb[71].mxu0  ;;  %21262 = vmatmul.mubr.msk.f32.gmra.mrb[112].mxu0 %vm325_vm0, %v2714_v25  ;;  %v3142_v25 = vld [vmem:[#allocation2 + $0x67] sm:$0xff] }
 0x2d8   : > { %v25193_v33 = vadd.f32 %v1747_v9, %v25056_v61  ;;  %v6066_v12 = vpop.f32.mrb[71].mxu1  ;;  %21820 = vmatmul.mubr.msk.f32.gmra.mrb[112].mxu1 %vm325_vm0, %v7031_v28  ;;  %21264 = vmatprep.mubr.msk.f32.mxu0 %vm325_vm0, %v2715_v1  ;;  %v2718_v61 = vld [vmem:[#allocation2 + $0x119] sm:$0xff]  ;;  %v7458_v28 = vld [vmem:[#allocation2 + $0x1a7] sm:$0xff] }
 0x2d9   : > { %v25198_v29 = vadd.f32 %v6066_v12, %v25061_v43  ;;  %21822 = vmatprep.mubr.msk.f32.mxu1 %vm325_vm0, %v7032_v4  ;;  %v2720_v43 = vld [vmem:[#allocation2 + $0x129] sm:$0xff]  ;;  %v25248_v6 = vld [vmem:[%s28309_s4 + $0x40] sm:$0xff] }
 0x2da   : > { %v3143_v12 = vld [vmem:[#allocation2 + $0x6f] sm:$0xff] }
 0x2db   : > { %21265 = vmatmul.mubr.msk.f32.gmra.mrb[26].mxu0 %vm325_vm0, %v2716_v15 }
 0x2dc   : > { %21823 = vmatmul.mubr.msk.f32.gmra.mrb[26].mxu1 %vm325_vm0, %v7033_v34  ;;  %21267 = vmatprep.mubr.msk.f32.mxu0 %vm325_vm0, %v2717_v5  ;;  %v3144_v34 = vld [vmem:[#allocation2 + $0x77] sm:$0xff] }
 0x2dd   : > { %21825 = vmatprep.mubr.msk.f32.mxu1 %vm325_vm0, %v7034_v20  ;;  %v7460_v5 = vld [vmem:[#allocation2 + $0x1b7] sm:$0xff]  ;;  %v7461_v20 = vld [vmem:[#allocation2 + $0x1bf] sm:$0xff] }
 0x2df   : > { %21268 = vmatmul.mubr.msk.f32.gmra.mrb[114].mxu0 %vm325_vm0, %v2718_v61  ;;  %v3146_v61 = vld [vmem:[#allocation2 + $0x87] sm:$0xff] }
 0x2e0   : > { %21826 = vmatmul.mubr.msk.f32.gmra.mrb[114].mxu1 %vm325_vm0, %v7035_v49  ;;  %21270 = vmatprep.mubr.msk.f32.mxu0 %vm325_vm0, %v2719_v22  ;;  %v7462_v22 = vld [vmem:[#allocation2 + $0x1c7] sm:$0xff] }
 0x2e1   : > { %21828 = vmatprep.mubr.msk.f32.mxu1 %vm325_vm0, %v7036_v23 }
 0x2e2   : > { %v21109_v45 = vpop.f32.mrb[72].mxu0 }
 0x2e3   : > { %v25210_v27 = vadd.f32 %v21109_v45, %v25073_v63  ;;  %v21667_v53 = vpop.f32.mrb[72].mxu1  ;;  %v2035_v30 = vpop.f32.mrb[73].mxu0  ;;  %21271 = vmatmul.mubr.msk.f32.gmra.mrb[30].mxu0 %vm325_vm0, %v2720_v43  ;;  %v2724_v63 = vld [vmem:[#allocation2 + $0x149] sm:$0xff] }
 0x2e4   : > { %v25214_v31 = vadd.f32 %v21667_v53, %v25077_v3  ;;  %21829 = vmatmul.mubr.msk.f32.gmra.mrb[30].mxu1 %vm325_vm0, %v7037_v24  ;;  %21273 = vmatprep.mubr.msk.f32.mxu0 %vm325_vm0, %v2721_v26  ;;  %v6353_v35 = vpop.f32.mrb[73].mxu1  ;;  %v7041_v3 = vld [vmem:[#allocation2 + $0x289] sm:$0xff]  ;;  %v3148_v53 = vld [vmem:[#allocation2 + $0x97] sm:$0xff] }
 0x2e5   : > { %21831 = vmatprep.mubr.msk.f32.mxu1 %vm325_vm0, %v7038_v52  ;;  %v3147_v26 = vld [vmem:[#allocation2 + $0x8f] sm:$0xff]  ;;  %v7464_v30 = vld [vmem:[#allocation2 + $0x1d7] sm:$0xff]  ;;  %v3150_v35 = vld [vmem:[#allocation2 + $0xa7] sm:$0xff] }
 0x2e6   : > { %v7463_v52 = vld [vmem:[#allocation2 + $0x1cf] sm:$0xff] }
 0x2e7   : > { %21274 = vmatmul.mubr.msk.f32.gmra.mrb[32].mxu0 %vm325_vm0, %v2722_v32  ;;  %v7465_v32 = vld [vmem:[#allocation2 + $0x1df] sm:$0xff] }
 0x2e8   : > { %21832 = vmatmul.mubr.msk.f32.gmra.mrb[32].mxu1 %vm325_vm0, %v7039_v36  ;;  %21276 = vmatprep.mubr.msk.f32.mxu0 %vm325_vm0, %v2723_v10  ;;  %v7466_v36 = vld [vmem:[#allocation2 + $0x1e7] sm:$0xff]  ;;  %v7467_v10 = vld [vmem:[#allocation2 + $0x1ef] sm:$0xff] }
 0x2e9   : > { %21834 = vmatprep.mubr.msk.f32.mxu1 %vm325_vm0, %v7040_v62  ;;  %v3152_v62 = vld [vmem:[#allocation2 + $0xb7] sm:$0xff] }
 0x2ea   : > { %v21115_v57 = vpop.f32.mrb[74].mxu0 }
 0x2eb   : > { %v21673_v42 = vpop.f32.mrb[74].mxu1  ;;  %v2054_v14 = vpop.f32.mrb[75].mxu0  ;;  %21277 = vmatmul.mubr.msk.f32.gmra.mrb[116].mxu0 %vm325_vm0, %v2724_v63 }
 0x2ec   : > { %v25225_v11 = vadd.f32 %v2054_v14, %v25088_v7  ;;  %v6372_v44 = vpop.f32.mrb[75].mxu1  ;;  %21835 = vmatmul.mubr.msk.f32.gmra.mrb[116].mxu1 %vm325_vm0, %v7041_v3  ;;  %21279 = vmatprep.mubr.msk.f32.mxu0 %vm325_vm0, %v2725_v38  ;;  %v2728_v7 = vld [vmem:[#allocation2 + $0x169] sm:$0xff]  ;;  %v7468_v3 = vld [vmem:[#allocation2 + $0x1f7] sm:$0xff]  ;;  %v3153_v14 = vld [vmem:[#allocation2 + $0xbf] sm:$0xff] }
 0x2ed   : > { %v25230_v19 = vadd.f32 %v6372_v44, %v25093_v54  ;;  %21837 = vmatprep.mubr.msk.f32.mxu1 %vm325_vm0, %v7042_v41  ;;  %v3141_v54 = vld [vmem:[#allocation2 + $0x5f] sm:$0xff] }
 0x2ef   : > { %21280 = vmatmul.mubr.msk.f32.gmra.mrb[36].mxu0 %vm325_vm0, %v2726_v51  ;;  %v7469_v51 = vld [vmem:[#allocation2 + $0x1ff] sm:$0xff] }
 0x2f0   : > { %21838 = vmatmul.mubr.msk.f32.gmra.mrb[36].mxu1 %vm325_vm0, %v7043_v58  ;;  %21282 = vmatprep.mubr.msk.f32.mxu0 %vm325_vm0, %v2727_v46  ;;  %v3154_v58 = vld [vmem:[#allocation2 + $0xc7] sm:$0xff] }
 0x2f1   : > { %21840 = vmatprep.mubr.msk.f32.mxu1 %vm325_vm0, %v7044_v56  ;;  %v7470_v46 = vld [vmem:[#allocation2 + $0x207] sm:$0xff]  ;;  %v3156_v56 = vld [vmem:[#allocation2 + $0xd7] sm:$0xff] }
 0x2f3   : > { %21283 = vmatmul.mubr.msk.f32.gmra.mrb[118].mxu0 %vm325_vm0, %v2728_v7 }
 0x2f4   : > { %21841 = vmatmul.mubr.msk.f32.gmra.mrb[118].mxu1 %vm325_vm0, %v7045_v17  ;;  %21287 = vmatprep.mubr.msk.f32.mxu0 %vm325_vm0, %v3140_v59  ;;  %v7472_v17 = vld [vmem:[#allocation2 + $0x217] sm:$0xff] }
 0x2f5   : > { %21845 = vmatprep.mubr.msk.f32.mxu1 %vm325_vm0, %v7456_v60 }
 0x2f6   : > { %v21124_v50 = vpop.f32.mrb[76].mxu0 }
 0x2f7   : > { %v25242_v1 = vadd.f32 %v21124_v50, %v25105_v37  ;;  %v21682_v48 = vpop.f32.mrb[76].mxu1  ;;  %v2083_v4 = vpop.f32.mrb[77].mxu0  ;;  %21288 = vmatmul.mubr.msk.f32.vlgmr.msra.gmra.mrb[0].mxu0 %vm325_vm0, %v3141_v54  ;;  %v7459_v37 = vld [vmem:[#allocation2 + $0x1af] sm:$0xff]  ;;  %v3157_v50 = vld [vmem:[#allocation2 + $0xdf] sm:$0xff] }
 0x2f8   : > { %v25251_v9 = vadd.f32 %v21682_v48, %v25114_v40  ;;  %21846 = vmatmul.mubr.msk.f32.vlgmr.msra.gmra.mrb[0].mxu1 %vm325_vm0, %v7457_v2  ;;  %21348 = vmatpush3.msra.mxu0 %v25111_v39  ;;  %v6401_v15 = vpop.f32.mrb[77].mxu1  ;;  %v3145_v40 = vld [vmem:[#allocation2 + $0x7f] sm:$0xff]  ;;  %v3158_v48 = vld [vmem:[#allocation2 + $0xe7] sm:$0xff] }
 0x2f9   : > { %21290 = vmatprep.mubr.msk.f32.mxu0 %vm325_vm0, %v3142_v25  ;;  %21848 = vmatprep.mubr.msk.f32.mxu1 %vm325_vm0, %v7458_v28  ;;  %v7473_v28 = vld [vmem:[#allocation2 + $0x21f] sm:$0xff]  ;;  %v7474_v4 = vld [vmem:[#allocation2 + $0x227] sm:$0xff]  ;;  %v3160_v15 = vld [vmem:[#allocation2 + $0xf7] sm:$0xff] }
 0x2fa   : > { %21906 = vmatpush3.msra.mxu1 %v25111_v39  ;;  %21409 = vmatprep.subr.mxu0 %v25248_v6 }
 0x2fb   : > { %21291 = vmatmul.mubr.msk.f32.gmra.mrb[2].mxu0 %vm325_vm0, %v3143_v12  ;;  %21967 = vmatprep.subr.mxu1 %v25248_v6  ;;  %v7475_v12 = vld [vmem:[#allocation2 + $0x22f] sm:$0xff] }
 0x2fc   : > { %21849 = vmatmul.mubr.msk.f32.gmra.mrb[2].mxu1 %vm325_vm0, %v7459_v37  ;;  %21293 = vmatprep.mubr.msk.f32.mxu0 %vm325_vm0, %v3144_v34  ;;  %v7476_v37 = vld [vmem:[#allocation2 + $0x237] sm:$0xff]  ;;  %v7477_v34 = vld [vmem:[#allocation2 + $0x23f] sm:$0xff] }
 0x2fd   : > { %21851 = vmatprep.mubr.msk.f32.mxu1 %vm325_vm0, %v7460_v5  ;;  %v3162_v5 = vld [vmem:[#allocation2 + $0x107] sm:$0xff] }
 0x2fe   : > { %v21130_v49 = vpop.f32.mrb[78].mxu0 }
 0x2ff   : > { %v21688_v23 = vpop.f32.mrb[78].mxu1  ;;  %v2102_v43 = vpop.f32.mrb[79].mxu0  ;;  %21294 = vmatmul.mubr.msk.f32.gmra.mrb[120].mxu0 %vm325_vm0, %v3145_v40 }
 0x300   : > { %v25266_v39 = vadd.f32 %v2102_v43, %v25129_v18  ;;  %v6420_v24 = vpop.f32.mrb[79].mxu1  ;;  %21852 = vmatmul.mubr.msk.f32.gmra.mrb[120].mxu1 %vm325_vm0, %v7461_v20  ;;  %21296 = vmatprep.mubr.msk.f32.mxu0 %vm325_vm0, %v3146_v61  ;;  %v3149_v18 = vld [vmem:[#allocation2 + $0x9f] sm:$0xff]  ;;  %v7478_v20 = vld [vmem:[#allocation2 + $0x247] sm:$0xff]  ;;  %v3163_v43 = vld [vmem:[#allocation2 + $0x10f] sm:$0xff] }
 0x301   : > { %v25271_v45 = vadd.f32 %v6420_v24, %v25134_v0  ;;  %21854 = vmatprep.mubr.msk.f32.mxu1 %vm325_vm0, %v7462_v22  ;;  %v3151_v0 = vld [vmem:[#allocation2 + $0xaf] sm:$0xff] }
 0x303   : > { %21297 = vmatmul.mubr.msk.f32.gmra.mrb[6].mxu0 %vm325_vm0, %v3147_v26  ;;  %v7479_v26 = vld [vmem:[#allocation2 + $0x24f] sm:$0xff] }
 0x304   : > { %21855 = vmatmul.mubr.msk.f32.gmra.mrb[6].mxu1 %vm325_vm0, %v7463_v52  ;;  %21299 = vmatprep.mubr.msk.f32.mxu0 %vm325_vm0, %v3148_v53  ;;  %v3164_v52 = vld [vmem:[#allocation2 + $0x117] sm:$0xff] }
 0x305   : > { %21857 = vmatprep.mubr.msk.f32.mxu1 %vm325_vm0, %v7464_v30  ;;  %v7480_v53 = vld [vmem:[#allocation2 + $0x257] sm:$0xff]  ;;  %v3166_v30 = vld [vmem:[#allocation2 + $0x127] sm:$0xff] }
 0x307   : > { %21300 = vmatmul.mubr.msk.f32.gmra.mrb[122].mxu0 %vm325_vm0, %v3149_v18 }
 0x308   : > { %21858 = vmatmul.mubr.msk.f32.gmra.mrb[122].mxu1 %vm325_vm0, %v7465_v32  ;;  %21302 = vmatprep.mubr.msk.f32.mxu0 %vm325_vm0, %v3150_v35  ;;  %v7482_v32 = vld [vmem:[#allocation2 + $0x267] sm:$0xff] }
 0x309   : > { %21860 = vmatprep.mubr.msk.f32.mxu1 %vm325_vm0, %v7466_v36 }
 0x30a   : > { %v21139_v63 = vpop.f32.mrb[80].mxu0 }
 0x30b   : > { %v25283_v38 = vadd.f32 %v21139_v63, %v25146_v16  ;;  %v21697_v57 = vpop.f32.mrb[80].mxu1  ;;  %v2131_v41 = vpop.f32.mrb[81].mxu0  ;;  %21303 = vmatmul.mubr.msk.f32.gmra.mrb[10].mxu0 %vm325_vm0, %v3151_v0  ;;  %v3155_v16 = vld [vmem:[#allocation2 + $0xcf] sm:$0xff] }
 0x30c   : > { %v25287_v42 = vadd.f32 %v21697_v57, %v25150_v21  ;;  %21861 = vmatmul.mubr.msk.f32.gmra.mrb[10].mxu1 %vm325_vm0, %v7467_v10  ;;  %21305 = vmatprep.mubr.msk.f32.mxu0 %vm325_vm0, %v3152_v62  ;;  %v6449_v44 = vpop.f32.mrb[81].mxu1  ;;  %v7471_v21 = vld [vmem:[#allocation2 + $0x20f] sm:$0xff]  ;;  %v3168_v57 = vld [vmem:[#allocation2 + $0x137] sm:$0xff] }
 0x30d   : > { %21863 = vmatprep.mubr.msk.f32.mxu1 %vm325_vm0, %v7468_v3  ;;  %v3167_v62 = vld [vmem:[#allocation2 + $0x12f] sm:$0xff]  ;;  %v7484_v41 = vld [vmem:[#allocation2 + $0x277] sm:$0xff]  ;;  %v3170_v44 = vld [vmem:[#allocation2 + $0x147] sm:$0xff] }
 0x30e   : > { %v7483_v3 = vld [vmem:[#allocation2 + $0x26f] sm:$0xff] }
 0x30f   : > { %21306 = vmatmul.mubr.msk.f32.gmra.mrb[12].mxu0 %vm325_vm0, %v3153_v14  ;;  %v7485_v14 = vld [vmem:[#allocation2 + $0x27f] sm:$0xff] }
 0x310   : > { %21864 = vmatmul.mubr.msk.f32.gmra.mrb[12].mxu1 %vm325_vm0, %v7469_v51  ;;  %21308 = vmatprep.mubr.msk.f32.mxu0 %vm325_vm0, %v3154_v58  ;;  %v7486_v51 = vld [vmem:[#allocation2 + $0x287] sm:$0xff]  ;;  %v7487_v58 = vld [vmem:[#allocation2 + $0x28f] sm:$0xff] }
 0x311   : > { %21866 = vmatprep.mubr.msk.f32.mxu1 %vm325_vm0, %v7470_v46  ;;  %v3172_v46 = vld [vmem:[#allocation2 + $0x157] sm:$0xff] }
 0x312   : > { %v21145_v7 = vpop.f32.mrb[82].mxu0 }
 0x313   : > { %v21703_v59 = vpop.f32.mrb[82].mxu1  ;;  %v2150_v60 = vpop.f32.mrb[83].mxu0  ;;  %21309 = vmatmul.mubr.msk.f32.gmra.mrb[124].mxu0 %vm325_vm0, %v3155_v16 }
 0x314   : > { %v25298_v54 = vadd.f32 %v2150_v60, %v25161_v55  ;;  %v6468_v2 = vpop.f32.mrb[83].mxu1  ;;  %21867 = vmatmul.mubr.msk.f32.gmra.mrb[124].mxu1 %vm325_vm0, %v7471_v21  ;;  %21311 = vmatprep.mubr.msk.f32.mxu0 %vm325_vm0, %v3156_v56  ;;  %v3159_v55 = vld [vmem:[#allocation2 + $0xef] sm:$0xff]  ;;  %v7488_v21 = vld [vmem:[#allocation2 + $0x297] sm:$0xff]  ;;  %v3173_v59 = vld [vmem:[#allocation2 + $0x15f] sm:$0xff] }
 0x315   : > { %v25303_v25 = vadd.f32 %v6468_v2, %v25166_v8  ;;  %21869 = vmatprep.mubr.msk.f32.mxu1 %vm325_vm0, %v7472_v17  ;;  %v3161_v8 = vld [vmem:[#allocation2 + $0xff] sm:$0xff] }
 0x317   : > { %21312 = vmatmul.mubr.msk.f32.gmra.mrb[16].mxu0 %vm325_vm0, %v3157_v50  ;;  %v7489_v50 = vld [vmem:[#allocation2 + $0x29f] sm:$0xff] }
 0x318   : > { %21870 = vmatmul.mubr.msk.f32.gmra.mrb[16].mxu1 %vm325_vm0, %v7473_v28  ;;  %21314 = vmatprep.mubr.msk.f32.mxu0 %vm325_vm0, %v3158_v48  ;;  %v3174_v28 = vld [vmem:[#allocation2 + $0x167] sm:$0xff] }
 0x319   : > { %21872 = vmatprep.mubr.msk.f32.mxu1 %vm325_vm0, %v7474_v4  ;;  %v7490_v48 = vld [vmem:[#allocation2 + $0x2a7] sm:$0xff]  ;;  %v7491_v4 = vld [vmem:[#allocation2 + $0x2af] sm:$0xff] }
 0x31b   : > { %21315 = vmatmul.mubr.msk.f32.gmra.mrb[126].mxu0 %vm325_vm0, %v3159_v55  ;;  %v3176_v55 = vld [vmem:[#allocation2 + $0x177] sm:$0xff] }
 0x31c   : > { %21873 = vmatmul.mubr.msk.f32.gmra.mrb[126].mxu1 %vm325_vm0, %v7475_v12  ;;  %21317 = vmatprep.mubr.msk.f32.mxu0 %vm325_vm0, %v3160_v15  ;;  %v7492_v15 = vld [vmem:[#allocation2 + $0x2b7] sm:$0xff] }
 0x31d   : > { %21875 = vmatprep.mubr.msk.f32.mxu1 %vm325_vm0, %v7476_v37 }
 0x31e   : > { %v21154_v40 = vpop.f32.mrb[84].mxu0 }
 0x31f   : > { %v25315_v61 = vadd.f32 %v21154_v40, %v25178_v13  ;;  %v21712_v49 = vpop.f32.mrb[84].mxu1  ;;  %v2179_v22 = vpop.f32.mrb[85].mxu0  ;;  %21318 = vmatmul.mubr.msk.f32.gmra.mrb[20].mxu0 %vm325_vm0, %v3161_v8  ;;  %v3165_v13 = vld [vmem:[#allocation2 + $0x11f] sm:$0xff] }
 0x320   : > { %v25319_v23 = vadd.f32 %v21712_v49, %v25182_v47  ;;  %21876 = vmatmul.mubr.msk.f32.gmra.mrb[20].mxu1 %vm325_vm0, %v7477_v34  ;;  %21320 = vmatprep.mubr.msk.f32.mxu0 %vm325_vm0, %v3162_v5  ;;  %v6497_v24 = vpop.f32.mrb[85].mxu1  ;;  %v7481_v47 = vld [vmem:[#allocation2 + $0x25f] sm:$0xff]  ;;  %v7494_v22 = vld [vmem:[#allocation2 + $0x2c7] sm:$0xff] }
 0x321   : > { %21878 = vmatprep.mubr.msk.f32.mxu1 %vm325_vm0, %v7478_v20  ;;  %v3177_v34 = vld [vmem:[#allocation2 + $0x17f] sm:$0xff]  ;;  %v3178_v20 = vld [vmem:[#allocation2 + $0x187] sm:$0xff]  ;;  %v7495_v24 = vld [vmem:[#allocation2 + $0x2cf] sm:$0xff] }
 0x322   : > { %v7493_v40 = vld [vmem:[#allocation2 + $0x2bf] sm:$0xff] }
 0x323   : > { %21321 = vmatmul.mubr.msk.f32.gmra.mrb[22].mxu0 %vm325_vm0, %v3163_v43  ;;  %v3179_v43 = vld [vmem:[#allocation2 + $0x18f] sm:$0xff] }
 0x324   : > { %21879 = vmatmul.mubr.msk.f32.gmra.mrb[22].mxu1 %vm325_vm0, %v7479_v26  ;;  %21323 = vmatprep.mubr.msk.f32.mxu0 %vm325_vm0, %v3164_v52  ;;  %v7906_v26 = vld [vmem:[#allocation2 + $0x198] sm:$0xff]  ;;  %v7907_v52 = vld [vmem:[#allocation2 + $0x1a0] sm:$0xff] }
 0x325   : > { %21881 = vmatprep.mubr.msk.f32.mxu1 %vm325_vm0, %v7480_v53 }
 0x326   : > { %v21160_v18 = vpop.f32.mrb[86].mxu0 }
 0x327   : > { %v21718_v35 = vpop.f32.mrb[86].mxu1  ;;  %v2198_v36 = vpop.f32.mrb[87].mxu0  ;;  %21324 = vmatmul.mubr.msk.f32.gmra.mrb[128].mxu0 %vm325_vm0, %v3165_v13  ;;  %v3593_v13 = vld [vmem:[#allocation2 + $0x68] sm:$0xff] }
 0x328   : > { %v25330_v0 = vadd.f32 %v2198_v36, %v25193_v33  ;;  %v6516_v10 = vpop.f32.mrb[87].mxu1  ;;  %21882 = vmatmul.mubr.msk.f32.gmra.mrb[128].mxu1 %vm325_vm0, %v7481_v47  ;;  %21326 = vmatprep.mubr.msk.f32.mxu0 %vm325_vm0, %v3166_v30  ;;  %v3169_v33 = vld [vmem:[#allocation2 + $0x13f] sm:$0xff]  ;;  %v7908_v47 = vld [vmem:[#allocation2 + $0x1a8] sm:$0xff]  ;;  %v3594_v36 = vld [vmem:[#allocation2 + $0x70] sm:$0xff] }
 0x329   : > { %v25335_v63 = vadd.f32 %v6516_v10, %v25198_v29  ;;  %21884 = vmatprep.mubr.msk.f32.mxu1 %vm325_vm0, %v7482_v32  ;;  %v3171_v29 = vld [vmem:[#allocation2 + $0x14f] sm:$0xff] }
 0x32a   : > { %v25385_v35 = vld [vmem:[%s28309_s4 + $0x8] sm:$0xff] }
 0x32b   : > { %21327 = vmatmul.mubr.msk.f32.gmra.mrb[26].mxu0 %vm325_vm0, %v3167_v62 }
 0x32c   : > { %21885 = vmatmul.mubr.msk.f32.gmra.mrb[26].mxu1 %vm325_vm0, %v7483_v3  ;;  %21329 = vmatprep.mubr.msk.f32.mxu0 %vm325_vm0, %v3168_v57  ;;  %v3595_v3 = vld [vmem:[#allocation2 + $0x78] sm:$0xff] }
 0x32d   : > { %21887 = vmatprep.mubr.msk.f32.mxu1 %vm325_vm0, %v7484_v41  ;;  %v7910_v57 = vld [vmem:[#allocation2 + $0x1b8] sm:$0xff]  ;;  %v7911_v41 = vld [vmem:[#allocation2 + $0x1c0] sm:$0xff] }
 0x32f   : > { %21330 = vmatmul.mubr.msk.f32.gmra.mrb[130].mxu0 %vm325_vm0, %v3169_v33  ;;  %v3597_v33 = vld [vmem:[#allocation2 + $0x88] sm:$0xff] }
 0x330   : > { %21888 = vmatmul.mubr.msk.f32.gmra.mrb[130].mxu1 %vm325_vm0, %v7485_v14  ;;  %21332 = vmatprep.mubr.msk.f32.mxu0 %vm325_vm0, %v3170_v44  ;;  %v7912_v44 = vld [vmem:[#allocation2 + $0x1c8] sm:$0xff] }
 0x331   : > { %21890 = vmatprep.mubr.msk.f32.mxu1 %vm325_vm0, %v7486_v51 }
 0x332   : > { %v21171_v16 = vpop.f32.mrb[88].mxu0 }
 0x333   : > { %v21729_v56 = vpop.f32.mrb[88].mxu1  ;;  %v2486_v7 = vpop.f32.mrb[89].mxu0  ;;  %21333 = vmatmul.mubr.msk.f32.gmra.mrb[30].mxu0 %vm325_vm0, %v3171_v29  ;;  %v25348_v17 = vadd.f32 %v21171_v16, %v25210_v27  ;;  %v3175_v27 = vld [vmem:[#allocation2 + $0x16f] sm:$0xff] }
 0x334   : > { %21891 = vmatmul.mubr.msk.f32.gmra.mrb[30].mxu1 %vm325_vm0, %v7487_v58  ;;  %21335 = vmatprep.mubr.msk.f32.mxu0 %vm325_vm0, %v3172_v46  ;;  %v6803_v60 = vpop.f32.mrb[89].mxu1  ;;  %v25353_v2 = vadd.f32 %v21729_v56, %v25214_v31  ;;  %v3598_v58 = vld [vmem:[#allocation2 + $0x90] sm:$0xff]  ;;  %v7914_v7 = vld [vmem:[#allocation2 + $0x1d8] sm:$0xff] }
 0x335   : > { %21893 = vmatprep.mubr.msk.f32.mxu1 %vm325_vm0, %v7488_v21  ;;  %v7913_v16 = vld [vmem:[#allocation2 + $0x1d0] sm:$0xff]  ;;  %v3599_v21 = vld [vmem:[#allocation2 + $0x98] sm:$0xff]  ;;  %v7915_v60 = vld [vmem:[#allocation2 + $0x1e0] sm:$0xff] }
 0x337   : > { %21336 = vmatmul.mubr.msk.f32.gmra.mrb[32].mxu0 %vm325_vm0, %v3173_v59  ;;  %v3600_v59 = vld [vmem:[#allocation2 + $0xa0] sm:$0xff] }
 0x338   : > { %21894 = vmatmul.mubr.msk.f32.gmra.mrb[32].mxu1 %vm325_vm0, %v7489_v50  ;;  %21338 = vmatprep.mubr.msk.f32.mxu0 %vm325_vm0, %v3174_v28  ;;  %v7916_v50 = vld [vmem:[#allocation2 + $0x1e8] sm:$0xff]  ;;  %v7917_v28 = vld [vmem:[#allocation2 + $0x1f0] sm:$0xff] }
 0x339   : > { %21896 = vmatprep.mubr.msk.f32.mxu1 %vm325_vm0, %v7490_v48  ;;  %v3603_v48 = vld [vmem:[#allocation2 + $0xb8] sm:$0xff] }
 0x33a   : > { %v21177_v12 = vpop.f32.mrb[90].mxu0 }
 0x33b   : > { %v21735_v31 = vpop.f32.mrb[90].mxu1  ;;  %v2505_v37 = vpop.f32.mrb[91].mxu0  ;;  %21339 = vmatmul.mubr.msk.f32.gmra.mrb[132].mxu0 %vm325_vm0, %v3175_v27 }
 0x33c   : > { %v6822_v8 = vpop.f32.mrb[91].mxu1  ;;  %21897 = vmatmul.mubr.msk.f32.gmra.mrb[132].mxu1 %vm325_vm0, %v7491_v4  ;;  %21341 = vmatprep.mubr.msk.f32.mxu0 %vm325_vm0, %v3176_v55  ;;  %v25364_v5 = vadd.f32 %v2505_v37, %v25225_v11  ;;  %v3591_v11 = vld [vmem:[#allocation2 + $0x58] sm:$0xff]  ;;  %v3604_v31 = vld [vmem:[#allocation2 + $0xc0] sm:$0xff] }
 0x33d   : > { %21899 = vmatprep.mubr.msk.f32.mxu1 %vm325_vm0, %v7492_v15  ;;  %v25368_v49 = vadd.f32 %v6822_v8, %v25230_v19  ;;  %v3592_v19 = vld [vmem:[#allocation2 + $0x60] sm:$0xff]  ;;  %v7918_v4 = vld [vmem:[#allocation2 + $0x1f8] sm:$0xff] }
 0x33f   : > { %21342 = vmatmul.mubr.msk.f32.gmra.mrb[36].mxu0 %vm325_vm0, %v3177_v34  ;;  %v7919_v34 = vld [vmem:[#allocation2 + $0x200] sm:$0xff] }
 0x340   : > { %21900 = vmatmul.mubr.msk.f32.gmra.mrb[36].mxu1 %vm325_vm0, %v7493_v40  ;;  %21344 = vmatprep.mubr.msk.f32.mxu0 %vm325_vm0, %v3178_v20  ;;  %v3605_v40 = vld [vmem:[#allocation2 + $0xc8] sm:$0xff] }
 0x341   : > { %21902 = vmatprep.mubr.msk.f32.mxu1 %vm325_vm0, %v7494_v22  ;;  %v7920_v20 = vld [vmem:[#allocation2 + $0x208] sm:$0xff]  ;;  %v7921_v22 = vld [vmem:[#allocation2 + $0x210] sm:$0xff] }
 0x343   : > { %21345 = vmatmul.mubr.msk.f32.gmra.mrb[134].mxu0 %vm325_vm0, %v3179_v43  ;;  %v3607_v43 = vld [vmem:[#allocation2 + $0xd8] sm:$0xff] }
 0x344   : > { %21903 = vmatmul.mubr.msk.f32.gmra.mrb[134].mxu1 %vm325_vm0, %v7495_v24  ;;  %21349 = vmatprep.mubr.msk.f32.mxu0 %vm325_vm0, %v3591_v11  ;;  %v7922_v11 = vld [vmem:[#allocation2 + $0x218] sm:$0xff] }
 0x345   : > { %21907 = vmatprep.mubr.msk.f32.mxu1 %vm325_vm0, %v7906_v26 }
 0x346   : > { %v21186_v53 = vpop.f32.mrb[92].mxu0 }
 0x347   : > { %v21744_v30 = vpop.f32.mrb[92].mxu1  ;;  %v2534_v18 = vpop.f32.mrb[93].mxu0  ;;  %21350 = vmatmul.mubr.msk.f32.vlgmr.msra.gmra.mrb[0].mxu0 %vm325_vm0, %v3592_v19  ;;  %v25380_v32 = vadd.f32 %v21186_v53, %v25242_v1  ;;  %v7909_v1 = vld [vmem:[#allocation2 + $0x1b0] sm:$0xff] }
 0x348   : > { %21908 = vmatmul.mubr.msk.f32.vlgmr.msra.gmra.mrb[0].mxu1 %vm325_vm0, %v7907_v52  ;;  %21410 = vmatpush3.msra.mxu0 %v25248_v6  ;;  %v6851_v10 = vpop.f32.mrb[93].mxu1  ;;  %v25390_v62 = vadd.f32 %v21744_v30, %v25251_v9  ;;  %v3596_v9 = vld [vmem:[#allocation2 + $0x80] sm:$0xff]  ;;  %v7924_v18 = vld [vmem:[#allocation2 + $0x228] sm:$0xff] }
 0x349   : > { %21352 = vmatprep.mubr.msk.f32.mxu0 %vm325_vm0, %v3593_v13  ;;  %21910 = vmatprep.mubr.msk.f32.mxu1 %vm325_vm0, %v7908_v47  ;;  %v3608_v52 = vld [vmem:[#allocation2 + $0xe0] sm:$0xff]  ;;  %v3609_v47 = vld [vmem:[#allocation2 + $0xe8] sm:$0xff]  ;;  %v7925_v10 = vld [vmem:[#allocation2 + $0x230] sm:$0xff] }
 0x34a   : > { %21968 = vmatpush3.msra.mxu1 %v25248_v6  ;;  %22029 = vmatprep.subr.mxu0 %v25385_v35  ;;  %v7923_v13 = vld [vmem:[#allocation2 + $0x220] sm:$0xff] }
 0x34b   : > { %21353 = vmatmul.mubr.msk.f32.gmra.mrb[2].mxu0 %vm325_vm0, %v3594_v36  ;;  %22587 = vmatprep.subr.mxu1 %v25385_v35  ;;  %v3610_v36 = vld [vmem:[#allocation2 + $0xf0] sm:$0xff] }
 0x34c   : > { %21911 = vmatmul.mubr.msk.f32.gmra.mrb[2].mxu1 %vm325_vm0, %v7909_v1  ;;  %21355 = vmatprep.mubr.msk.f32.mxu0 %vm325_vm0, %v3595_v3  ;;  %v7926_v1 = vld [vmem:[#allocation2 + $0x238] sm:$0xff]  ;;  %v7927_v3 = vld [vmem:[#allocation2 + $0x240] sm:$0xff] }
 0x34d   : > { %21913 = vmatprep.mubr.msk.f32.mxu1 %vm325_vm0, %v7910_v57  ;;  %v3613_v57 = vld [vmem:[#allocation2 + $0x108] sm:$0xff] }
 0x34e   : > { %v21192_v14 = vpop.f32.mrb[94].mxu0 }
 0x34f   : > { %v21750_v51 = vpop.f32.mrb[94].mxu1  ;;  %v2553_v29 = vpop.f32.mrb[95].mxu0  ;;  %21356 = vmatmul.mubr.msk.f32.gmra.mrb[136].mxu0 %vm325_vm0, %v3596_v9 }
 0x350   : > { %v6870_v6 = vpop.f32.mrb[95].mxu1  ;;  %21914 = vmatmul.mubr.msk.f32.gmra.mrb[136].mxu1 %vm325_vm0, %v7911_v41  ;;  %21358 = vmatprep.mubr.msk.f32.mxu0 %vm325_vm0, %v3597_v33  ;;  %v25405_v46 = vadd.f32 %v2553_v29, %v25266_v39  ;;  %v3601_v39 = vld [vmem:[#allocation2 + $0xa8] sm:$0xff]  ;;  %v3614_v51 = vld [vmem:[#allocation2 + $0x110] sm:$0xff] }
 0x351   : > { %21916 = vmatprep.mubr.msk.f32.mxu1 %vm325_vm0, %v7912_v44  ;;  %v25409_v56 = vadd.f32 %v6870_v6, %v25271_v45  ;;  %v3602_v45 = vld [vmem:[#allocation2 + $0xb0] sm:$0xff]  ;;  %v7928_v41 = vld [vmem:[#allocation2 + $0x248] sm:$0xff] }
 0x353   : > { %21359 = vmatmul.mubr.msk.f32.gmra.mrb[6].mxu0 %vm325_vm0, %v3598_v58  ;;  %v7929_v58 = vld [vmem:[#allocation2 + $0x250] sm:$0xff] }
 0x354   : > { %21917 = vmatmul.mubr.msk.f32.gmra.mrb[6].mxu1 %vm325_vm0, %v7913_v16  ;;  %21361 = vmatprep.mubr.msk.f32.mxu0 %vm325_vm0, %v3599_v21  ;;  %v3615_v16 = vld [vmem:[#allocation2 + $0x118] sm:$0xff] }
 0x355   : > { %21919 = vmatprep.mubr.msk.f32.mxu1 %vm325_vm0, %v7914_v7  ;;  %v7930_v21 = vld [vmem:[#allocation2 + $0x258] sm:$0xff]  ;;  %v7931_v7 = vld [vmem:[#allocation2 + $0x260] sm:$0xff] }
 0x357   : > { %21362 = vmatmul.mubr.msk.f32.gmra.mrb[138].mxu0 %vm325_vm0, %v3600_v59  ;;  %v3617_v59 = vld [vmem:[#allocation2 + $0x128] sm:$0xff] }
 0x358   : > { %21920 = vmatmul.mubr.msk.f32.gmra.mrb[138].mxu1 %vm325_vm0, %v7915_v60  ;;  %21364 = vmatprep.mubr.msk.f32.mxu0 %vm325_vm0, %v3601_v39  ;;  %v7932_v39 = vld [vmem:[#allocation2 + $0x268] sm:$0xff] }
 0x359   : > { %21922 = vmatprep.mubr.msk.f32.mxu1 %vm325_vm0, %v7916_v50 }
 0x35a   : > { %v21201_v27 = vpop.f32.mrb[96].mxu0 }
 0x35b   : > { %v21759_v55 = vpop.f32.mrb[96].mxu1  ;;  %v2582_v12 = vpop.f32.mrb[97].mxu0  ;;  %21365 = vmatmul.mubr.msk.f32.gmra.mrb[10].mxu0 %vm325_vm0, %v3602_v45  ;;  %v25421_v15 = vadd.f32 %v21201_v27, %v25283_v38  ;;  %v3606_v38 = vld [vmem:[#allocation2 + $0xd0] sm:$0xff] }
 0x35c   : > { %21923 = vmatmul.mubr.msk.f32.gmra.mrb[10].mxu1 %vm325_vm0, %v7917_v28  ;;  %21367 = vmatprep.mubr.msk.f32.mxu0 %vm325_vm0, %v3603_v48  ;;  %v6899_v37 = vpop.f32.mrb[97].mxu1  ;;  %v25426_v8 = vadd.f32 %v21759_v55, %v25287_v42  ;;  %v3618_v28 = vld [vmem:[#allocation2 + $0x130] sm:$0xff]  ;;  %v7934_v12 = vld [vmem:[#allocation2 + $0x278] sm:$0xff] }
 0x35d   : > { %21925 = vmatprep.mubr.msk.f32.mxu1 %vm325_vm0, %v7918_v4  ;;  %v7933_v27 = vld [vmem:[#allocation2 + $0x270] sm:$0xff]  ;;  %v3619_v4 = vld [vmem:[#allocation2 + $0x138] sm:$0xff]  ;;  %v7935_v37 = vld [vmem:[#allocation2 + $0x280] sm:$0xff] }
 0x35f   : > { %21368 = vmatmul.mubr.msk.f32.gmra.mrb[12].mxu0 %vm325_vm0, %v3604_v31  ;;  %v3620_v31 = vld [vmem:[#allocation2 + $0x140] sm:$0xff] }
 0x360   : > { %21926 = vmatmul.mubr.msk.f32.gmra.mrb[12].mxu1 %vm325_vm0, %v7919_v34  ;;  %21370 = vmatprep.mubr.msk.f32.mxu0 %vm325_vm0, %v3605_v40  ;;  %v25479_v34 = vld [vmem:[#allocation2 + $0x288] sm:$0xff]  ;;  %v25486_v40 = vld [vmem:[#allocation2 + $0x290] sm:$0xff] }
 0x361   : > { %21928 = vmatprep.mubr.msk.f32.mxu1 %vm325_vm0, %v7920_v20  ;;  %v3623_v20 = vld [vmem:[#allocation2 + $0x158] sm:$0xff] }
 0x362   : > { %v21207_v24 = vpop.f32.mrb[98].mxu0 }
 0x363   : > { %v21765_v42 = vpop.f32.mrb[98].mxu1  ;;  %v2601_v26 = vpop.f32.mrb[99].mxu0  ;;  %21371 = vmatmul.mubr.msk.f32.gmra.mrb[140].mxu0 %vm325_vm0, %v3606_v38 }
 0x364   : > { %v6918_v19 = vpop.f32.mrb[99].mxu1  ;;  %21929 = vmatmul.mubr.msk.f32.gmra.mrb[140].mxu1 %vm325_vm0, %v7921_v22  ;;  %21373 = vmatprep.mubr.msk.f32.mxu0 %vm325_vm0, %v3607_v43  ;;  %v25437_v53 = vadd.f32 %v2601_v26, %v25298_v54  ;;  %v3611_v54 = vld [vmem:[#allocation2 + $0xf8] sm:$0xff]  ;;  %v3624_v26 = vld [vmem:[#allocation2 + $0x160] sm:$0xff] }
 0x365   : > { %21931 = vmatprep.mubr.msk.f32.mxu1 %vm325_vm0, %v7922_v11  ;;  %v25441_v30 = vadd.f32 %v6918_v19, %v25303_v25  ;;  %v3612_v25 = vld [vmem:[#allocation2 + $0x100] sm:$0xff]  ;;  %v25488_v22 = vld [vmem:[#allocation2 + $0x298] sm:$0xff] }
 0x367   : > { %21374 = vmatmul.mubr.msk.f32.gmra.mrb[16].mxu0 %vm325_vm0, %v3608_v52  ;;  %v25502_v52 = vld [vmem:[#allocation2 + $0x2a0] sm:$0xff] }
 0x368   : > { %21932 = vmatmul.mubr.msk.f32.gmra.mrb[16].mxu1 %vm325_vm0, %v7923_v13  ;;  %21376 = vmatprep.mubr.msk.f32.mxu0 %vm325_vm0, %v3609_v47  ;;  %v25504_v13 = vld [vmem:[#allocation2 + $0x2a8] sm:$0xff]  ;;  %v25512_v47 = vld [vmem:[#allocation2 + $0x2b0] sm:$0xff] }
 0x369   : > { %21934 = vmatprep.mubr.msk.f32.mxu1 %vm325_vm0, %v7924_v18  ;;  %v3627_v18 = vld [vmem:[#allocation2 + $0x178] sm:$0xff] }
 0x36b   : > { %21377 = vmatmul.mubr.msk.f32.gmra.mrb[142].mxu0 %vm325_vm0, %v3610_v36 }
 0x36c   : > { %21935 = vmatmul.mubr.msk.f32.gmra.mrb[142].mxu1 %vm325_vm0, %v7925_v10  ;;  %21379 = vmatprep.mubr.msk.f32.mxu0 %vm325_vm0, %v3611_v54  ;;  %v25514_v10 = vld [vmem:[#allocation2 + $0x2b8] sm:$0xff] }
 0x36d   : > { %21937 = vmatprep.mubr.msk.f32.mxu1 %vm325_vm0, %v7926_v1 }
 0x36e   : > { %v21216_v9 = vpop.f32.mrb[100].mxu0 }
 0x36f   : > { %v21774_v33 = vpop.f32.mrb[100].mxu1  ;;  %v2630_v14 = vpop.f32.mrb[101].mxu0  ;;  %21380 = vmatmul.mubr.msk.f32.gmra.mrb[20].mxu0 %vm325_vm0, %v3612_v25  ;;  %v25453_v44 = vadd.f32 %v21216_v9, %v25315_v61  ;;  %v3616_v61 = vld [vmem:[#allocation2 + $0x120] sm:$0xff] }
 0x370   : > { %21938 = vmatmul.mubr.msk.f32.gmra.mrb[20].mxu1 %vm325_vm0, %v7927_v3  ;;  %21382 = vmatprep.mubr.msk.f32.mxu0 %vm325_vm0, %v3613_v57  ;;  %v6947_v29 = vpop.f32.mrb[101].mxu1  ;;  %v25458_v6 = vadd.f32 %v21774_v33, %v25319_v23  ;;  %v3628_v57 = vld [vmem:[#allocation2 + $0x180] sm:$0xff]  ;;  %v3629_v33 = vld [vmem:[#allocation2 + $0x188] sm:$0xff] }
 0x371   : > { %21940 = vmatprep.mubr.msk.f32.mxu1 %vm325_vm0, %v7928_v41  ;;  %v25528_v41 = vld [vmem:[#allocation2 + $0x2c0] sm:$0xff]  ;;  %v25530_v14 = vld [vmem:[#allocation2 + $0x2c8] sm:$0xff] }
 0x372   : > { %v8356_v29 = vld [vmem:[#allocation2 + $0x199] sm:$0xff] }
 0x373   : > { %21383 = vmatmul.mubr.msk.f32.gmra.mrb[22].mxu0 %vm325_vm0, %v3614_v51  ;;  %v4042_v51 = vld [vmem:[#allocation2 + $0x59] sm:$0xff] }
 0x374   : > { %21941 = vmatmul.mubr.msk.f32.gmra.mrb[22].mxu1 %vm325_vm0, %v7929_v58  ;;  %21385 = vmatprep.mubr.msk.f32.mxu0 %vm325_vm0, %v3615_v16  ;;  %v4043_v58 = vld [vmem:[#allocation2 + $0x61] sm:$0xff] }
 0x375   : > { %21943 = vmatprep.mubr.msk.f32.mxu1 %vm325_vm0, %v7930_v21  ;;  %v8357_v16 = vld [vmem:[#allocation2 + $0x1a1] sm:$0xff] }
 0x376   : > { %v21222_v60 = vpop.f32.mrb[102].mxu0 }
 0x377   : > { %v21780_v23 = vpop.f32.mrb[102].mxu1  ;;  %v2649_v50 = vpop.f32.mrb[103].mxu0  ;;  %21386 = vmatmul.mubr.msk.f32.gmra.mrb[144].mxu0 %vm325_vm0, %v3616_v61  ;;  %v4044_v61 = vld [vmem:[#allocation2 + $0x69] sm:$0xff] }
 0x378   : > { %v6966_v45 = vpop.f32.mrb[103].mxu1  ;;  %21944 = vmatmul.mubr.msk.f32.gmra.mrb[144].mxu1 %vm325_vm0, %v7931_v7  ;;  %21388 = vmatprep.mubr.msk.f32.mxu0 %vm325_vm0, %v3617_v59  ;;  %v25469_v48 = vadd.f32 %v2649_v50, %v25330_v0  ;;  %v3621_v0 = vld [vmem:[#allocation2 + $0x148] sm:$0xff]  ;;  %v25552_v23 = vld [vmem:[%s28309_s4] sm:$0xff] }
 0x379   : > { %21946 = vmatprep.mubr.msk.f32.mxu1 %vm325_vm0, %v7932_v39  ;;  %v25473_v55 = vadd.f32 %v6966_v45, %v25335_v63  ;;  %v3622_v63 = vld [vmem:[#allocation2 + $0x150] sm:$0xff] }
 0x37a   : > { %v8358_v7 = vld [vmem:[#allocation2 + $0x1a9] sm:$0xff]  ;;  %v4045_v45 = vld [vmem:[#allocation2 + $0x71] sm:$0xff] }
 0x37b   : > { %21389 = vmatmul.mubr.msk.f32.gmra.mrb[26].mxu0 %vm325_vm0, %v3618_v28 }
 0x37c   : > { %21947 = vmatmul.mubr.msk.f32.gmra.mrb[26].mxu1 %vm325_vm0, %v7933_v27  ;;  %21391 = vmatprep.mubr.msk.f32.mxu0 %vm325_vm0, %v3619_v4  ;;  %v4046_v27 = vld [vmem:[#allocation2 + $0x79] sm:$0xff] }
 0x37d   : > { %21949 = vmatprep.mubr.msk.f32.mxu1 %vm325_vm0, %v7934_v12  ;;  %v8360_v4 = vld [vmem:[#allocation2 + $0x1b9] sm:$0xff]  ;;  %v8361_v12 = vld [vmem:[#allocation2 + $0x1c1] sm:$0xff] }
 0x37f   : > { %21392 = vmatmul.mubr.msk.f32.gmra.mrb[146].mxu0 %vm325_vm0, %v3620_v31  ;;  %v4048_v31 = vld [vmem:[#allocation2 + $0x89] sm:$0xff] }
 0x380   : > { %21950 = vmatmul.mubr.msk.f32.gmra.mrb[146].mxu1 %vm325_vm0, %v7935_v37  ;;  %21394 = vmatprep.mubr.msk.f32.mxu0 %vm325_vm0, %v3621_v0  ;;  %v8362_v0 = vld [vmem:[#allocation2 + $0x1c9] sm:$0xff] }
 0x381   : > { %21952 = vmatprep.mubr.msk.f32.mxu1 %vm325_vm0, %v25479_v34 }
 0x382   : > { %v21233_v38 = vpop.f32.mrb[104].mxu0 }
 0x383   : > { %v25491_v43 = vadd.f32 %v21233_v38, %v25348_v17  ;;  %v21791_v24 = vpop.f32.mrb[104].mxu1  ;;  %v2937_v11 = vpop.f32.mrb[105].mxu0  ;;  %21395 = vmatmul.mubr.msk.f32.gmra.mrb[30].mxu0 %vm325_vm0, %v3622_v63  ;;  %v3625_v17 = vld [vmem:[#allocation2 + $0x168] sm:$0xff] }
 0x384   : > { %v25495_v42 = vadd.f32 %v21791_v24, %v25353_v2  ;;  %21953 = vmatmul.mubr.msk.f32.gmra.mrb[30].mxu1 %vm325_vm0, %v25486_v40  ;;  %21397 = vmatprep.mubr.msk.f32.mxu0 %vm325_vm0, %v3623_v20  ;;  %v7253_v19 = vpop.f32.mrb[105].mxu1  ;;  %v3626_v2 = vld [vmem:[#allocation2 + $0x170] sm:$0xff] }
 0x385   : > { %21955 = vmatprep.mubr.msk.f32.mxu1 %vm325_vm0, %v25488_v22  ;;  %v4049_v24 = vld [vmem:[#allocation2 + $0x91] sm:$0xff]  ;;  %v4050_v19 = vld [vmem:[#allocation2 + $0x99] sm:$0xff] }
 0x387   : > { %21398 = vmatmul.mubr.msk.f32.gmra.mrb[32].mxu0 %vm325_vm0, %v3624_v26  ;;  %v8363_v26 = vld [vmem:[#allocation2 + $0x1d1] sm:$0xff] }
 0x388   : > { %21956 = vmatmul.mubr.msk.f32.gmra.mrb[32].mxu1 %vm325_vm0, %v25502_v52  ;;  %21400 = vmatprep.mubr.msk.f32.mxu0 %vm325_vm0, %v3625_v17  ;;  %v8364_v17 = vld [vmem:[#allocation2 + $0x1d9] sm:$0xff] }
 0x389   : > { %21958 = vmatprep.mubr.msk.f32.mxu1 %vm325_vm0, %v25504_v13 }
 0x38a   : > { %v21239_v36 = vpop.f32.mrb[106].mxu0 }
 0x38b   : > { %v21797_v54 = vpop.f32.mrb[106].mxu1  ;;  %v2956_v1 = vpop.f32.mrb[107].mxu0  ;;  %21401 = vmatmul.mubr.msk.f32.gmra.mrb[148].mxu0 %vm325_vm0, %v3626_v2  ;;  %v8365_v2 = vld [vmem:[#allocation2 + $0x1e1] sm:$0xff]  ;;  %v8366_v36 = vld [vmem:[#allocation2 + $0x1e9] sm:$0xff] }
 0x38c   : > { %v25518_v25 = vadd.f32 %v2956_v1, %v25364_v5  ;;  %v7272_v3 = vpop.f32.mrb[107].mxu1  ;;  %21959 = vmatmul.mubr.msk.f32.gmra.mrb[148].mxu1 %vm325_vm0, %v25512_v47  ;;  %21403 = vmatprep.mubr.msk.f32.mxu0 %vm325_vm0, %v3627_v18  ;;  %v3630_v5 = vld [vmem:[#allocation2 + $0x190] sm:$0xff]  ;;  %v4054_v1 = vld [vmem:[#allocation2 + $0xb9] sm:$0xff] }
 0x38d   : > { %v25524_v9 = vadd.f32 %v7272_v3, %v25368_v49  ;;  %21961 = vmatprep.mubr.msk.f32.mxu1 %vm325_vm0, %v25514_v10  ;;  %v25538_v49 = vld [vmem:[#allocation2 + $0x2d0] sm:$0xff] }
 0x38e   : > { %v4052_v18 = vld [vmem:[#allocation2 + $0xa9] sm:$0xff]  ;;  %v8367_v54 = vld [vmem:[#allocation2 + $0x1f1] sm:$0xff] }
 0x38f   : > { %21404 = vmatmul.mubr.msk.f32.gmra.mrb[36].mxu0 %vm325_vm0, %v3628_v57  ;;  %v8368_v57 = vld [vmem:[#allocation2 + $0x1f9] sm:$0xff] }
 0x390   : > { %21962 = vmatmul.mubr.msk.f32.gmra.mrb[36].mxu1 %vm325_vm0, %v25528_v41  ;;  %21406 = vmatprep.mubr.msk.f32.mxu0 %vm325_vm0, %v3629_v33 }
 0x391   : > { %21964 = vmatprep.mubr.msk.f32.mxu1 %vm325_vm0, %v25530_v14 }
 0x393   : > { %21407 = vmatmul.mubr.msk.f32.gmra.mrb[150].mxu0 %vm325_vm0, %v3630_v5 }
 0x394   : > { %21965 = vmatmul.mubr.msk.f32.gmra.mrb[150].mxu1 %vm325_vm0, %v25538_v49  ;;  %21411 = vmatprep.mubr.msk.f32.mxu0 %vm325_vm0, %v4042_v51 }
 0x395   : > { %21969 = vmatprep.mubr.msk.f32.mxu1 %vm325_vm0, %v8356_v29 }
 0x396   : > { %v21248_v21 = vpop.f32.mrb[108].mxu0 }
 0x397   : > { %v25546_v59 = vadd.f32 %v21248_v21, %v25380_v32  ;;  %v21806_v60 = vpop.f32.mrb[108].mxu1  ;;  %v2985_v39 = vpop.f32.mrb[109].mxu0  ;;  %21412 = vmatmul.mubr.msk.f32.vlgmr.msra.gmra.mrb[0].mxu0 %vm325_vm0, %v4043_v58  ;;  %v8359_v32 = vld [vmem:[#allocation2 + $0x1b1] sm:$0xff]  ;;  %v4055_v58 = vld [vmem:[#allocation2 + $0xc1] sm:$0xff] }
 0x398   : > { %v25555_v50 = vadd.f32 %v21806_v60, %v25390_v62  ;;  %21970 = vmatmul.mubr.msk.f32.vlgmr.msra.gmra.mrb[0].mxu1 %vm325_vm0, %v8357_v16  ;;  %22030 = vmatpush3.msra.mxu0 %v25385_v35  ;;  %v7301_v28 = vpop.f32.mrb[109].mxu1  ;;  %v4047_v62 = vld [vmem:[#allocation2 + $0x81] sm:$0xff]  ;;  %v4058_v60 = vld [vmem:[#allocation2 + $0xd9] sm:$0xff] }
 0x399   : > { %21414 = vmatprep.mubr.msk.f32.mxu0 %vm325_vm0, %v4044_v61  ;;  %21972 = vmatprep.mubr.msk.f32.mxu1 %vm325_vm0, %v8358_v7  ;;  %v8369_v21 = vld [vmem:[#allocation2 + $0x201] sm:$0xff]  ;;  %v4056_v61 = vld [vmem:[#allocation2 + $0xc9] sm:$0xff] }
 0x39a   : > { %22588 = vmatpush3.msra.mxu1 %v25385_v35  ;;  %22091 = vmatprep.subr.mxu0 %v25552_v23  ;;  %v8370_v7 = vld [vmem:[#allocation2 + $0x209] sm:$0xff] }
 0x39b   : > { %21415 = vmatmul.mubr.msk.f32.gmra.mrb[2].mxu0 %vm325_vm0, %v4045_v45  ;;  %22649 = vmatprep.subr.mxu1 %v25552_v23  ;;  %v8372_v45 = vld [vmem:[#allocation2 + $0x219] sm:$0xff] }
 0x39c   : > { %21973 = vmatmul.mubr.msk.f32.gmra.mrb[2].mxu1 %vm325_vm0, %v8359_v32  ;;  %21417 = vmatprep.mubr.msk.f32.mxu0 %vm325_vm0, %v4046_v27 }
 0x39d   : > { %21975 = vmatprep.mubr.msk.f32.mxu1 %vm325_vm0, %v8360_v4 }
 0x39e   : > { %v21254_v37 = vpop.f32.mrb[110].mxu0 }
 0x39f   : > { %v21812_v63 = vpop.f32.mrb[110].mxu1  ;;  %v3004_v20 = vpop.f32.mrb[111].mxu0  ;;  %21418 = vmatmul.mubr.msk.f32.gmra.mrb[152].mxu0 %vm325_vm0, %v4047_v62  ;;  %v4059_v62 = vld [vmem:[#allocation2 + $0xe1] sm:$0xff]  ;;  %v4060_v37 = vld [vmem:[#allocation2 + $0xe9] sm:$0xff] }
 0x3a0   : > { %v25570_v35 = vadd.f32 %v3004_v20, %v25405_v46  ;;  %v7320_v38 = vpop.f32.mrb[111].mxu1  ;;  %21976 = vmatmul.mubr.msk.f32.gmra.mrb[152].mxu1 %vm325_vm0, %v8361_v12  ;;  %21420 = vmatprep.mubr.msk.f32.mxu0 %vm325_vm0, %v4048_v31  ;;  %v4051_v46 = vld [vmem:[#allocation2 + $0xa1] sm:$0xff]  ;;  %v8375_v63 = vld [vmem:[#allocation2 + $0x231] sm:$0xff]  ;;  %v4062_v20 = vld [vmem:[#allocation2 + $0xf9] sm:$0xff] }
 0x3a1   : > { %v25575_v11 = vadd.f32 %v7320_v38, %v25409_v56  ;;  %21978 = vmatprep.mubr.msk.f32.mxu1 %vm325_vm0, %v8362_v0  ;;  %v4053_v56 = vld [vmem:[#allocation2 + $0xb1] sm:$0xff]  ;;  %v8373_v31 = vld [vmem:[#allocation2 + $0x221] sm:$0xff]  ;;  %v8374_v0 = vld [vmem:[#allocation2 + $0x229] sm:$0xff] }
 0x3a2   : > { %v8376_v38 = vld [vmem:[#allocation2 + $0x239] sm:$0xff] }
 0x3a3   : > { %21421 = vmatmul.mubr.msk.f32.gmra.mrb[6].mxu0 %vm325_vm0, %v4049_v24  ;;  %v8377_v24 = vld [vmem:[#allocation2 + $0x241] sm:$0xff] }
 0x3a4   : > { %21979 = vmatmul.mubr.msk.f32.gmra.mrb[6].mxu1 %vm325_vm0, %v8363_v26  ;;  %21423 = vmatprep.mubr.msk.f32.mxu0 %vm325_vm0, %v4050_v19  ;;  %v4064_v26 = vld [vmem:[#allocation2 + $0x109] sm:$0xff] }
 0x3a5   : > { %21981 = vmatprep.mubr.msk.f32.mxu1 %vm325_vm0, %v8364_v17  ;;  %v8378_v17 = vld [vmem:[#allocation2 + $0x249] sm:$0xff] }
 0x3a7   : > { %21424 = vmatmul.mubr.msk.f32.gmra.mrb[154].mxu0 %vm325_vm0, %v4051_v46 }
 0x3a8   : > { %21982 = vmatmul.mubr.msk.f32.gmra.mrb[154].mxu1 %vm325_vm0, %v8365_v2  ;;  %21426 = vmatprep.mubr.msk.f32.mxu0 %vm325_vm0, %v4052_v18 }
 0x3a9   : > { %21984 = vmatprep.mubr.msk.f32.mxu1 %vm325_vm0, %v8366_v36 }
 0x3aa   : > { %v21263_v3 = vpop.f32.mrb[112].mxu0 }
 0x3ab   : > { %v25587_v33 = vadd.f32 %v21263_v3, %v25421_v15  ;;  %v21821_v5 = vpop.f32.mrb[112].mxu1  ;;  %v3033_v51 = vpop.f32.mrb[113].mxu0  ;;  %21427 = vmatmul.mubr.msk.f32.gmra.mrb[10].mxu0 %vm325_vm0, %v4053_v56  ;;  %v4057_v15 = vld [vmem:[#allocation2 + $0xd1] sm:$0xff]  ;;  %v4066_v3 = vld [vmem:[#allocation2 + $0x119] sm:$0xff] }
 0x3ac   : > { %v25591_v29 = vadd.f32 %v21821_v5, %v25426_v8  ;;  %21985 = vmatmul.mubr.msk.f32.gmra.mrb[10].mxu1 %vm325_vm0, %v8367_v54  ;;  %21429 = vmatprep.mubr.msk.f32.mxu0 %vm325_vm0, %v4054_v1  ;;  %v7349_v16 = vpop.f32.mrb[113].mxu1  ;;  %v8371_v8 = vld [vmem:[#allocation2 + $0x211] sm:$0xff]  ;;  %v4068_v5 = vld [vmem:[#allocation2 + $0x129] sm:$0xff] }
 0x3ad   : > { %21987 = vmatprep.mubr.msk.f32.mxu1 %vm325_vm0, %v8368_v57  ;;  %v4065_v56 = vld [vmem:[#allocation2 + $0x111] sm:$0xff]  ;;  %v8380_v57 = vld [vmem:[#allocation2 + $0x259] sm:$0xff] }
 0x3ae   : > { %v8379_v1 = vld [vmem:[#allocation2 + $0x251] sm:$0xff] }
 0x3af   : > { %21430 = vmatmul.mubr.msk.f32.gmra.mrb[12].mxu0 %vm325_vm0, %v4055_v58  ;;  %v8382_v58 = vld [vmem:[#allocation2 + $0x269] sm:$0xff] }
 0x3b0   : > { %21988 = vmatmul.mubr.msk.f32.gmra.mrb[12].mxu1 %vm325_vm0, %v8369_v21  ;;  %21432 = vmatprep.mubr.msk.f32.mxu0 %vm325_vm0, %v4056_v61 }
 0x3b1   : > { %21990 = vmatprep.mubr.msk.f32.mxu1 %vm325_vm0, %v8370_v7 }
 0x3b2   : > { %v21269_v39 = vpop.f32.mrb[114].mxu0 }
 0x3b3   : > { %v21827_v28 = vpop.f32.mrb[114].mxu1  ;;  %v3052_v32 = vpop.f32.mrb[115].mxu0  ;;  %21433 = vmatmul.mubr.msk.f32.gmra.mrb[156].mxu0 %vm325_vm0, %v4057_v15  ;;  %v4069_v15 = vld [vmem:[#allocation2 + $0x131] sm:$0xff]  ;;  %v4070_v39 = vld [vmem:[#allocation2 + $0x139] sm:$0xff] }
 0x3b4   : > { %v25602_v27 = vadd.f32 %v3052_v32, %v25437_v53  ;;  %v7368_v4 = vpop.f32.mrb[115].mxu1  ;;  %21991 = vmatmul.mubr.msk.f32.gmra.mrb[156].mxu1 %vm325_vm0, %v8371_v8  ;;  %21435 = vmatprep.mubr.msk.f32.mxu0 %vm325_vm0, %v4058_v60  ;;  %v4061_v53 = vld [vmem:[#allocation2 + $0xf1] sm:$0xff]  ;;  %v8385_v28 = vld [vmem:[#allocation2 + $0x281] sm:$0xff]  ;;  %v4072_v32 = vld [vmem:[#allocation2 + $0x149] sm:$0xff] }
 0x3b5   : > { %v25607_v12 = vadd.f32 %v7368_v4, %v25441_v30  ;;  %21993 = vmatprep.mubr.msk.f32.mxu1 %vm325_vm0, %v8372_v45  ;;  %v4063_v30 = vld [vmem:[#allocation2 + $0x101] sm:$0xff]  ;;  %v8383_v60 = vld [vmem:[#allocation2 + $0x271] sm:$0xff]  ;;  %v8384_v45 = vld [vmem:[#allocation2 + $0x279] sm:$0xff] }
 0x3b6   : > { %v8386_v4 = vld [vmem:[#allocation2 + $0x289] sm:$0xff] }
 0x3b7   : > { %21436 = vmatmul.mubr.msk.f32.gmra.mrb[16].mxu0 %vm325_vm0, %v4059_v62  ;;  %v8387_v62 = vld [vmem:[#allocation2 + $0x291] sm:$0xff] }
 0x3b8   : > { %21994 = vmatmul.mubr.msk.f32.gmra.mrb[16].mxu1 %vm325_vm0, %v8373_v31  ;;  %21438 = vmatprep.mubr.msk.f32.mxu0 %vm325_vm0, %v4060_v37  ;;  %v4074_v31 = vld [vmem:[#allocation2 + $0x159] sm:$0xff] }
 0x3b9   : > { %21996 = vmatprep.mubr.msk.f32.mxu1 %vm325_vm0, %v8374_v0  ;;  %v8388_v0 = vld [vmem:[#allocation2 + $0x299] sm:$0xff] }
 0x3bb   : > { %21439 = vmatmul.mubr.msk.f32.gmra.mrb[158].mxu0 %vm325_vm0, %v4061_v53 }
 0x3bc   : > { %21997 = vmatmul.mubr.msk.f32.gmra.mrb[158].mxu1 %vm325_vm0, %v8375_v63  ;;  %21441 = vmatprep.mubr.msk.f32.mxu0 %vm325_vm0, %v4062_v20 }
 0x3bd   : > { %21999 = vmatprep.mubr.msk.f32.mxu1 %vm325_vm0, %v8376_v38 }
 0x3be   : > { %v21278_v19 = vpop.f32.mrb[116].mxu0 }
 0x3bf   : > { %v25619_v46 = vadd.f32 %v21278_v19, %v25453_v44  ;;  %v21836_v2 = vpop.f32.mrb[116].mxu1  ;;  %v3081_v18 = vpop.f32.mrb[117].mxu0  ;;  %21442 = vmatmul.mubr.msk.f32.gmra.mrb[20].mxu0 %vm325_vm0, %v4063_v30  ;;  %v4067_v44 = vld [vmem:[#allocation2 + $0x121] sm:$0xff]  ;;  %v4076_v19 = vld [vmem:[#allocation2 + $0x169] sm:$0xff] }
 0x3c0   : > { %v25623_v36 = vadd.f32 %v21836_v2, %v25458_v6  ;;  %22000 = vmatmul.mubr.msk.f32.gmra.mrb[20].mxu1 %vm325_vm0, %v8377_v24  ;;  %21444 = vmatprep.mubr.msk.f32.mxu0 %vm325_vm0, %v4064_v26  ;;  %v7397_v54 = vpop.f32.mrb[117].mxu1  ;;  %v8381_v6 = vld [vmem:[#allocation2 + $0x261] sm:$0xff]  ;;  %v4078_v2 = vld [vmem:[#allocation2 + $0x179] sm:$0xff] }
 0x3c1   : > { %22002 = vmatprep.mubr.msk.f32.mxu1 %vm325_vm0, %v8378_v17  ;;  %v4075_v30 = vld [vmem:[#allocation2 + $0x161] sm:$0xff]  ;;  %v8390_v17 = vld [vmem:[#allocation2 + $0x2a9] sm:$0xff] }
 0x3c2   : > { %v8389_v26 = vld [vmem:[#allocation2 + $0x2a1] sm:$0xff] }
 0x3c3   : > { %21445 = vmatmul.mubr.msk.f32.gmra.mrb[22].mxu0 %vm325_vm0, %v4065_v56  ;;  %v8392_v56 = vld [vmem:[#allocation2 + $0x2b9] sm:$0xff] }
 0x3c4   : > { %22003 = vmatmul.mubr.msk.f32.gmra.mrb[22].mxu1 %vm325_vm0, %v8379_v1  ;;  %21447 = vmatprep.mubr.msk.f32.mxu0 %vm325_vm0, %v4066_v3 }
 0x3c5   : > { %22005 = vmatprep.mubr.msk.f32.mxu1 %vm325_vm0, %v8380_v57 }
 0x3c6   : > { %v21284_v51 = vpop.f32.mrb[118].mxu0 }
 0x3c7   : > { %v21842_v16 = vpop.f32.mrb[118].mxu1  ;;  %v3100_v21 = vpop.f32.mrb[119].mxu0  ;;  %21448 = vmatmul.mubr.msk.f32.gmra.mrb[160].mxu0 %vm325_vm0, %v4067_v44  ;;  %v4079_v44 = vld [vmem:[#allocation2 + $0x181] sm:$0xff]  ;;  %v4080_v51 = vld [vmem:[#allocation2 + $0x189] sm:$0xff] }
 0x3c8   : > { %v25634_v61 = vadd.f32 %v3100_v21, %v25469_v48  ;;  %v7416_v7 = vpop.f32.mrb[119].mxu1  ;;  %22006 = vmatmul.mubr.msk.f32.gmra.mrb[160].mxu1 %vm325_vm0, %v8381_v6  ;;  %21450 = vmatprep.mubr.msk.f32.mxu0 %vm325_vm0, %v4068_v5  ;;  %v4071_v48 = vld [vmem:[#allocation2 + $0x141] sm:$0xff]  ;;  %v8395_v16 = vld [vmem:[#allocation2 + $0x2d1] sm:$0xff] }
 0x3c9   : > { %v25639_v8 = vadd.f32 %v7416_v7, %v25473_v55  ;;  %22008 = vmatprep.mubr.msk.f32.mxu1 %vm325_vm0, %v8382_v58  ;;  %v4073_v55 = vld [vmem:[#allocation2 + $0x151] sm:$0xff]  ;;  %v8393_v5 = vld [vmem:[#allocation2 + $0x2c1] sm:$0xff]  ;;  %v8394_v58 = vld [vmem:[#allocation2 + $0x2c9] sm:$0xff] }
 0x3ca   : > { %v13473_v21 = vld [vmem:[#allocation2 + $0x3c8] sm:$0xff] }
 0x3cb   : > { %21451 = vmatmul.mubr.msk.f32.gmra.mrb[26].mxu0 %vm325_vm0, %v4069_v15  ;;  %v13475_v15 = vld [vmem:[#allocation2 + $0x3d8] sm:$0xff] }
 0x3cc   : > { %22009 = vmatmul.mubr.msk.f32.gmra.mrb[26].mxu1 %vm325_vm0, %v8383_v60  ;;  %21453 = vmatprep.mubr.msk.f32.mxu0 %vm325_vm0, %v4070_v39 }
 0x3cd   : > { %22011 = vmatprep.mubr.msk.f32.mxu1 %vm325_vm0, %v8384_v45 }
 0x3cf   : > { %21454 = vmatmul.mubr.msk.f32.gmra.mrb[162].mxu0 %vm325_vm0, %v4071_v48  ;;  %v25691_v48 = vld [vmem:[%s28309_s4 + $0x10] sm:$0xff] }
 0x3d0   : > { %22012 = vmatmul.mubr.msk.f32.gmra.mrb[162].mxu1 %vm325_vm0, %v8385_v28  ;;  %21456 = vmatprep.mubr.msk.f32.mxu0 %vm325_vm0, %v4072_v32  ;;  %v13479_v32 = vld [vmem:[#allocation2 + $0x3f8] sm:$0xff] }
 0x3d1   : > { %22014 = vmatprep.mubr.msk.f32.mxu1 %vm325_vm0, %v8386_v4 }
 0x3d2   : > { %v21295_v37 = vpop.f32.mrb[120].mxu0 }
 0x3d3   : > { %v25651_v53 = vadd.f32 %v21295_v37, %v25491_v43  ;;  %v21853_v63 = vpop.f32.mrb[120].mxu1  ;;  %v3388_v20 = vpop.f32.mrb[121].mxu0  ;;  %21457 = vmatmul.mubr.msk.f32.gmra.mrb[30].mxu0 %vm325_vm0, %v4073_v55  ;;  %v4077_v43 = vld [vmem:[#allocation2 + $0x171] sm:$0xff]  ;;  %v9179_v37 = vld [vmem:[#allocation2 + $0x2e8] sm:$0xff] }
 0x3d4   : > { %v25655_v38 = vadd.f32 %v21853_v63, %v25495_v42  ;;  %22015 = vmatmul.mubr.msk.f32.gmra.mrb[30].mxu1 %vm325_vm0, %v8387_v62  ;;  %21459 = vmatprep.mubr.msk.f32.mxu0 %vm325_vm0, %v4074_v31  ;;  %v7703_v24 = vpop.f32.mrb[121].mxu1  ;;  %v8391_v42 = vld [vmem:[#allocation2 + $0x2b1] sm:$0xff]  ;;  %v13480_v62 = vld [vmem:[#allocation2 + $0x400] sm:$0xff]  ;;  %v13481_v31 = vld [vmem:[#allocation2 + $0x408] sm:$0xff] }
 0x3d5   : > { %22017 = vmatprep.mubr.msk.f32.mxu1 %vm325_vm0, %v8388_v0  ;;  %v13485_v63 = vld [vmem:[#allocation2 + $0x428] sm:$0xff]  ;;  %v9180_v24 = vld [vmem:[#allocation2 + $0x2f0] sm:$0xff] }
 0x3d7   : > { %21460 = vmatmul.mubr.msk.f32.gmra.mrb[32].mxu0 %vm325_vm0, %v4075_v30 }
 0x3d8   : > { %22018 = vmatmul.mubr.msk.f32.gmra.mrb[32].mxu1 %vm325_vm0, %v8389_v26  ;;  %21462 = vmatprep.mubr.msk.f32.mxu0 %vm325_vm0, %v4076_v19  ;;  %v13486_v19 = vld [vmem:[#allocation2 + $0x430] sm:$0xff] }
 0x3d9   : > { %22020 = vmatprep.mubr.msk.f32.mxu1 %vm325_vm0, %v8390_v17  ;;  %v9181_v17 = vld [vmem:[#allocation2 + $0x2f8] sm:$0xff] }
 0x3da   : > { %v21301_v18 = vpop.f32.mrb[122].mxu0 }
 0x3db   : > { %v21859_v54 = vpop.f32.mrb[122].mxu1  ;;  %v3407_v1 = vpop.f32.mrb[123].mxu0  ;;  %21463 = vmatmul.mubr.msk.f32.gmra.mrb[164].mxu0 %vm325_vm0, %v4077_v43  ;;  %v13487_v43 = vld [vmem:[#allocation2 + $0x438] sm:$0xff]  ;;  %v13489_v18 = vld [vmem:[#allocation2 + $0x448] sm:$0xff] }
 0x3dc   : > { %v25666_v3 = vadd.f32 %v3407_v1, %v25518_v25  ;;  %v7722_v57 = vpop.f32.mrb[123].mxu1  ;;  %22021 = vmatmul.mubr.msk.f32.gmra.mrb[164].mxu1 %vm325_vm0, %v8391_v42  ;;  %21465 = vmatprep.mubr.msk.f32.mxu0 %vm325_vm0, %v4078_v2  ;;  %v4081_v25 = vld [vmem:[#allocation2 + $0x191] sm:$0xff]  ;;  %v9183_v42 = vld [vmem:[#allocation2 + $0x308] sm:$0xff] }
 0x3dd   : > { %v25671_v6 = vadd.f32 %v7722_v57, %v25524_v9  ;;  %22023 = vmatprep.mubr.msk.f32.mxu1 %vm325_vm0, %v8392_v56  ;;  %v13474_v9 = vld [vmem:[#allocation2 + $0x3d0] sm:$0xff] }
 0x3df   : > { %21466 = vmatmul.mubr.msk.f32.gmra.mrb[36].mxu0 %vm325_vm0, %v4079_v44  ;;  %v9184_v44 = vld [vmem:[#allocation2 + $0x310] sm:$0xff] }
 0x3e0   : > { %22024 = vmatmul.mubr.msk.f32.gmra.mrb[36].mxu1 %vm325_vm0, %v8393_v5  ;;  %21468 = vmatprep.mubr.msk.f32.mxu0 %vm325_vm0, %v4080_v51  ;;  %v13490_v51 = vld [vmem:[#allocation2 + $0x450] sm:$0xff] }
 0x3e1   : > { %22026 = vmatprep.mubr.msk.f32.mxu1 %vm325_vm0, %v8394_v58  ;;  %v9185_v58 = vld [vmem:[#allocation2 + $0x318] sm:$0xff] }
 0x3e3   : > { %21469 = vmatmul.mubr.msk.f32.gmra.mrb[166].mxu0 %vm325_vm0, %v4081_v25  ;;  %v13491_v25 = vld [vmem:[#allocation2 + $0x458] sm:$0xff] }
 0x3e4   : > { %22027 = vmatmul.mubr.msk.f32.gmra.mrb[166].mxu1 %vm325_vm0, %v8395_v16  ;;  %22031 = vmatprep.mubr.msk.f32.mxu0 %vm325_vm0, %v25479_v34  ;;  %v13492_v16 = vld [vmem:[#allocation2 + $0x460] sm:$0xff] }
 0x3e5   : > { %22589 = vmatprep.mubr.msk.f32.mxu1 %vm325_vm0, %v13473_v21  ;;  %v9187_v21 = vld [vmem:[#allocation2 + $0x328] sm:$0xff] }
 0x3e6   : > { %v21310_v7 = vpop.f32.mrb[124].mxu0 }
 0x3e7   : > { %v25684_v60 = vadd.f32 %v21310_v7, %v25546_v59  ;;  %v21868_v39 = vpop.f32.mrb[124].mxu1  ;;  %v3436_v45 = vpop.f32.mrb[125].mxu0  ;;  %22032 = vmatmul.mubr.msk.f32.vlgmr.msra.gmra.mrb[168].mxu0 %vm325_vm0, %v25486_v40  ;;  %v13476_v59 = vld [vmem:[#allocation2 + $0x3e0] sm:$0xff]  ;;  %v13477_v40 = vld [vmem:[#allocation2 + $0x3e8] sm:$0xff]  ;;  %v13494_v7 = vld [vmem:[#allocation2 + $0x470] sm:$0xff] }
 0x3e8   : > { %v25694_v34 = vadd.f32 %v21868_v39, %v25555_v50  ;;  %22590 = vmatmul.mubr.msk.f32.vlgmr.msra.gmra.mrb[168].mxu1 %vm325_vm0, %v13474_v9  ;;  %22092 = vmatpush3.msra.mxu0 %v25552_v23  ;;  %v7751_v28 = vpop.f32.mrb[125].mxu1  ;;  %v13493_v9 = vld [vmem:[#allocation2 + $0x468] sm:$0xff]  ;;  %v13495_v45 = vld [vmem:[#allocation2 + $0x478] sm:$0xff] }
 0x3e9   : > { %22034 = vmatprep.mubr.msk.f32.mxu0 %vm325_vm0, %v25488_v22  ;;  %22592 = vmatprep.mubr.msk.f32.mxu1 %vm325_vm0, %v13475_v15  ;;  %v13478_v22 = vld [vmem:[#allocation2 + $0x3f0] sm:$0xff]  ;;  %v9189_v15 = vld [vmem:[#allocation2 + $0x338] sm:$0xff] }
 0x3ea   : > { %22650 = vmatpush3.msra.mxu1 %v25552_v23  ;;  %22153 = vmatprep.subr.mxu0 %v25691_v48 }
 0x3eb   : > { %22035 = vmatmul.mubr.msk.f32.gmra.mrb[170].mxu0 %vm325_vm0, %v25502_v52  ;;  %22711 = vmatprep.subr.mxu1 %v25691_v48 }
 0x3ec   : > { %22593 = vmatmul.mubr.msk.f32.gmra.mrb[170].mxu1 %vm325_vm0, %v13476_v59  ;;  %22037 = vmatprep.mubr.msk.f32.mxu0 %vm325_vm0, %v25504_v13 }
 0x3ed   : > { %22595 = vmatprep.mubr.msk.f32.mxu1 %vm325_vm0, %v13477_v40 }
 0x3ee   : > { %v21316_v50 = vpop.f32.mrb[126].mxu0 }
 0x3ef   : > { %v21874_v4 = vpop.f32.mrb[126].mxu1  ;;  %v3455_v55 = vpop.f32.mrb[127].mxu0  ;;  %22038 = vmatmul.mubr.msk.f32.gmra.mrb[172].mxu0 %vm325_vm0, %v25512_v47  ;;  %v13482_v47 = vld [vmem:[#allocation2 + $0x410] sm:$0xff]  ;;  %v9190_v50 = vld [vmem:[#allocation2 + $0x340] sm:$0xff] }
 0x3f0   : > { %v25713_v23 = vadd.f32 %v3455_v55, %v25570_v35  ;;  %v7770_v52 = vpop.f32.mrb[127].mxu1  ;;  %22596 = vmatmul.mubr.msk.f32.gmra.mrb[172].mxu1 %vm325_vm0, %v13478_v22  ;;  %22040 = vmatprep.mubr.msk.f32.mxu0 %vm325_vm0, %v25514_v10  ;;  %v9177_v35 = vld [vmem:[#allocation2 + $0x2d8] sm:$0xff]  ;;  %v13496_v4 = vld [vmem:[#allocation2 + $0x480] sm:$0xff]  ;;  %v9191_v55 = vld [vmem:[#allocation2 + $0x348] sm:$0xff] }
 0x3f1   : > { %v25719_v13 = vadd.f32 %v7770_v52, %v25575_v11  ;;  %22598 = vmatprep.mubr.msk.f32.mxu1 %vm325_vm0, %v13479_v32  ;;  %v13483_v10 = vld [vmem:[#allocation2 + $0x418] sm:$0xff]  ;;  %v9178_v11 = vld [vmem:[#allocation2 + $0x2e0] sm:$0xff]  ;;  %v13497_v52 = vld [vmem:[#allocation2 + $0x488] sm:$0xff] }
 0x3f3   : > { %22041 = vmatmul.mubr.msk.f32.gmra.mrb[174].mxu0 %vm325_vm0, %v25528_v41  ;;  %v13484_v41 = vld [vmem:[#allocation2 + $0x420] sm:$0xff] }
 0x3f4   : > { %22599 = vmatmul.mubr.msk.f32.gmra.mrb[174].mxu1 %vm325_vm0, %v13480_v62  ;;  %22043 = vmatprep.mubr.msk.f32.mxu0 %vm325_vm0, %v25530_v14  ;;  %v9193_v62 = vld [vmem:[#allocation2 + $0x358] sm:$0xff] }
 0x3f5   : > { %22601 = vmatprep.mubr.msk.f32.mxu1 %vm325_vm0, %v13481_v31 }
 0x3f7   : > { %22044 = vmatmul.mubr.msk.f32.gmra.mrb[176].mxu0 %vm325_vm0, %v25538_v49 }
 0x3f8   : > { %22602 = vmatmul.mubr.msk.f32.gmra.mrb[176].mxu1 %vm325_vm0, %v13482_v47  ;;  %22046 = vmatprep.mubr.msk.f32.mxu0 %vm325_vm0, %v9177_v35  ;;  %v13499_v47 = vld [vmem:[#allocation2 + $0x498] sm:$0xff] }
 0x3f9   : > { %22604 = vmatprep.mubr.msk.f32.mxu1 %vm325_vm0, %v13483_v10 }
 0x3fa   : > { %v21325_v0 = vpop.f32.mrb[128].mxu0 }
 0x3fb   : > { %v25734_v14 = vadd.f32 %v21325_v0, %v25587_v33  ;;  %v21883_v20 = vpop.f32.mrb[128].mxu1  ;;  %v3484_v30 = vpop.f32.mrb[129].mxu0  ;;  %22047 = vmatmul.mubr.msk.f32.gmra.mrb[178].mxu0 %vm325_vm0, %v9178_v11  ;;  %v9182_v33 = vld [vmem:[#allocation2 + $0x300] sm:$0xff] }
 0x3fc   : > { %v25738_v49 = vadd.f32 %v21883_v20, %v25591_v29  ;;  %22605 = vmatmul.mubr.msk.f32.gmra.mrb[178].mxu1 %vm325_vm0, %v13484_v41  ;;  %22049 = vmatprep.mubr.msk.f32.mxu0 %vm325_vm0, %v9179_v37  ;;  %v7799_v26 = vpop.f32.mrb[129].mxu1  ;;  %v13488_v29 = vld [vmem:[#allocation2 + $0x440] sm:$0xff]  ;;  %v9195_v20 = vld [vmem:[#allocation2 + $0x368] sm:$0xff] }
 0x3fd   : > { %22607 = vmatprep.mubr.msk.f32.mxu1 %vm325_vm0, %v13485_v63  ;;  %v9194_v37 = vld [vmem:[#allocation2 + $0x360] sm:$0xff]  ;;  %v13501_v30 = vld [vmem:[#allocation2 + $0x4a8] sm:$0xff]  ;;  %v9197_v26 = vld [vmem:[#allocation2 + $0x378] sm:$0xff] }
 0x3fe   : > { %v13500_v63 = vld [vmem:[#allocation2 + $0x4a0] sm:$0xff] }
 0x3ff   : > { %22050 = vmatmul.mubr.msk.f32.gmra.mrb[180].mxu0 %vm325_vm0, %v9180_v24  ;;  %v13502_v24 = vld [vmem:[#allocation2 + $0x4b0] sm:$0xff] }
 0x400   : > { %22608 = vmatmul.mubr.msk.f32.gmra.mrb[180].mxu1 %vm325_vm0, %v13486_v19  ;;  %22052 = vmatprep.mubr.msk.f32.mxu0 %vm325_vm0, %v9181_v17  ;;  %v13503_v19 = vld [vmem:[#allocation2 + $0x4b8] sm:$0xff]  ;;  %v13504_v17 = vld [vmem:[#allocation2 + $0x4c0] sm:$0xff] }
 0x401   : > { %22610 = vmatprep.mubr.msk.f32.mxu1 %vm325_vm0, %v13487_v43  ;;  %v9199_v43 = vld [vmem:[#allocation2 + $0x388] sm:$0xff] }
 0x402   : > { %v21331_v2 = vpop.f32.mrb[130].mxu0 }
 0x403   : > { %v21889_v56 = vpop.f32.mrb[130].mxu1  ;;  %v3503_v54 = vpop.f32.mrb[131].mxu0  ;;  %22053 = vmatmul.mubr.msk.f32.gmra.mrb[182].mxu0 %vm325_vm0, %v9182_v33 }
 0x404   : > { %v25749_v1 = vadd.f32 %v3503_v54, %v25602_v27  ;;  %v7818_v57 = vpop.f32.mrb[131].mxu1  ;;  %22611 = vmatmul.mubr.msk.f32.gmra.mrb[182].mxu1 %vm325_vm0, %v13488_v29  ;;  %22055 = vmatprep.mubr.msk.f32.mxu0 %vm325_vm0, %v9183_v42  ;;  %v9186_v27 = vld [vmem:[#allocation2 + $0x320] sm:$0xff]  ;;  %v13505_v29 = vld [vmem:[#allocation2 + $0x4c8] sm:$0xff]  ;;  %v9200_v54 = vld [vmem:[#allocation2 + $0x390] sm:$0xff] }
 0x405   : > { %v25754_v5 = vadd.f32 %v7818_v57, %v25607_v12  ;;  %22613 = vmatprep.mubr.msk.f32.mxu1 %vm325_vm0, %v13489_v18  ;;  %v9188_v12 = vld [vmem:[#allocation2 + $0x330] sm:$0xff] }
 0x407   : > { %22056 = vmatmul.mubr.msk.f32.gmra.mrb[184].mxu0 %vm325_vm0, %v9184_v44  ;;  %v13506_v44 = vld [vmem:[#allocation2 + $0x4d0] sm:$0xff] }
 0x408   : > { %22614 = vmatmul.mubr.msk.f32.gmra.mrb[184].mxu1 %vm325_vm0, %v13490_v51  ;;  %22058 = vmatprep.mubr.msk.f32.mxu0 %vm325_vm0, %v9185_v58  ;;  %v9201_v51 = vld [vmem:[#allocation2 + $0x398] sm:$0xff] }
 0x409   : > { %22616 = vmatprep.mubr.msk.f32.mxu1 %vm325_vm0, %v13491_v25  ;;  %v13507_v58 = vld [vmem:[#allocation2 + $0x4d8] sm:$0xff]  ;;  %v9203_v25 = vld [vmem:[#allocation2 + $0x3a8] sm:$0xff] }
 0x40b   : > { %22059 = vmatmul.mubr.msk.f32.gmra.mrb[186].mxu0 %vm325_vm0, %v9186_v27 }
 0x40c   : > { %22617 = vmatmul.mubr.msk.f32.gmra.mrb[186].mxu1 %vm325_vm0, %v13492_v16  ;;  %22061 = vmatprep.mubr.msk.f32.mxu0 %vm325_vm0, %v9187_v21  ;;  %v13509_v16 = vld [vmem:[#allocation2 + $0x4e8] sm:$0xff] }
 0x40d   : > { %22619 = vmatprep.mubr.msk.f32.mxu1 %vm325_vm0, %v13493_v9 }
 0x40e   : > { %v21340_v39 = vpop.f32.mrb[132].mxu0 }
 0x40f   : > { %v25766_v28 = vadd.f32 %v21340_v39, %v25619_v46  ;;  %v21898_v59 = vpop.f32.mrb[132].mxu1  ;;  %v3532_v40 = vpop.f32.mrb[133].mxu0  ;;  %22062 = vmatmul.mubr.msk.f32.gmra.mrb[188].mxu0 %vm325_vm0, %v9188_v12  ;;  %v9192_v46 = vld [vmem:[#allocation2 + $0x350] sm:$0xff] }
 0x410   : > { %v25770_v22 = vadd.f32 %v21898_v59, %v25623_v36  ;;  %22620 = vmatmul.mubr.msk.f32.gmra.mrb[188].mxu1 %vm325_vm0, %v13494_v7  ;;  %22064 = vmatprep.mubr.msk.f32.mxu0 %vm325_vm0, %v9189_v15  ;;  %v7847_v32 = vpop.f32.mrb[133].mxu1  ;;  %v13498_v36 = vld [vmem:[#allocation2 + $0x490] sm:$0xff]  ;;  %v9205_v59 = vld [vmem:[#allocation2 + $0x3b8] sm:$0xff] }
 0x411   : > { %22622 = vmatprep.mubr.msk.f32.mxu1 %vm325_vm0, %v13495_v45  ;;  %v9204_v15 = vld [vmem:[#allocation2 + $0x3b0] sm:$0xff]  ;;  %v13511_v40 = vld [vmem:[#allocation2 + $0x4f8] sm:$0xff]  ;;  %v9126_v32 = vld [vmem:[#allocation2 + $0x287] sm:$0xff] }
 0x412   : > { %v13510_v45 = vld [vmem:[#allocation2 + $0x4f0] sm:$0xff] }
 0x413   : > { %22065 = vmatmul.mubr.msk.f32.gmra.mrb[190].mxu0 %vm325_vm0, %v9190_v50  ;;  %v13512_v50 = vld [vmem:[#allocation2 + $0x500] sm:$0xff] }
 0x414   : > { %22623 = vmatmul.mubr.msk.f32.gmra.mrb[190].mxu1 %vm325_vm0, %v13496_v4  ;;  %22067 = vmatprep.mubr.msk.f32.mxu0 %vm325_vm0, %v9191_v55  ;;  %v13432_v4 = vld [vmem:[#allocation2 + $0x3c7] sm:$0xff]  ;;  %v13433_v55 = vld [vmem:[#allocation2 + $0x3cf] sm:$0xff] }
 0x415   : > { %22625 = vmatprep.mubr.msk.f32.mxu1 %vm325_vm0, %v13497_v52 }
 0x416   : > { %v21346_v31 = vpop.f32.mrb[134].mxu0 }
 0x417   : > { %v21904_v35 = vpop.f32.mrb[134].mxu1  ;;  %v3551_v10 = vpop.f32.mrb[135].mxu0  ;;  %22068 = vmatmul.mubr.msk.f32.gmra.mrb[192].mxu0 %vm325_vm0, %v9192_v46  ;;  %v9128_v46 = vld [vmem:[#allocation2 + $0x297] sm:$0xff] }
 0x418   : > { %v25781_v11 = vadd.f32 %v3551_v10, %v25634_v61  ;;  %v7866_v41 = vpop.f32.mrb[135].mxu1  ;;  %22626 = vmatmul.mubr.msk.f32.gmra.mrb[192].mxu1 %vm325_vm0, %v13498_v36  ;;  %22070 = vmatprep.mubr.msk.f32.mxu0 %vm325_vm0, %v9193_v62  ;;  %v9196_v61 = vld [vmem:[#allocation2 + $0x370] sm:$0xff]  ;;  %v25836_v35 = vld [vmem:[%s28309_s4 + $0x18] sm:$0xff] }
 0x419   : > { %v25786_v0 = vadd.f32 %v7866_v41, %v25639_v8  ;;  %22628 = vmatprep.mubr.msk.f32.mxu1 %vm325_vm0, %v13499_v47  ;;  %v9198_v8 = vld [vmem:[#allocation2 + $0x380] sm:$0xff]  ;;  %v13434_v36 = vld [vmem:[#allocation2 + $0x3d7] sm:$0xff] }
 0x41a   : > { %v9129_v41 = vld [vmem:[#allocation2 + $0x29f] sm:$0xff] }
 0x41b   : > { %22071 = vmatmul.mubr.msk.f32.gmra.mrb[194].mxu0 %vm325_vm0, %v9194_v37 }
 0x41c   : > { %22629 = vmatmul.mubr.msk.f32.gmra.mrb[194].mxu1 %vm325_vm0, %v13500_v63  ;;  %22073 = vmatprep.mubr.msk.f32.mxu0 %vm325_vm0, %v9195_v20  ;;  %v9130_v63 = vld [vmem:[#allocation2 + $0x2a7] sm:$0xff] }
 0x41d   : > { %22631 = vmatprep.mubr.msk.f32.mxu1 %vm325_vm0, %v13501_v30  ;;  %v13436_v20 = vld [vmem:[#allocation2 + $0x3e7] sm:$0xff]  ;;  %v13437_v30 = vld [vmem:[#allocation2 + $0x3ef] sm:$0xff] }
 0x41f   : > { %22074 = vmatmul.mubr.msk.f32.gmra.mrb[196].mxu0 %vm325_vm0, %v9196_v61  ;;  %v9132_v61 = vld [vmem:[#allocation2 + $0x2b7] sm:$0xff] }
 0x420   : > { %22632 = vmatmul.mubr.msk.f32.gmra.mrb[196].mxu1 %vm325_vm0, %v13502_v24  ;;  %22076 = vmatprep.mubr.msk.f32.mxu0 %vm325_vm0, %v9197_v26  ;;  %v13438_v26 = vld [vmem:[#allocation2 + $0x3f7] sm:$0xff] }
 0x421   : > { %22634 = vmatprep.mubr.msk.f32.mxu1 %vm325_vm0, %v13503_v19 }
 0x422   : > { %v21357_v33 = vpop.f32.mrb[136].mxu0 }
 0x423   : > { %v25798_v42 = vadd.f32 %v21357_v33, %v25651_v53  ;;  %v21915_v2 = vpop.f32.mrb[136].mxu1  ;;  %v3839_v18 = vpop.f32.mrb[137].mxu0  ;;  %22077 = vmatmul.mubr.msk.f32.gmra.mrb[198].mxu0 %vm325_vm0, %v9198_v8  ;;  %v9202_v53 = vld [vmem:[#allocation2 + $0x3a0] sm:$0xff] }
 0x424   : > { %v25802_v56 = vadd.f32 %v21915_v2, %v25655_v38  ;;  %22635 = vmatmul.mubr.msk.f32.gmra.mrb[198].mxu1 %vm325_vm0, %v13504_v17  ;;  %22079 = vmatprep.mubr.msk.f32.mxu0 %vm325_vm0, %v9199_v43  ;;  %v8153_v57 = vpop.f32.mrb[137].mxu1  ;;  %v13508_v38 = vld [vmem:[#allocation2 + $0x4e0] sm:$0xff] }
 0x425   : > { %22637 = vmatprep.mubr.msk.f32.mxu1 %vm325_vm0, %v13505_v29  ;;  %v9133_v43 = vld [vmem:[#allocation2 + $0x2bf] sm:$0xff]  ;;  %v9134_v2 = vld [vmem:[#allocation2 + $0x2c7] sm:$0xff]  ;;  %v9136_v57 = vld [vmem:[#allocation2 + $0x2d7] sm:$0xff] }
 0x426   : > { %v13439_v29 = vld [vmem:[#allocation2 + $0x3ff] sm:$0xff]  ;;  %v13440_v18 = vld [vmem:[#allocation2 + $0x407] sm:$0xff] }
 0x427   : > { %22080 = vmatmul.mubr.msk.f32.gmra.mrb[200].mxu0 %vm325_vm0, %v9200_v54  ;;  %v13441_v54 = vld [vmem:[#allocation2 + $0x40f] sm:$0xff] }
 0x428   : > { %22638 = vmatmul.mubr.msk.f32.gmra.mrb[200].mxu1 %vm325_vm0, %v13506_v44  ;;  %22082 = vmatprep.mubr.msk.f32.mxu0 %vm325_vm0, %v9201_v51  ;;  %v13442_v44 = vld [vmem:[#allocation2 + $0x417] sm:$0xff]  ;;  %v13443_v51 = vld [vmem:[#allocation2 + $0x41f] sm:$0xff] }
 0x429   : > { %22640 = vmatprep.mubr.msk.f32.mxu1 %vm325_vm0, %v13507_v58  ;;  %v9138_v58 = vld [vmem:[#allocation2 + $0x2e7] sm:$0xff] }
 0x42a   : > { %v21363_v27 = vpop.f32.mrb[138].mxu0 }
 0x42b   : > { %v21921_v21 = vpop.f32.mrb[138].mxu1  ;;  %v3858_v9 = vpop.f32.mrb[139].mxu0  ;;  %22083 = vmatmul.mubr.msk.f32.gmra.mrb[202].mxu0 %vm325_vm0, %v9202_v53 }
 0x42c   : > { %v25813_v12 = vadd.f32 %v3858_v9, %v25666_v3  ;;  %v8172_v7 = vpop.f32.mrb[139].mxu1  ;;  %22641 = vmatmul.mubr.msk.f32.gmra.mrb[202].mxu1 %vm325_vm0, %v13508_v38  ;;  %22085 = vmatprep.mubr.msk.f32.mxu0 %vm325_vm0, %v9203_v25  ;;  %v9206_v3 = vld [vmem:[#allocation2 + $0x3c0] sm:$0xff]  ;;  %v9139_v9 = vld [vmem:[#allocation2 + $0x2ef] sm:$0xff] }
 0x42d   : > { %v25818_v39 = vadd.f32 %v8172_v7, %v25671_v6  ;;  %22643 = vmatprep.mubr.msk.f32.mxu1 %vm325_vm0, %v13509_v16  ;;  %v9127_v6 = vld [vmem:[#allocation2 + $0x28f] sm:$0xff]  ;;  %v13444_v38 = vld [vmem:[#allocation2 + $0x427] sm:$0xff] }
 0x42f   : > { %22086 = vmatmul.mubr.msk.f32.gmra.mrb[204].mxu0 %vm325_vm0, %v9204_v15  ;;  %v13445_v15 = vld [vmem:[#allocation2 + $0x42f] sm:$0xff] }
 0x430   : > { %22644 = vmatmul.mubr.msk.f32.gmra.mrb[204].mxu1 %vm325_vm0, %v13510_v45  ;;  %22088 = vmatprep.mubr.msk.f32.mxu0 %vm325_vm0, %v9205_v59  ;;  %v9140_v45 = vld [vmem:[#allocation2 + $0x2f7] sm:$0xff] }
 0x431   : > { %22646 = vmatprep.mubr.msk.f32.mxu1 %vm325_vm0, %v13511_v40  ;;  %v13446_v59 = vld [vmem:[#allocation2 + $0x437] sm:$0xff]  ;;  %v9142_v40 = vld [vmem:[#allocation2 + $0x307] sm:$0xff] }
 0x433   : > { %22089 = vmatmul.mubr.msk.f32.gmra.mrb[206].mxu0 %vm325_vm0, %v9206_v3 }
 0x434   : > { %22647 = vmatmul.mubr.msk.f32.gmra.mrb[206].mxu1 %vm325_vm0, %v13512_v50  ;;  %22093 = vmatprep.mubr.msk.f32.mxu0 %vm325_vm0, %v9126_v32  ;;  %v13448_v50 = vld [vmem:[#allocation2 + $0x447] sm:$0xff] }
 0x435   : > { %22651 = vmatprep.mubr.msk.f32.mxu1 %vm325_vm0, %v13432_v4 }
 0x436   : > { %v21372_v52 = vpop.f32.mrb[140].mxu0 }
 0x437   : > { %v25830_v62 = vadd.f32 %v21372_v52, %v25684_v60  ;;  %v21930_v31 = vpop.f32.mrb[140].mxu1  ;;  %v3887_v47 = vpop.f32.mrb[141].mxu0  ;;  %22094 = vmatmul.mubr.msk.f32.vlgmr.msra.gmra.mrb[168].mxu0 %vm325_vm0, %v9127_v6  ;;  %v13435_v60 = vld [vmem:[#allocation2 + $0x3df] sm:$0xff]  ;;  %v9143_v52 = vld [vmem:[#allocation2 + $0x30f] sm:$0xff] }
 0x438   : > { %v25839_v10 = vadd.f32 %v21930_v31, %v25694_v34  ;;  %22652 = vmatmul.mubr.msk.f32.vlgmr.msra.gmra.mrb[168].mxu1 %vm325_vm0, %v13433_v55  ;;  %22154 = vmatpush3.msra.mxu0 %v25691_v48  ;;  %v8201_v37 = vpop.f32.mrb[141].mxu1  ;;  %v9131_v34 = vld [vmem:[#allocation2 + $0x2af] sm:$0xff]  ;;  %v9144_v31 = vld [vmem:[#allocation2 + $0x317] sm:$0xff] }
 0x439   : > { %22096 = vmatprep.mubr.msk.f32.mxu0 %vm325_vm0, %v9128_v46  ;;  %22654 = vmatprep.mubr.msk.f32.mxu1 %vm325_vm0, %v13434_v36  ;;  %v13449_v36 = vld [vmem:[#allocation2 + $0x44f] sm:$0xff]  ;;  %v13450_v47 = vld [vmem:[#allocation2 + $0x457] sm:$0xff]  ;;  %v9146_v37 = vld [vmem:[#allocation2 + $0x327] sm:$0xff] }
 0x43a   : > { %22712 = vmatpush3.msra.mxu1 %v25691_v48  ;;  %22215 = vmatprep.subr.mxu0 %v25836_v35 }
 0x43b   : > { %22097 = vmatmul.mubr.msk.f32.gmra.mrb[170].mxu0 %vm325_vm0, %v9129_v41  ;;  %22773 = vmatprep.subr.mxu1 %v25836_v35  ;;  %v13451_v41 = vld [vmem:[#allocation2 + $0x45f] sm:$0xff] }
 0x43c   : > { %22655 = vmatmul.mubr.msk.f32.gmra.mrb[170].mxu1 %vm325_vm0, %v13435_v60  ;;  %22099 = vmatprep.mubr.msk.f32.mxu0 %vm325_vm0, %v9130_v63  ;;  %v13452_v60 = vld [vmem:[#allocation2 + $0x467] sm:$0xff]  ;;  %v13453_v63 = vld [vmem:[#allocation2 + $0x46f] sm:$0xff] }
 0x43d   : > { %22657 = vmatprep.mubr.msk.f32.mxu1 %vm325_vm0, %v13436_v20  ;;  %v9148_v20 = vld [vmem:[#allocation2 + $0x337] sm:$0xff] }
 0x43e   : > { %v21378_v24 = vpop.f32.mrb[142].mxu0 }
 0x43f   : > { %v21936_v19 = vpop.f32.mrb[142].mxu1  ;;  %v3906_v8 = vpop.f32.mrb[143].mxu0  ;;  %22100 = vmatmul.mubr.msk.f32.gmra.mrb[208].mxu0 %vm325_vm0, %v9131_v34 }
 0x440   : > { %v25854_v48 = vadd.f32 %v3906_v8, %v25713_v23  ;;  %v8220_v17 = vpop.f32.mrb[143].mxu1  ;;  %22658 = vmatmul.mubr.msk.f32.gmra.mrb[208].mxu1 %vm325_vm0, %v13437_v30  ;;  %22102 = vmatprep.mubr.msk.f32.mxu0 %vm325_vm0, %v9132_v61  ;;  %v9135_v23 = vld [vmem:[#allocation2 + $0x2cf] sm:$0xff]  ;;  %v13454_v30 = vld [vmem:[#allocation2 + $0x477] sm:$0xff]  ;;  %v9149_v8 = vld [vmem:[#allocation2 + $0x33f] sm:$0xff] }
 0x441   : > { %v25859_v33 = vadd.f32 %v8220_v17, %v25719_v13  ;;  %22660 = vmatprep.mubr.msk.f32.mxu1 %vm325_vm0, %v13438_v26  ;;  %v9137_v13 = vld [vmem:[#allocation2 + $0x2df] sm:$0xff] }
 0x443   : > { %22103 = vmatmul.mubr.msk.f32.gmra.mrb[174].mxu0 %vm325_vm0, %v9133_v43  ;;  %v13455_v43 = vld [vmem:[#allocation2 + $0x47f] sm:$0xff] }
 0x444   : > { %22661 = vmatmul.mubr.msk.f32.gmra.mrb[174].mxu1 %vm325_vm0, %v13439_v29  ;;  %22105 = vmatprep.mubr.msk.f32.mxu0 %vm325_vm0, %v9134_v2  ;;  %v9150_v29 = vld [vmem:[#allocation2 + $0x347] sm:$0xff] }
 0x445   : > { %22663 = vmatprep.mubr.msk.f32.mxu1 %vm325_vm0, %v13440_v18  ;;  %v13456_v2 = vld [vmem:[#allocation2 + $0x487] sm:$0xff]  ;;  %v9152_v18 = vld [vmem:[#allocation2 + $0x357] sm:$0xff] }
 0x447   : > { %22106 = vmatmul.mubr.msk.f32.gmra.mrb[210].mxu0 %vm325_vm0, %v9135_v23 }
 0x448   : > { %22664 = vmatmul.mubr.msk.f32.gmra.mrb[210].mxu1 %vm325_vm0, %v13441_v54  ;;  %22108 = vmatprep.mubr.msk.f32.mxu0 %vm325_vm0, %v9136_v57  ;;  %v13458_v54 = vld [vmem:[#allocation2 + $0x497] sm:$0xff] }
 0x449   : > { %22666 = vmatprep.mubr.msk.f32.mxu1 %vm325_vm0, %v13442_v44 }
 0x44a   : > { %v21387_v53 = vpop.f32.mrb[144].mxu0 }
 0x44b   : > { %v25871_v25 = vadd.f32 %v21387_v53, %v25734_v14  ;;  %v21945_v27 = vpop.f32.mrb[144].mxu1  ;;  %v3935_v16 = vpop.f32.mrb[145].mxu0  ;;  %22109 = vmatmul.mubr.msk.f32.gmra.mrb[178].mxu0 %vm325_vm0, %v9137_v13  ;;  %v9141_v14 = vld [vmem:[#allocation2 + $0x2ff] sm:$0xff] }
 0x44c   : > { %v25875_v21 = vadd.f32 %v21945_v27, %v25738_v49  ;;  %22667 = vmatmul.mubr.msk.f32.gmra.mrb[178].mxu1 %vm325_vm0, %v13443_v51  ;;  %22111 = vmatprep.mubr.msk.f32.mxu0 %vm325_vm0, %v9138_v58  ;;  %v8249_v7 = vpop.f32.mrb[145].mxu1  ;;  %v13447_v49 = vld [vmem:[#allocation2 + $0x43f] sm:$0xff] }
 0x44d   : > { %22669 = vmatprep.mubr.msk.f32.mxu1 %vm325_vm0, %v13444_v38  ;;  %v25924_v58 = vld [vmem:[%s28310_s5] ss:$0 sm:$0xff] }
 0x44e   : > { %v9153_v53 = vld [vmem:[#allocation2 + $0x35f] sm:$0xff] }
 0x44f   : > { %22112 = vmatmul.mubr.msk.f32.gmra.mrb[180].mxu0 %vm325_vm0, %v9139_v9  ;;  %v13459_v27 = vld [vmem:[#allocation2 + $0x49f] sm:$0xff]  ;;  %v13460_v9 = vld [vmem:[#allocation2 + $0x4a7] sm:$0xff] }
 0x450   : > { %22670 = vmatmul.mubr.msk.f32.gmra.mrb[180].mxu1 %vm325_vm0, %v13445_v15  ;;  %22114 = vmatprep.mubr.msk.f32.mxu0 %vm325_vm0, %v9140_v45 }
 0x451   : > { %22672 = vmatprep.mubr.msk.f32.mxu1 %vm325_vm0, %v13446_v59 }
 0x452   : > { %v21393_v3 = vpop.f32.mrb[146].mxu0 }
 0x453   : > { %v21951_v32 = vpop.f32.mrb[146].mxu1  ;;  %v3954_v4 = vpop.f32.mrb[147].mxu0  ;;  %22115 = vmatmul.mubr.msk.f32.gmra.mrb[212].mxu0 %vm325_vm0, %v9141_v14 }
 0x454   : > { %v25886_v6 = vadd.f32 %v3954_v4, %v25749_v1  ;;  %v8268_v55 = vpop.f32.mrb[147].mxu1  ;;  %22673 = vmatmul.mubr.msk.f32.gmra.mrb[212].mxu1 %vm325_vm0, %v13447_v49  ;;  %22117 = vmatprep.mubr.msk.f32.mxu0 %vm325_vm0, %v9142_v40  ;;  %v9145_v1 = vld [vmem:[#allocation2 + $0x31f] sm:$0xff]  ;;  %v9155_v49 = vld [vmem:[#allocation2 + $0x36f] sm:$0xff]  ;;  %v9156_v4 = vld [vmem:[#allocation2 + $0x377] sm:$0xff] }
 0x455   : > { %v25891_v46 = vadd.f32 %v8268_v55, %v25754_v5  ;;  %22675 = vmatprep.mubr.msk.f32.mxu1 %vm325_vm0, %v13448_v50  ;;  %v9147_v5 = vld [vmem:[#allocation2 + $0x32f] sm:$0xff] }
 0x456   : > { %v13461_v32 = vld [vmem:[#allocation2 + $0x4af] sm:$0xff] }
 0x457   : > { %22118 = vmatmul.mubr.msk.f32.gmra.mrb[184].mxu0 %vm325_vm0, %v9143_v52 }
 0x458   : > { %22676 = vmatmul.mubr.msk.f32.gmra.mrb[184].mxu1 %vm325_vm0, %v13449_v36  ;;  %22120 = vmatprep.mubr.msk.f32.mxu0 %vm325_vm0, %v9144_v31 }
 0x459   : > { %22678 = vmatprep.mubr.msk.f32.mxu1 %vm325_vm0, %v13450_v47 }
 0x45b   : > { %22121 = vmatmul.mubr.msk.f32.gmra.mrb[214].mxu0 %vm325_vm0, %v9145_v1  ;;  %v13462_v1 = vld [vmem:[#allocation2 + $0x4b7] sm:$0xff] }
 0x45c   : > { %22679 = vmatmul.mubr.msk.f32.gmra.mrb[214].mxu1 %vm325_vm0, %v13451_v41  ;;  %22123 = vmatprep.mubr.msk.f32.mxu0 %vm325_vm0, %v9146_v37 }
 0x45d   : > { %22681 = vmatprep.mubr.msk.f32.mxu1 %vm325_vm0, %v13452_v60 }
 0x45e   : > { %v21402_v34 = vpop.f32.mrb[148].mxu0 }
 0x45f   : > { %v25903_v61 = vadd.f32 %v21402_v34, %v25766_v28  ;;  %v21960_v24 = vpop.f32.mrb[148].mxu1  ;;  %v3983_v26 = vpop.f32.mrb[149].mxu0  ;;  %22124 = vmatmul.mubr.msk.f32.gmra.mrb[188].mxu0 %vm325_vm0, %v9147_v5  ;;  %v9151_v28 = vld [vmem:[#allocation2 + $0x34f] sm:$0xff] }
 0x460   : > { %v25907_v19 = vadd.f32 %v21960_v24, %v25770_v22  ;;  %22682 = vmatmul.mubr.msk.f32.gmra.mrb[188].mxu1 %vm325_vm0, %v13453_v63  ;;  %22126 = vmatprep.mubr.msk.f32.mxu0 %vm325_vm0, %v9148_v20  ;;  %v8297_v17 = vpop.f32.mrb[149].mxu1  ;;  %v13457_v22 = vld [vmem:[#allocation2 + $0x48f] sm:$0xff] }
 0x461   : > { %22684 = vmatprep.mubr.msk.f32.mxu1 %vm325_vm0, %v13454_v30  ;;  %v9157_v17 = vld [vmem:[#allocation2 + $0x37f] sm:$0xff] }
 0x463   : > { %22127 = vmatmul.mubr.msk.f32.gmra.mrb[190].mxu0 %vm325_vm0, %v9149_v8 }
 0x464   : > { %22685 = vmatmul.mubr.msk.f32.gmra.mrb[190].mxu1 %vm325_vm0, %v13455_v43  ;;  %22129 = vmatprep.mubr.msk.f32.mxu0 %vm325_vm0, %v9150_v29 }
 0x465   : > { %22687 = vmatprep.mubr.msk.f32.mxu1 %vm325_vm0, %v13456_v2 }
 0x466   : > { %v21408_v23 = vpop.f32.mrb[150].mxu0 }
 0x467   : > { %v21966_v57 = vpop.f32.mrb[150].mxu1  ;;  %v4002_v44 = vpop.f32.mrb[151].mxu0  ;;  %22130 = vmatmul.mubr.msk.f32.gmra.mrb[216].mxu0 %vm325_vm0, %v9151_v28 }
 0x468   : > { %v25918_v13 = vadd.f32 %v4002_v44, %v25781_v11  ;;  %v8316_v51 = vpop.f32.mrb[151].mxu1  ;;  %22688 = vmatmul.mubr.msk.f32.gmra.mrb[216].mxu1 %vm325_vm0, %v13457_v22  ;;  %22132 = vmatprep.mubr.msk.f32.mxu0 %vm325_vm0, %v9152_v18  ;;  %v9154_v11 = vld [vmem:[#allocation2 + $0x367] sm:$0xff]  ;;  %v13463_v22 = vld [vmem:[#allocation2 + $0x4bf] sm:$0xff] }
 0x469   : > { %v25928_v38 = vadd.f32 %v8316_v51, %v25786_v0  ;;  %22690 = vmatprep.mubr.msk.f32.mxu1 %vm325_vm0, %v13458_v54  ;;  %v9158_v18 = vld [vmem:[#allocation2 + $0x387] sm:$0xff] }
 0x46a   : > { %28385 = vst [vmem:[#allocation9_spill] sm:$0xff] %v25918_v13  ;;  %v21413_v16 = vpop.f32.mrb[0].mxu0  ;;  %v13464_v51 = vld [vmem:[#allocation2 + $0x4c7] sm:$0xff] }
 0x46b   : > { %28386 = vst [vmem:[#allocation10_spill] sm:$0xff] %v25928_v38  ;;  %v4500_v7 = vadd.f32 %v21413_v16, %v25924_v58  ;;  %v21971_v15 = vpop.f32.mrb[0].mxu1  ;;  %v4270_v45 = vpop.f32.mrb[1].mxu0  ;;  %22133 = vmatmul.mubr.msk.f32.gmra.mrb[194].mxu0 %vm325_vm0, %v9153_v53 }
 0x46c   : > { %v8807_v59 = vadd.f32 %v21971_v15, %v25924_v58  ;;  %v4499_v0 = vadd.f32 %v25924_v58, %v4270_v45  ;;  %v8583_v14 = vpop.f32.mrb[1].mxu1  ;;  %22691 = vmatmul.mubr.msk.f32.gmra.mrb[194].mxu1 %vm325_vm0, %v13459_v27  ;;  %22135 = vmatprep.mubr.msk.f32.mxu0 %vm325_vm0, %v9154_v11 }
 0x46d   : > { %4533 = vst.msk [vmem:[%s24242_s1 + $0x8] sm:$0xff] %vm4531_vm3, %v4500_v7  ;;  %v4537_v40 = vsel %vm4531_vm3, %v4500_v7, 0.0  ;;  %v4551_v3 = vmul.f32 %v4500_v7, %v4500_v7  ;;  %v8806_v50 = vadd.f32 %v25924_v58, %v8583_v14  ;;  %22693 = vmatprep.mubr.msk.f32.mxu1 %vm325_vm0, %v13460_v9 }
 0x46e   : > { %8839 = vst.msk [vmem:[%s24242_s1 + $0x108] sm:$0xff] %vm4531_vm3, %v8807_v59  ;;  %v8843_v55 = vsel %vm4531_vm3, %v8807_v59, 0.0  ;;  %v8857_v52 = vmul.f32 %v8807_v59, %v8807_v59  ;;  %4532 = vst.msk [vmem:[%s24242_s1] sm:$0xff] %vm4531_vm3, %v4499_v0  ;;  %v4536_v36 = vsel %vm4531_vm3, %v4499_v0, 0.0  ;;  %v4550_v31 = vmul.f32 %v4499_v0, %v4499_v0  ;;  %v21416_v47 = vpop.f32.mrb[2].mxu0 }
 0x46f   : > { %v4555_v41 = vsel %vm4531_vm3, %v4551_v3, 0.0  ;;  %v4538_v37 = vadd.f32 %v4537_v40, %v4536_v36  ;;  %8838 = vst.msk [vmem:[%s24242_s1 + $0x100] sm:$0xff] %vm4531_vm3, %v8806_v50  ;;  %v8842_v60 = vsel %vm4531_vm3, %v8806_v50, 0.0  ;;  %v8856_v5 = vmul.f32 %v8806_v50, %v8806_v50  ;;  %v21974_v63 = vpop.f32.mrb[2].mxu1  ;;  %v4280_v20 = vpop.f32.mrb[3].mxu0  ;;  %22136 = vmatmul.mubr.msk.f32.gmra.mrb[218].mxu0 %vm325_vm0, %v9155_v49  ;;  %v9159_v49 = vld [vmem:[#allocation2 + $0x38f] sm:$0xff] }
 0x470   : > { %v8861_v34 = vsel %vm4531_vm3, %v8857_v52, 0.0  ;;  %v4554_v30 = vsel %vm4531_vm3, %v4550_v31, 0.0  ;;  %v8844_v24 = vadd.f32 %v8843_v55, %v8842_v60  ;;  %v4502_v26 = vadd.f32 %v21416_v47, %v25924_v58  ;;  %v8593_v8 = vpop.f32.mrb[3].mxu1  ;;  %22694 = vmatmul.mubr.msk.f32.gmra.mrb[218].mxu1 %vm325_vm0, %v13461_v32  ;;  %22138 = vmatprep.mubr.msk.f32.mxu0 %vm325_vm0, %v9156_v4  ;;  %v13465_v4 = vld [vmem:[#allocation2 + $0x4cf] sm:$0xff]  ;;  %v9160_v55 = vld [vmem:[#allocation2 + $0x397] sm:$0xff] }
 0x471   : > { %v4556_v43 = vadd.f32 %v4555_v41, %v4554_v30  ;;  %v8860_v29 = vsel %vm4531_vm3, %v8856_v5, 0.0  ;;  %v8809_v2 = vadd.f32 %v21974_v63, %v25924_v58  ;;  %v4501_v28 = vadd.f32 %v25924_v58, %v4280_v20  ;;  %22696 = vmatprep.mubr.msk.f32.mxu1 %vm325_vm0, %v13462_v1  ;;  %v13466_v41 = vld [vmem:[#allocation2 + $0x4d7] sm:$0xff] }
 0x472   : > { %v8862_v23 = vadd.f32 %v8861_v34, %v8860_v29  ;;  %4535 = vst.msk [vmem:[%s24242_s1 + $0x18] sm:$0xff] %vm4531_vm3, %v4502_v26  ;;  %v4553_v54 = vmul.f32 %v4502_v26, %v4502_v26  ;;  %v8808_v57 = vadd.f32 %v25924_v58, %v8593_v8  ;;  %v21419_v44 = vpop.f32.mrb[152].mxu0  ;;  %v4541_v53 = vsel %vm4531_vm3, %v4502_v26, 0.0  ;;  %v9161_v8 = vld [vmem:[#allocation2 + $0x39f] sm:$0xff]  ;;  %v9162_v29 = vld [vmem:[#allocation2 + $0x3a7] sm:$0xff] }
 0x473   : > { %8841 = vst.msk [vmem:[%s24242_s1 + $0x118] sm:$0xff] %vm4531_vm3, %v8809_v2  ;;  %v8847_v27 = vsel %vm4531_vm3, %v8809_v2, 0.0  ;;  %4534 = vst.msk [vmem:[%s24242_s1 + $0x10] sm:$0xff] %vm4531_vm3, %v4501_v28  ;;  %v4539_v11 = vsel %vm4531_vm3, %v4501_v28, 0.0  ;;  %v4552_v16 = vmul.f32 %v4501_v28, %v4501_v28  ;;  %v21977_v9 = vpop.f32.mrb[152].mxu1  ;;  %v4290_v7 = vpop.f32.mrb[153].mxu0  ;;  %22139 = vmatmul.mubr.msk.f32.gmra.mrb[198].mxu0 %vm325_vm0, %v9157_v17  ;;  %v8859_v15 = vmul.f32 %v8809_v2, %v8809_v2 }
 0x474   : > { %v4540_v45 = vadd.f32 %v4539_v11, %v4538_v37  ;;  %8840 = vst.msk [vmem:[%s24242_s1 + $0x110] sm:$0xff] %vm4531_vm3, %v8808_v57  ;;  %v8845_v59 = vsel %vm4531_vm3, %v8808_v57, 0.0  ;;  %v8858_v0 = vmul.f32 %v8808_v57, %v8808_v57  ;;  %22697 = vmatmul.mubr.msk.f32.gmra.mrb[198].mxu1 %vm325_vm0, %v13463_v22  ;;  %v8603_v14 = vpop.f32.mrb[153].mxu1  ;;  %22141 = vmatprep.mubr.msk.f32.mxu0 %vm325_vm0, %v9158_v18  ;;  %v4559_v40 = vsel %vm4531_vm3, %v4553_v54, 0.0  ;;  %v13468_v28 = vld [vmem:[#allocation2 + $0x4e7] sm:$0xff]  ;;  %v9164_v11 = vld [vmem:[#allocation2 + $0x3b7] sm:$0xff] }
 0x475   : > { %v4557_v3 = vsel %vm4531_vm3, %v4552_v16, 0.0  ;;  %v8846_v50 = vadd.f32 %v8845_v59, %v8844_v24  ;;  %v4465_v32 = vadd.f32 %v21419_v44, %v25798_v42  ;;  %22699 = vmatprep.mubr.msk.f32.mxu1 %vm325_vm0, %v13464_v51  ;;  %v8778_v47 = vadd.f32 %v21977_v9, %v25802_v56  ;;  %v13470_v59 = vld [vmem:[#allocation2 + $0x4f7] sm:$0xff] }
 0x476   : > { %v4542_v52 = vadd.f32 %v4541_v53, %v4540_v45  ;;  %v4558_v36 = vadd.f32 %v4557_v3, %v4556_v43  ;;  %v8863_v31 = vsel %vm4531_vm3, %v8858_v0, 0.0  ;;  %v21422_v1 = vpop.f32.mrb[6].mxu0  ;;  %v8865_v34 = vsel %vm4531_vm3, %v8859_v15, 0.0  ;;  %v13467_v43 = vld [vmem:[#allocation2 + $0x4df] sm:$0xff]  ;;  %v9163_v53 = vld [vmem:[#allocation2 + $0x3af] sm:$0xff] }
 0x477   : > { %v25984_v37 = vadd.f32 %v8847_v27, %v8846_v50  ;;  %v8864_v60 = vadd.f32 %v8863_v31, %v8862_v23  ;;  %v4503_v5 = vadd.f32 %v25924_v58, %v4465_v32  ;;  %v4505_v42 = vadd.f32 %v21422_v1, %v25924_v58  ;;  %v21980_v63 = vpop.f32.mrb[6].mxu1  ;;  %v4299_v20 = vpop.f32.mrb[7].mxu0  ;;  %22142 = vmatmul.mubr.msk.f32.gmra.mrb[200].mxu0 %vm325_vm0, %v9159_v49  ;;  %v13469_v27 = vld [vmem:[#allocation2 + $0x4ef] sm:$0xff] }
 0x478   : > { %v4560_v56 = vadd.f32 %v4559_v40, %v4558_v36  ;;  %v8810_v30 = vadd.f32 %v25924_v58, %v8778_v47  ;;  %v25992_v24 = vadd.f32 %v21980_v63, %v25924_v58  ;;  %v8612_v26 = vpop.f32.mrb[7].mxu1  ;;  %22700 = vmatmul.mubr.msk.f32.gmra.mrb[200].mxu1 %vm325_vm0, %v13465_v4  ;;  %22144 = vmatprep.mubr.msk.f32.mxu0 %vm325_vm0, %v9160_v55  ;;  %v4543_v22 = vrot.slane %v4542_v52, 4 }
 0x479   : > { %v25996_v17 = vadd.f32 %v8865_v34, %v8864_v60  ;;  %4568 = vst.msk [vmem:[%s24242_s1 + $0x20] sm:$0xff] %vm4531_vm3, %v4503_v5  ;;  %4570 = vst.msk [vmem:[%s24242_s1 + $0x30] sm:$0xff] %vm4531_vm3, %v4505_v42  ;;  %22702 = vmatprep.mubr.msk.f32.mxu1 %vm325_vm0, %v13466_v41  ;;  %v4586_v57 = vmul.f32 %v4503_v5, %v4503_v5  ;;  %v4504_v44 = vadd.f32 %v25924_v58, %v4299_v20  ;;  %v13471_v60 = vld [vmem:[#allocation2 + $0x4ff] sm:$0xff] }
 0x47a   : > { %8874 = vst.msk [vmem:[%s24242_s1 + $0x120] sm:$0xff] %vm4531_vm3, %v8810_v30  ;;  %8876 = vst.msk [vmem:[%s24242_s1 + $0x130] sm:$0xff] %vm4531_vm3, %v25992_v24  ;;  %v21425_v2 = vpop.f32.mrb[154].mxu0  ;;  %v4561_v18 = vrot.slane %v4560_v56, 4  ;;  %v4588_v16 = vmul.f32 %v4505_v42, %v4505_v42  ;;  %v4572_v9 = vsel %vm4531_vm3, %v4503_v5, 0.0  ;;  %v4544_v0 = vadd.f32 %v4543_v22, %v4542_v52  ;;  %v9165_v52 = vld [vmem:[#allocation2 + $0x3bf] sm:$0xff] }
 0x47b   : > { %v21983_v23 = vpop.f32.mrb[154].mxu1  ;;  %v4309_v54 = vpop.f32.mrb[155].mxu0  ;;  %22145 = vmatmul.mubr.msk.f32.gmra.mrb[220].mxu0 %vm325_vm0, %v9161_v8  ;;  %4569 = vst.msk [vmem:[%s24242_s1 + $0x28] sm:$0xff] %vm4531_vm3, %v4504_v44  ;;  %v4573_v7 = vsel %vm4531_vm3, %v4504_v44, 0.0  ;;  %v4587_v15 = vmul.f32 %v4504_v44, %v4504_v44  ;;  %v4575_v49 = vsel %vm4531_vm3, %v4505_v42, 0.0  ;;  %v8894_v32 = vmul.f32 %v25992_v24, %v25992_v24  ;;  %v9962_v5 = vld [vmem:[#allocation2 + $0x289] sm:$0xff] }
 0x47c   : > { %v8622_v51 = vpop.f32.mrb[155].mxu1  ;;  %22703 = vmatmul.mubr.msk.f32.gmra.mrb[220].mxu1 %vm325_vm0, %v13467_v43  ;;  %22147 = vmatprep.mubr.msk.f32.mxu0 %vm325_vm0, %v9162_v29  ;;  %v4562_v14 = vadd.f32 %v4561_v18, %v4560_v56  ;;  %v4574_v40 = vadd.f32 %v4573_v7, %v4572_v9  ;;  %v4590_v4 = vsel %vm4531_vm3, %v4586_v57, 0.0  ;;  %v8811_v36 = vadd.f32 %v25924_v58, %v8612_v26  ;;  %v14268_v56 = vld [vmem:[#allocation2 + $0x3c9] sm:$0xff]  ;;  %v9963_v44 = vld [vmem:[#allocation2 + $0x291] sm:$0xff] }
 0x47d   : > { %22705 = vmatprep.mubr.msk.f32.mxu1 %vm325_vm0, %v13468_v28  ;;  %v4591_v55 = vsel %vm4531_vm3, %v4587_v15, 0.0  ;;  %v8892_v47 = vmul.f32 %v8810_v30, %v8810_v30  ;;  %v4593_v42 = vsel %vm4531_vm3, %v4588_v16, 0.0  ;;  %v8878_v63 = vsel %vm4531_vm3, %v8810_v30, 0.0  ;;  %v14269_v16 = vld [vmem:[#allocation2 + $0x3d1] sm:$0xff] }
 0x47e   : > { %v21428_v45 = vpop.f32.mrb[10].mxu0  ;;  %v4576_v1 = vadd.f32 %v4575_v49, %v4574_v40  ;;  %v4592_v41 = vadd.f32 %v4591_v55, %v4590_v4  ;;  %8875 = vst.msk [vmem:[%s24242_s1 + $0x128] sm:$0xff] %vm4531_vm3, %v8811_v36  ;;  %v8879_v20 = vsel %vm4531_vm3, %v8811_v36, 0.0  ;;  %v4545_v26 = vrot.slane %v4544_v0, 2 }
 0x47f   : > { %v21986_v3 = vpop.f32.mrb[10].mxu1  ;;  %v4318_v50 = vpop.f32.mrb[11].mxu0  ;;  %22148 = vmatmul.mubr.msk.f32.gmra.mrb[204].mxu0 %vm325_vm0, %v9163_v53  ;;  %v4563_v8 = vrot.slane %v4562_v14, 2  ;;  %v8880_v29 = vadd.f32 %v8879_v20, %v8878_v63  ;;  %v8881_v22 = vsel %vm4531_vm3, %v25992_v24, 0.0  ;;  %v8899_v30 = vsel %vm4531_vm3, %v8894_v32, 0.0 }
 0x480   : > { %v26024_v31 = vpop.f32.mrb[11].mxu1  ;;  %22706 = vmatmul.mubr.msk.f32.gmra.mrb[204].mxu1 %vm325_vm0, %v13469_v27  ;;  %22150 = vmatprep.mubr.msk.f32.mxu0 %vm325_vm0, %v9164_v11  ;;  %v4594_v43 = vadd.f32 %v4593_v42, %v4592_v41  ;;  %v8893_v18 = vmul.f32 %v8811_v36, %v8811_v36  ;;  %v4468_v23 = vadd.f32 %v4309_v54, %v25813_v12  ;;  %v8896_v27 = vsel %vm4531_vm3, %v8892_v47, 0.0  ;;  %v9965_v36 = vld [vmem:[#allocation2 + $0x2a1] sm:$0xff]  ;;  %v9966_v42 = vld [vmem:[#allocation2 + $0x2a9] sm:$0xff] }
 0x481   : > { %22708 = vmatprep.mubr.msk.f32.mxu1 %vm325_vm0, %v13470_v59  ;;  %v8882_v53 = vadd.f32 %v8881_v22, %v8880_v29  ;;  %v8781_v11 = vadd.f32 %v8622_v51, %v25818_v39  ;;  %v4508_v24 = vadd.f32 %v21428_v45, %v25924_v58  ;;  %v8815_v9 = vadd.f32 %v21986_v3, %v25924_v58  ;;  %v9964_v59 = vld [vmem:[#allocation2 + $0x299] sm:$0xff] }
 0x482   : > { %v26034_v34 = vpop.f32.mrb[12].mxu0  ;;  %v8897_v12 = vsel %vm4531_vm3, %v8893_v18, 0.0  ;;  %v4506_v54 = vadd.f32 %v25924_v58, %v4468_v23  ;;  %v4507_v7 = vadd.f32 %v25924_v58, %v4318_v50  ;;  %v14270_v39 = vld [vmem:[#allocation2 + $0x3d9] sm:$0xff]  ;;  %v26059_v51 = vadd.f32 %v4545_v26, %v4544_v0 }
 0x483   : > { %v26036_v2 = vpop.f32.mrb[12].mxu1  ;;  %v26038_v28 = vpop.f32.mrb[13].mxu0  ;;  %22151 = vmatmul.mubr.msk.f32.gmra.mrb[222].mxu0 %vm325_vm0, %v9165_v52  ;;  %v26061_v45 = vadd.f32 %v4563_v8, %v4562_v14  ;;  %v8898_v49 = vadd.f32 %v8897_v12, %v8896_v27  ;;  %v8813_v40 = vadd.f32 %v25924_v58, %v8781_v11  ;;  %4605 = vst.msk [vmem:[%s24242_s1 + $0x48] sm:$0xff] %vm4531_vm3, %v4508_v24  ;;  %v4609_v0 = vsel %vm4531_vm3, %v4508_v24, 0.0 }
 0x484   : > { %v26045_v57 = vpop.f32.mrb[13].mxu1  ;;  %22709 = vmatmul.mubr.msk.f32.gmra.mrb[222].mxu1 %vm325_vm0, %v13471_v60  ;;  %22155 = vmatprep.mubr.msk.f32.mxu0 %vm325_vm0, %v9962_v5  ;;  %4571 = vst.msk [vmem:[%s24242_s1 + $0x38] sm:$0xff] %vm4531_vm3, %v4506_v54  ;;  %v4577_v50 = vsel %vm4531_vm3, %v4506_v54, 0.0  ;;  %v4589_v4 = vmul.f32 %v4506_v54, %v4506_v54  ;;  %v4623_v14 = vmul.f32 %v4508_v24, %v4508_v24  ;;  %8911 = vst.msk [vmem:[%s24242_s1 + $0x148] sm:$0xff] %vm4531_vm3, %v8815_v9  ;;  %v14271_v5 = vld [vmem:[#allocation2 + $0x3e1] sm:$0xff] }
 0x485   : > { %22713 = vmatprep.mubr.msk.f32.mxu1 %vm325_vm0, %v14268_v56  ;;  %4604 = vst.msk [vmem:[%s24242_s1 + $0x40] sm:$0xff] %vm4531_vm3, %v4507_v7  ;;  %v8900_v52 = vadd.f32 %v8899_v30, %v8898_v49  ;;  %v4578_v47 = vadd.f32 %v4577_v50, %v4576_v1  ;;  %8877 = vst.msk [vmem:[%s24242_s1 + $0x138] sm:$0xff] %vm4531_vm3, %v8813_v40  ;;  %v8883_v41 = vsel %vm4531_vm3, %v8813_v40, 0.0  ;;  %v8915_v56 = vsel %vm4531_vm3, %v8815_v9, 0.0  ;;  %v14272_v1 = vld [vmem:[#allocation2 + $0x3e9] sm:$0xff]  ;;  %v14274_v50 = vld [vmem:[#allocation2 + $0x3f9] sm:$0xff] }
 0x486   : > { %v26057_v15 = vpop.f32.mrb[156].mxu0  ;;  %v8895_v60 = vmul.f32 %v8813_v40, %v8813_v40  ;;  %v4595_v63 = vsel %vm4531_vm3, %v4589_v4, 0.0  ;;  %v26085_v20 = vadd.f32 %v8883_v41, %v8882_v53  ;;  %v8929_v26 = vmul.f32 %v8815_v9, %v8815_v9 }
 0x487   : > { %v26066_v32 = vpop.f32.mrb[156].mxu1  ;;  %v4338_v3 = vpop.f32.mrb[157].mxu0  ;;  %22156 = vmatmul.mubr.msk.f32.vlgmr.msra.gmra.mrb[168].mxu0 %vm325_vm0, %v9963_v44  ;;  %v4579_v29 = vrot.slane %v4578_v47, 4  ;;  %v4596_v22 = vadd.f32 %v4595_v63, %v4594_v43  ;;  %v4608_v18 = vsel %vm4531_vm3, %v4507_v7, 0.0  ;;  %v4627_v27 = vsel %vm4531_vm3, %v4623_v14, 0.0  ;;  %v9967_v43 = vld [vmem:[#allocation2 + $0x2b1] sm:$0xff] }
 0x488   : > { %22714 = vmatmul.mubr.msk.f32.vlgmr.msra.gmra.mrb[168].mxu1 %vm325_vm0, %v14269_v16  ;;  %22216 = vmatpush3.msra.mxu0 %v25836_v35  ;;  %v8651_v55 = vpop.f32.mrb[157].mxu1  ;;  %v8901_v30 = vsel %vm4531_vm3, %v8895_v60, 0.0  ;;  %v26101_v11 = vadd.f32 %v4609_v0, %v4608_v18  ;;  %v4622_v24 = vmul.f32 %v4507_v7, %v4507_v7  ;;  %v8814_v54 = vadd.f32 %v25924_v58, %v26024_v31  ;;  %v14273_v7 = vld [vmem:[#allocation2 + $0x3f1] sm:$0xff]  ;;  %v9969_v60 = vld [vmem:[#allocation2 + $0x2c1] sm:$0xff] }
 0x489   : > { %22158 = vmatprep.mubr.msk.f32.mxu0 %vm325_vm0, %v9964_v59  ;;  %22716 = vmatprep.mubr.msk.f32.mxu1 %vm325_vm0, %v14270_v39  ;;  %v26098_v53 = vadd.f32 %v8901_v30, %v8900_v52  ;;  %v4580_v16 = vadd.f32 %v4579_v29, %v4578_v47  ;;  %v4597_v12 = vrot.slane %v4596_v22, 4  ;;  %v4510_v9 = vadd.f32 %v26034_v34, %v25924_v58  ;;  %v9968_v59 = vld [vmem:[#allocation2 + $0x2b9] sm:$0xff]  ;;  %v14275_v63 = vld [vmem:[#allocation2 + $0x401] sm:$0xff]  ;;  %v14276_v29 = vld [vmem:[#allocation2 + $0x409] sm:$0xff] }
 0x48a   : > { %v26088_v8 = vpop.f32.mrb[16].mxu0  ;;  %22774 = vmatpush3.msra.mxu1 %v25836_v35  ;;  %v4547_v39 = vrot.slane %v26059_v51, 1  ;;  %v4626_v49 = vsel %vm4531_vm3, %v4622_v24, 0.0  ;;  %v8817_v40 = vadd.f32 %v26036_v2, %v25924_v58  ;;  %8910 = vst.msk [vmem:[%s24242_s1 + $0x140] sm:$0xff] %vm4531_vm3, %v8814_v54  ;;  %v8914_v34 = vsel %vm4531_vm3, %v8814_v54, 0.0 }
 0x48b   : > { %v26093_v23 = vpop.f32.mrb[16].mxu1  ;;  %v26095_v44 = vpop.f32.mrb[17].mxu0  ;;  %22159 = vmatmul.mubr.msk.f32.gmra.mrb[170].mxu0 %vm325_vm0, %v9965_v36  ;;  %v4581_v4 = vrot.slane %v4580_v16, 2  ;;  %v4598_v0 = vadd.f32 %v4597_v12, %v4596_v22  ;;  %v26116_v31 = vadd.f32 %v4627_v27, %v4626_v49  ;;  %4607 = vst.msk [vmem:[%s24242_s1 + $0x58] sm:$0xff] %vm4531_vm3, %v4510_v9  ;;  %v4565_v2 = vrot.slane %v26061_v45, 1 }
 0x48c   : > { %v26103_v35 = vpop.f32.mrb[17].mxu1  ;;  %22717 = vmatmul.mubr.msk.f32.gmra.mrb[170].mxu1 %vm325_vm0, %v14271_v5  ;;  %22161 = vmatprep.mubr.msk.f32.mxu0 %vm325_vm0, %v9966_v42  ;;  %v8933_v36 = vsel %vm4531_vm3, %v8929_v26, 0.0  ;;  %v26128_v52 = vadd.f32 %v8915_v56, %v8914_v34  ;;  %v8928_v47 = vmul.f32 %v8814_v54, %v8814_v54  ;;  %8913 = vst.msk [vmem:[%s24242_s1 + $0x158] sm:$0xff] %vm4531_vm3, %v8817_v40 }
 0x48d   : > { %22719 = vmatprep.mubr.msk.f32.mxu1 %vm325_vm0, %v14272_v1  ;;  %v4582_v5 = vadd.f32 %v4581_v4, %v4580_v16  ;;  %v4599_v42 = vrot.slane %v4598_v0, 2  ;;  %v9970_v1 = vld [vmem:[#allocation2 + $0x2c9] sm:$0xff]  ;;  %v4548_v22 = vadd.f32 %v4547_v39, %v26059_v51  ;;  %v4566_v16 = vadd.f32 %v4565_v2, %v26061_v45  ;;  %v9971_v51 = vld [vmem:[#allocation2 + $0x2d1] sm:$0xff] }
 0x48e   : > { %v21440_v3 = vpop.f32.mrb[158].mxu0  ;;  %v8932_v26 = vsel %vm4531_vm3, %v8928_v47, 0.0  ;;  %v4625_v12 = vmul.f32 %v4510_v9, %v4510_v9  ;;  %v4509_v54 = vadd.f32 %v25924_v58, %v26038_v28  ;;  %v8816_v49 = vadd.f32 %v25924_v58, %v26045_v57  ;;  %v9972_v28 = vld [vmem:[#allocation2 + $0x2d9] sm:$0xff] }
 0x48f   : > { %v21998_v14 = vpop.f32.mrb[158].mxu1  ;;  %v26123_v55 = vpop.f32.mrb[159].mxu0  ;;  %22162 = vmatmul.mubr.msk.f32.gmra.mrb[224].mxu0 %vm325_vm0, %v9967_v43  ;;  %v4583_v30 = vrot.slane %v4582_v5, 1  ;;  %v4600_v18 = vadd.f32 %v4599_v42, %v4598_v0  ;;  %v8934_v27 = vadd.f32 %v8933_v36, %v8932_v26  ;;  %v4473_v45 = vadd.f32 %v26057_v15, %v25830_v62  ;;  %v14277_v3 = vld [vmem:[#allocation2 + $0x411] sm:$0xff]  ;;  %v14278_v15 = vld [vmem:[#allocation2 + $0x419] sm:$0xff] }
 0x490   : > { %v26132_v41 = vpop.f32.mrb[159].mxu1  ;;  %22720 = vmatmul.mubr.msk.f32.gmra.mrb[224].mxu1 %vm325_vm0, %v14273_v7  ;;  %22164 = vmatprep.mubr.msk.f32.mxu0 %vm325_vm0, %v9968_v59  ;;  %v4613_v4 = vsel %vm4531_vm3, %v4510_v9, 0.0  ;;  %v8919_v0 = vsel %vm4531_vm3, %v8817_v40, 0.0  ;;  %v8931_v34 = vmul.f32 %v8817_v40, %v8817_v40  ;;  %4606 = vst.msk [vmem:[%s24242_s1 + $0x50] sm:$0xff] %vm4531_vm3, %v4509_v54  ;;  %v4611_v57 = vsel %vm4531_vm3, %v4509_v54, 0.0  ;;  %8912 = vst.msk [vmem:[%s24242_s1 + $0x150] sm:$0xff] %vm4531_vm3, %v8816_v49 }
 0x491   : > { %22722 = vmatprep.mubr.msk.f32.mxu1 %vm325_vm0, %v14274_v50  ;;  %v4584_v59 = vadd.f32 %v4583_v30, %v4582_v5  ;;  %v4601_v39 = vrot.slane %v4600_v18, 1  ;;  %v26161_v50 = vld [vmem:[%s28309_s4 + $0x20] sm:$0xff]  ;;  %v4612_v36 = vadd.f32 %v4611_v57, %v26101_v11  ;;  %v4624_v9 = vmul.f32 %v4509_v54, %v4509_v54 }
 0x492   : > { %v26138_v56 = vpop.f32.mrb[20].mxu0  ;;  %22277 = vmatprep.subr.mxu0 %v26161_v50  ;;  %22835 = vmatprep.subr.mxu1 %v26161_v50  ;;  %v8917_v5 = vsel %vm4531_vm3, %v8816_v49, 0.0  ;;  %v8930_v42 = vmul.f32 %v8816_v49, %v8816_v49  ;;  %v9973_v11 = vld [vmem:[#allocation2 + $0x2e1] sm:$0xff]  ;;  %v14280_v49 = vld [vmem:[#allocation2 + $0x429] sm:$0xff] }
 0x493   : > { %v26141_v24 = vpop.f32.mrb[20].mxu1  ;;  %v26143_v43 = vpop.f32.mrb[21].mxu0  ;;  %22165 = vmatmul.mubr.msk.f32.gmra.mrb[174].mxu0 %vm325_vm0, %v9969_v60  ;;  %v26172_v14 = vadd.f32 %v4584_v59, %v4548_v22  ;;  %v4602_v2 = vadd.f32 %v4601_v39, %v4600_v18  ;;  %v4631_v60 = vsel %vm4531_vm3, %v4625_v12, 0.0  ;;  %v4629_v22 = vsel %vm4531_vm3, %v4624_v9, 0.0  ;;  %v14279_v18 = vld [vmem:[#allocation2 + $0x421] sm:$0xff]  ;;  %v9974_v39 = vld [vmem:[#allocation2 + $0x2e9] sm:$0xff] }
 0x494   : > { %v26149_v7 = vpop.f32.mrb[21].mxu1  ;;  %22723 = vmatmul.mubr.msk.f32.gmra.mrb[174].mxu1 %vm325_vm0, %v14275_v63  ;;  %22167 = vmatprep.mubr.msk.f32.mxu0 %vm325_vm0, %v9970_v1  ;;  %v4511_v63 = vadd.f32 %v25924_v58, %v4473_v45  ;;  %v8918_v30 = vadd.f32 %v8917_v5, %v26128_v52  ;;  %v8937_v12 = vsel %vm4531_vm3, %v8931_v34, 0.0  ;;  %v4630_v54 = vadd.f32 %v4629_v22, %v26116_v31 }
 0x495   : > { %22725 = vmatprep.mubr.msk.f32.mxu1 %vm325_vm0, %v14276_v29  ;;  %v26189_v26 = vadd.f32 %v4602_v2, %v4566_v16  ;;  %v4614_v29 = vadd.f32 %v4613_v4, %v4612_v36  ;;  %v8786_v16 = vadd.f32 %v26066_v32, %v25839_v10  ;;  %v8820_v32 = vadd.f32 %v26093_v23, %v25924_v58  ;;  %v14281_v2 = vld [vmem:[#allocation2 + $0x431] sm:$0xff]  ;;  %v9976_v36 = vld [vmem:[#allocation2 + $0x2f9] sm:$0xff] }
 0x496   : > { %v26168_v62 = vpop.f32.mrb[22].mxu0  ;;  %4640 = vst.msk [vmem:[%s24242_s1 + $0x60] sm:$0xff] %vm4531_vm3, %v4511_v63  ;;  %v26203_v52 = vadd.f32 %v8919_v0, %v8918_v30  ;;  %v4632_v34 = vadd.f32 %v4631_v60, %v4630_v54  ;;  %v9975_v0 = vld [vmem:[#allocation2 + $0x2f1] sm:$0xff]  ;;  %v4644_v54 = vsel %vm4531_vm3, %v4511_v63, 0.0 }
 0x497   : > { %v26177_v40 = vpop.f32.mrb[22].mxu1  ;;  %v26179_v47 = vpop.f32.mrb[23].mxu0  ;;  %22168 = vmatmul.mubr.msk.f32.gmra.mrb[226].mxu0 %vm325_vm0, %v9971_v51  ;;  %v8935_v51 = vsel %vm4531_vm3, %v8930_v42, 0.0  ;;  %v4615_v45 = vrot.slane %v4614_v29, 4  ;;  %v26211_v10 = vadd.f32 %v25924_v58, %v8786_v16  ;;  %8948 = vst.msk [vmem:[%s24242_s1 + $0x170] sm:$0xff] %vm4531_vm3, %v8820_v32  ;;  %v9978_v16 = vld [vmem:[#allocation2 + $0x309] sm:$0xff] }
 0x498   : > { %v26185_v1 = vpop.f32.mrb[23].mxu1  ;;  %22726 = vmatmul.mubr.msk.f32.gmra.mrb[226].mxu1 %vm325_vm0, %v14277_v3  ;;  %22170 = vmatprep.mubr.msk.f32.mxu0 %vm325_vm0, %v9972_v28  ;;  %v8936_v3 = vadd.f32 %v8935_v51, %v8934_v27  ;;  %v4513_v28 = vadd.f32 %v26088_v8, %v25924_v58  ;;  %v4512_v27 = vadd.f32 %v25924_v58, %v26095_v44  ;;  %v4633_v9 = vrot.slane %v4632_v34, 4  ;;  %v14282_v44 = vld [vmem:[#allocation2 + $0x439] sm:$0xff]  ;;  %v14283_v51 = vld [vmem:[#allocation2 + $0x441] sm:$0xff] }
 0x499   : > { %22728 = vmatprep.mubr.msk.f32.mxu1 %vm325_vm0, %v14278_v15  ;;  %v4616_v57 = vadd.f32 %v4615_v45, %v4614_v29  ;;  %8946 = vst.msk [vmem:[%s24242_s1 + $0x160] sm:$0xff] %vm4531_vm3, %v26211_v10  ;;  %v4658_v29 = vmul.f32 %v4511_v63, %v4511_v63 }
 0x49a   : > { %v26201_v59 = vpop.f32.mrb[160].mxu0  ;;  %v26218_v15 = vadd.f32 %v8937_v12, %v8936_v3  ;;  %4642 = vst.msk [vmem:[%s24242_s1 + $0x70] sm:$0xff] %vm4531_vm3, %v4513_v28  ;;  %4641 = vst.msk [vmem:[%s24242_s1 + $0x68] sm:$0xff] %vm4531_vm3, %v4512_v27  ;;  %v4645_v22 = vsel %vm4531_vm3, %v4512_v27, 0.0  ;;  %v4659_v3 = vmul.f32 %v4512_v27, %v4512_v27 }
 0x49b   : > { %v26207_v31 = vpop.f32.mrb[160].mxu1  ;;  %v4386_v4 = vpop.f32.mrb[161].mxu0  ;;  %22171 = vmatmul.mubr.msk.f32.gmra.mrb[178].mxu0 %vm325_vm0, %v9973_v11  ;;  %v4617_v60 = vrot.slane %v4616_v57, 2  ;;  %v4634_v11 = vadd.f32 %v4633_v9, %v4632_v34  ;;  %v4646_v45 = vadd.f32 %v4645_v22, %v4644_v54  ;;  %v14284_v34 = vld [vmem:[#allocation2 + $0x449] sm:$0xff]  ;;  %v4662_v27 = vsel %vm4531_vm3, %v4658_v29, 0.0  ;;  %v9980_v29 = vld [vmem:[#allocation2 + $0x319] sm:$0xff] }
 0x49c   : > { %22729 = vmatmul.mubr.msk.f32.gmra.mrb[178].mxu1 %vm325_vm0, %v14279_v18  ;;  %v8699_v8 = vpop.f32.mrb[161].mxu1  ;;  %28387 = vst [vmem:[#allocation11_spill] sm:$0xff] %v26218_v15  ;;  %22173 = vmatprep.mubr.msk.f32.mxu0 %vm325_vm0, %v9974_v39  ;;  %v9977_v18 = vld [vmem:[#allocation2 + $0x301] sm:$0xff]  ;;  %v8953_v54 = vsel %vm4531_vm3, %v8820_v32, 0.0 }
 0x49d   : > { %22731 = vmatprep.mubr.msk.f32.mxu1 %vm325_vm0, %v14280_v49  ;;  %v4618_v12 = vadd.f32 %v4617_v60, %v4616_v57  ;;  %v4635_v39 = vrot.slane %v4634_v11, 2  ;;  %v4660_v49 = vmul.f32 %v4513_v28, %v4513_v28  ;;  %v8819_v57 = vadd.f32 %v25924_v58, %v26103_v35  ;;  %v9979_v35 = vld [vmem:[#allocation2 + $0x311] sm:$0xff] }
 0x49e   : > { %v26231_v23 = vpop.f32.mrb[26].mxu0  ;;  %v4663_v60 = vsel %vm4531_vm3, %v4659_v3, 0.0 }
 0x49f   : > { %v26233_v5 = vpop.f32.mrb[26].mxu1  ;;  %v26235_v42 = vpop.f32.mrb[27].mxu0  ;;  %22174 = vmatmul.mubr.msk.f32.gmra.mrb[180].mxu0 %vm325_vm0, %v9975_v0  ;;  %v4619_v8 = vrot.slane %v4618_v12, 1  ;;  %v8964_v0 = vmul.f32 %v26211_v10, %v26211_v10  ;;  %v4636_v9 = vadd.f32 %v4635_v39, %v4634_v11  ;;  %8947 = vst.msk [vmem:[%s24242_s1 + $0x168] sm:$0xff] %vm4531_vm3, %v8819_v57  ;;  %v14285_v11 = vld [vmem:[#allocation2 + $0x451] sm:$0xff]  ;;  %v4665_v39 = vsel %vm4531_vm3, %v4660_v49, 0.0 }
 0x4a0   : > { %v26239_v30 = vpop.f32.mrb[27].mxu1  ;;  %22732 = vmatmul.mubr.msk.f32.gmra.mrb[180].mxu1 %vm325_vm0, %v14281_v2  ;;  %22176 = vmatprep.mubr.msk.f32.mxu0 %vm325_vm0, %v9976_v36  ;;  %v4647_v2 = vsel %vm4531_vm3, %v4513_v28, 0.0 }
 0x4a1   : > { %22734 = vmatprep.mubr.msk.f32.mxu1 %vm325_vm0, %v14282_v44  ;;  %v26253_v44 = vadd.f32 %v4647_v2, %v4646_v45  ;;  %v4620_v28 = vadd.f32 %v4619_v8, %v4618_v12  ;;  %v8951_v45 = vsel %vm4531_vm3, %v8819_v57, 0.0  ;;  %v8950_v8 = vsel %vm4531_vm3, %v26211_v10, 0.0  ;;  %v9981_v10 = vld [vmem:[#allocation2 + $0x321] sm:$0xff] }
 0x4a2   : > { %v21455_v4 = vpop.f32.mrb[162].mxu0 }
 0x4a3   : > { %v22013_v63 = vpop.f32.mrb[162].mxu1  ;;  %v26250_v36 = vpop.f32.mrb[163].mxu0  ;;  %22177 = vmatmul.mubr.msk.f32.gmra.mrb[228].mxu0 %vm325_vm0, %v9977_v18  ;;  %v8966_v4 = vmul.f32 %v8820_v32, %v8820_v32  ;;  %v4637_v18 = vrot.slane %v4636_v9, 1  ;;  %v26270_v12 = vadd.f32 %v4620_v28, %v26172_v14  ;;  %v4476_v14 = vadd.f32 %v26123_v55, %v25854_v48  ;;  %v14287_v48 = vld [vmem:[#allocation2 + $0x461] sm:$0xff]  ;;  %v9982_v55 = vld [vmem:[#allocation2 + $0x329] sm:$0xff] }
 0x4a4   : > { %v26257_v22 = vpop.f32.mrb[163].mxu1  ;;  %22735 = vmatmul.mubr.msk.f32.gmra.mrb[228].mxu1 %vm325_vm0, %v14283_v51  ;;  %22179 = vmatprep.mubr.msk.f32.mxu0 %vm325_vm0, %v9978_v16  ;;  %v4664_v63 = vadd.f32 %v4663_v60, %v4662_v27  ;;  %v8965_v51 = vmul.f32 %v8819_v57, %v8819_v57  ;;  %v14286_v16 = vld [vmem:[#allocation2 + $0x459] sm:$0xff]  ;;  %v8952_v57 = vadd.f32 %v8951_v45, %v8950_v8 }
 0x4a5   : > { %22737 = vmatprep.mubr.msk.f32.mxu1 %vm325_vm0, %v14284_v34  ;;  %v8968_v34 = vsel %vm4531_vm3, %v8964_v0, 0.0  ;;  %v4638_v49 = vadd.f32 %v4637_v18, %v4636_v9  ;;  %v8971_v0 = vsel %vm4531_vm3, %v8966_v4, 0.0  ;;  %v8789_v9 = vadd.f32 %v26132_v41, %v25859_v33  ;;  %v14288_v33 = vld [vmem:[#allocation2 + $0x469] sm:$0xff] }
 0x4a6   : > { %v26267_v3 = vpop.f32.mrb[30].mxu0  ;;  %v4666_v32 = vadd.f32 %v4665_v39, %v4664_v63  ;;  %v8969_v60 = vsel %vm4531_vm3, %v8965_v51, 0.0  ;;  %v4514_v18 = vadd.f32 %v25924_v58, %v4476_v14  ;;  %v8823_v4 = vadd.f32 %v26141_v24, %v25924_v58 }
 0x4a7   : > { %v26275_v2 = vpop.f32.mrb[30].mxu1  ;;  %v26277_v27 = vpop.f32.mrb[31].mxu0  ;;  %22180 = vmatmul.mubr.msk.f32.gmra.mrb[184].mxu0 %vm325_vm0, %v9979_v35  ;;  %v8970_v63 = vadd.f32 %v8969_v60, %v8968_v34  ;;  %v4516_v35 = vadd.f32 %v26138_v56, %v25924_v58  ;;  %v8821_v56 = vadd.f32 %v25924_v58, %v8789_v9  ;;  %v9983_v34 = vld [vmem:[#allocation2 + $0x331] sm:$0xff] }
 0x4a8   : > { %v26283_v28 = vpop.f32.mrb[31].mxu1  ;;  %22738 = vmatmul.mubr.msk.f32.gmra.mrb[184].mxu1 %vm325_vm0, %v14285_v11  ;;  %22182 = vmatprep.mubr.msk.f32.mxu0 %vm325_vm0, %v9980_v29  ;;  %v26294_v11 = vadd.f32 %v4638_v49, %v26189_v26  ;;  %v8954_v29 = vadd.f32 %v8953_v54, %v8952_v57  ;;  %4643 = vst.msk [vmem:[%s24242_s1 + $0x78] sm:$0xff] %vm4531_vm3, %v4514_v18  ;;  %v4649_v54 = vsel %vm4531_vm3, %v4514_v18, 0.0  ;;  %8983 = vst.msk [vmem:[%s24242_s1 + $0x188] sm:$0xff] %vm4531_vm3, %v8823_v4 }
 0x4a9   : > { %22740 = vmatprep.mubr.msk.f32.mxu1 %vm325_vm0, %v14286_v16  ;;  %v8972_v41 = vadd.f32 %v8971_v0, %v8970_v63  ;;  %4677 = vst.msk [vmem:[%s24242_s1 + $0x88] sm:$0xff] %vm4531_vm3, %v4516_v35  ;;  %v4661_v24 = vmul.f32 %v4514_v18, %v4514_v18  ;;  %v4681_v51 = vsel %vm4531_vm3, %v4516_v35, 0.0  ;;  %v4695_v16 = vmul.f32 %v4516_v35, %v4516_v35  ;;  %v9984_v0 = vld [vmem:[#allocation2 + $0x339] sm:$0xff] }
 0x4aa   : > { %v26299_v39 = vpop.f32.mrb[32].mxu0  ;;  %v4650_v49 = vadd.f32 %v4649_v54, %v26253_v44  ;;  %8949 = vst.msk [vmem:[%s24242_s1 + $0x178] sm:$0xff] %vm4531_vm3, %v8821_v56  ;;  %v8955_v57 = vsel %vm4531_vm3, %v8821_v56, 0.0  ;;  %v8967_v60 = vmul.f32 %v8821_v56, %v8821_v56  ;;  %v8987_v14 = vsel %vm4531_vm3, %v8823_v4, 0.0 }
 0x4ab   : > { %v26304_v45 = vpop.f32.mrb[32].mxu1  ;;  %v26306_v26 = vpop.f32.mrb[33].mxu0  ;;  %22183 = vmatmul.mubr.msk.f32.gmra.mrb[230].mxu0 %vm325_vm0, %v9981_v10  ;;  %v14289_v10 = vld [vmem:[#allocation2 + $0x471] sm:$0xff]  ;;  %v4667_v63 = vsel %vm4531_vm3, %v4661_v24, 0.0  ;;  %v26326_v9 = vadd.f32 %v8955_v57, %v8954_v29  ;;  %v9001_v35 = vmul.f32 %v8823_v4, %v8823_v4  ;;  %v4515_v44 = vadd.f32 %v25924_v58, %v26143_v43 }
 0x4ac   : > { %v26315_v8 = vpop.f32.mrb[33].mxu1  ;;  %22741 = vmatmul.mubr.msk.f32.gmra.mrb[230].mxu1 %vm325_vm0, %v14287_v48  ;;  %22185 = vmatprep.mubr.msk.f32.mxu0 %vm325_vm0, %v9982_v55  ;;  %v14290_v55 = vld [vmem:[#allocation2 + $0x479] sm:$0xff]  ;;  %v4651_v18 = vrot.slane %v4650_v49, 4  ;;  %v4668_v56 = vadd.f32 %v4667_v63, %v4666_v32  ;;  %v8973_v54 = vsel %vm4531_vm3, %v8967_v60, 0.0  ;;  %v4699_v43 = vsel %vm4531_vm3, %v4695_v16, 0.0  ;;  %v14291_v16 = vld [vmem:[#allocation2 + $0x481] sm:$0xff] }
 0x4ad   : > { %22743 = vmatprep.mubr.msk.f32.mxu1 %vm325_vm0, %v14288_v33  ;;  %28388 = vst [vmem:[#allocation12_spill] sm:$0xff] %v26326_v9  ;;  %v8822_v33 = vadd.f32 %v25924_v58, %v26149_v7  ;;  %v26338_v29 = vadd.f32 %v8973_v54, %v8972_v41  ;;  %4676 = vst.msk [vmem:[%s24242_s1 + $0x80] sm:$0xff] %vm4531_vm3, %v4515_v44  ;;  %v4680_v4 = vsel %vm4531_vm3, %v4515_v44, 0.0  ;;  %v9985_v58 = vld [vmem:[#allocation2 + $0x341] sm:$0xff]  ;;  %v9005_v54 = vsel %vm4531_vm3, %v9001_v35, 0.0 }
 0x4ae   : > { %v26330_v48 = vpop.f32.mrb[164].mxu0  ;;  %v4694_v32 = vmul.f32 %v4515_v44, %v4515_v44  ;;  %v4652_v7 = vadd.f32 %v4651_v18, %v4650_v49  ;;  %v4669_v60 = vrot.slane %v4668_v56, 4  ;;  %v4682_v63 = vadd.f32 %v4681_v51, %v4680_v4  ;;  %v26364_v35 = vld [vmem:[%s28310_s5] ss:$0 sm:$0xff] }
 0x4af   : > { %v26335_v15 = vpop.f32.mrb[164].mxu1  ;;  %v4434_v24 = vpop.f32.mrb[165].mxu0  ;;  %22186 = vmatmul.mubr.msk.f32.gmra.mrb[188].mxu0 %vm325_vm0, %v9983_v34  ;;  %28389 = vst [vmem:[#allocation13_spill] sm:$0xff] %v26338_v29  ;;  %8982 = vst.msk [vmem:[%s24242_s1 + $0x180] sm:$0xff] %vm4531_vm3, %v8822_v33  ;;  %v8986_v41 = vsel %vm4531_vm3, %v8822_v33, 0.0  ;;  %v9986_v34 = vld [vmem:[#allocation2 + $0x349] sm:$0xff]  ;;  %v9000_v4 = vmul.f32 %v8822_v33, %v8822_v33 }
 0x4b0   : > { %22744 = vmatmul.mubr.msk.f32.gmra.mrb[188].mxu1 %vm325_vm0, %v14289_v10  ;;  %v8747_v57 = vpop.f32.mrb[165].mxu1  ;;  %22188 = vmatprep.mubr.msk.f32.mxu0 %vm325_vm0, %v9984_v0  ;;  %v4698_v44 = vsel %vm4531_vm3, %v4694_v32, 0.0  ;;  %v26352_v10 = vadd.f32 %v8987_v14, %v8986_v41  ;;  %v14292_v0 = vld [vmem:[#allocation2 + $0x489] sm:$0xff]  ;;  %v4653_v49 = vrot.slane %v4652_v7, 2  ;;  %v4670_v18 = vadd.f32 %v4669_v60, %v4668_v56  ;;  %v9987_v33 = vld [vmem:[#allocation2 + $0x351] sm:$0xff]  ;;  %v9988_v41 = vld [vmem:[#allocation2 + $0x359] sm:$0xff] }
 0x4b1   : > { %22746 = vmatprep.mubr.msk.f32.mxu1 %vm325_vm0, %v14290_v55  ;;  %v4700_v51 = vadd.f32 %v4699_v43, %v4698_v44  ;;  %v4518_v14 = vadd.f32 %v26364_v35, %v26168_v62  ;;  %v8825_v55 = vadd.f32 %v26364_v35, %v26177_v40  ;;  %v4517_v60 = vadd.f32 %v26364_v35, %v26179_v47  ;;  %v14293_v62 = vld [vmem:[#allocation2 + $0x491] sm:$0xff] }
 0x4b2   : > { %v26354_v24 = vpop.f32.mrb[36].mxu0  ;;  %v4654_v43 = vadd.f32 %v4653_v49, %v4652_v7  ;;  %v4671_v32 = vrot.slane %v4670_v18, 2 }
 0x4b3   : > { %v26356_v57 = vpop.f32.mrb[36].mxu1  ;;  %v26358_v29 = vpop.f32.mrb[37].mxu0  ;;  %22189 = vmatmul.mubr.msk.f32.gmra.mrb[190].mxu0 %vm325_vm0, %v9985_v58  ;;  %v9004_v58 = vsel %vm4531_vm3, %v9000_v4, 0.0  ;;  %4679 = vst.msk [vmem:[%s24242_s1 + $0x98] sm:$0xff] %vm4531_vm3, %v4518_v14  ;;  %8985 = vst.msk [vmem:[%s24242_s1 + $0x198] sm:$0xff] %vm4531_vm3, %v8825_v55  ;;  %v4697_v47 = vmul.f32 %v4518_v14, %v4518_v14  ;;  %v4685_v38 = vsel %vm4531_vm3, %v4518_v14, 0.0  ;;  %v4696_v13 = vmul.f32 %v4517_v60, %v4517_v60 }
 0x4b4   : > { %v26370_v56 = vpop.f32.mrb[37].mxu1  ;;  %22747 = vmatmul.mubr.msk.f32.gmra.mrb[190].mxu1 %vm325_vm0, %v14291_v16  ;;  %22191 = vmatprep.mubr.msk.f32.mxu0 %vm325_vm0, %v9986_v34  ;;  %v26378_v40 = vadd.f32 %v9005_v54, %v9004_v58  ;;  %v14294_v34 = vld [vmem:[#allocation2 + $0x499] sm:$0xff]  ;;  %v4655_v44 = vrot.slane %v4654_v43, 1  ;;  %v4672_v7 = vadd.f32 %v4671_v32, %v4670_v18  ;;  %4678 = vst.msk [vmem:[%s24242_s1 + $0x90] sm:$0xff] %vm4531_vm3, %v4517_v60  ;;  %v9989_v58 = vld [vmem:[#allocation2 + $0x361] sm:$0xff] }
 0x4b5   : > { %28390 = vst [vmem:[#allocation14_spill] sm:$0xff] %v26370_v56  ;;  %22749 = vmatprep.mubr.msk.f32.mxu1 %vm325_vm0, %v14292_v0  ;;  %v4683_v0 = vsel %vm4531_vm3, %v4517_v60, 0.0  ;;  %v14295_v32 = vld [vmem:[#allocation2 + $0x4a1] sm:$0xff]  ;;  %v14296_v56 = vld [vmem:[#allocation2 + $0x4a9] sm:$0xff]  ;;  %v4701_v14 = vsel %vm4531_vm3, %v4696_v13, 0.0  ;;  %v8794_v60 = vadd.f32 %v26207_v31, %v25875_v21  ;;  %v9992_v21 = vld [vmem:[#allocation2 + $0x379] sm:$0xff] }
 0x4b6   : > { %v21470_v16 = vpop.f32.mrb[166].mxu0  ;;  %v4673_v9 = vrot.slane %v4672_v7, 1  ;;  %v4684_v18 = vadd.f32 %v4683_v0, %v4682_v63  ;;  %v8824_v63 = vadd.f32 %v26364_v35, %v26185_v1 }
 0x4b7   : > { %v22028_v49 = vpop.f32.mrb[166].mxu1  ;;  %v26386_v4 = vpop.f32.mrb[167].mxu0  ;;  %22192 = vmatmul.mubr.msk.f32.gmra.mrb[232].mxu0 %vm325_vm0, %v9987_v33  ;;  %v4656_v16 = vadd.f32 %v4655_v44, %v4654_v43  ;;  %v8991_v33 = vsel %vm4531_vm3, %v8825_v55, 0.0  ;;  %v4703_v43 = vsel %vm4531_vm3, %v4697_v47, 0.0  ;;  %v14298_v44 = vld [vmem:[#allocation2 + $0x4b9] sm:$0xff]  ;;  %v4521_v47 = vadd.f32 %v26364_v35, %v26231_v23  ;;  %v9993_v23 = vld [vmem:[#allocation2 + $0x381] sm:$0xff] }
 0x4b8   : > { %28391 = vst [vmem:[#allocation15_spill] sm:$0xff] %v26386_v4  ;;  %v26390_v54 = vpop.f32.mrb[167].mxu1  ;;  %22750 = vmatmul.mubr.msk.f32.gmra.mrb[232].mxu1 %vm325_vm0, %v14293_v62  ;;  %22194 = vmatprep.mubr.msk.f32.mxu0 %vm325_vm0, %v9988_v41  ;;  %v9990_v49 = vld [vmem:[#allocation2 + $0x369] sm:$0xff]  ;;  %v9003_v4 = vmul.f32 %v8825_v55, %v8825_v55  ;;  %v4674_v41 = vadd.f32 %v4673_v9, %v4672_v7  ;;  %8984 = vst.msk [vmem:[%s24242_s1 + $0x190] sm:$0xff] %vm4531_vm3, %v8824_v63  ;;  %v8989_v13 = vsel %vm4531_vm3, %v8824_v63, 0.0 }
 0x4b9   : > { %28392 = vst [vmem:[#allocation16_spill] sm:$0xff] %v26390_v54  ;;  %22752 = vmatprep.mubr.msk.f32.mxu1 %vm325_vm0, %v14294_v34  ;;  %v26398_v62 = vadd.f32 %v4656_v16, %v26270_v12  ;;  %v4686_v54 = vadd.f32 %v4685_v38, %v4684_v18  ;;  %v4481_v55 = vadd.f32 %v26201_v59, %v25871_v25  ;;  %v9991_v38 = vld [vmem:[#allocation2 + $0x371] sm:$0xff]  ;;  %4714 = vst.msk [vmem:[%s24242_s1 + $0xb0] sm:$0xff] %vm4531_vm3, %v4521_v47  ;;  %v14299_v16 = vld [vmem:[#allocation2 + $0x4c1] sm:$0xff] }
 0x4ba   : > { %v26412_v12 = vadd.f32 %v4674_v41, %v26294_v11  ;;  %v4702_v9 = vadd.f32 %v4701_v14, %v4700_v51  ;;  %v14297_v25 = vld [vmem:[#allocation2 + $0x4b1] sm:$0xff]  ;;  %v8990_v59 = vadd.f32 %v8989_v13, %v26352_v10  ;;  %v9002_v31 = vmul.f32 %v8824_v63, %v8824_v63  ;;  %v9994_v18 = vld [vmem:[#allocation2 + $0x389] sm:$0xff] }
 0x4bb   : > { %22195 = vmatmul.mubr.msk.f32.gmra.mrb[194].mxu0 %vm325_vm0, %v9989_v58  ;;  %v4687_v1 = vrot.slane %v4686_v54, 4  ;;  %v4519_v34 = vadd.f32 %v26364_v35, %v4481_v55  ;;  %v26421_v11 = vadd.f32 %v26364_v35, %v8794_v60 }
 0x4bc   : > { %22753 = vmatmul.mubr.msk.f32.gmra.mrb[194].mxu1 %vm325_vm0, %v14295_v32  ;;  %22197 = vmatprep.mubr.msk.f32.mxu0 %vm325_vm0, %v9990_v49  ;;  %v4704_v7 = vadd.f32 %v4703_v43, %v4702_v9  ;;  %v26430_v10 = vadd.f32 %v8991_v33, %v8990_v59  ;;  %v9007_v0 = vsel %vm4531_vm3, %v9002_v31, 0.0  ;;  %v9009_v32 = vsel %vm4531_vm3, %v9003_v4, 0.0  ;;  %v14300_v33 = vld [vmem:[#allocation2 + $0x4c9] sm:$0xff]  ;;  %v9995_v4 = vld [vmem:[#allocation2 + $0x391] sm:$0xff] }
 0x4bd   : > { %22755 = vmatprep.mubr.msk.f32.mxu1 %vm325_vm0, %v14296_v56  ;;  %v4688_v51 = vadd.f32 %v4687_v1, %v4686_v54  ;;  %v26427_v56 = vadd.f32 %v26364_v35, %v26233_v5  ;;  %4712 = vst.msk [vmem:[%s24242_s1 + $0xa0] sm:$0xff] %vm4531_vm3, %v4519_v34  ;;  %9018 = vst.msk [vmem:[%s24242_s1 + $0x1a0] sm:$0xff] %vm4531_vm3, %v26421_v11  ;;  %v9008_v5 = vadd.f32 %v9007_v0, %v26378_v40 }
 0x4be   : > { %v4705_v58 = vrot.slane %v4704_v7, 4  ;;  %v4520_v40 = vadd.f32 %v26364_v35, %v26235_v42  ;;  %v4730_v60 = vmul.f32 %v4519_v34, %v4519_v34  ;;  %v4716_v13 = vsel %vm4531_vm3, %v4519_v34, 0.0 }
 0x4bf   : > { %22198 = vmatmul.mubr.msk.f32.gmra.mrb[234].mxu0 %vm325_vm0, %v9991_v38  ;;  %v4689_v54 = vrot.slane %v4688_v51, 2  ;;  %9020 = vst.msk [vmem:[%s24242_s1 + $0x1b0] sm:$0xff] %vm4531_vm3, %v26427_v56  ;;  %v26450_v43 = vadd.f32 %v9009_v32, %v9008_v5  ;;  %v8849_v59 = vrot.slane %v25984_v37, 4  ;;  %v4732_v31 = vmul.f32 %v4521_v47, %v4521_v47  ;;  %v9997_v32 = vld [vmem:[#allocation2 + $0x3a1] sm:$0xff] }
 0x4c0   : > { %22756 = vmatmul.mubr.msk.f32.gmra.mrb[234].mxu1 %vm325_vm0, %v14297_v25  ;;  %22200 = vmatprep.mubr.msk.f32.mxu0 %vm325_vm0, %v9992_v21  ;;  %v4706_v63 = vadd.f32 %v4705_v58, %v4704_v7  ;;  %4713 = vst.msk [vmem:[%s24242_s1 + $0xa8] sm:$0xff] %vm4531_vm3, %v4520_v40  ;;  %v4717_v42 = vsel %vm4531_vm3, %v4520_v40, 0.0  ;;  %v14301_v25 = vld [vmem:[#allocation2 + $0x4d1] sm:$0xff]  ;;  %v9996_v21 = vld [vmem:[#allocation2 + $0x399] sm:$0xff]  ;;  %v8827_v34 = vadd.f32 %v26364_v35, %v26239_v30 }
 0x4c1   : > { %22758 = vmatprep.mubr.msk.f32.mxu1 %vm325_vm0, %v14298_v44  ;;  %v4690_v41 = vadd.f32 %v4689_v54, %v4688_v51  ;;  %v4718_v44 = vadd.f32 %v4717_v42, %v4716_v13  ;;  %v4731_v51 = vmul.f32 %v4520_v40, %v4520_v40  ;;  %v14302_v7 = vld [vmem:[#allocation2 + $0x4d9] sm:$0xff]  ;;  %v4719_v54 = vsel %vm4531_vm3, %v4521_v47, 0.0  ;;  %v9998_v40 = vld [vmem:[#allocation2 + $0x3a9] sm:$0xff] }
 0x4c2   : > { %v26448_v49 = vpop.f32.mrb[172].mxu0  ;;  %v4707_v9 = vrot.slane %v4706_v63, 2  ;;  %v9036_v58 = vmul.f32 %v26421_v11, %v26421_v11  ;;  %9019 = vst.msk [vmem:[%s24242_s1 + $0x1a8] sm:$0xff] %vm4531_vm3, %v8827_v34  ;;  %v9025_v13 = vsel %vm4531_vm3, %v26427_v56, 0.0 }
 0x4c3   : > { %v9414_v14 = vpop.f32.mrb[173].mxu0  ;;  %22201 = vmatmul.mubr.msk.f32.gmra.mrb[198].mxu0 %vm325_vm0, %v9993_v23  ;;  %v26455_v55 = vpop.f32.mrb[172].mxu1  ;;  %v4691_v1 = vrot.slane %v4690_v41, 1  ;;  %v26471_v5 = vadd.f32 %v4719_v54, %v4718_v44 }
 0x4c4   : > { %22759 = vmatmul.mubr.msk.f32.gmra.mrb[198].mxu1 %vm325_vm0, %v14299_v16  ;;  %22203 = vmatprep.mubr.msk.f32.mxu0 %vm325_vm0, %v9994_v18  ;;  %v13720_v38 = vpop.f32.mrb[173].mxu1  ;;  %v4708_v23 = vadd.f32 %v4707_v9, %v4706_v63  ;;  %v4734_v16 = vsel %vm4531_vm3, %v4730_v60, 0.0  ;;  %v4735_v18 = vsel %vm4531_vm3, %v4731_v51, 0.0  ;;  %v14303_v63 = vld [vmem:[#allocation2 + $0x4e1] sm:$0xff]  ;;  %v4737_v14 = vsel %vm4531_vm3, %v4732_v31, 0.0 }
 0x4c5   : > { %22761 = vmatprep.mubr.msk.f32.mxu1 %vm325_vm0, %v14300_v33  ;;  %v4692_v0 = vadd.f32 %v4691_v1, %v4690_v41  ;;  %v9038_v33 = vmul.f32 %v26427_v56, %v26427_v56  ;;  %v4736_v41 = vadd.f32 %v4735_v18, %v4734_v16  ;;  %v9022_v60 = vsel %vm4531_vm3, %v26421_v11, 0.0  ;;  %v14304_v1 = vld [vmem:[#allocation2 + $0x4e9] sm:$0xff]  ;;  %v9999_v56 = vld [vmem:[#allocation2 + $0x3b1] sm:$0xff]  ;;  %v14306_v18 = vld [vmem:[#allocation2 + $0x4f9] sm:$0xff] }
 0x4c6   : > { %v4709_v30 = vrot.slane %v4708_v23, 1  ;;  %v9040_v31 = vsel %vm4531_vm3, %v9036_v58, 0.0  ;;  %v4484_v51 = vadd.f32 %v26250_v36, %v25886_v6  ;;  %v14305_v6 = vld [vmem:[#allocation2 + $0x4f1] sm:$0xff]  ;;  %v8831_v16 = vadd.f32 %v26364_v35, %v26275_v2 }
 0x4c7   : > { %22204 = vmatmul.mubr.msk.f32.gmra.mrb[200].mxu0 %vm325_vm0, %v9995_v4  ;;  %v26478_v47 = vadd.f32 %v4692_v0, %v26398_v62  ;;  %v9023_v4 = vsel %vm4531_vm3, %v8827_v34, 0.0  ;;  %v9037_v62 = vmul.f32 %v8827_v34, %v8827_v34  ;;  %v4738_v42 = vadd.f32 %v4737_v14, %v4736_v41  ;;  %v14307_v14 = vld [vmem:[#allocation2 + $0x501] sm:$0xff] }
 0x4c8   : > { %22762 = vmatmul.mubr.msk.f32.gmra.mrb[200].mxu1 %vm325_vm0, %v14301_v25  ;;  %22206 = vmatprep.mubr.msk.f32.mxu0 %vm325_vm0, %v9996_v21  ;;  %v4710_v9 = vadd.f32 %v4709_v30, %v4708_v23  ;;  %v9024_v25 = vadd.f32 %v9023_v4, %v9022_v60  ;;  %v9043_v54 = vsel %vm4531_vm3, %v9038_v33, 0.0  ;;  %v4522_v36 = vadd.f32 %v26364_v35, %v4484_v51  ;;  %v10412_v60 = vld [vmem:[#allocation2 + $0x2af] sm:$0xff] }
 0x4c9   : > { %22764 = vmatprep.mubr.msk.f32.mxu1 %vm325_vm0, %v14302_v7  ;;  %v9041_v11 = vsel %vm4531_vm3, %v9037_v62, 0.0  ;;  %v8797_v7 = vadd.f32 %v26257_v22, %v25891_v46  ;;  %v10000_v46 = vld [vmem:[#allocation2 + $0x3b9] sm:$0xff]  ;;  %v4523_v33 = vadd.f32 %v26364_v35, %v26277_v27  ;;  %v8830_v41 = vadd.f32 %v26364_v35, %v26283_v28  ;;  %9055 = vst.msk [vmem:[%s24242_s1 + $0x1c8] sm:$0xff] %vm4531_vm3, %v8831_v16  ;;  %v10001_v27 = vld [vmem:[#allocation2 + $0x3c1] sm:$0xff] }
 0x4ca   : > { %v22045_v38 = vpop.f32.mrb[176].mxu0  ;;  %v26505_v23 = vadd.f32 %v4710_v9, %v26412_v12  ;;  %v9026_v34 = vadd.f32 %v9025_v13, %v9024_v25  ;;  %v9042_v58 = vadd.f32 %v9041_v11, %v9040_v31  ;;  %v4524_v12 = vadd.f32 %v26364_v35, %v26267_v3  ;;  %4715 = vst.msk [vmem:[%s24242_s1 + $0xb8] sm:$0xff] %vm4531_vm3, %v4522_v36 }
 0x4cb   : > { %v26491_v21 = vpop.f32.mrb[177].mxu0  ;;  %22207 = vmatmul.mubr.msk.f32.gmra.mrb[236].mxu0 %vm325_vm0, %v9997_v32  ;;  %v22603_v44 = vpop.f32.mrb[176].mxu1  ;;  %v8829_v22 = vadd.f32 %v26364_v35, %v8797_v7  ;;  %v26516_v32 = vadd.f32 %v8849_v59, %v25984_v37  ;;  %v4721_v3 = vsel %vm4531_vm3, %v4522_v36, 0.0  ;;  %v4733_v2 = vmul.f32 %v4522_v36, %v4522_v36  ;;  %4748 = vst.msk [vmem:[%s24242_s1 + $0xc0] sm:$0xff] %vm4531_vm3, %v4523_v33 }
 0x4cc   : > { %22765 = vmatmul.mubr.msk.f32.gmra.mrb[236].mxu1 %vm325_vm0, %v14303_v63  ;;  %22209 = vmatprep.mubr.msk.f32.mxu0 %vm325_vm0, %v9998_v40  ;;  %v26502_v0 = vpop.f32.mrb[177].mxu1  ;;  %v9044_v30 = vadd.f32 %v9043_v54, %v9042_v58  ;;  %4749 = vst.msk [vmem:[%s24242_s1 + $0xc8] sm:$0xff] %vm4531_vm3, %v4524_v12  ;;  %v4722_v28 = vadd.f32 %v4721_v3, %v26471_v5  ;;  %9054 = vst.msk [vmem:[%s24242_s1 + $0x1c0] sm:$0xff] %vm4531_vm3, %v8830_v41  ;;  %v8867_v4 = vrot.slane %v25996_v17, 4  ;;  %v14718_v5 = vld [vmem:[#allocation2 + $0x3ef] sm:$0xff] }
 0x4cd   : > { %22767 = vmatprep.mubr.msk.f32.mxu1 %vm325_vm0, %v14304_v1  ;;  %9021 = vst.msk [vmem:[%s24242_s1 + $0x1b8] sm:$0xff] %vm4531_vm3, %v8829_v22  ;;  %v9027_v37 = vsel %vm4531_vm3, %v8829_v22, 0.0  ;;  %v9039_v59 = vmul.f32 %v8829_v22, %v8829_v22  ;;  %v4767_v40 = vmul.f32 %v4524_v12, %v4524_v12  ;;  %v4739_v62 = vsel %vm4531_vm3, %v4733_v2, 0.0 }
 0x4ce   : > { %v26536_v63 = vadd.f32 %v9027_v37, %v9026_v34  ;;  %v4753_v1 = vsel %vm4531_vm3, %v4524_v12, 0.0  ;;  %v4723_v9 = vrot.slane %v4722_v28, 4  ;;  %v4740_v13 = vadd.f32 %v4739_v62, %v4738_v42  ;;  %v10415_v62 = vld [vmem:[#allocation2 + $0x2c7] sm:$0xff] }
 0x4cf   : > { %22210 = vmatmul.mubr.msk.f32.gmra.mrb[204].mxu0 %vm325_vm0, %v9999_v56  ;;  %v9045_v38 = vsel %vm4531_vm3, %v9039_v59, 0.0  ;;  %v9073_v44 = vmul.f32 %v8831_v16, %v8831_v16  ;;  %v8851_v31 = vrot.slane %v26516_v32, 2  ;;  %v8885_v11 = vrot.slane %v26085_v20, 4  ;;  %v10413_v56 = vld [vmem:[#allocation2 + $0x2b7] sm:$0xff] }
 0x4d0   : > { %22768 = vmatmul.mubr.msk.f32.gmra.mrb[204].mxu1 %vm325_vm0, %v14305_v6  ;;  %22212 = vmatprep.mubr.msk.f32.mxu0 %vm325_vm0, %v10000_v46  ;;  %v26547_v25 = vadd.f32 %v9045_v38, %v9044_v30  ;;  %v4752_v51 = vsel %vm4531_vm3, %v4523_v33, 0.0  ;;  %v4766_v7 = vmul.f32 %v4523_v33, %v4523_v33  ;;  %v4724_v54 = vadd.f32 %v4723_v9, %v4722_v28  ;;  %v14719_v6 = vld [vmem:[#allocation2 + $0x3f7] sm:$0xff]  ;;  %v10414_v30 = vld [vmem:[#allocation2 + $0x2bf] sm:$0xff]  ;;  %v26572_v28 = vld [vmem:[%s28309_s4 + $0x28] sm:$0xff] }
 0x4d1   : > { %22770 = vmatprep.mubr.msk.f32.mxu1 %vm325_vm0, %v14306_v18  ;;  %v4741_v34 = vrot.slane %v4740_v13, 4  ;;  %v4771_v42 = vsel %vm4531_vm3, %v4767_v40, 0.0  ;;  %v9059_v58 = vsel %vm4531_vm3, %v8831_v16, 0.0  ;;  %v26558_v46 = vadd.f32 %v4753_v1, %v4752_v51  ;;  %v14720_v33 = vld [vmem:[#allocation2 + $0x3ff] sm:$0xff]  ;;  %v14721_v9 = vld [vmem:[#allocation2 + $0x407] sm:$0xff] }
 0x4d2   : > { %v4770_v36 = vsel %vm4531_vm3, %v4766_v7, 0.0  ;;  %v9058_v22 = vsel %vm4531_vm3, %v8830_v41, 0.0  ;;  %v9072_v12 = vmul.f32 %v8830_v41, %v8830_v41  ;;  %v8903_v3 = vrot.slane %v26098_v53, 4  ;;  %v14722_v7 = vld [vmem:[#allocation2 + $0x40f] sm:$0xff] }
 0x4d3   : > { %22213 = vmatmul.mubr.msk.f32.gmra.mrb[238].mxu0 %vm325_vm0, %v10001_v27  ;;  %v4725_v2 = vrot.slane %v4724_v54, 2  ;;  %v4742_v37 = vadd.f32 %v4741_v34, %v4740_v13  ;;  %v9077_v16 = vsel %vm4531_vm3, %v9073_v44, 0.0  ;;  %v26574_v41 = vadd.f32 %v4771_v42, %v4770_v36  ;;  %v10416_v13 = vld [vmem:[#allocation2 + $0x2cf] sm:$0xff] }
 0x4d4   : > { %22771 = vmatmul.mubr.msk.f32.gmra.mrb[238].mxu1 %vm325_vm0, %v14307_v14  ;;  %22217 = vmatprep.mubr.msk.f32.mxu0 %vm325_vm0, %v10412_v60  ;;  %v26576_v40 = vadd.f32 %v9059_v58, %v9058_v22  ;;  %v9076_v14 = vsel %vm4531_vm3, %v9072_v12, 0.0  ;;  %v4526_v60 = vadd.f32 %v26364_v35, %v26299_v39  ;;  %v8833_v51 = vadd.f32 %v26364_v35, %v26304_v45 }
 0x4d5   : > { %22775 = vmatprep.mubr.msk.f32.mxu1 %vm325_vm0, %v14718_v5  ;;  %v4726_v1 = vadd.f32 %v4725_v2, %v4724_v54  ;;  %v4743_v5 = vrot.slane %v4742_v37, 2  ;;  %v26585_v44 = vadd.f32 %v9077_v16, %v9076_v14  ;;  %v26597_v54 = vadd.f32 %v8867_v4, %v25996_v17  ;;  %v10417_v17 = vld [vmem:[#allocation2 + $0x2d7] sm:$0xff] }
 0x4d6   : > { %v26562_v18 = vpop.f32.mrb[182].mxu0  ;;  %4751 = vst.msk [vmem:[%s24242_s1 + $0xd8] sm:$0xff] %vm4531_vm3, %v4526_v60  ;;  %v4769_v39 = vmul.f32 %v4526_v60, %v4526_v60  ;;  %v26602_v45 = vadd.f32 %v8885_v11, %v26085_v20  ;;  %9057 = vst.msk [vmem:[%s24242_s1 + $0x1d8] sm:$0xff] %vm4531_vm3, %v8833_v51  ;;  %v4757_v58 = vsel %vm4531_vm3, %v4526_v60, 0.0  ;;  %v10418_v11 = vld [vmem:[#allocation2 + $0x2df] sm:$0xff]  ;;  %v8832_v22 = vadd.f32 %v26364_v35, %v26315_v8 }
 0x4d7   : > { %v9462_v59 = vpop.f32.mrb[183].mxu0  ;;  %22218 = vmatmul.mubr.msk.f32.vlgmr.msra.gmra.mrb[168].mxu0 %vm325_vm0, %v10413_v56  ;;  %v26567_v27 = vpop.f32.mrb[182].mxu1  ;;  %v26594_v56 = vadd.f32 %v8851_v31, %v26516_v32  ;;  %v4727_v34 = vrot.slane %v4726_v1, 1  ;;  %v4744_v42 = vadd.f32 %v4743_v5, %v4742_v37  ;;  %v4525_v32 = vadd.f32 %v26364_v35, %v26306_v26 }
 0x4d8   : > { %22776 = vmatmul.mubr.msk.f32.vlgmr.msra.gmra.mrb[168].mxu1 %vm325_vm0, %v14719_v6  ;;  %22278 = vmatpush3.msra.mxu0 %v26161_v50  ;;  %v13768_v38 = vpop.f32.mrb[183].mxu1  ;;  %v4775_v20 = vsel %vm4531_vm3, %v4769_v39, 0.0  ;;  %v9063_v6 = vsel %vm4531_vm3, %v8833_v51, 0.0  ;;  %v9075_v2 = vmul.f32 %v8833_v51, %v8833_v51  ;;  %9056 = vst.msk [vmem:[%s24242_s1 + $0x1d0] sm:$0xff] %vm4531_vm3, %v8832_v22  ;;  %v9061_v8 = vsel %vm4531_vm3, %v8832_v22, 0.0 }
 0x4d9   : > { %22220 = vmatprep.mubr.msk.f32.mxu0 %vm325_vm0, %v10414_v30  ;;  %22778 = vmatprep.mubr.msk.f32.mxu1 %vm325_vm0, %v14720_v33  ;;  %v4728_v4 = vadd.f32 %v4727_v34, %v4726_v1  ;;  %v4745_v31 = vrot.slane %v4744_v42, 1  ;;  %4750 = vst.msk [vmem:[%s24242_s1 + $0xd0] sm:$0xff] %vm4531_vm3, %v4525_v32  ;;  %v4755_v26 = vsel %vm4531_vm3, %v4525_v32, 0.0  ;;  %v4768_v36 = vmul.f32 %v4525_v32, %v4525_v32  ;;  %v14724_v30 = vld [vmem:[#allocation2 + $0x41f] sm:$0xff] }
 0x4da   : > { %22836 = vmatpush3.msra.mxu1 %v26161_v50  ;;  %22339 = vmatprep.subr.mxu0 %v26572_v28  ;;  %v26605_v50 = vadd.f32 %v8903_v3, %v26098_v53  ;;  %v14723_v53 = vld [vmem:[#allocation2 + $0x417] sm:$0xff]  ;;  %v4756_v37 = vadd.f32 %v4755_v26, %v26558_v46  ;;  %v9074_v60 = vmul.f32 %v8832_v22, %v8832_v22  ;;  %v10419_v46 = vld [vmem:[#allocation2 + $0x2e7] sm:$0xff]  ;;  %v8853_v32 = vrot.slane %v26594_v56, 1 }
 0x4db   : > { %22221 = vmatmul.mubr.msk.f32.gmra.mrb[170].mxu0 %vm325_vm0, %v10415_v62  ;;  %22897 = vmatprep.subr.mxu1 %v26572_v28  ;;  %v26623_v33 = vadd.f32 %v4728_v4, %v26478_v47  ;;  %v4746_v3 = vadd.f32 %v4745_v31, %v4744_v42  ;;  %v4773_v14 = vsel %vm4531_vm3, %v4768_v36, 0.0  ;;  %v4489_v47 = vadd.f32 %v26330_v48, %v25903_v61  ;;  %v10420_v61 = vld [vmem:[#allocation2 + $0x2ef] sm:$0xff]  ;;  %v14728_v36 = vld [vmem:[#allocation2 + $0x43f] sm:$0xff] }
 0x4dc   : > { %22779 = vmatmul.mubr.msk.f32.gmra.mrb[170].mxu1 %vm325_vm0, %v14721_v9  ;;  %22223 = vmatprep.mubr.msk.f32.mxu0 %vm325_vm0, %v10416_v13  ;;  %v4758_v1 = vadd.f32 %v4757_v58, %v4756_v37  ;;  %v4774_v5 = vadd.f32 %v4773_v14, %v26574_v41  ;;  %v9062_v9 = vadd.f32 %v9061_v8, %v26576_v40  ;;  %v14725_v13 = vld [vmem:[#allocation2 + $0x427] sm:$0xff]  ;;  %v9079_v48 = vsel %vm4531_vm3, %v9074_v60, 0.0  ;;  %v14727_v58 = vld [vmem:[#allocation2 + $0x437] sm:$0xff]  ;;  %v10424_v8 = vld [vmem:[#allocation2 + $0x30f] sm:$0xff] }
 0x4dd   : > { %22781 = vmatprep.mubr.msk.f32.mxu1 %vm325_vm0, %v14722_v7  ;;  %v26640_v38 = vadd.f32 %v4746_v3, %v26505_v23  ;;  %v4527_v39 = vadd.f32 %v26364_v35, %v4489_v47  ;;  %v8802_v51 = vadd.f32 %v26335_v15, %v25907_v19  ;;  %v4529_v23 = vadd.f32 %v26364_v35, %v26354_v24  ;;  %v14726_v7 = vld [vmem:[#allocation2 + $0x42f] sm:$0xff]  ;;  %v10421_v15 = vld [vmem:[#allocation2 + $0x2f7] sm:$0xff] }
 0x4de   : > { %v22060_v12 = vpop.f32.mrb[186].mxu0  ;;  %v4759_v41 = vrot.slane %v4758_v1, 4  ;;  %v4776_v34 = vadd.f32 %v4775_v20, %v4774_v5  ;;  %v26651_v40 = vadd.f32 %v9063_v6, %v9062_v9  ;;  %v9080_v42 = vadd.f32 %v9079_v48, %v26585_v44  ;;  %v10422_v20 = vld [vmem:[#allocation2 + $0x2ff] sm:$0xff]  ;;  %v14730_v9 = vld [vmem:[#allocation2 + $0x44f] sm:$0xff] }
 0x4df   : > { %v26626_v16 = vpop.f32.mrb[187].mxu0  ;;  %22224 = vmatmul.mubr.msk.f32.gmra.mrb[240].mxu0 %vm325_vm0, %v10417_v17  ;;  %v22618_v59 = vpop.f32.mrb[186].mxu1  ;;  %v8869_v17 = vrot.slane %v26597_v54, 2  ;;  %v9081_v4 = vsel %vm4531_vm3, %v9075_v2, 0.0  ;;  %4784 = vst.msk [vmem:[%s24242_s1 + $0xe0] sm:$0xff] %vm4531_vm3, %v4527_v39  ;;  %v26661_v19 = vadd.f32 %v26364_v35, %v8802_v51  ;;  %4786 = vst.msk [vmem:[%s24242_s1 + $0xf0] sm:$0xff] %vm4531_vm3, %v4529_v23  ;;  %v26677_v6 = vadd.f32 %v26364_v35, %v26356_v57 }
 0x4e0   : > { %22782 = vmatmul.mubr.msk.f32.gmra.mrb[240].mxu1 %vm325_vm0, %v14723_v53  ;;  %22226 = vmatprep.mubr.msk.f32.mxu0 %vm325_vm0, %v10418_v11  ;;  %v26637_v62 = vpop.f32.mrb[187].mxu1  ;;  %v4760_v24 = vadd.f32 %v4759_v41, %v4758_v1  ;;  %v4777_v44 = vrot.slane %v4776_v34, 4  ;;  %v26667_v31 = vadd.f32 %v9081_v4, %v9080_v42  ;;  %v8887_v53 = vrot.slane %v26602_v45, 2 }
 0x4e1   : > { %22784 = vmatprep.mubr.msk.f32.mxu1 %vm325_vm0, %v14724_v30  ;;  %v8905_v11 = vrot.slane %v26605_v50, 2  ;;  %9090 = vst.msk [vmem:[%s24242_s1 + $0x1e0] sm:$0xff] %vm4531_vm3, %v26661_v19  ;;  %v4528_v26 = vadd.f32 %v26364_v35, %v26358_v29  ;;  %v26683_v30 = vadd.f32 %v8853_v32, %v26594_v56  ;;  %v26686_v3 = vadd.f32 %v8869_v17, %v26597_v54  ;;  %v10423_v29 = vld [vmem:[#allocation2 + $0x307] sm:$0xff]  ;;  %v10425_v32 = vld [vmem:[#allocation2 + $0x317] sm:$0xff] }
 0x4e2   : > { %v4761_v22 = vrot.slane %v4760_v24, 2  ;;  %v4778_v12 = vadd.f32 %v4777_v44, %v4776_v34  ;;  %v4802_v2 = vmul.f32 %v4527_v39, %v4527_v39  ;;  %9092 = vst.msk [vmem:[%s24242_s1 + $0x1f0] sm:$0xff] %vm4531_vm3, %v26677_v6  ;;  %v4804_v56 = vmul.f32 %v4529_v23, %v4529_v23  ;;  %v14729_v54 = vld [vmem:[#allocation2 + $0x447] sm:$0xff]  ;;  %v14731_v44 = vld [vmem:[#allocation2 + $0x457] sm:$0xff] }
 0x4e3   : > { %22227 = vmatmul.mubr.msk.f32.gmra.mrb[174].mxu0 %vm325_vm0, %v10419_v46  ;;  %4785 = vst.msk [vmem:[%s24242_s1 + $0xe8] sm:$0xff] %vm4531_vm3, %v4528_v26  ;;  %v4789_v57 = vsel %vm4531_vm3, %v4528_v26, 0.0  ;;  %v4788_v14 = vsel %vm4531_vm3, %v4527_v39, 0.0  ;;  %v26699_v60 = vadd.f32 %v8887_v53, %v26602_v45  ;;  %v26702_v47 = vadd.f32 %v8905_v11, %v26605_v50  ;;  %v28393_v34 = vld [vmem:[#allocation14_spill] sm:$0xff] }
 0x4e4   : > { %22785 = vmatmul.mubr.msk.f32.gmra.mrb[174].mxu1 %vm325_vm0, %v14725_v13  ;;  %22229 = vmatprep.mubr.msk.f32.mxu0 %vm325_vm0, %v10420_v61  ;;  %v4762_v37 = vadd.f32 %v4761_v22, %v4760_v24  ;;  %v4779_v59 = vrot.slane %v4778_v12, 2  ;;  %v4790_v46 = vadd.f32 %v4789_v57, %v4788_v14  ;;  %v4803_v1 = vmul.f32 %v4528_v26, %v4528_v26  ;;  %v28395_v14 = vld [vmem:[#allocation15_spill] sm:$0xff] }
 0x4e5   : > { %22787 = vmatprep.mubr.msk.f32.mxu1 %vm325_vm0, %v14726_v7  ;;  %v9108_v48 = vmul.f32 %v26661_v19, %v26661_v19  ;;  %v4791_v39 = vsel %vm4531_vm3, %v4529_v23, 0.0  ;;  %v8921_v50 = vrot.slane %v26203_v52, 4  ;;  %v8835_v42 = vadd.f32 %v26364_v35, %v28393_v34 }
 0x4e6   : > { %v4763_v13 = vrot.slane %v4762_v37, 1  ;;  %v4780_v61 = vadd.f32 %v4779_v59, %v4778_v12  ;;  %v4792_v7 = vadd.f32 %v4791_v39, %v4790_v46  ;;  %v4807_v41 = vsel %vm4531_vm3, %v4803_v1, 0.0  ;;  %v28396_v1 = vld [vmem:[#allocation10_spill] sm:$0xff] }
 0x4e7   : > { %22230 = vmatmul.mubr.msk.f32.gmra.mrb[242].mxu0 %vm325_vm0, %v10421_v15  ;;  %v4809_v15 = vsel %vm4531_vm3, %v4804_v56, 0.0  ;;  %v4806_v24 = vsel %vm4531_vm3, %v4802_v2, 0.0  ;;  %9091 = vst.msk [vmem:[%s24242_s1 + $0x1e8] sm:$0xff] %vm4531_vm3, %v8835_v42  ;;  %v9095_v11 = vsel %vm4531_vm3, %v8835_v42, 0.0  ;;  %v9109_v26 = vmul.f32 %v8835_v42, %v8835_v42  ;;  %v28394_v56 = vld [vmem:[#allocation9_spill] sm:$0xff]  ;;  %v14734_v42 = vld [vmem:[#allocation2 + $0x46f] sm:$0xff] }
 0x4e8   : > { %22788 = vmatmul.mubr.msk.f32.gmra.mrb[242].mxu1 %vm325_vm0, %v14727_v58  ;;  %22232 = vmatprep.mubr.msk.f32.mxu0 %vm325_vm0, %v10422_v20  ;;  %v4764_v17 = vadd.f32 %v4763_v13, %v4762_v37  ;;  %v4781_v4 = vrot.slane %v4780_v61, 1  ;;  %v10426_v58 = vld [vmem:[#allocation2 + $0x31f] sm:$0xff]  ;;  %v9110_v20 = vmul.f32 %v26677_v6, %v26677_v6  ;;  %v4808_v53 = vadd.f32 %v4807_v41, %v4806_v24 }
 0x4e9   : > { %22790 = vmatprep.mubr.msk.f32.mxu1 %vm325_vm0, %v14728_v36  ;;  %v14732_v36 = vld [vmem:[#allocation2 + $0x45f] sm:$0xff]  ;;  %v9094_v2 = vsel %vm4531_vm3, %v26661_v19, 0.0  ;;  %v9112_v57 = vsel %vm4531_vm3, %v9108_v48, 0.0  ;;  %v9113_v59 = vsel %vm4531_vm3, %v9109_v26, 0.0  ;;  %v9097_v19 = vsel %vm4531_vm3, %v26677_v6, 0.0  ;;  %v10428_v48 = vld [vmem:[#allocation2 + $0x32f] sm:$0xff] }
 0x4ea   : > { %v26704_v5 = vpop.f32.mrb[192].mxu0  ;;  %v26727_v22 = vadd.f32 %v4764_v17, %v26623_v33  ;;  %v4782_v12 = vadd.f32 %v4781_v4, %v4780_v61  ;;  %v9096_v37 = vadd.f32 %v9095_v11, %v9094_v2  ;;  %v10427_v33 = vld [vmem:[#allocation2 + $0x327] sm:$0xff]  ;;  %v9114_v46 = vadd.f32 %v9113_v59, %v9112_v57  ;;  %v10429_v26 = vld [vmem:[#allocation2 + $0x337] sm:$0xff]  ;;  %v10430_v59 = vld [vmem:[#allocation2 + $0x33f] sm:$0xff] }
 0x4eb   : > { %v9510_v51 = vpop.f32.mrb[193].mxu0  ;;  %22233 = vmatmul.mubr.msk.f32.gmra.mrb[178].mxu0 %vm325_vm0, %v10423_v29  ;;  %v26710_v45 = vpop.f32.mrb[192].mxu1  ;;  %v4810_v29 = vadd.f32 %v4809_v15, %v4808_v53  ;;  %v14733_v61 = vld [vmem:[#allocation2 + $0x467] sm:$0xff]  ;;  %v8871_v39 = vrot.slane %v26686_v3, 1  ;;  %v8889_v6 = vrot.slane %v26699_v60, 1 }
 0x4ec   : > { %22791 = vmatmul.mubr.msk.f32.gmra.mrb[178].mxu1 %vm325_vm0, %v14729_v54  ;;  %22235 = vmatprep.mubr.msk.f32.mxu0 %vm325_vm0, %v10424_v8  ;;  %v13816_v23 = vpop.f32.mrb[193].mxu1  ;;  %v4492_v54 = vadd.f32 %v28395_v14, %v28394_v56  ;;  %v26739_v8 = vadd.f32 %v4782_v12, %v26640_v38  ;;  %v9115_v51 = vsel %vm4531_vm3, %v9110_v20, 0.0  ;;  %v9098_v41 = vadd.f32 %v9097_v19, %v9096_v37  ;;  %v14735_v37 = vld [vmem:[#allocation2 + $0x477] sm:$0xff] }
 0x4ed   : > { %22793 = vmatprep.mubr.msk.f32.mxu1 %vm325_vm0, %v14730_v9  ;;  %v28397_v9 = vld [vmem:[#allocation16_spill] sm:$0xff]  ;;  %v9116_v17 = vadd.f32 %v9115_v51, %v9114_v46  ;;  %v28400_v56 = vld [vmem:[#allocation13_spill] sm:$0xff]  ;;  %v10431_v51 = vld [vmem:[#allocation2 + $0x347] sm:$0xff] }
 0x4ee   : > { %v8805_v13 = vadd.f32 %v28397_v9, %v28396_v1  ;;  %v4530_v38 = vadd.f32 %v26364_v35, %v4492_v54  ;;  %v8975_v14 = vrot.slane %v28400_v56, 4  ;;  %v8993_v54 = vrot.slane %v26430_v10, 4  ;;  %v14736_v46 = vld [vmem:[#allocation2 + $0x47f] sm:$0xff] }
 0x4ef   : > { %22236 = vmatmul.mubr.msk.f32.gmra.mrb[180].mxu0 %vm325_vm0, %v10425_v32  ;;  %v28398_v32 = vld [vmem:[#allocation11_spill] sm:$0xff] }
 0x4f0   : > { %22794 = vmatmul.mubr.msk.f32.gmra.mrb[180].mxu1 %vm325_vm0, %v14731_v44  ;;  %22238 = vmatprep.mubr.msk.f32.mxu0 %vm325_vm0, %v10426_v58  ;;  %v8939_v23 = vrot.slane %v28398_v32, 4  ;;  %v8837_v4 = vadd.f32 %v26364_v35, %v8805_v13  ;;  %v8907_v44 = vrot.slane %v26702_v47, 1  ;;  %v28399_v58 = vld [vmem:[#allocation12_spill] sm:$0xff]  ;;  %4787 = vst.msk [vmem:[%s24242_s1 + $0xf8] sm:$0xff] %vm4531_vm3, %v4530_v38  ;;  %v4793_v53 = vsel %vm4531_vm3, %v4530_v38, 0.0 }
 0x4f1   : > { %22796 = vmatprep.mubr.msk.f32.mxu1 %vm325_vm0, %v14732_v36  ;;  %v8957_v20 = vrot.slane %v28399_v58, 4  ;;  %v4805_v11 = vmul.f32 %v4530_v38, %v4530_v38  ;;  %v8922_v36 = vadd.f32 %v8921_v50, %v26203_v52  ;;  %v4794_v12 = vadd.f32 %v4793_v53, %v4792_v7 }
 0x4f2   : > { %v22075_v34 = vpop.f32.mrb[196].mxu0  ;;  %9093 = vst.msk [vmem:[%s24242_s1 + $0x1f8] sm:$0xff] %vm4531_vm3, %v8837_v4  ;;  %v9099_v2 = vsel %vm4531_vm3, %v8837_v4, 0.0  ;;  %v9111_v57 = vmul.f32 %v8837_v4, %v8837_v4  ;;  %v8940_v52 = vadd.f32 %v8939_v23, %v28398_v32  ;;  %v9011_v13 = vrot.slane %v26450_v43, 4  ;;  %v10432_v32 = vld [vmem:[#allocation2 + $0x34f] sm:$0xff] }
 0x4f3   : > { %v26752_v15 = vpop.f32.mrb[197].mxu0  ;;  %22239 = vmatmul.mubr.msk.f32.gmra.mrb[244].mxu0 %vm325_vm0, %v10427_v33  ;;  %v22633_v24 = vpop.f32.mrb[196].mxu1  ;;  %v4811_v33 = vsel %vm4531_vm3, %v4805_v11, 0.0  ;;  %v26772_v19 = vadd.f32 %v9099_v2, %v9098_v41  ;;  %v4795_v50 = vrot.slane %v4794_v12, 4  ;;  %v8958_v9 = vadd.f32 %v8957_v20, %v28399_v58  ;;  %v14738_v58 = vld [vmem:[#allocation2 + $0x48f] sm:$0xff] }
 0x4f4   : > { %22797 = vmatmul.mubr.msk.f32.gmra.mrb[244].mxu1 %vm325_vm0, %v14733_v61  ;;  %22241 = vmatprep.mubr.msk.f32.mxu0 %vm325_vm0, %v10428_v48  ;;  %v26762_v35 = vpop.f32.mrb[197].mxu1  ;;  %v4812_v7 = vadd.f32 %v4811_v33, %v4810_v29  ;;  %v9117_v1 = vsel %vm4531_vm3, %v9111_v57, 0.0  ;;  %v9029_v61 = vrot.slane %v26536_v63, 4  ;;  %v26785_v41 = vadd.f32 %v8871_v39, %v26686_v3  ;;  %v14739_v57 = vld [vmem:[#allocation2 + $0x497] sm:$0xff] }
 0x4f5   : > { %22799 = vmatprep.mubr.msk.f32.mxu1 %vm325_vm0, %v14734_v42  ;;  %v26780_v48 = vadd.f32 %v9117_v1, %v9116_v17  ;;  %v26788_v29 = vadd.f32 %v8889_v6, %v26699_v60  ;;  %v4796_v38 = vadd.f32 %v4795_v50, %v4794_v12  ;;  %v14737_v42 = vld [vmem:[#allocation2 + $0x487] sm:$0xff]  ;;  %v8923_v23 = vrot.slane %v8922_v36, 2 }
 0x4f6   : > { %v4813_v34 = vrot.slane %v4812_v7, 4  ;;  %v8976_v17 = vadd.f32 %v8975_v14, %v28400_v56  ;;  %v8994_v4 = vadd.f32 %v8993_v54, %v26430_v10  ;;  %v9047_v24 = vrot.slane %v26547_v25, 4  ;;  %v10433_v10 = vld [vmem:[#allocation2 + $0x357] sm:$0xff]  ;;  %v14740_v54 = vld [vmem:[#allocation2 + $0x49f] sm:$0xff] }
 0x4f7   : > { %22242 = vmatmul.mubr.msk.f32.gmra.mrb[184].mxu0 %vm325_vm0, %v10429_v26  ;;  %v26795_v3 = vadd.f32 %v8907_v44, %v26702_v47  ;;  %v9065_v60 = vrot.slane %v26651_v40, 4  ;;  %v4797_v39 = vrot.slane %v4796_v38, 2  ;;  %v8941_v20 = vrot.slane %v8940_v52, 2 }
 0x4f8   : > { %22800 = vmatmul.mubr.msk.f32.gmra.mrb[184].mxu1 %vm325_vm0, %v14735_v37  ;;  %22244 = vmatprep.mubr.msk.f32.mxu0 %vm325_vm0, %v10430_v59  ;;  %v4814_v6 = vadd.f32 %v4813_v34, %v4812_v7  ;;  %v8959_v53 = vrot.slane %v8958_v9, 2  ;;  %v9012_v11 = vadd.f32 %v9011_v13, %v26450_v43  ;;  %v9030_v26 = vadd.f32 %v9029_v61, %v26536_v63  ;;  %v10434_v37 = vld [vmem:[#allocation2 + $0x35f] sm:$0xff] }
 0x4f9   : > { %22802 = vmatprep.mubr.msk.f32.mxu1 %vm325_vm0, %v14736_v46  ;;  %v9083_v47 = vrot.slane %v26667_v31, 4  ;;  %v4798_v44 = vadd.f32 %v4797_v39, %v4796_v38  ;;  %v9101_v2 = vrot.slane %v26772_v19, 4  ;;  %v8924_v59 = vadd.f32 %v8923_v23, %v8922_v36 }
 0x4fa   : > { %v4815_v12 = vrot.slane %v4814_v6, 2  ;;  %v8977_v56 = vrot.slane %v8976_v17, 2  ;;  %v8995_v43 = vrot.slane %v8994_v4, 2  ;;  %v9048_v63 = vadd.f32 %v9047_v24, %v26547_v25  ;;  %v10435_v25 = vld [vmem:[#allocation2 + $0x367] sm:$0xff] }
 0x4fb   : > { %22245 = vmatmul.mubr.msk.f32.gmra.mrb[246].mxu0 %vm325_vm0, %v10431_v51  ;;  %v9066_v33 = vadd.f32 %v9065_v60, %v26651_v40  ;;  %v4799_v46 = vrot.slane %v4798_v44, 1  ;;  %v9119_v7 = vrot.slane %v26780_v48, 4  ;;  %v8942_v61 = vadd.f32 %v8941_v20, %v8940_v52  ;;  %v14741_v24 = vld [vmem:[#allocation2 + $0x4a7] sm:$0xff] }
 0x4fc   : > { %22803 = vmatmul.mubr.msk.f32.gmra.mrb[246].mxu1 %vm325_vm0, %v14737_v42  ;;  %22247 = vmatprep.mubr.msk.f32.mxu0 %vm325_vm0, %v10432_v32  ;;  %v4816_v50 = vadd.f32 %v4815_v12, %v4814_v6  ;;  %v8960_v36 = vadd.f32 %v8959_v53, %v8958_v9  ;;  %v9013_v51 = vrot.slane %v9012_v11, 2  ;;  %v9031_v38 = vrot.slane %v9030_v26, 2  ;;  %v14742_v6 = vld [vmem:[#allocation2 + $0x4af] sm:$0xff] }
 0x4fd   : > { %22805 = vmatprep.mubr.msk.f32.mxu1 %vm325_vm0, %v14738_v58  ;;  %v9084_v40 = vadd.f32 %v9083_v47, %v26667_v31  ;;  %v4800_v42 = vadd.f32 %v4799_v46, %v4798_v44  ;;  %v9102_v23 = vadd.f32 %v9101_v2, %v26772_v19  ;;  %v10436_v58 = vld [vmem:[#allocation2 + $0x36f] sm:$0xff]  ;;  %v8925_v52 = vrot.slane %v8924_v59, 1  ;;  %v14744_v46 = vld [vmem:[#allocation2 + $0x4bf] sm:$0xff] }
 0x4fe   : > { %v26807_v14 = vpop.f32.mrb[202].mxu0  ;;  %v4817_v32 = vrot.slane %v4816_v50, 1  ;;  %v8978_v9 = vadd.f32 %v8977_v56, %v8976_v17  ;;  %v8996_v60 = vadd.f32 %v8995_v43, %v8994_v4  ;;  %v9049_v39 = vrot.slane %v9048_v63, 2  ;;  %v10437_v17 = vld [vmem:[#allocation2 + $0x377] sm:$0xff] }
 0x4ff   : > { %v9558_v1 = vpop.f32.mrb[203].mxu0  ;;  %22248 = vmatmul.mubr.msk.f32.gmra.mrb[188].mxu0 %vm325_vm0, %v10433_v10  ;;  %v26812_v13 = vpop.f32.mrb[202].mxu1  ;;  %v9067_v20 = vrot.slane %v9066_v33, 2  ;;  %v4801_v53 = vadd.f32 %v4800_v42, %v26727_v22  ;;  %v9120_v12 = vadd.f32 %v9119_v7, %v26780_v48  ;;  %v8943_v31 = vrot.slane %v8942_v61, 1  ;;  %v14743_v48 = vld [vmem:[#allocation2 + $0x4b7] sm:$0xff] }
 0x500   : > { %22806 = vmatmul.mubr.msk.f32.gmra.mrb[188].mxu1 %vm325_vm0, %v14739_v57  ;;  %22250 = vmatprep.mubr.msk.f32.mxu0 %vm325_vm0, %v10434_v37  ;;  %v13864_v34 = vpop.f32.mrb[203].mxu1  ;;  %v4818_v10 = vadd.f32 %v4817_v32, %v4816_v50  ;;  %v8961_v47 = vrot.slane %v8960_v36, 1  ;;  %v9014_v19 = vadd.f32 %v9013_v51, %v9012_v11  ;;  %v9032_v44 = vadd.f32 %v9031_v38, %v9030_v26  ;;  %v10438_v37 = vld [vmem:[#allocation2 + $0x37f] sm:$0xff] }
 0x501   : > { %22808 = vmatprep.mubr.msk.f32.mxu1 %vm325_vm0, %v14740_v54  ;;  %v9085_v4 = vrot.slane %v9084_v40, 2  ;;  %v8855_v57 = vadd.f32 %v26683_v30, %v4801_v53  ;;  %v9103_v22 = vrot.slane %v9102_v23, 2  ;;  %v8926_v56 = vadd.f32 %v8925_v52, %v8924_v59 }
 0x502   : > { %v4819_v2 = vadd.f32 %v4818_v10, %v26739_v8  ;;  %v8979_v43 = vrot.slane %v8978_v9, 1  ;;  %v8997_v54 = vrot.slane %v8996_v60, 1  ;;  %v9050_v11 = vadd.f32 %v9049_v39, %v9048_v63  ;;  %v10439_v63 = vld [vmem:[#allocation2 + $0x387] sm:$0xff]  ;;  %v14746_v39 = vld [vmem:[#allocation2 + $0x4cf] sm:$0xff] }
 0x503   : > { %22251 = vmatmul.mubr.msk.f32.gmra.mrb[190].mxu0 %vm325_vm0, %v10435_v25  ;;  %v9068_v50 = vadd.f32 %v9067_v20, %v9066_v33  ;;  %v8891_v1 = vadd.f32 %v26788_v29, %v8855_v57  ;;  %v9121_v51 = vrot.slane %v9120_v12, 2  ;;  %v8944_v38 = vadd.f32 %v8943_v31, %v8942_v61  ;;  %v14748_v57 = vld [vmem:[#allocation2 + $0x4df] sm:$0xff] }
 0x504   : > { %22809 = vmatmul.mubr.msk.f32.gmra.mrb[190].mxu1 %vm325_vm0, %v14741_v24  ;;  %22253 = vmatprep.mubr.msk.f32.mxu0 %vm325_vm0, %v10436_v58  ;;  %v8873_v7 = vadd.f32 %v26785_v41, %v4819_v2  ;;  %v8962_v25 = vadd.f32 %v8961_v47, %v8960_v36  ;;  %v9015_v34 = vrot.slane %v9014_v19, 1  ;;  %v9033_v59 = vrot.slane %v9032_v44, 1  ;;  %v14745_v24 = vld [vmem:[#allocation2 + $0x4c7] sm:$0xff]  ;;  %v10440_v58 = vld [vmem:[#allocation2 + $0x38f] sm:$0xff] }
 0x505   : > { %22811 = vmatprep.mubr.msk.f32.mxu1 %vm325_vm0, %v14742_v6  ;;  %v9086_v41 = vadd.f32 %v9085_v4, %v9084_v40  ;;  %v8927_v42 = vadd.f32 %v8926_v56, %v8891_v1  ;;  %v9104_v32 = vadd.f32 %v9103_v22, %v9102_v23  ;;  %v8980_v61 = vadd.f32 %v8979_v43, %v8978_v9  ;;  %v10442_v4 = vld [vmem:[#allocation2 + $0x39f] sm:$0xff] }
 0x506   : > { %v22090_v26 = vpop.f32.mrb[206].mxu0  ;;  %v8909_v29 = vadd.f32 %v26795_v3, %v8873_v7  ;;  %v8998_v36 = vadd.f32 %v8997_v54, %v8996_v60  ;;  %v9051_v52 = vrot.slane %v9050_v11, 1  ;;  %v9069_v6 = vrot.slane %v9068_v50, 1  ;;  %v10441_v3 = vld [vmem:[#allocation2 + $0x397] sm:$0xff] }
 0x507   : > { %v26829_v8 = vpop.f32.mrb[207].mxu0  ;;  %22254 = vmatmul.mubr.msk.f32.gmra.mrb[248].mxu0 %vm325_vm0, %v10437_v17  ;;  %v22648_v30 = vpop.f32.mrb[206].mxu1  ;;  %v8963_v53 = vadd.f32 %v8962_v25, %v8927_v42  ;;  %v9122_v10 = vadd.f32 %v9121_v51, %v9120_v12  ;;  %v9016_v31 = vadd.f32 %v9015_v34, %v9014_v19  ;;  %v9034_v40 = vadd.f32 %v9033_v59, %v9032_v44  ;;  %v14747_v60 = vld [vmem:[#allocation2 + $0x4d7] sm:$0xff]  ;;  %v10443_v44 = vld [vmem:[#allocation2 + $0x3a7] sm:$0xff]  ;;  %v14752_v42 = vld [vmem:[#allocation2 + $0x4ff] sm:$0xff] }
 0x508   : > { %22812 = vmatmul.mubr.msk.f32.gmra.mrb[248].mxu1 %vm325_vm0, %v14743_v48  ;;  %22256 = vmatprep.mubr.msk.f32.mxu0 %vm325_vm0, %v10438_v37  ;;  %v26834_v33 = vpop.f32.mrb[207].mxu1  ;;  %v8945_v20 = vadd.f32 %v8944_v38, %v8909_v29  ;;  %v9087_v23 = vrot.slane %v9086_v41, 1  ;;  %v9105_v9 = vrot.slane %v9104_v32, 1  ;;  %v9052_v2 = vadd.f32 %v9051_v52, %v9050_v11  ;;  %v14749_v26 = vld [vmem:[#allocation2 + $0x4e7] sm:$0xff]  ;;  %v10444_v11 = vld [vmem:[#allocation2 + $0x3af] sm:$0xff]  ;;  %v10445_v59 = vld [vmem:[#allocation2 + $0x3b7] sm:$0xff] }
 0x509   : > { %22814 = vmatprep.mubr.msk.f32.mxu1 %vm325_vm0, %v14744_v46  ;;  %v8999_v17 = vadd.f32 %v8998_v36, %v8963_v53  ;;  %v9070_v12 = vadd.f32 %v9069_v6, %v9068_v50  ;;  %v9123_v19 = vrot.slane %v9122_v10, 1  ;;  %v14750_v50 = vld [vmem:[#allocation2 + $0x4ef] sm:$0xff]  ;;  %v14751_v29 = vld [vmem:[#allocation2 + $0x4f7] sm:$0xff] }
 0x50a   : > { %v8981_v47 = vadd.f32 %v8980_v61, %v8945_v20  ;;  %v9088_v37 = vadd.f32 %v9087_v23, %v9086_v41  ;;  %v9106_v54 = vadd.f32 %v9105_v9, %v9104_v32  ;;  %v14753_v32 = vld [vmem:[#allocation2 + $0x507] sm:$0xff]  ;;  %v14754_v61 = vld [vmem:[#allocation2 + $0x50f] sm:$0xff]  ;;  %v10449_v20 = vld [vmem:[#allocation2 + $0x3d7] sm:$0xff] }
 0x50b   : > { %22257 = vmatmul.mubr.msk.f32.gmra.mrb[194].mxu0 %vm325_vm0, %v10439_v63  ;;  %v9035_v48 = vadd.f32 %v9034_v40, %v8999_v17  ;;  %v9124_v51 = vadd.f32 %v9123_v19, %v9122_v10  ;;  %v14755_v10 = vld [vmem:[#allocation2 + $0x517] sm:$0xff]  ;;  %v14756_v40 = vld [vmem:[#allocation2 + $0x51f] sm:$0xff]  ;;  %v10865_v19 = vld [vmem:[#allocation2 + $0x2c8] sm:$0xff] }
 0x50c   : > { %22815 = vmatmul.mubr.msk.f32.gmra.mrb[194].mxu1 %vm325_vm0, %v14745_v24  ;;  %22259 = vmatprep.mubr.msk.f32.mxu0 %vm325_vm0, %v10440_v58  ;;  %v9017_v22 = vadd.f32 %v9016_v31, %v8981_v47  ;;  %v10448_v24 = vld [vmem:[#allocation2 + $0x3cf] sm:$0xff]  ;;  %v10450_v31 = vld [vmem:[#allocation2 + $0x3df] sm:$0xff] }
 0x50d   : > { %22817 = vmatprep.mubr.msk.f32.mxu1 %vm325_vm0, %v14746_v39  ;;  %v9071_v43 = vadd.f32 %v9070_v12, %v9035_v48  ;;  %v10862_v23 = vld [vmem:[#allocation2 + $0x2b0] sm:$0xff]  ;;  %v15169_v17 = vld [vmem:[#allocation2 + $0x3f8] sm:$0xff] }
 0x50e   : > { %v9053_v56 = vadd.f32 %v9052_v2, %v9017_v22  ;;  %v15168_v47 = vld [vmem:[#allocation2 + $0x3f0] sm:$0xff] }
 0x50f   : > { %22260 = vmatmul.mubr.msk.f32.gmra.mrb[250].mxu0 %vm325_vm0, %v10441_v3  ;;  %v26846_v1 = vadd.f32 %v9106_v54, %v9071_v43  ;;  %v14757_v3 = vld [vmem:[#allocation2 + $0x527] sm:$0xff]  ;;  %v26889_v22 = vld [vmem:[%s28309_s4 + $0x30] sm:$0xff]  ;;  %v15173_v43 = vld [vmem:[#allocation2 + $0x418] sm:$0xff] }
 0x510   : > { %22818 = vmatmul.mubr.msk.f32.gmra.mrb[250].mxu1 %vm325_vm0, %v14747_v60  ;;  %22262 = vmatprep.mubr.msk.f32.mxu0 %vm325_vm0, %v10442_v4  ;;  %v9089_v7 = vadd.f32 %v9088_v37, %v9053_v56  ;;  %v10864_v60 = vld [vmem:[#allocation2 + $0x2c0] sm:$0xff]  ;;  %v10866_v37 = vld [vmem:[#allocation2 + $0x2d0] sm:$0xff] }
 0x511   : > { %22820 = vmatprep.mubr.msk.f32.mxu1 %vm325_vm0, %v14748_v57  ;;  %v15170_v4 = vld [vmem:[#allocation2 + $0x400] sm:$0xff]  ;;  %v15172_v56 = vld [vmem:[#allocation2 + $0x410] sm:$0xff] }
 0x512   : > { %v22101_v46 = vpop.f32.mrb[208].mxu0  ;;  %v26857_v41 = vadd.f32 %v9124_v51, %v9089_v7  ;;  %v10868_v54 = vld [vmem:[#allocation2 + $0x2e0] sm:$0xff]  ;;  %v10869_v51 = vld [vmem:[#allocation2 + $0x2e8] sm:$0xff] }
 0x513   : > { %v26849_v30 = vadd.f32 %v22101_v46, %v26448_v49  ;;  %v22659_v38 = vpop.f32.mrb[208].mxu1  ;;  %v9791_v25 = vpop.f32.mrb[209].mxu0  ;;  %22263 = vmatmul.mubr.msk.f32.gmra.mrb[198].mxu0 %vm325_vm0, %v10443_v44  ;;  %v10446_v49 = vld [vmem:[#allocation2 + $0x3bf] sm:$0xff] }
 0x514   : > { %v26853_v34 = vadd.f32 %v22659_v38, %v26455_v55  ;;  %22821 = vmatmul.mubr.msk.f32.gmra.mrb[198].mxu1 %vm325_vm0, %v14749_v26  ;;  %22265 = vmatprep.mubr.msk.f32.mxu0 %vm325_vm0, %v10444_v11  ;;  %v14097_v63 = vpop.f32.mrb[209].mxu1  ;;  %v10447_v55 = vld [vmem:[#allocation2 + $0x3c7] sm:$0xff] }
 0x515   : > { %22823 = vmatprep.mubr.msk.f32.mxu1 %vm325_vm0, %v14750_v50  ;;  %v15174_v11 = vld [vmem:[#allocation2 + $0x420] sm:$0xff]  ;;  %v15175_v25 = vld [vmem:[#allocation2 + $0x428] sm:$0xff]  ;;  %v15176_v63 = vld [vmem:[#allocation2 + $0x430] sm:$0xff] }
 0x517   : > { %22266 = vmatmul.mubr.msk.f32.gmra.mrb[200].mxu0 %vm325_vm0, %v10445_v59  ;;  %v10870_v59 = vld [vmem:[#allocation2 + $0x2f0] sm:$0xff] }
 0x518   : > { %22824 = vmatmul.mubr.msk.f32.gmra.mrb[200].mxu1 %vm325_vm0, %v14751_v29  ;;  %22268 = vmatprep.mubr.msk.f32.mxu0 %vm325_vm0, %v10446_v49  ;;  %v15177_v29 = vld [vmem:[#allocation2 + $0x438] sm:$0xff]  ;;  %v10872_v49 = vld [vmem:[#allocation2 + $0x300] sm:$0xff] }
 0x519   : > { %22826 = vmatprep.mubr.msk.f32.mxu1 %vm325_vm0, %v14752_v42  ;;  %v15178_v42 = vld [vmem:[#allocation2 + $0x440] sm:$0xff] }
 0x51a   : > { %v22107_v58 = vpop.f32.mrb[210].mxu0 }
 0x51b   : > { %v22665_v36 = vpop.f32.mrb[210].mxu1  ;;  %v9810_v52 = vpop.f32.mrb[211].mxu0  ;;  %22269 = vmatmul.mubr.msk.f32.gmra.mrb[252].mxu0 %vm325_vm0, %v10447_v55  ;;  %v15179_v55 = vld [vmem:[#allocation2 + $0x448] sm:$0xff]  ;;  %v15180_v58 = vld [vmem:[#allocation2 + $0x450] sm:$0xff] }
 0x51c   : > { %v26866_v39 = vadd.f32 %v9810_v52, %v26491_v21  ;;  %v14116_v6 = vpop.f32.mrb[211].mxu1  ;;  %22827 = vmatmul.mubr.msk.f32.gmra.mrb[252].mxu1 %vm325_vm0, %v14753_v32  ;;  %22271 = vmatprep.mubr.msk.f32.mxu0 %vm325_vm0, %v10448_v24  ;;  %v10451_v21 = vld [vmem:[#allocation2 + $0x3e7] sm:$0xff]  ;;  %v10874_v32 = vld [vmem:[#allocation2 + $0x310] sm:$0xff] }
 0x51d   : > { %v26871_v53 = vadd.f32 %v14116_v6, %v26502_v0  ;;  %22829 = vmatprep.mubr.msk.f32.mxu1 %vm325_vm0, %v14754_v61  ;;  %v10863_v0 = vld [vmem:[#allocation2 + $0x2b8] sm:$0xff] }
 0x51f   : > { %22272 = vmatmul.mubr.msk.f32.gmra.mrb[204].mxu0 %vm325_vm0, %v10449_v20  ;;  %v10875_v20 = vld [vmem:[#allocation2 + $0x318] sm:$0xff] }
 0x520   : > { %22830 = vmatmul.mubr.msk.f32.gmra.mrb[204].mxu1 %vm325_vm0, %v14755_v10  ;;  %22274 = vmatprep.mubr.msk.f32.mxu0 %vm325_vm0, %v10450_v31  ;;  %v15181_v31 = vld [vmem:[#allocation2 + $0x458] sm:$0xff] }
 0x521   : > { %22832 = vmatprep.mubr.msk.f32.mxu1 %vm325_vm0, %v14756_v40  ;;  %v10876_v40 = vld [vmem:[#allocation2 + $0x320] sm:$0xff] }
 0x523   : > { %22275 = vmatmul.mubr.msk.f32.gmra.mrb[254].mxu0 %vm325_vm0, %v10451_v21  ;;  %v15182_v21 = vld [vmem:[#allocation2 + $0x460] sm:$0xff] }
 0x524   : > { %22833 = vmatmul.mubr.msk.f32.gmra.mrb[254].mxu1 %vm325_vm0, %v14757_v3  ;;  %22279 = vmatprep.mubr.msk.f32.mxu0 %vm325_vm0, %v10862_v23  ;;  %v10878_v3 = vld [vmem:[#allocation2 + $0x330] sm:$0xff] }
 0x525   : > { %22837 = vmatprep.mubr.msk.f32.mxu1 %vm325_vm0, %v15168_v47  ;;  %v15184_v47 = vld [vmem:[#allocation2 + $0x470] sm:$0xff] }
 0x526   : > { %v22116_v9 = vpop.f32.mrb[212].mxu0 }
 0x527   : > { %v26883_v2 = vadd.f32 %v22116_v9, %v26562_v18  ;;  %v22674_v57 = vpop.f32.mrb[212].mxu1  ;;  %v9839_v12 = vpop.f32.mrb[213].mxu0  ;;  %22280 = vmatmul.mubr.msk.f32.vlgmr.msra.gmra.mrb[168].mxu0 %vm325_vm0, %v10863_v0  ;;  %v15171_v18 = vld [vmem:[#allocation2 + $0x408] sm:$0xff] }
 0x528   : > { %v26892_v48 = vadd.f32 %v22674_v57, %v26567_v27  ;;  %22838 = vmatmul.mubr.msk.f32.vlgmr.msra.gmra.mrb[168].mxu1 %vm325_vm0, %v15169_v17  ;;  %22340 = vmatpush3.msra.mxu0 %v26572_v28  ;;  %v14145_v44 = vpop.f32.mrb[213].mxu1  ;;  %v10867_v27 = vld [vmem:[#allocation2 + $0x2d8] sm:$0xff] }
 0x529   : > { %22282 = vmatprep.mubr.msk.f32.mxu0 %vm325_vm0, %v10864_v60  ;;  %22840 = vmatprep.mubr.msk.f32.mxu1 %vm325_vm0, %v15170_v4  ;;  %v10879_v4 = vld [vmem:[#allocation2 + $0x338] sm:$0xff]  ;;  %v15186_v44 = vld [vmem:[#allocation2 + $0x480] sm:$0xff] }
 0x52a   : > { %22898 = vmatpush3.msra.mxu1 %v26572_v28  ;;  %22401 = vmatprep.subr.mxu0 %v26889_v22  ;;  %v15185_v12 = vld [vmem:[#allocation2 + $0x478] sm:$0xff] }
 0x52b   : > { %22283 = vmatmul.mubr.msk.f32.gmra.mrb[170].mxu0 %vm325_vm0, %v10865_v19  ;;  %22959 = vmatprep.subr.mxu1 %v26889_v22  ;;  %v10880_v19 = vld [vmem:[#allocation2 + $0x340] sm:$0xff] }
 0x52c   : > { %22841 = vmatmul.mubr.msk.f32.gmra.mrb[170].mxu1 %vm325_vm0, %v15171_v18  ;;  %22285 = vmatprep.mubr.msk.f32.mxu0 %vm325_vm0, %v10866_v37  ;;  %v15187_v18 = vld [vmem:[#allocation2 + $0x488] sm:$0xff]  ;;  %v10882_v37 = vld [vmem:[#allocation2 + $0x350] sm:$0xff] }
 0x52d   : > { %22843 = vmatprep.mubr.msk.f32.mxu1 %vm325_vm0, %v15172_v56  ;;  %v15188_v56 = vld [vmem:[#allocation2 + $0x490] sm:$0xff] }
 0x52e   : > { %v22122_v26 = vpop.f32.mrb[214].mxu0 }
 0x52f   : > { %v22680_v46 = vpop.f32.mrb[214].mxu1  ;;  %v9858_v50 = vpop.f32.mrb[215].mxu0  ;;  %22286 = vmatmul.mubr.msk.f32.gmra.mrb[4].mxu0 %vm325_vm0, %v10867_v27  ;;  %v15189_v27 = vld [vmem:[#allocation2 + $0x498] sm:$0xff]  ;;  %v15190_v26 = vld [vmem:[#allocation2 + $0x4a0] sm:$0xff] }
 0x530   : > { %v26907_v28 = vadd.f32 %v9858_v50, %v26626_v16  ;;  %v14164_v7 = vpop.f32.mrb[215].mxu1  ;;  %22844 = vmatmul.mubr.msk.f32.gmra.mrb[4].mxu1 %vm325_vm0, %v15173_v43  ;;  %22288 = vmatprep.mubr.msk.f32.mxu0 %vm325_vm0, %v10868_v54  ;;  %v10871_v16 = vld [vmem:[#allocation2 + $0x2f8] sm:$0xff]  ;;  %v10884_v43 = vld [vmem:[#allocation2 + $0x360] sm:$0xff] }
 0x531   : > { %v26912_v38 = vadd.f32 %v14164_v7, %v26637_v62  ;;  %22846 = vmatprep.mubr.msk.f32.mxu1 %vm325_vm0, %v15174_v11  ;;  %v10873_v62 = vld [vmem:[#allocation2 + $0x308] sm:$0xff] }
 0x533   : > { %22289 = vmatmul.mubr.msk.f32.gmra.mrb[174].mxu0 %vm325_vm0, %v10869_v51  ;;  %v10885_v51 = vld [vmem:[#allocation2 + $0x368] sm:$0xff] }
 0x534   : > { %22847 = vmatmul.mubr.msk.f32.gmra.mrb[174].mxu1 %vm325_vm0, %v15175_v25  ;;  %22291 = vmatprep.mubr.msk.f32.mxu0 %vm325_vm0, %v10870_v59  ;;  %v15191_v59 = vld [vmem:[#allocation2 + $0x4a8] sm:$0xff] }
 0x535   : > { %22849 = vmatprep.mubr.msk.f32.mxu1 %vm325_vm0, %v15176_v63  ;;  %v10886_v63 = vld [vmem:[#allocation2 + $0x370] sm:$0xff] }
 0x537   : > { %22292 = vmatmul.mubr.msk.f32.gmra.mrb[8].mxu0 %vm325_vm0, %v10871_v16  ;;  %v15192_v16 = vld [vmem:[#allocation2 + $0x4b0] sm:$0xff] }
 0x538   : > { %22850 = vmatmul.mubr.msk.f32.gmra.mrb[8].mxu1 %vm325_vm0, %v15177_v29  ;;  %22294 = vmatprep.mubr.msk.f32.mxu0 %vm325_vm0, %v10872_v49  ;;  %v10888_v29 = vld [vmem:[#allocation2 + $0x380] sm:$0xff] }
 0x539   : > { %22852 = vmatprep.mubr.msk.f32.mxu1 %vm325_vm0, %v15178_v42  ;;  %v15194_v42 = vld [vmem:[#allocation2 + $0x4c0] sm:$0xff] }
 0x53a   : > { %v22131_v24 = vpop.f32.mrb[216].mxu0 }
 0x53b   : > { %v26924_v61 = vadd.f32 %v22131_v24, %v26704_v5  ;;  %v22689_v36 = vpop.f32.mrb[216].mxu1  ;;  %v9887_v52 = vpop.f32.mrb[217].mxu0  ;;  %22295 = vmatmul.mubr.msk.f32.gmra.mrb[178].mxu0 %vm325_vm0, %v10873_v62  ;;  %v10877_v5 = vld [vmem:[#allocation2 + $0x328] sm:$0xff] }
 0x53c   : > { %v26928_v6 = vadd.f32 %v22689_v36, %v26710_v45  ;;  %22853 = vmatmul.mubr.msk.f32.gmra.mrb[178].mxu1 %vm325_vm0, %v15179_v55  ;;  %22297 = vmatprep.mubr.msk.f32.mxu0 %vm325_vm0, %v10874_v32  ;;  %v14193_v10 = vpop.f32.mrb[217].mxu1  ;;  %v15183_v45 = vld [vmem:[#allocation2 + $0x468] sm:$0xff] }
 0x53d   : > { %22855 = vmatprep.mubr.msk.f32.mxu1 %vm325_vm0, %v15180_v58  ;;  %v10889_v58 = vld [vmem:[#allocation2 + $0x388] sm:$0xff]  ;;  %v15196_v10 = vld [vmem:[#allocation2 + $0x4d0] sm:$0xff] }
 0x53e   : > { %v15195_v52 = vld [vmem:[#allocation2 + $0x4c8] sm:$0xff] }
 0x53f   : > { %22298 = vmatmul.mubr.msk.f32.gmra.mrb[180].mxu0 %vm325_vm0, %v10875_v20  ;;  %v10890_v20 = vld [vmem:[#allocation2 + $0x390] sm:$0xff] }
 0x540   : > { %22856 = vmatmul.mubr.msk.f32.gmra.mrb[180].mxu1 %vm325_vm0, %v15181_v31  ;;  %22300 = vmatprep.mubr.msk.f32.mxu0 %vm325_vm0, %v10876_v40  ;;  %v15197_v31 = vld [vmem:[#allocation2 + $0x4d8] sm:$0xff]  ;;  %v10892_v40 = vld [vmem:[#allocation2 + $0x3a0] sm:$0xff] }
 0x541   : > { %22858 = vmatprep.mubr.msk.f32.mxu1 %vm325_vm0, %v15182_v21  ;;  %v15198_v21 = vld [vmem:[#allocation2 + $0x4e0] sm:$0xff] }
 0x542   : > { %v22137_v23 = vpop.f32.mrb[218].mxu0 }
 0x543   : > { %v22695_v0 = vpop.f32.mrb[218].mxu1  ;;  %v9906_v17 = vpop.f32.mrb[219].mxu0  ;;  %22301 = vmatmul.mubr.msk.f32.gmra.mrb[14].mxu0 %vm325_vm0, %v10877_v5  ;;  %v15199_v5 = vld [vmem:[#allocation2 + $0x4e8] sm:$0xff]  ;;  %v15200_v23 = vld [vmem:[#allocation2 + $0x4f0] sm:$0xff] }
 0x544   : > { %v26939_v9 = vadd.f32 %v9906_v17, %v26752_v15  ;;  %v14212_v60 = vpop.f32.mrb[219].mxu1  ;;  %22859 = vmatmul.mubr.msk.f32.gmra.mrb[14].mxu1 %vm325_vm0, %v15183_v45  ;;  %22303 = vmatprep.mubr.msk.f32.mxu0 %vm325_vm0, %v10878_v3  ;;  %v10881_v15 = vld [vmem:[#allocation2 + $0x348] sm:$0xff]  ;;  %v10894_v45 = vld [vmem:[#allocation2 + $0x3b0] sm:$0xff] }
 0x545   : > { %v26944_v57 = vadd.f32 %v14212_v60, %v26762_v35  ;;  %22861 = vmatprep.mubr.msk.f32.mxu1 %vm325_vm0, %v15184_v47  ;;  %v10883_v35 = vld [vmem:[#allocation2 + $0x358] sm:$0xff] }
 0x547   : > { %22304 = vmatmul.mubr.msk.f32.gmra.mrb[184].mxu0 %vm325_vm0, %v10879_v4  ;;  %v10895_v4 = vld [vmem:[#allocation2 + $0x3b8] sm:$0xff] }
 0x548   : > { %22862 = vmatmul.mubr.msk.f32.gmra.mrb[184].mxu1 %vm325_vm0, %v15185_v12  ;;  %22306 = vmatprep.mubr.msk.f32.mxu0 %vm325_vm0, %v10880_v19  ;;  %v15201_v19 = vld [vmem:[#allocation2 + $0x4f8] sm:$0xff] }
 0x549   : > { %22864 = vmatprep.mubr.msk.f32.mxu1 %vm325_vm0, %v15186_v44  ;;  %v10896_v44 = vld [vmem:[#allocation2 + $0x3c0] sm:$0xff] }
 0x54b   : > { %22307 = vmatmul.mubr.msk.f32.gmra.mrb[18].mxu0 %vm325_vm0, %v10881_v15  ;;  %v15202_v15 = vld [vmem:[#allocation2 + $0x500] sm:$0xff] }
 0x54c   : > { %22865 = vmatmul.mubr.msk.f32.gmra.mrb[18].mxu1 %vm325_vm0, %v15187_v18  ;;  %22309 = vmatprep.mubr.msk.f32.mxu0 %vm325_vm0, %v10882_v37  ;;  %v10898_v18 = vld [vmem:[#allocation2 + $0x3d0] sm:$0xff] }
 0x54d   : > { %22867 = vmatprep.mubr.msk.f32.mxu1 %vm325_vm0, %v15188_v56  ;;  %v15204_v56 = vld [vmem:[#allocation2 + $0x510] sm:$0xff] }
 0x54e   : > { %v22146_v54 = vpop.f32.mrb[220].mxu0 }
 0x54f   : > { %v26956_v11 = vadd.f32 %v22146_v54, %v26807_v14  ;;  %v22704_v46 = vpop.f32.mrb[220].mxu1  ;;  %v9935_v50 = vpop.f32.mrb[221].mxu0  ;;  %22310 = vmatmul.mubr.msk.f32.gmra.mrb[188].mxu0 %vm325_vm0, %v10883_v35  ;;  %v10887_v14 = vld [vmem:[#allocation2 + $0x378] sm:$0xff] }
 0x550   : > { %v26960_v7 = vadd.f32 %v22704_v46, %v26812_v13  ;;  %22868 = vmatmul.mubr.msk.f32.gmra.mrb[188].mxu1 %vm325_vm0, %v15189_v27  ;;  %22312 = vmatprep.mubr.msk.f32.mxu0 %vm325_vm0, %v10884_v43  ;;  %v14241_v25 = vpop.f32.mrb[221].mxu1  ;;  %v15193_v13 = vld [vmem:[#allocation2 + $0x4b8] sm:$0xff] }
 0x551   : > { %22870 = vmatprep.mubr.msk.f32.mxu1 %vm325_vm0, %v15190_v26  ;;  %v10899_v26 = vld [vmem:[#allocation2 + $0x3d8] sm:$0xff]  ;;  %v15206_v25 = vld [vmem:[#allocation2 + $0x520] sm:$0xff] }
 0x552   : > { %v15205_v50 = vld [vmem:[#allocation2 + $0x518] sm:$0xff] }
 0x553   : > { %22313 = vmatmul.mubr.msk.f32.gmra.mrb[190].mxu0 %vm325_vm0, %v10885_v51  ;;  %v10900_v51 = vld [vmem:[#allocation2 + $0x3e0] sm:$0xff] }
 0x554   : > { %22871 = vmatmul.mubr.msk.f32.gmra.mrb[190].mxu1 %vm325_vm0, %v15191_v59  ;;  %22315 = vmatprep.mubr.msk.f32.mxu0 %vm325_vm0, %v10886_v63  ;;  %v15207_v59 = vld [vmem:[#allocation2 + $0x528] sm:$0xff]  ;;  %v11312_v63 = vld [vmem:[#allocation2 + $0x2b1] sm:$0xff] }
 0x555   : > { %22873 = vmatprep.mubr.msk.f32.mxu1 %vm325_vm0, %v15192_v16  ;;  %v15618_v16 = vld [vmem:[#allocation2 + $0x3f1] sm:$0xff] }
 0x556   : > { %v22152_v49 = vpop.f32.mrb[222].mxu0 }
 0x557   : > { %v22710_v62 = vpop.f32.mrb[222].mxu1  ;;  %v9954_v55 = vpop.f32.mrb[223].mxu0  ;;  %22316 = vmatmul.mubr.msk.f32.gmra.mrb[24].mxu0 %vm325_vm0, %v10887_v14  ;;  %v15619_v14 = vld [vmem:[#allocation2 + $0x3f9] sm:$0xff]  ;;  %v15620_v49 = vld [vmem:[#allocation2 + $0x401] sm:$0xff] }
 0x558   : > { %v26971_v32 = vadd.f32 %v9954_v55, %v26829_v8  ;;  %v14260_v24 = vpop.f32.mrb[223].mxu1  ;;  %22874 = vmatmul.mubr.msk.f32.gmra.mrb[24].mxu1 %vm325_vm0, %v15193_v13  ;;  %22318 = vmatprep.mubr.msk.f32.mxu0 %vm325_vm0, %v10888_v29  ;;  %v10891_v8 = vld [vmem:[#allocation2 + $0x398] sm:$0xff]  ;;  %v11314_v29 = vld [vmem:[#allocation2 + $0x2c1] sm:$0xff] }
 0x559   : > { %v26976_v36 = vadd.f32 %v14260_v24, %v26834_v33  ;;  %22876 = vmatprep.mubr.msk.f32.mxu1 %vm325_vm0, %v15194_v42  ;;  %v10893_v33 = vld [vmem:[#allocation2 + $0x3a8] sm:$0xff]  ;;  %v27026_v24 = vld [vmem:[%s28309_s4 + $0x38] sm:$0xff] }
 0x55b   : > { %22319 = vmatmul.mubr.msk.f32.gmra.mrb[194].mxu0 %vm325_vm0, %v10889_v58 }
 0x55c   : > { %22877 = vmatmul.mubr.msk.f32.gmra.mrb[194].mxu1 %vm325_vm0, %v15195_v52  ;;  %22321 = vmatprep.mubr.msk.f32.mxu0 %vm325_vm0, %v10890_v20  ;;  %v11315_v52 = vld [vmem:[#allocation2 + $0x2c9] sm:$0xff] }
 0x55d   : > { %22879 = vmatprep.mubr.msk.f32.mxu1 %vm325_vm0, %v15196_v10  ;;  %v11316_v10 = vld [vmem:[#allocation2 + $0x2d1] sm:$0xff] }
 0x55f   : > { %22322 = vmatmul.mubr.msk.f32.gmra.mrb[28].mxu0 %vm325_vm0, %v10891_v8  ;;  %v15622_v8 = vld [vmem:[#allocation2 + $0x411] sm:$0xff] }
 0x560   : > { %22880 = vmatmul.mubr.msk.f32.gmra.mrb[28].mxu1 %vm325_vm0, %v15197_v31  ;;  %22324 = vmatprep.mubr.msk.f32.mxu0 %vm325_vm0, %v10892_v40  ;;  %v15623_v31 = vld [vmem:[#allocation2 + $0x419] sm:$0xff]  ;;  %v11318_v40 = vld [vmem:[#allocation2 + $0x2e1] sm:$0xff] }
 0x561   : > { %22882 = vmatprep.mubr.msk.f32.mxu1 %vm325_vm0, %v15198_v21 }
 0x562   : > { %v22163_v3 = vpop.f32.mrb[224].mxu0 }
 0x563   : > { %v26988_v47 = vadd.f32 %v22163_v3, %v26849_v30  ;;  %v22721_v0 = vpop.f32.mrb[224].mxu1  ;;  %v10209_v17 = vpop.f32.mrb[225].mxu0  ;;  %22325 = vmatmul.mubr.msk.f32.gmra.mrb[198].mxu0 %vm325_vm0, %v10893_v33  ;;  %v10897_v30 = vld [vmem:[#allocation2 + $0x3c8] sm:$0xff] }
 0x564   : > { %v26992_v60 = vadd.f32 %v22721_v0, %v26853_v34  ;;  %22883 = vmatmul.mubr.msk.f32.gmra.mrb[198].mxu1 %vm325_vm0, %v15199_v5  ;;  %22327 = vmatprep.mubr.msk.f32.mxu0 %vm325_vm0, %v10894_v45  ;;  %v14515_v12 = vpop.f32.mrb[225].mxu1  ;;  %v15203_v34 = vld [vmem:[#allocation2 + $0x508] sm:$0xff] }
 0x565   : > { %22885 = vmatprep.mubr.msk.f32.mxu1 %vm325_vm0, %v15200_v23  ;;  %v15624_v33 = vld [vmem:[#allocation2 + $0x421] sm:$0xff]  ;;  %v11319_v23 = vld [vmem:[#allocation2 + $0x2e9] sm:$0xff]  ;;  %v15626_v12 = vld [vmem:[#allocation2 + $0x431] sm:$0xff] }
 0x566   : > { %v15625_v17 = vld [vmem:[#allocation2 + $0x429] sm:$0xff] }
 0x567   : > { %22328 = vmatmul.mubr.msk.f32.gmra.mrb[200].mxu0 %vm325_vm0, %v10895_v4  ;;  %v11320_v4 = vld [vmem:[#allocation2 + $0x2f1] sm:$0xff] }
 0x568   : > { %22886 = vmatmul.mubr.msk.f32.gmra.mrb[200].mxu1 %vm325_vm0, %v15201_v19  ;;  %22330 = vmatprep.mubr.msk.f32.mxu0 %vm325_vm0, %v10896_v44  ;;  %v15627_v19 = vld [vmem:[#allocation2 + $0x439] sm:$0xff]  ;;  %v11322_v44 = vld [vmem:[#allocation2 + $0x301] sm:$0xff] }
 0x569   : > { %22888 = vmatprep.mubr.msk.f32.mxu1 %vm325_vm0, %v15202_v15  ;;  %v15628_v15 = vld [vmem:[#allocation2 + $0x441] sm:$0xff] }
 0x56a   : > { %v22169_v37 = vpop.f32.mrb[226].mxu0 }
 0x56b   : > { %v22727_v35 = vpop.f32.mrb[226].mxu1  ;;  %v10228_v27 = vpop.f32.mrb[227].mxu0  ;;  %22331 = vmatmul.mubr.msk.f32.gmra.mrb[34].mxu0 %vm325_vm0, %v10897_v30  ;;  %v15629_v30 = vld [vmem:[#allocation2 + $0x449] sm:$0xff]  ;;  %v15630_v37 = vld [vmem:[#allocation2 + $0x451] sm:$0xff] }
 0x56c   : > { %v27003_v43 = vadd.f32 %v10228_v27, %v26866_v39  ;;  %v14534_v54 = vpop.f32.mrb[227].mxu1  ;;  %22889 = vmatmul.mubr.msk.f32.gmra.mrb[34].mxu1 %vm325_vm0, %v15203_v34  ;;  %22333 = vmatprep.mubr.msk.f32.mxu0 %vm325_vm0, %v10898_v18  ;;  %v10901_v39 = vld [vmem:[#allocation2 + $0x3e8] sm:$0xff]  ;;  %v11324_v34 = vld [vmem:[#allocation2 + $0x311] sm:$0xff] }
 0x56d   : > { %v27008_v46 = vadd.f32 %v14534_v54, %v26871_v53  ;;  %22891 = vmatprep.mubr.msk.f32.mxu1 %vm325_vm0, %v15204_v56  ;;  %v11313_v53 = vld [vmem:[#allocation2 + $0x2b9] sm:$0xff] }
 0x56f   : > { %22334 = vmatmul.mubr.msk.f32.gmra.mrb[204].mxu0 %vm325_vm0, %v10899_v26  ;;  %v11325_v26 = vld [vmem:[#allocation2 + $0x319] sm:$0xff] }
 0x570   : > { %22892 = vmatmul.mubr.msk.f32.gmra.mrb[204].mxu1 %vm325_vm0, %v15205_v50  ;;  %22336 = vmatprep.mubr.msk.f32.mxu0 %vm325_vm0, %v10900_v51  ;;  %v15631_v51 = vld [vmem:[#allocation2 + $0x459] sm:$0xff] }
 0x571   : > { %22894 = vmatprep.mubr.msk.f32.mxu1 %vm325_vm0, %v15206_v25  ;;  %v11326_v25 = vld [vmem:[#allocation2 + $0x321] sm:$0xff] }
 0x573   : > { %22337 = vmatmul.mubr.msk.f32.gmra.mrb[38].mxu0 %vm325_vm0, %v10901_v39  ;;  %v15632_v39 = vld [vmem:[#allocation2 + $0x461] sm:$0xff] }
 0x574   : > { %22895 = vmatmul.mubr.msk.f32.gmra.mrb[38].mxu1 %vm325_vm0, %v15207_v59  ;;  %22341 = vmatprep.mubr.msk.f32.mxu0 %vm325_vm0, %v11312_v63  ;;  %v11328_v59 = vld [vmem:[#allocation2 + $0x331] sm:$0xff] }
 0x575   : > { %22899 = vmatprep.mubr.msk.f32.mxu1 %vm325_vm0, %v15618_v16  ;;  %v15634_v16 = vld [vmem:[#allocation2 + $0x471] sm:$0xff] }
 0x576   : > { %v22178_v13 = vpop.f32.mrb[228].mxu0 }
 0x577   : > { %v27020_v42 = vadd.f32 %v22178_v13, %v26883_v2  ;;  %v22736_v62 = vpop.f32.mrb[228].mxu1  ;;  %v10257_v55 = vpop.f32.mrb[229].mxu0  ;;  %22342 = vmatmul.mubr.msk.f32.vlgmr.msra.gmra.mrb[168].mxu0 %vm325_vm0, %v11313_v53  ;;  %v15621_v2 = vld [vmem:[#allocation2 + $0x409] sm:$0xff] }
 0x578   : > { %v27029_v58 = vadd.f32 %v22736_v62, %v26892_v48  ;;  %22900 = vmatmul.mubr.msk.f32.vlgmr.msra.gmra.mrb[168].mxu1 %vm325_vm0, %v15619_v14  ;;  %22402 = vmatpush3.msra.mxu0 %v26889_v22  ;;  %v14563_v20 = vpop.f32.mrb[229].mxu1  ;;  %v11317_v48 = vld [vmem:[#allocation2 + $0x2d9] sm:$0xff] }
 0x579   : > { %22344 = vmatprep.mubr.msk.f32.mxu0 %vm325_vm0, %v11314_v29  ;;  %22902 = vmatprep.mubr.msk.f32.mxu1 %vm325_vm0, %v15620_v49  ;;  %v11329_v49 = vld [vmem:[#allocation2 + $0x339] sm:$0xff]  ;;  %v15636_v20 = vld [vmem:[#allocation2 + $0x481] sm:$0xff] }
 0x57a   : > { %22960 = vmatpush3.msra.mxu1 %v26889_v22  ;;  %22463 = vmatprep.subr.mxu0 %v27026_v24  ;;  %v15635_v55 = vld [vmem:[#allocation2 + $0x479] sm:$0xff] }
 0x57b   : > { %22345 = vmatmul.mubr.msk.f32.gmra.mrb[170].mxu0 %vm325_vm0, %v11315_v52  ;;  %23021 = vmatprep.subr.mxu1 %v27026_v24  ;;  %v11330_v52 = vld [vmem:[#allocation2 + $0x341] sm:$0xff] }
 0x57c   : > { %22903 = vmatmul.mubr.msk.f32.gmra.mrb[170].mxu1 %vm325_vm0, %v15621_v2  ;;  %22347 = vmatprep.mubr.msk.f32.mxu0 %vm325_vm0, %v11316_v10  ;;  %v15637_v2 = vld [vmem:[#allocation2 + $0x489] sm:$0xff]  ;;  %v11332_v10 = vld [vmem:[#allocation2 + $0x351] sm:$0xff] }
 0x57d   : > { %22905 = vmatprep.mubr.msk.f32.mxu1 %vm325_vm0, %v15622_v8  ;;  %v15638_v8 = vld [vmem:[#allocation2 + $0x491] sm:$0xff] }
 0x57e   : > { %v22184_v21 = vpop.f32.mrb[230].mxu0 }
 0x57f   : > { %v22742_v5 = vpop.f32.mrb[230].mxu1  ;;  %v10276_v45 = vpop.f32.mrb[231].mxu0  ;;  %22348 = vmatmul.mubr.msk.f32.gmra.mrb[40].mxu0 %vm325_vm0, %v11317_v48  ;;  %v15639_v48 = vld [vmem:[#allocation2 + $0x499] sm:$0xff]  ;;  %v15640_v21 = vld [vmem:[#allocation2 + $0x4a1] sm:$0xff] }
 0x580   : > { %v27044_v22 = vadd.f32 %v10276_v45, %v26907_v28  ;;  %v14582_v3 = vpop.f32.mrb[231].mxu1  ;;  %22906 = vmatmul.mubr.msk.f32.gmra.mrb[40].mxu1 %vm325_vm0, %v15623_v31  ;;  %22350 = vmatprep.mubr.msk.f32.mxu0 %vm325_vm0, %v11318_v40  ;;  %v11321_v28 = vld [vmem:[#allocation2 + $0x2f9] sm:$0xff]  ;;  %v11334_v31 = vld [vmem:[#allocation2 + $0x361] sm:$0xff] }
 0x581   : > { %v27049_v0 = vadd.f32 %v14582_v3, %v26912_v38  ;;  %22908 = vmatprep.mubr.msk.f32.mxu1 %vm325_vm0, %v15624_v33  ;;  %v11323_v38 = vld [vmem:[#allocation2 + $0x309] sm:$0xff] }
 0x583   : > { %22351 = vmatmul.mubr.msk.f32.gmra.mrb[174].mxu0 %vm325_vm0, %v11319_v23  ;;  %v11335_v23 = vld [vmem:[#allocation2 + $0x369] sm:$0xff] }
 0x584   : > { %22909 = vmatmul.mubr.msk.f32.gmra.mrb[174].mxu1 %vm325_vm0, %v15625_v17  ;;  %22353 = vmatprep.mubr.msk.f32.mxu0 %vm325_vm0, %v11320_v4  ;;  %v15641_v4 = vld [vmem:[#allocation2 + $0x4a9] sm:$0xff] }
 0x585   : > { %22911 = vmatprep.mubr.msk.f32.mxu1 %vm325_vm0, %v15626_v12  ;;  %v11336_v12 = vld [vmem:[#allocation2 + $0x371] sm:$0xff] }
 0x587   : > { %22354 = vmatmul.mubr.msk.f32.gmra.mrb[42].mxu0 %vm325_vm0, %v11321_v28  ;;  %v15642_v28 = vld [vmem:[#allocation2 + $0x4b1] sm:$0xff] }
 0x588   : > { %22912 = vmatmul.mubr.msk.f32.gmra.mrb[42].mxu1 %vm325_vm0, %v15627_v19  ;;  %22356 = vmatprep.mubr.msk.f32.mxu0 %vm325_vm0, %v11322_v44  ;;  %v11338_v19 = vld [vmem:[#allocation2 + $0x381] sm:$0xff] }
 0x589   : > { %22914 = vmatprep.mubr.msk.f32.mxu1 %vm325_vm0, %v15628_v15  ;;  %v15644_v15 = vld [vmem:[#allocation2 + $0x4c1] sm:$0xff] }
 0x58a   : > { %v22193_v18 = vpop.f32.mrb[232].mxu0 }
 0x58b   : > { %v27061_v56 = vadd.f32 %v22193_v18, %v26924_v61  ;;  %v22751_v35 = vpop.f32.mrb[232].mxu1  ;;  %v10305_v27 = vpop.f32.mrb[233].mxu0  ;;  %22357 = vmatmul.mubr.msk.f32.gmra.mrb[178].mxu0 %vm325_vm0, %v11323_v38  ;;  %v11327_v61 = vld [vmem:[#allocation2 + $0x329] sm:$0xff] }
 0x58c   : > { %v27065_v54 = vadd.f32 %v22751_v35, %v26928_v6  ;;  %22915 = vmatmul.mubr.msk.f32.gmra.mrb[178].mxu1 %vm325_vm0, %v15629_v30  ;;  %22359 = vmatprep.mubr.msk.f32.mxu0 %vm325_vm0, %v11324_v34  ;;  %v14611_v50 = vpop.f32.mrb[233].mxu1  ;;  %v15633_v6 = vld [vmem:[#allocation2 + $0x469] sm:$0xff] }
 0x58d   : > { %22917 = vmatprep.mubr.msk.f32.mxu1 %vm325_vm0, %v15630_v37  ;;  %v11339_v37 = vld [vmem:[#allocation2 + $0x389] sm:$0xff]  ;;  %v15646_v50 = vld [vmem:[#allocation2 + $0x4d1] sm:$0xff] }
 0x58e   : > { %v15645_v27 = vld [vmem:[#allocation2 + $0x4c9] sm:$0xff] }
 0x58f   : > { %22360 = vmatmul.mubr.msk.f32.gmra.mrb[180].mxu0 %vm325_vm0, %v11325_v26  ;;  %v11340_v26 = vld [vmem:[#allocation2 + $0x391] sm:$0xff] }
 0x590   : > { %22918 = vmatmul.mubr.msk.f32.gmra.mrb[180].mxu1 %vm325_vm0, %v15631_v51  ;;  %22362 = vmatprep.mubr.msk.f32.mxu0 %vm325_vm0, %v11326_v25  ;;  %v15647_v51 = vld [vmem:[#allocation2 + $0x4d9] sm:$0xff]  ;;  %v11342_v25 = vld [vmem:[#allocation2 + $0x3a1] sm:$0xff] }
 0x591   : > { %22920 = vmatprep.mubr.msk.f32.mxu1 %vm325_vm0, %v15632_v39  ;;  %v15648_v39 = vld [vmem:[#allocation2 + $0x4e1] sm:$0xff] }
 0x592   : > { %v22199_v63 = vpop.f32.mrb[234].mxu0 }
 0x593   : > { %v22757_v53 = vpop.f32.mrb[234].mxu1  ;;  %v10324_v14 = vpop.f32.mrb[235].mxu0  ;;  %22363 = vmatmul.mubr.msk.f32.gmra.mrb[44].mxu0 %vm325_vm0, %v11327_v61  ;;  %v15649_v61 = vld [vmem:[#allocation2 + $0x4e9] sm:$0xff]  ;;  %v15650_v63 = vld [vmem:[#allocation2 + $0x4f1] sm:$0xff] }
 0x594   : > { %v27076_v13 = vadd.f32 %v10324_v14, %v26939_v9  ;;  %v14630_v29 = vpop.f32.mrb[235].mxu1  ;;  %22921 = vmatmul.mubr.msk.f32.gmra.mrb[44].mxu1 %vm325_vm0, %v15633_v6  ;;  %22365 = vmatprep.mubr.msk.f32.mxu0 %vm325_vm0, %v11328_v59  ;;  %v11331_v9 = vld [vmem:[#allocation2 + $0x349] sm:$0xff]  ;;  %v11344_v6 = vld [vmem:[#allocation2 + $0x3b1] sm:$0xff] }
 0x595   : > { %v27081_v62 = vadd.f32 %v14630_v29, %v26944_v57  ;;  %22923 = vmatprep.mubr.msk.f32.mxu1 %vm325_vm0, %v15634_v16  ;;  %v11333_v57 = vld [vmem:[#allocation2 + $0x359] sm:$0xff] }
 0x597   : > { %22366 = vmatmul.mubr.msk.f32.gmra.mrb[184].mxu0 %vm325_vm0, %v11329_v49  ;;  %v11345_v49 = vld [vmem:[#allocation2 + $0x3b9] sm:$0xff] }
 0x598   : > { %22924 = vmatmul.mubr.msk.f32.gmra.mrb[184].mxu1 %vm325_vm0, %v15635_v55  ;;  %22368 = vmatprep.mubr.msk.f32.mxu0 %vm325_vm0, %v11330_v52  ;;  %v15651_v52 = vld [vmem:[#allocation2 + $0x4f9] sm:$0xff] }
 0x599   : > { %22926 = vmatprep.mubr.msk.f32.mxu1 %vm325_vm0, %v15636_v20  ;;  %v11346_v20 = vld [vmem:[#allocation2 + $0x3c1] sm:$0xff] }
 0x59b   : > { %22369 = vmatmul.mubr.msk.f32.gmra.mrb[46].mxu0 %vm325_vm0, %v11331_v9  ;;  %v15652_v9 = vld [vmem:[#allocation2 + $0x501] sm:$0xff] }
 0x59c   : > { %22927 = vmatmul.mubr.msk.f32.gmra.mrb[46].mxu1 %vm325_vm0, %v15637_v2  ;;  %22371 = vmatprep.mubr.msk.f32.mxu0 %vm325_vm0, %v11332_v10  ;;  %v11348_v2 = vld [vmem:[#allocation2 + $0x3d1] sm:$0xff] }
 0x59d   : > { %22929 = vmatprep.mubr.msk.f32.mxu1 %vm325_vm0, %v15638_v8  ;;  %v15654_v8 = vld [vmem:[#allocation2 + $0x511] sm:$0xff] }
 0x59e   : > { %v22208_v40 = vpop.f32.mrb[236].mxu0 }
 0x59f   : > { %v27093_v33 = vadd.f32 %v22208_v40, %v26956_v11  ;;  %v22766_v5 = vpop.f32.mrb[236].mxu1  ;;  %v10353_v45 = vpop.f32.mrb[237].mxu0  ;;  %22372 = vmatmul.mubr.msk.f32.gmra.mrb[188].mxu0 %vm325_vm0, %v11333_v57  ;;  %v11337_v11 = vld [vmem:[#allocation2 + $0x379] sm:$0xff] }
 0x5a0   : > { %v27097_v3 = vadd.f32 %v22766_v5, %v26960_v7  ;;  %22930 = vmatmul.mubr.msk.f32.gmra.mrb[188].mxu1 %vm325_vm0, %v15639_v48  ;;  %22374 = vmatprep.mubr.msk.f32.mxu0 %vm325_vm0, %v11334_v31  ;;  %v14659_v17 = vpop.f32.mrb[237].mxu1  ;;  %v15643_v7 = vld [vmem:[#allocation2 + $0x4b9] sm:$0xff] }
 0x5a1   : > { %22932 = vmatprep.mubr.msk.f32.mxu1 %vm325_vm0, %v15640_v21  ;;  %v11349_v21 = vld [vmem:[#allocation2 + $0x3d9] sm:$0xff]  ;;  %v15656_v17 = vld [vmem:[#allocation2 + $0x521] sm:$0xff] }
 0x5a2   : > { %v15655_v45 = vld [vmem:[#allocation2 + $0x519] sm:$0xff] }
 0x5a3   : > { %22375 = vmatmul.mubr.msk.f32.gmra.mrb[190].mxu0 %vm325_vm0, %v11335_v23  ;;  %v11350_v23 = vld [vmem:[#allocation2 + $0x3e1] sm:$0xff] }
 0x5a4   : > { %22933 = vmatmul.mubr.msk.f32.gmra.mrb[190].mxu1 %vm325_vm0, %v15641_v4  ;;  %22377 = vmatprep.mubr.msk.f32.mxu0 %vm325_vm0, %v11336_v12  ;;  %v15657_v4 = vld [vmem:[#allocation2 + $0x529] sm:$0xff]  ;;  %v11762_v12 = vld [vmem:[#allocation2 + $0x2d7] sm:$0xff] }
 0x5a5   : > { %22935 = vmatprep.mubr.msk.f32.mxu1 %vm325_vm0, %v15642_v28  ;;  %v16068_v28 = vld [vmem:[#allocation2 + $0x417] sm:$0xff] }
 0x5a6   : > { %v22214_v44 = vpop.f32.mrb[238].mxu0 }
 0x5a7   : > { %v22772_v38 = vpop.f32.mrb[238].mxu1  ;;  %v10372_v30 = vpop.f32.mrb[239].mxu0  ;;  %22378 = vmatmul.mubr.msk.f32.gmra.mrb[48].mxu0 %vm325_vm0, %v11337_v11  ;;  %v16069_v11 = vld [vmem:[#allocation2 + $0x41f] sm:$0xff]  ;;  %v16070_v44 = vld [vmem:[#allocation2 + $0x427] sm:$0xff] }
 0x5a8   : > { %v27108_v34 = vadd.f32 %v10372_v30, %v26971_v32  ;;  %v14678_v18 = vpop.f32.mrb[239].mxu1  ;;  %22936 = vmatmul.mubr.msk.f32.gmra.mrb[48].mxu1 %vm325_vm0, %v15643_v7  ;;  %22380 = vmatprep.mubr.msk.f32.mxu0 %vm325_vm0, %v11338_v19  ;;  %v11341_v32 = vld [vmem:[#allocation2 + $0x399] sm:$0xff]  ;;  %v11764_v19 = vld [vmem:[#allocation2 + $0x2e7] sm:$0xff] }
 0x5a9   : > { %v27113_v35 = vadd.f32 %v14678_v18, %v26976_v36  ;;  %22938 = vmatprep.mubr.msk.f32.mxu1 %vm325_vm0, %v15644_v15  ;;  %v11343_v36 = vld [vmem:[#allocation2 + $0x3a9] sm:$0xff]  ;;  %v27163_v18 = vld [vmem:[%s28309_s4 + $0x40] sm:$0xff] }
 0x5ab   : > { %22381 = vmatmul.mubr.msk.f32.gmra.mrb[194].mxu0 %vm325_vm0, %v11339_v37 }
 0x5ac   : > { %22939 = vmatmul.mubr.msk.f32.gmra.mrb[194].mxu1 %vm325_vm0, %v15645_v27  ;;  %22383 = vmatprep.mubr.msk.f32.mxu0 %vm325_vm0, %v11340_v26  ;;  %v11765_v27 = vld [vmem:[#allocation2 + $0x2ef] sm:$0xff] }
 0x5ad   : > { %22941 = vmatprep.mubr.msk.f32.mxu1 %vm325_vm0, %v15646_v50  ;;  %v11766_v50 = vld [vmem:[#allocation2 + $0x2f7] sm:$0xff] }
 0x5af   : > { %22384 = vmatmul.mubr.msk.f32.gmra.mrb[50].mxu0 %vm325_vm0, %v11341_v32  ;;  %v16072_v32 = vld [vmem:[#allocation2 + $0x437] sm:$0xff] }
 0x5b0   : > { %22942 = vmatmul.mubr.msk.f32.gmra.mrb[50].mxu1 %vm325_vm0, %v15647_v51  ;;  %22386 = vmatprep.mubr.msk.f32.mxu0 %vm325_vm0, %v11342_v25  ;;  %v16073_v51 = vld [vmem:[#allocation2 + $0x43f] sm:$0xff]  ;;  %v11768_v25 = vld [vmem:[#allocation2 + $0x307] sm:$0xff] }
 0x5b1   : > { %22944 = vmatprep.mubr.msk.f32.mxu1 %vm325_vm0, %v15648_v39 }
 0x5b2   : > { %v22225_v59 = vpop.f32.mrb[240].mxu0 }
 0x5b3   : > { %v27125_v16 = vadd.f32 %v22225_v59, %v26988_v47  ;;  %v22783_v53 = vpop.f32.mrb[240].mxu1  ;;  %v10659_v14 = vpop.f32.mrb[241].mxu0  ;;  %22387 = vmatmul.mubr.msk.f32.gmra.mrb[198].mxu0 %vm325_vm0, %v11343_v36  ;;  %v11347_v47 = vld [vmem:[#allocation2 + $0x3c9] sm:$0xff] }
 0x5b4   : > { %v27129_v29 = vadd.f32 %v22783_v53, %v26992_v60  ;;  %22945 = vmatmul.mubr.msk.f32.gmra.mrb[198].mxu1 %vm325_vm0, %v15649_v61  ;;  %22389 = vmatprep.mubr.msk.f32.mxu0 %vm325_vm0, %v11344_v6  ;;  %v14965_v55 = vpop.f32.mrb[241].mxu1  ;;  %v15653_v60 = vld [vmem:[#allocation2 + $0x509] sm:$0xff] }
 0x5b5   : > { %22947 = vmatprep.mubr.msk.f32.mxu1 %vm325_vm0, %v15650_v63  ;;  %v16074_v36 = vld [vmem:[#allocation2 + $0x447] sm:$0xff]  ;;  %v11769_v63 = vld [vmem:[#allocation2 + $0x30f] sm:$0xff]  ;;  %v16076_v55 = vld [vmem:[#allocation2 + $0x457] sm:$0xff] }
 0x5b6   : > { %v16075_v14 = vld [vmem:[#allocation2 + $0x44f] sm:$0xff] }
 0x5b7   : > { %22390 = vmatmul.mubr.msk.f32.gmra.mrb[200].mxu0 %vm325_vm0, %v11345_v49  ;;  %v11770_v49 = vld [vmem:[#allocation2 + $0x317] sm:$0xff] }
 0x5b8   : > { %22948 = vmatmul.mubr.msk.f32.gmra.mrb[200].mxu1 %vm325_vm0, %v15651_v52  ;;  %22392 = vmatprep.mubr.msk.f32.mxu0 %vm325_vm0, %v11346_v20  ;;  %v16077_v52 = vld [vmem:[#allocation2 + $0x45f] sm:$0xff]  ;;  %v11772_v20 = vld [vmem:[#allocation2 + $0x327] sm:$0xff] }
 0x5b9   : > { %22950 = vmatprep.mubr.msk.f32.mxu1 %vm325_vm0, %v15652_v9  ;;  %v16078_v9 = vld [vmem:[#allocation2 + $0x467] sm:$0xff] }
 0x5ba   : > { %v22231_v10 = vpop.f32.mrb[242].mxu0 }
 0x5bb   : > { %v22789_v57 = vpop.f32.mrb[242].mxu1  ;;  %v10678_v48 = vpop.f32.mrb[243].mxu0  ;;  %22393 = vmatmul.mubr.msk.f32.gmra.mrb[52].mxu0 %vm325_vm0, %v11347_v47  ;;  %v16079_v47 = vld [vmem:[#allocation2 + $0x46f] sm:$0xff]  ;;  %v16080_v10 = vld [vmem:[#allocation2 + $0x477] sm:$0xff] }
 0x5bc   : > { %v27140_v31 = vadd.f32 %v10678_v48, %v27003_v43  ;;  %v14984_v40 = vpop.f32.mrb[243].mxu1  ;;  %22951 = vmatmul.mubr.msk.f32.gmra.mrb[52].mxu1 %vm325_vm0, %v15653_v60  ;;  %22395 = vmatprep.mubr.msk.f32.mxu0 %vm325_vm0, %v11348_v2  ;;  %v11351_v43 = vld [vmem:[#allocation2 + $0x3e9] sm:$0xff]  ;;  %v11774_v60 = vld [vmem:[#allocation2 + $0x337] sm:$0xff] }
 0x5bd   : > { %v27145_v5 = vadd.f32 %v14984_v40, %v27008_v46  ;;  %22953 = vmatprep.mubr.msk.f32.mxu1 %vm325_vm0, %v15654_v8  ;;  %v11763_v46 = vld [vmem:[#allocation2 + $0x2df] sm:$0xff] }
 0x5bf   : > { %22396 = vmatmul.mubr.msk.f32.gmra.mrb[204].mxu0 %vm325_vm0, %v11349_v21  ;;  %v11775_v21 = vld [vmem:[#allocation2 + $0x33f] sm:$0xff] }
 0x5c0   : > { %22954 = vmatmul.mubr.msk.f32.gmra.mrb[204].mxu1 %vm325_vm0, %v15655_v45  ;;  %22398 = vmatprep.mubr.msk.f32.mxu0 %vm325_vm0, %v11350_v23  ;;  %v16081_v23 = vld [vmem:[#allocation2 + $0x47f] sm:$0xff] }
 0x5c1   : > { %22956 = vmatprep.mubr.msk.f32.mxu1 %vm325_vm0, %v15656_v17  ;;  %v11776_v17 = vld [vmem:[#allocation2 + $0x347] sm:$0xff] }
 0x5c3   : > { %22399 = vmatmul.mubr.msk.f32.gmra.mrb[54].mxu0 %vm325_vm0, %v11351_v43  ;;  %v16082_v43 = vld [vmem:[#allocation2 + $0x487] sm:$0xff] }
 0x5c4   : > { %22957 = vmatmul.mubr.msk.f32.gmra.mrb[54].mxu1 %vm325_vm0, %v15657_v4  ;;  %22403 = vmatprep.mubr.msk.f32.mxu0 %vm325_vm0, %v11762_v12  ;;  %v11778_v4 = vld [vmem:[#allocation2 + $0x357] sm:$0xff] }
 0x5c5   : > { %22961 = vmatprep.mubr.msk.f32.mxu1 %vm325_vm0, %v16068_v28  ;;  %v16084_v28 = vld [vmem:[#allocation2 + $0x497] sm:$0xff] }
 0x5c6   : > { %v22240_v7 = vpop.f32.mrb[244].mxu0 }
 0x5c7   : > { %v27157_v15 = vadd.f32 %v22240_v7, %v27020_v42  ;;  %v22798_v38 = vpop.f32.mrb[244].mxu1  ;;  %v10707_v30 = vpop.f32.mrb[245].mxu0  ;;  %22404 = vmatmul.mubr.msk.f32.vlgmr.msra.gmra.mrb[168].mxu0 %vm325_vm0, %v11763_v46  ;;  %v16071_v42 = vld [vmem:[#allocation2 + $0x42f] sm:$0xff] }
 0x5c8   : > { %v27166_v37 = vadd.f32 %v22798_v38, %v27029_v58  ;;  %22962 = vmatmul.mubr.msk.f32.vlgmr.msra.gmra.mrb[168].mxu1 %vm325_vm0, %v16069_v11  ;;  %22464 = vmatpush3.msra.mxu0 %v27026_v24  ;;  %v15013_v26 = vpop.f32.mrb[245].mxu1  ;;  %v11767_v58 = vld [vmem:[#allocation2 + $0x2ff] sm:$0xff] }
 0x5c9   : > { %22406 = vmatprep.mubr.msk.f32.mxu0 %vm325_vm0, %v11764_v19  ;;  %22964 = vmatprep.mubr.msk.f32.mxu1 %vm325_vm0, %v16070_v44  ;;  %v11779_v44 = vld [vmem:[#allocation2 + $0x35f] sm:$0xff]  ;;  %v16086_v26 = vld [vmem:[#allocation2 + $0x4a7] sm:$0xff] }
 0x5ca   : > { %23022 = vmatpush3.msra.mxu1 %v27026_v24  ;;  %22525 = vmatprep.subr.mxu0 %v27163_v18  ;;  %v16085_v30 = vld [vmem:[#allocation2 + $0x49f] sm:$0xff] }
 0x5cb   : > { %22407 = vmatmul.mubr.msk.f32.gmra.mrb[170].mxu0 %vm325_vm0, %v11765_v27  ;;  %23083 = vmatprep.subr.mxu1 %v27163_v18  ;;  %v11780_v27 = vld [vmem:[#allocation2 + $0x367] sm:$0xff] }
 0x5cc   : > { %22965 = vmatmul.mubr.msk.f32.gmra.mrb[170].mxu1 %vm325_vm0, %v16071_v42  ;;  %22409 = vmatprep.mubr.msk.f32.mxu0 %vm325_vm0, %v11766_v50  ;;  %v16087_v42 = vld [vmem:[#allocation2 + $0x4af] sm:$0xff]  ;;  %v11782_v50 = vld [vmem:[#allocation2 + $0x377] sm:$0xff] }
 0x5cd   : > { %22967 = vmatprep.mubr.msk.f32.mxu1 %vm325_vm0, %v16072_v32  ;;  %v16088_v32 = vld [vmem:[#allocation2 + $0x4b7] sm:$0xff] }
 0x5ce   : > { %v22246_v39 = vpop.f32.mrb[246].mxu0 }
 0x5cf   : > { %v22804_v61 = vpop.f32.mrb[246].mxu1  ;;  %v10726_v6 = vpop.f32.mrb[247].mxu0  ;;  %22410 = vmatmul.mubr.msk.f32.gmra.mrb[56].mxu0 %vm325_vm0, %v11767_v58  ;;  %v16089_v58 = vld [vmem:[#allocation2 + $0x4bf] sm:$0xff]  ;;  %v16090_v39 = vld [vmem:[#allocation2 + $0x4c7] sm:$0xff] }
 0x5d0   : > { %v27181_v24 = vadd.f32 %v10726_v6, %v27044_v22  ;;  %v15032_v59 = vpop.f32.mrb[247].mxu1  ;;  %22968 = vmatmul.mubr.msk.f32.gmra.mrb[56].mxu1 %vm325_vm0, %v16073_v51  ;;  %22412 = vmatprep.mubr.msk.f32.mxu0 %vm325_vm0, %v11768_v25  ;;  %v11771_v22 = vld [vmem:[#allocation2 + $0x31f] sm:$0xff]  ;;  %v11784_v51 = vld [vmem:[#allocation2 + $0x387] sm:$0xff] }
 0x5d1   : > { %v27186_v53 = vadd.f32 %v15032_v59, %v27049_v0  ;;  %22970 = vmatprep.mubr.msk.f32.mxu1 %vm325_vm0, %v16074_v36  ;;  %v11773_v0 = vld [vmem:[#allocation2 + $0x32f] sm:$0xff] }
 0x5d3   : > { %22413 = vmatmul.mubr.msk.f32.gmra.mrb[174].mxu0 %vm325_vm0, %v11769_v63  ;;  %v11785_v63 = vld [vmem:[#allocation2 + $0x38f] sm:$0xff] }
 0x5d4   : > { %22971 = vmatmul.mubr.msk.f32.gmra.mrb[174].mxu1 %vm325_vm0, %v16075_v14  ;;  %22415 = vmatprep.mubr.msk.f32.mxu0 %vm325_vm0, %v11770_v49  ;;  %v16091_v49 = vld [vmem:[#allocation2 + $0x4cf] sm:$0xff] }
 0x5d5   : > { %22973 = vmatprep.mubr.msk.f32.mxu1 %vm325_vm0, %v16076_v55  ;;  %v11786_v55 = vld [vmem:[#allocation2 + $0x397] sm:$0xff] }
 0x5d7   : > { %22416 = vmatmul.mubr.msk.f32.gmra.mrb[58].mxu0 %vm325_vm0, %v11771_v22  ;;  %v16092_v22 = vld [vmem:[#allocation2 + $0x4d7] sm:$0xff] }
 0x5d8   : > { %22974 = vmatmul.mubr.msk.f32.gmra.mrb[58].mxu1 %vm325_vm0, %v16077_v52  ;;  %22418 = vmatprep.mubr.msk.f32.mxu0 %vm325_vm0, %v11772_v20  ;;  %v11788_v52 = vld [vmem:[#allocation2 + $0x3a7] sm:$0xff] }
 0x5d9   : > { %22976 = vmatprep.mubr.msk.f32.mxu1 %vm325_vm0, %v16078_v9  ;;  %v16094_v9 = vld [vmem:[#allocation2 + $0x4e7] sm:$0xff] }
 0x5da   : > { %v22255_v2 = vpop.f32.mrb[248].mxu0 }
 0x5db   : > { %v27198_v8 = vadd.f32 %v22255_v2, %v27061_v56  ;;  %v22813_v57 = vpop.f32.mrb[248].mxu1  ;;  %v10755_v48 = vpop.f32.mrb[249].mxu0  ;;  %22419 = vmatmul.mubr.msk.f32.gmra.mrb[178].mxu0 %vm325_vm0, %v11773_v0  ;;  %v11777_v56 = vld [vmem:[#allocation2 + $0x34f] sm:$0xff] }
 0x5dc   : > { %v27202_v40 = vadd.f32 %v22813_v57, %v27065_v54  ;;  %22977 = vmatmul.mubr.msk.f32.gmra.mrb[178].mxu1 %vm325_vm0, %v16079_v47  ;;  %22421 = vmatprep.mubr.msk.f32.mxu0 %vm325_vm0, %v11774_v60  ;;  %v15061_v45 = vpop.f32.mrb[249].mxu1  ;;  %v16083_v54 = vld [vmem:[#allocation2 + $0x48f] sm:$0xff] }
 0x5dd   : > { %22979 = vmatprep.mubr.msk.f32.mxu1 %vm325_vm0, %v16080_v10  ;;  %v11789_v10 = vld [vmem:[#allocation2 + $0x3af] sm:$0xff]  ;;  %v16096_v45 = vld [vmem:[#allocation2 + $0x4f7] sm:$0xff] }
 0x5de   : > { %v16095_v48 = vld [vmem:[#allocation2 + $0x4ef] sm:$0xff] }
 0x5df   : > { %22422 = vmatmul.mubr.msk.f32.gmra.mrb[180].mxu0 %vm325_vm0, %v11775_v21  ;;  %v11790_v21 = vld [vmem:[#allocation2 + $0x3b7] sm:$0xff] }
 0x5e0   : > { %22980 = vmatmul.mubr.msk.f32.gmra.mrb[180].mxu1 %vm325_vm0, %v16081_v23  ;;  %22424 = vmatprep.mubr.msk.f32.mxu0 %vm325_vm0, %v11776_v17  ;;  %v16097_v23 = vld [vmem:[#allocation2 + $0x4ff] sm:$0xff]  ;;  %v11792_v17 = vld [vmem:[#allocation2 + $0x3c7] sm:$0xff] }
 0x5e1   : > { %22982 = vmatprep.mubr.msk.f32.mxu1 %vm325_vm0, %v16082_v43  ;;  %v16098_v43 = vld [vmem:[#allocation2 + $0x507] sm:$0xff] }
 0x5e2   : > { %v22261_v12 = vpop.f32.mrb[250].mxu0 }
 0x5e3   : > { %v22819_v46 = vpop.f32.mrb[250].mxu1  ;;  %v10774_v11 = vpop.f32.mrb[251].mxu0  ;;  %22425 = vmatmul.mubr.msk.f32.gmra.mrb[60].mxu0 %vm325_vm0, %v11777_v56  ;;  %v16099_v56 = vld [vmem:[#allocation2 + $0x50f] sm:$0xff]  ;;  %v16100_v12 = vld [vmem:[#allocation2 + $0x517] sm:$0xff] }
 0x5e4   : > { %v27213_v7 = vadd.f32 %v10774_v11, %v27076_v13  ;;  %v15080_v19 = vpop.f32.mrb[251].mxu1  ;;  %22983 = vmatmul.mubr.msk.f32.gmra.mrb[60].mxu1 %vm325_vm0, %v16083_v54  ;;  %22427 = vmatprep.mubr.msk.f32.mxu0 %vm325_vm0, %v11778_v4  ;;  %v11781_v13 = vld [vmem:[#allocation2 + $0x36f] sm:$0xff]  ;;  %v11794_v54 = vld [vmem:[#allocation2 + $0x3d7] sm:$0xff] }
 0x5e5   : > { %v27218_v38 = vadd.f32 %v15080_v19, %v27081_v62  ;;  %22985 = vmatprep.mubr.msk.f32.mxu1 %vm325_vm0, %v16084_v28  ;;  %v11783_v62 = vld [vmem:[#allocation2 + $0x37f] sm:$0xff] }
 0x5e7   : > { %22428 = vmatmul.mubr.msk.f32.gmra.mrb[184].mxu0 %vm325_vm0, %v11779_v44  ;;  %v11795_v44 = vld [vmem:[#allocation2 + $0x3df] sm:$0xff] }
 0x5e8   : > { %22986 = vmatmul.mubr.msk.f32.gmra.mrb[184].mxu1 %vm325_vm0, %v16085_v30  ;;  %22430 = vmatprep.mubr.msk.f32.mxu0 %vm325_vm0, %v11780_v27  ;;  %v16101_v27 = vld [vmem:[#allocation2 + $0x51f] sm:$0xff] }
 0x5e9   : > { %22988 = vmatprep.mubr.msk.f32.mxu1 %vm325_vm0, %v16086_v26  ;;  %v11796_v26 = vld [vmem:[#allocation2 + $0x3e7] sm:$0xff] }
 0x5eb   : > { %22431 = vmatmul.mubr.msk.f32.gmra.mrb[62].mxu0 %vm325_vm0, %v11781_v13  ;;  %v16102_v13 = vld [vmem:[#allocation2 + $0x527] sm:$0xff] }
 0x5ec   : > { %22989 = vmatmul.mubr.msk.f32.gmra.mrb[62].mxu1 %vm325_vm0, %v16087_v42  ;;  %22433 = vmatprep.mubr.msk.f32.mxu0 %vm325_vm0, %v11782_v50  ;;  %v11798_v42 = vld [vmem:[#allocation2 + $0x3f7] sm:$0xff] }
 0x5ed   : > { %22991 = vmatprep.mubr.msk.f32.mxu1 %vm325_vm0, %v16088_v32  ;;  %v16104_v32 = vld [vmem:[#allocation2 + $0x537] sm:$0xff] }
 0x5ee   : > { %v22270_v25 = vpop.f32.mrb[252].mxu0 }
 0x5ef   : > { %v27230_v36 = vadd.f32 %v22270_v25, %v27093_v33  ;;  %v22828_v61 = vpop.f32.mrb[252].mxu1  ;;  %v10803_v6 = vpop.f32.mrb[253].mxu0  ;;  %22434 = vmatmul.mubr.msk.f32.gmra.mrb[188].mxu0 %vm325_vm0, %v11783_v62  ;;  %v11787_v33 = vld [vmem:[#allocation2 + $0x39f] sm:$0xff] }
 0x5f0   : > { %v27234_v59 = vadd.f32 %v22828_v61, %v27097_v3  ;;  %22992 = vmatmul.mubr.msk.f32.gmra.mrb[188].mxu1 %vm325_vm0, %v16089_v58  ;;  %22436 = vmatprep.mubr.msk.f32.mxu0 %vm325_vm0, %v11784_v51  ;;  %v15109_v14 = vpop.f32.mrb[253].mxu1  ;;  %v16093_v3 = vld [vmem:[#allocation2 + $0x4df] sm:$0xff] }
 0x5f1   : > { %22994 = vmatprep.mubr.msk.f32.mxu1 %vm325_vm0, %v16090_v39  ;;  %v11799_v39 = vld [vmem:[#allocation2 + $0x3ff] sm:$0xff]  ;;  %v16106_v14 = vld [vmem:[#allocation2 + $0x547] sm:$0xff] }
 0x5f2   : > { %v16105_v6 = vld [vmem:[#allocation2 + $0x53f] sm:$0xff] }
 0x5f3   : > { %22437 = vmatmul.mubr.msk.f32.gmra.mrb[190].mxu0 %vm325_vm0, %v11785_v63  ;;  %v11800_v63 = vld [vmem:[#allocation2 + $0x407] sm:$0xff] }
 0x5f4   : > { %22995 = vmatmul.mubr.msk.f32.gmra.mrb[190].mxu1 %vm325_vm0, %v16091_v49  ;;  %22439 = vmatprep.mubr.msk.f32.mxu0 %vm325_vm0, %v11786_v55  ;;  %v16107_v49 = vld [vmem:[#allocation2 + $0x54f] sm:$0xff]  ;;  %v12212_v55 = vld [vmem:[#allocation2 + $0x2d8] sm:$0xff] }
 0x5f5   : > { %22997 = vmatprep.mubr.msk.f32.mxu1 %vm325_vm0, %v16092_v22  ;;  %v16518_v22 = vld [vmem:[#allocation2 + $0x418] sm:$0xff] }
 0x5f6   : > { %v22276_v20 = vpop.f32.mrb[254].mxu0 }
 0x5f7   : > { %v22834_v0 = vpop.f32.mrb[254].mxu1  ;;  %v10822_v47 = vpop.f32.mrb[255].mxu0  ;;  %22440 = vmatmul.mubr.msk.f32.gmra.mrb[64].mxu0 %vm325_vm0, %v11787_v33  ;;  %v16519_v33 = vld [vmem:[#allocation2 + $0x420] sm:$0xff]  ;;  %v16520_v20 = vld [vmem:[#allocation2 + $0x428] sm:$0xff] }
 0x5f8   : > { %v27245_v60 = vadd.f32 %v10822_v47, %v27108_v34  ;;  %v15128_v2 = vpop.f32.mrb[255].mxu1  ;;  %22998 = vmatmul.mubr.msk.f32.gmra.mrb[64].mxu1 %vm325_vm0, %v16093_v3  ;;  %22442 = vmatprep.mubr.msk.f32.mxu0 %vm325_vm0, %v11788_v52  ;;  %v11791_v34 = vld [vmem:[#allocation2 + $0x3bf] sm:$0xff]  ;;  %v12214_v52 = vld [vmem:[#allocation2 + $0x2e8] sm:$0xff] }
 0x5f9   : > { %v27250_v57 = vadd.f32 %v15128_v2, %v27113_v35  ;;  %23000 = vmatprep.mubr.msk.f32.mxu1 %vm325_vm0, %v16094_v9  ;;  %v11793_v35 = vld [vmem:[#allocation2 + $0x3cf] sm:$0xff] }
 0x5fb   : > { %22443 = vmatmul.mubr.msk.f32.gmra.mrb[194].mxu0 %vm325_vm0, %v11789_v10  ;;  %v12215_v10 = vld [vmem:[#allocation2 + $0x2f0] sm:$0xff] }
 0x5fc   : > { %23001 = vmatmul.mubr.msk.f32.gmra.mrb[194].mxu1 %vm325_vm0, %v16095_v48  ;;  %22445 = vmatprep.mubr.msk.f32.mxu0 %vm325_vm0, %v11790_v21  ;;  %v16521_v21 = vld [vmem:[#allocation2 + $0x430] sm:$0xff] }
 0x5fd   : > { %23003 = vmatprep.mubr.msk.f32.mxu1 %vm325_vm0, %v16096_v45  ;;  %v16522_v45 = vld [vmem:[#allocation2 + $0x438] sm:$0xff] }
 0x5ff   : > { %22446 = vmatmul.mubr.msk.f32.gmra.mrb[66].mxu0 %vm325_vm0, %v11791_v34  ;;  %v16523_v34 = vld [vmem:[#allocation2 + $0x440] sm:$0xff] }
 0x600   : > { %23004 = vmatmul.mubr.msk.f32.gmra.mrb[66].mxu1 %vm325_vm0, %v16097_v23  ;;  %22448 = vmatprep.mubr.msk.f32.mxu0 %vm325_vm0, %v11792_v17  ;;  %v12218_v23 = vld [vmem:[#allocation2 + $0x308] sm:$0xff] }
 0x601   : > { %23006 = vmatprep.mubr.msk.f32.mxu1 %vm325_vm0, %v16098_v43  ;;  %v16524_v43 = vld [vmem:[#allocation2 + $0x448] sm:$0xff] }
 0x602   : > { %v22287_v4 = vpop.f32.mrb[4].mxu0 }
 0x603   : > { %v27262_v28 = vadd.f32 %v22287_v4, %v27125_v16  ;;  %v22845_v46 = vpop.f32.mrb[4].mxu1  ;;  %v11109_v11 = vpop.f32.mrb[5].mxu0  ;;  %22449 = vmatmul.mubr.msk.f32.gmra.mrb[198].mxu0 %vm325_vm0, %v11793_v35  ;;  %v11797_v16 = vld [vmem:[#allocation2 + $0x3ef] sm:$0xff] }
 0x604   : > { %v27266_v19 = vadd.f32 %v22845_v46, %v27129_v29  ;;  %23007 = vmatmul.mubr.msk.f32.gmra.mrb[198].mxu1 %vm325_vm0, %v16099_v56  ;;  %22451 = vmatprep.mubr.msk.f32.mxu0 %vm325_vm0, %v11794_v54  ;;  %v15415_v30 = vpop.f32.mrb[5].mxu1  ;;  %v16103_v29 = vld [vmem:[#allocation2 + $0x52f] sm:$0xff]  ;;  %v12220_v11 = vld [vmem:[#allocation2 + $0x318] sm:$0xff] }
 0x605   : > { %23009 = vmatprep.mubr.msk.f32.mxu1 %vm325_vm0, %v16100_v12  ;;  %v12219_v4 = vld [vmem:[#allocation2 + $0x310] sm:$0xff]  ;;  %v16527_v30 = vld [vmem:[#allocation2 + $0x460] sm:$0xff] }
 0x606   : > { %v16525_v46 = vld [vmem:[#allocation2 + $0x450] sm:$0xff] }
 0x607   : > { %22452 = vmatmul.mubr.msk.f32.gmra.mrb[200].mxu0 %vm325_vm0, %v11795_v44  ;;  %v16526_v44 = vld [vmem:[#allocation2 + $0x458] sm:$0xff] }
 0x608   : > { %23010 = vmatmul.mubr.msk.f32.gmra.mrb[200].mxu1 %vm325_vm0, %v16101_v27  ;;  %22454 = vmatprep.mubr.msk.f32.mxu0 %vm325_vm0, %v11796_v26  ;;  %v12222_v27 = vld [vmem:[#allocation2 + $0x328] sm:$0xff] }
 0x609   : > { %23012 = vmatprep.mubr.msk.f32.mxu1 %vm325_vm0, %v16102_v13  ;;  %v16528_v26 = vld [vmem:[#allocation2 + $0x468] sm:$0xff]  ;;  %v16529_v13 = vld [vmem:[#allocation2 + $0x470] sm:$0xff] }
 0x60a   : > { %v22293_v50 = vpop.f32.mrb[8].mxu0 }
 0x60b   : > { %v22851_v62 = vpop.f32.mrb[8].mxu1  ;;  %v11128_v58 = vpop.f32.mrb[9].mxu0  ;;  %22455 = vmatmul.mubr.msk.f32.gmra.mrb[68].mxu0 %vm325_vm0, %v11797_v16  ;;  %v12224_v16 = vld [vmem:[#allocation2 + $0x338] sm:$0xff] }
 0x60c   : > { %v27277_v51 = vadd.f32 %v11128_v58, %v27140_v31  ;;  %v15434_v25 = vpop.f32.mrb[9].mxu1  ;;  %23013 = vmatmul.mubr.msk.f32.gmra.mrb[68].mxu1 %vm325_vm0, %v16103_v29  ;;  %22457 = vmatprep.mubr.msk.f32.mxu0 %vm325_vm0, %v11798_v42  ;;  %v11801_v31 = vld [vmem:[#allocation2 + $0x40f] sm:$0xff]  ;;  %v16530_v42 = vld [vmem:[#allocation2 + $0x478] sm:$0xff] }
 0x60d   : > { %v27282_v61 = vadd.f32 %v15434_v25, %v27145_v5  ;;  %23015 = vmatprep.mubr.msk.f32.mxu1 %vm325_vm0, %v16104_v32  ;;  %v12213_v5 = vld [vmem:[#allocation2 + $0x2e0] sm:$0xff] }
 0x60e   : > { %v12225_v25 = vld [vmem:[#allocation2 + $0x340] sm:$0xff] }
 0x60f   : > { %22458 = vmatmul.mubr.msk.f32.gmra.mrb[204].mxu0 %vm325_vm0, %v11799_v39 }
 0x610   : > { %23016 = vmatmul.mubr.msk.f32.gmra.mrb[204].mxu1 %vm325_vm0, %v16105_v6  ;;  %22460 = vmatprep.mubr.msk.f32.mxu0 %vm325_vm0, %v11800_v63  ;;  %v16531_v6 = vld [vmem:[#allocation2 + $0x480] sm:$0xff]  ;;  %v12226_v63 = vld [vmem:[#allocation2 + $0x348] sm:$0xff] }
 0x611   : > { %23018 = vmatprep.mubr.msk.f32.mxu1 %vm325_vm0, %v16106_v14  ;;  %v16532_v14 = vld [vmem:[#allocation2 + $0x488] sm:$0xff] }
 0x613   : > { %22461 = vmatmul.mubr.msk.f32.gmra.mrb[70].mxu0 %vm325_vm0, %v11801_v31  ;;  %v12228_v31 = vld [vmem:[#allocation2 + $0x358] sm:$0xff] }
 0x614   : > { %23019 = vmatmul.mubr.msk.f32.gmra.mrb[70].mxu1 %vm325_vm0, %v16107_v49  ;;  %22465 = vmatprep.mubr.msk.f32.mxu0 %vm325_vm0, %v12212_v55  ;;  %v16534_v55 = vld [vmem:[#allocation2 + $0x498] sm:$0xff] }
 0x615   : > { %23023 = vmatprep.mubr.msk.f32.mxu1 %vm325_vm0, %v16518_v22 }
 0x616   : > { %v22302_v3 = vpop.f32.mrb[14].mxu0 }
 0x617   : > { %v27294_v9 = vadd.f32 %v22302_v3, %v27157_v15  ;;  %v22860_v0 = vpop.f32.mrb[14].mxu1  ;;  %v11157_v47 = vpop.f32.mrb[15].mxu0  ;;  %22466 = vmatmul.mubr.msk.f32.vlgmr.msra.gmra.mrb[168].mxu0 %vm325_vm0, %v12213_v5  ;;  %v12216_v15 = vld [vmem:[#allocation2 + $0x2f8] sm:$0xff] }
 0x618   : > { %v27298_v2 = vadd.f32 %v22860_v0, %v27166_v37  ;;  %23024 = vmatmul.mubr.msk.f32.vlgmr.msra.gmra.mrb[168].mxu1 %vm325_vm0, %v16519_v33  ;;  %22526 = vmatpush3.msra.mxu0 %v27163_v18  ;;  %v15463_v48 = vpop.f32.mrb[15].mxu1  ;;  %v12217_v37 = vld [vmem:[#allocation2 + $0x300] sm:$0xff]  ;;  %v12230_v47 = vld [vmem:[#allocation2 + $0x368] sm:$0xff] }
 0x619   : > { %22468 = vmatprep.mubr.msk.f32.mxu0 %vm325_vm0, %v12214_v52  ;;  %23026 = vmatprep.mubr.msk.f32.mxu1 %vm325_vm0, %v16520_v20  ;;  %v12229_v52 = vld [vmem:[#allocation2 + $0x360] sm:$0xff]  ;;  %v16537_v48 = vld [vmem:[#allocation2 + $0x4b0] sm:$0xff] }
 0x61a   : > { %23084 = vmatpush3.msra.mxu1 %v27163_v18  ;;  %v16535_v0 = vld [vmem:[#allocation2 + $0x4a0] sm:$0xff] }
 0x61b   : > { %22469 = vmatmul.mubr.msk.f32.gmra.mrb[170].mxu0 %vm325_vm0, %v12215_v10  ;;  %v16536_v10 = vld [vmem:[#allocation2 + $0x4a8] sm:$0xff] }
 0x61c   : > { %23027 = vmatmul.mubr.msk.f32.gmra.mrb[170].mxu1 %vm325_vm0, %v16521_v21  ;;  %22471 = vmatprep.mubr.msk.f32.mxu0 %vm325_vm0, %v12216_v15  ;;  %v12232_v21 = vld [vmem:[#allocation2 + $0x378] sm:$0xff] }
 0x61d   : > { %23029 = vmatprep.mubr.msk.f32.mxu1 %vm325_vm0, %v16522_v45  ;;  %v16538_v15 = vld [vmem:[#allocation2 + $0x4b8] sm:$0xff]  ;;  %v16539_v45 = vld [vmem:[#allocation2 + $0x4c0] sm:$0xff] }
 0x61e   : > { %v22308_v17 = vpop.f32.mrb[18].mxu0 }
 0x61f   : > { %v22866_v35 = vpop.f32.mrb[18].mxu1  ;;  %v11176_v56 = vpop.f32.mrb[19].mxu0  ;;  %22472 = vmatmul.mubr.msk.f32.gmra.mrb[72].mxu0 %vm325_vm0, %v12217_v37  ;;  %v12234_v37 = vld [vmem:[#allocation2 + $0x388] sm:$0xff] }
 0x620   : > { %v27311_v54 = vadd.f32 %v11176_v56, %v27181_v24  ;;  %v15482_v18 = vpop.f32.mrb[19].mxu1  ;;  %23030 = vmatmul.mubr.msk.f32.gmra.mrb[72].mxu1 %vm325_vm0, %v16523_v34  ;;  %22474 = vmatprep.mubr.msk.f32.mxu0 %vm325_vm0, %v12218_v23  ;;  %v12221_v24 = vld [vmem:[#allocation2 + $0x320] sm:$0xff]  ;;  %v16540_v23 = vld [vmem:[#allocation2 + $0x4c8] sm:$0xff] }
 0x621   : > { %v27316_v12 = vadd.f32 %v15482_v18, %v27186_v53  ;;  %23032 = vmatprep.mubr.msk.f32.mxu1 %vm325_vm0, %v16524_v43  ;;  %v12223_v53 = vld [vmem:[#allocation2 + $0x330] sm:$0xff] }
 0x622   : > { %v12235_v18 = vld [vmem:[#allocation2 + $0x390] sm:$0xff] }
 0x623   : > { %22475 = vmatmul.mubr.msk.f32.gmra.mrb[174].mxu0 %vm325_vm0, %v12219_v4 }
 0x624   : > { %23033 = vmatmul.mubr.msk.f32.gmra.mrb[174].mxu1 %vm325_vm0, %v16525_v46  ;;  %22477 = vmatprep.mubr.msk.f32.mxu0 %vm325_vm0, %v12220_v11  ;;  %v16541_v46 = vld [vmem:[#allocation2 + $0x4d0] sm:$0xff]  ;;  %v12236_v11 = vld [vmem:[#allocation2 + $0x398] sm:$0xff] }
 0x625   : > { %23035 = vmatprep.mubr.msk.f32.mxu1 %vm325_vm0, %v16526_v44  ;;  %v16542_v44 = vld [vmem:[#allocation2 + $0x4d8] sm:$0xff] }
 0x627   : > { %22478 = vmatmul.mubr.msk.f32.gmra.mrb[74].mxu0 %vm325_vm0, %v12221_v24  ;;  %v12238_v24 = vld [vmem:[#allocation2 + $0x3a8] sm:$0xff] }
 0x628   : > { %23036 = vmatmul.mubr.msk.f32.gmra.mrb[74].mxu1 %vm325_vm0, %v16527_v30  ;;  %22480 = vmatprep.mubr.msk.f32.mxu0 %vm325_vm0, %v12222_v27  ;;  %v16544_v27 = vld [vmem:[#allocation2 + $0x4e8] sm:$0xff] }
 0x629   : > { %23038 = vmatprep.mubr.msk.f32.mxu1 %vm325_vm0, %v16528_v26 }
 0x62a   : > { %v22317_v29 = vpop.f32.mrb[24].mxu0 }
 0x62b   : > { %v27328_v50 = vadd.f32 %v22317_v29, %v27198_v8  ;;  %v22875_v32 = vpop.f32.mrb[24].mxu1  ;;  %v11205_v62 = vpop.f32.mrb[25].mxu0  ;;  %22481 = vmatmul.mubr.msk.f32.gmra.mrb[178].mxu0 %vm325_vm0, %v12223_v53  ;;  %v12227_v8 = vld [vmem:[#allocation2 + $0x350] sm:$0xff] }
 0x62c   : > { %v27332_v58 = vadd.f32 %v22875_v32, %v27202_v40  ;;  %23039 = vmatmul.mubr.msk.f32.gmra.mrb[178].mxu1 %vm325_vm0, %v16529_v13  ;;  %22483 = vmatprep.mubr.msk.f32.mxu0 %vm325_vm0, %v12224_v16  ;;  %v15511_v39 = vpop.f32.mrb[25].mxu1  ;;  %v16533_v40 = vld [vmem:[#allocation2 + $0x490] sm:$0xff]  ;;  %v12240_v62 = vld [vmem:[#allocation2 + $0x3b8] sm:$0xff] }
 0x62d   : > { %23041 = vmatprep.mubr.msk.f32.mxu1 %vm325_vm0, %v16530_v42  ;;  %v12239_v29 = vld [vmem:[#allocation2 + $0x3b0] sm:$0xff]  ;;  %v16547_v39 = vld [vmem:[#allocation2 + $0x500] sm:$0xff] }
 0x62e   : > { %v16545_v32 = vld [vmem:[#allocation2 + $0x4f0] sm:$0xff] }
 0x62f   : > { %22484 = vmatmul.mubr.msk.f32.gmra.mrb[180].mxu0 %vm325_vm0, %v12225_v25  ;;  %v16546_v25 = vld [vmem:[#allocation2 + $0x4f8] sm:$0xff] }
 0x630   : > { %23042 = vmatmul.mubr.msk.f32.gmra.mrb[180].mxu1 %vm325_vm0, %v16531_v6  ;;  %22486 = vmatprep.mubr.msk.f32.mxu0 %vm325_vm0, %v12226_v63  ;;  %v12242_v6 = vld [vmem:[#allocation2 + $0x3c8] sm:$0xff] }
 0x631   : > { %23044 = vmatprep.mubr.msk.f32.mxu1 %vm325_vm0, %v16532_v14  ;;  %v16548_v63 = vld [vmem:[#allocation2 + $0x508] sm:$0xff]  ;;  %v16549_v14 = vld [vmem:[#allocation2 + $0x510] sm:$0xff] }
 0x632   : > { %v22323_v49 = vpop.f32.mrb[28].mxu0 }
 0x633   : > { %v22881_v22 = vpop.f32.mrb[28].mxu1  ;;  %v11224_v5 = vpop.f32.mrb[29].mxu0  ;;  %22487 = vmatmul.mubr.msk.f32.gmra.mrb[76].mxu0 %vm325_vm0, %v12227_v8  ;;  %v12244_v8 = vld [vmem:[#allocation2 + $0x3d8] sm:$0xff] }
 0x634   : > { %v27343_v33 = vadd.f32 %v11224_v5, %v27213_v7  ;;  %v15530_v3 = vpop.f32.mrb[29].mxu1  ;;  %23045 = vmatmul.mubr.msk.f32.gmra.mrb[76].mxu1 %vm325_vm0, %v16533_v40  ;;  %22489 = vmatprep.mubr.msk.f32.mxu0 %vm325_vm0, %v12228_v31  ;;  %v12231_v7 = vld [vmem:[#allocation2 + $0x370] sm:$0xff]  ;;  %v16550_v31 = vld [vmem:[#allocation2 + $0x518] sm:$0xff] }
 0x635   : > { %v27348_v20 = vadd.f32 %v15530_v3, %v27218_v38  ;;  %23047 = vmatprep.mubr.msk.f32.mxu1 %vm325_vm0, %v16534_v55  ;;  %v12233_v38 = vld [vmem:[#allocation2 + $0x380] sm:$0xff] }
 0x636   : > { %v12245_v3 = vld [vmem:[#allocation2 + $0x3e0] sm:$0xff] }
 0x637   : > { %22490 = vmatmul.mubr.msk.f32.gmra.mrb[184].mxu0 %vm325_vm0, %v12229_v52 }
 0x638   : > { %23048 = vmatmul.mubr.msk.f32.gmra.mrb[184].mxu1 %vm325_vm0, %v16535_v0  ;;  %22492 = vmatprep.mubr.msk.f32.mxu0 %vm325_vm0, %v12230_v47  ;;  %v16551_v0 = vld [vmem:[#allocation2 + $0x520] sm:$0xff]  ;;  %v12246_v47 = vld [vmem:[#allocation2 + $0x3e8] sm:$0xff] }
 0x639   : > { %23050 = vmatprep.mubr.msk.f32.mxu1 %vm325_vm0, %v16536_v10  ;;  %v16552_v10 = vld [vmem:[#allocation2 + $0x528] sm:$0xff] }
 0x63b   : > { %22493 = vmatmul.mubr.msk.f32.gmra.mrb[78].mxu0 %vm325_vm0, %v12231_v7  ;;  %v12248_v7 = vld [vmem:[#allocation2 + $0x3f8] sm:$0xff] }
 0x63c   : > { %23051 = vmatmul.mubr.msk.f32.gmra.mrb[78].mxu1 %vm325_vm0, %v16537_v48  ;;  %22495 = vmatprep.mubr.msk.f32.mxu0 %vm325_vm0, %v12232_v21  ;;  %v16554_v21 = vld [vmem:[#allocation2 + $0x538] sm:$0xff] }
 0x63d   : > { %23053 = vmatprep.mubr.msk.f32.mxu1 %vm325_vm0, %v16538_v15 }
 0x63e   : > { %v22332_v34 = vpop.f32.mrb[34].mxu0 }
 0x63f   : > { %v27360_v17 = vadd.f32 %v22332_v34, %v27230_v36  ;;  %v22890_v43 = vpop.f32.mrb[34].mxu1  ;;  %v11253_v35 = vpop.f32.mrb[35].mxu0  ;;  %22496 = vmatmul.mubr.msk.f32.gmra.mrb[188].mxu0 %vm325_vm0, %v12233_v38  ;;  %v12237_v36 = vld [vmem:[#allocation2 + $0x3a0] sm:$0xff] }
 0x640   : > { %v27364_v56 = vadd.f32 %v22890_v43, %v27234_v59  ;;  %23054 = vmatmul.mubr.msk.f32.gmra.mrb[188].mxu1 %vm325_vm0, %v16539_v45  ;;  %22498 = vmatprep.mubr.msk.f32.mxu0 %vm325_vm0, %v12234_v37  ;;  %v15559_v4 = vpop.f32.mrb[35].mxu1  ;;  %v16543_v59 = vld [vmem:[#allocation2 + $0x4e0] sm:$0xff]  ;;  %v12250_v35 = vld [vmem:[#allocation2 + $0x408] sm:$0xff] }
 0x641   : > { %23056 = vmatprep.mubr.msk.f32.mxu1 %vm325_vm0, %v16540_v23  ;;  %v12249_v34 = vld [vmem:[#allocation2 + $0x400] sm:$0xff]  ;;  %v16557_v4 = vld [vmem:[#allocation2 + $0x550] sm:$0xff] }
 0x642   : > { %v16555_v43 = vld [vmem:[#allocation2 + $0x540] sm:$0xff] }
 0x643   : > { %22499 = vmatmul.mubr.msk.f32.gmra.mrb[190].mxu0 %vm325_vm0, %v12235_v18  ;;  %v16556_v18 = vld [vmem:[#allocation2 + $0x548] sm:$0xff] }
 0x644   : > { %23057 = vmatmul.mubr.msk.f32.gmra.mrb[190].mxu1 %vm325_vm0, %v16541_v46  ;;  %22501 = vmatprep.mubr.msk.f32.mxu0 %vm325_vm0, %v12236_v11  ;;  %v12662_v46 = vld [vmem:[#allocation2 + $0x2d9] sm:$0xff] }
 0x645   : > { %23059 = vmatprep.mubr.msk.f32.mxu1 %vm325_vm0, %v16542_v44  ;;  %v16968_v11 = vld [vmem:[#allocation2 + $0x419] sm:$0xff]  ;;  %v16969_v44 = vld [vmem:[#allocation2 + $0x421] sm:$0xff] }
 0x646   : > { %v22338_v30 = vpop.f32.mrb[38].mxu0 }
 0x647   : > { %v22896_v26 = vpop.f32.mrb[38].mxu1  ;;  %v11272_v53 = vpop.f32.mrb[39].mxu0  ;;  %22502 = vmatmul.mubr.msk.f32.gmra.mrb[80].mxu0 %vm325_vm0, %v12237_v36  ;;  %v12664_v36 = vld [vmem:[#allocation2 + $0x2e9] sm:$0xff] }
 0x648   : > { %v27375_v13 = vadd.f32 %v11272_v53, %v27245_v60  ;;  %v15578_v16 = vpop.f32.mrb[39].mxu1  ;;  %23060 = vmatmul.mubr.msk.f32.gmra.mrb[80].mxu1 %vm325_vm0, %v16543_v59  ;;  %22504 = vmatprep.mubr.msk.f32.mxu0 %vm325_vm0, %v12238_v24  ;;  %v12241_v60 = vld [vmem:[#allocation2 + $0x3c0] sm:$0xff]  ;;  %v16970_v24 = vld [vmem:[#allocation2 + $0x429] sm:$0xff] }
 0x649   : > { %v27380_v42 = vadd.f32 %v15578_v16, %v27250_v57  ;;  %23062 = vmatprep.mubr.msk.f32.mxu1 %vm325_vm0, %v16544_v27  ;;  %v12243_v57 = vld [vmem:[#allocation2 + $0x3d0] sm:$0xff] }
 0x64a   : > { %v12665_v16 = vld [vmem:[#allocation2 + $0x2f1] sm:$0xff] }
 0x64b   : > { %22505 = vmatmul.mubr.msk.f32.gmra.mrb[194].mxu0 %vm325_vm0, %v12239_v29 }
 0x64c   : > { %23063 = vmatmul.mubr.msk.f32.gmra.mrb[194].mxu1 %vm325_vm0, %v16545_v32  ;;  %22507 = vmatprep.mubr.msk.f32.mxu0 %vm325_vm0, %v12240_v62  ;;  %v16971_v32 = vld [vmem:[#allocation2 + $0x431] sm:$0xff]  ;;  %v12666_v62 = vld [vmem:[#allocation2 + $0x2f9] sm:$0xff] }
 0x64d   : > { %23065 = vmatprep.mubr.msk.f32.mxu1 %vm325_vm0, %v16546_v25  ;;  %v16972_v25 = vld [vmem:[#allocation2 + $0x439] sm:$0xff] }
 0x64f   : > { %22508 = vmatmul.mubr.msk.f32.gmra.mrb[82].mxu0 %vm325_vm0, %v12241_v60  ;;  %v12668_v60 = vld [vmem:[#allocation2 + $0x309] sm:$0xff] }
 0x650   : > { %23066 = vmatmul.mubr.msk.f32.gmra.mrb[82].mxu1 %vm325_vm0, %v16547_v39  ;;  %22510 = vmatprep.mubr.msk.f32.mxu0 %vm325_vm0, %v12242_v6  ;;  %v16974_v6 = vld [vmem:[#allocation2 + $0x449] sm:$0xff] }
 0x651   : > { %23068 = vmatprep.mubr.msk.f32.mxu1 %vm325_vm0, %v16548_v63 }
 0x652   : > { %v22349_v40 = vpop.f32.mrb[40].mxu0 }
 0x653   : > { %v27392_v49 = vadd.f32 %v22349_v40, %v27262_v28  ;;  %v22907_v55 = vpop.f32.mrb[40].mxu1  ;;  %v11559_v22 = vpop.f32.mrb[41].mxu0  ;;  %22511 = vmatmul.mubr.msk.f32.gmra.mrb[198].mxu0 %vm325_vm0, %v12243_v57  ;;  %v12247_v28 = vld [vmem:[#allocation2 + $0x3f0] sm:$0xff] }
 0x654   : > { %v27396_v5 = vadd.f32 %v22907_v55, %v27266_v19  ;;  %23069 = vmatmul.mubr.msk.f32.gmra.mrb[198].mxu1 %vm325_vm0, %v16549_v14  ;;  %22513 = vmatprep.mubr.msk.f32.mxu0 %vm325_vm0, %v12244_v8  ;;  %v15865_v52 = vpop.f32.mrb[41].mxu1  ;;  %v16553_v19 = vld [vmem:[#allocation2 + $0x530] sm:$0xff]  ;;  %v12670_v22 = vld [vmem:[#allocation2 + $0x319] sm:$0xff] }
 0x655   : > { %23071 = vmatprep.mubr.msk.f32.mxu1 %vm325_vm0, %v16550_v31  ;;  %v12669_v40 = vld [vmem:[#allocation2 + $0x311] sm:$0xff]  ;;  %v16977_v52 = vld [vmem:[#allocation2 + $0x461] sm:$0xff] }
 0x656   : > { %v16975_v55 = vld [vmem:[#allocation2 + $0x451] sm:$0xff] }
 0x657   : > { %22514 = vmatmul.mubr.msk.f32.gmra.mrb[200].mxu0 %vm325_vm0, %v12245_v3  ;;  %v16976_v3 = vld [vmem:[#allocation2 + $0x459] sm:$0xff] }
 0x658   : > { %23072 = vmatmul.mubr.msk.f32.gmra.mrb[200].mxu1 %vm325_vm0, %v16551_v0  ;;  %22516 = vmatprep.mubr.msk.f32.mxu0 %vm325_vm0, %v12246_v47  ;;  %v12672_v0 = vld [vmem:[#allocation2 + $0x329] sm:$0xff] }
 0x659   : > { %23074 = vmatprep.mubr.msk.f32.mxu1 %vm325_vm0, %v16552_v10  ;;  %v16978_v47 = vld [vmem:[#allocation2 + $0x469] sm:$0xff]  ;;  %v16979_v10 = vld [vmem:[#allocation2 + $0x471] sm:$0xff] }
 0x65a   : > { %v22355_v48 = vpop.f32.mrb[42].mxu0 }
 0x65b   : > { %v22913_v15 = vpop.f32.mrb[42].mxu1  ;;  %v11578_v38 = vpop.f32.mrb[43].mxu0  ;;  %22517 = vmatmul.mubr.msk.f32.gmra.mrb[84].mxu0 %vm325_vm0, %v12247_v28  ;;  %v12674_v28 = vld [vmem:[#allocation2 + $0x339] sm:$0xff] }
 0x65c   : > { %v27407_v45 = vadd.f32 %v11578_v38, %v27277_v51  ;;  %v15884_v37 = vpop.f32.mrb[43].mxu1  ;;  %23075 = vmatmul.mubr.msk.f32.gmra.mrb[84].mxu1 %vm325_vm0, %v16553_v19  ;;  %22519 = vmatprep.mubr.msk.f32.mxu0 %vm325_vm0, %v12248_v7  ;;  %v12251_v51 = vld [vmem:[#allocation2 + $0x410] sm:$0xff]  ;;  %v16980_v7 = vld [vmem:[#allocation2 + $0x479] sm:$0xff] }
 0x65d   : > { %v27412_v23 = vadd.f32 %v15884_v37, %v27282_v61  ;;  %23077 = vmatprep.mubr.msk.f32.mxu1 %vm325_vm0, %v16554_v21  ;;  %v12663_v61 = vld [vmem:[#allocation2 + $0x2e1] sm:$0xff] }
 0x65e   : > { %v12675_v37 = vld [vmem:[#allocation2 + $0x341] sm:$0xff] }
 0x65f   : > { %22520 = vmatmul.mubr.msk.f32.gmra.mrb[204].mxu0 %vm325_vm0, %v12249_v34 }
 0x660   : > { %23078 = vmatmul.mubr.msk.f32.gmra.mrb[204].mxu1 %vm325_vm0, %v16555_v43  ;;  %22522 = vmatprep.mubr.msk.f32.mxu0 %vm325_vm0, %v12250_v35  ;;  %v16981_v43 = vld [vmem:[#allocation2 + $0x481] sm:$0xff]  ;;  %v12676_v35 = vld [vmem:[#allocation2 + $0x349] sm:$0xff] }
 0x661   : > { %23080 = vmatprep.mubr.msk.f32.mxu1 %vm325_vm0, %v16556_v18  ;;  %v16982_v18 = vld [vmem:[#allocation2 + $0x489] sm:$0xff] }
 0x663   : > { %22523 = vmatmul.mubr.msk.f32.gmra.mrb[86].mxu0 %vm325_vm0, %v12251_v51  ;;  %v12678_v51 = vld [vmem:[#allocation2 + $0x359] sm:$0xff] }
 0x664   : > { %23081 = vmatmul.mubr.msk.f32.gmra.mrb[86].mxu1 %vm325_vm0, %v16557_v4  ;;  %22527 = vmatprep.mubr.msk.f32.mxu0 %vm325_vm0, %v12662_v46  ;;  %v16984_v46 = vld [vmem:[#allocation2 + $0x499] sm:$0xff] }
 0x665   : > { %23085 = vmatprep.mubr.msk.f32.mxu1 %vm325_vm0, %v16968_v11 }
 0x666   : > { %v22364_v59 = vpop.f32.mrb[44].mxu0 }
 0x667   : > { %v27424_v30 = vadd.f32 %v22364_v59, %v27294_v9  ;;  %v22922_v27 = vpop.f32.mrb[44].mxu1  ;;  %v11607_v26 = vpop.f32.mrb[45].mxu0  ;;  %22528 = vmatmul.mubr.msk.f32.vlgmr.msra.gmra.mrb[168].mxu0 %vm325_vm0, %v12663_v61  ;;  %v12667_v9 = vld [vmem:[#allocation2 + $0x301] sm:$0xff] }
 0x668   : > { %v27428_v53 = vadd.f32 %v22922_v27, %v27298_v2  ;;  %23086 = vmatmul.mubr.msk.f32.vlgmr.msra.gmra.mrb[168].mxu1 %vm325_vm0, %v16969_v44  ;;  %22530 = vmatprep.mubr.msk.f32.mxu0 %vm325_vm0, %v12664_v36  ;;  %v15913_v29 = vpop.f32.mrb[45].mxu1  ;;  %v16973_v2 = vld [vmem:[#allocation2 + $0x441] sm:$0xff]  ;;  %v12680_v26 = vld [vmem:[#allocation2 + $0x369] sm:$0xff] }
 0x669   : > { %23088 = vmatprep.mubr.msk.f32.mxu1 %vm325_vm0, %v16970_v24  ;;  %v12679_v59 = vld [vmem:[#allocation2 + $0x361] sm:$0xff]  ;;  %v16987_v29 = vld [vmem:[#allocation2 + $0x4b1] sm:$0xff] }
 0x66a   : > { %v16985_v27 = vld [vmem:[#allocation2 + $0x4a1] sm:$0xff] }
 0x66b   : > { %22531 = vmatmul.mubr.msk.f32.gmra.mrb[170].mxu0 %vm325_vm0, %v12665_v16  ;;  %v16986_v16 = vld [vmem:[#allocation2 + $0x4a9] sm:$0xff] }
 0x66c   : > { %23089 = vmatmul.mubr.msk.f32.gmra.mrb[170].mxu1 %vm325_vm0, %v16971_v32  ;;  %22533 = vmatprep.mubr.msk.f32.mxu0 %vm325_vm0, %v12666_v62  ;;  %v12682_v32 = vld [vmem:[#allocation2 + $0x379] sm:$0xff] }
 0x66d   : > { %23091 = vmatprep.mubr.msk.f32.mxu1 %vm325_vm0, %v16972_v25  ;;  %v16988_v62 = vld [vmem:[#allocation2 + $0x4b9] sm:$0xff]  ;;  %v16989_v25 = vld [vmem:[#allocation2 + $0x4c1] sm:$0xff] }
 0x66e   : > { %v22370_v39 = vpop.f32.mrb[46].mxu0 }
 0x66f   : > { %v22928_v63 = vpop.f32.mrb[46].mxu1  ;;  %v11626_v57 = vpop.f32.mrb[47].mxu0  ;;  %22534 = vmatmul.mubr.msk.f32.gmra.mrb[88].mxu0 %vm325_vm0, %v12667_v9  ;;  %v12684_v9 = vld [vmem:[#allocation2 + $0x389] sm:$0xff] }
 0x670   : > { %v27439_v14 = vadd.f32 %v11626_v57, %v27311_v54  ;;  %v15932_v8 = vpop.f32.mrb[47].mxu1  ;;  %23092 = vmatmul.mubr.msk.f32.gmra.mrb[88].mxu1 %vm325_vm0, %v16973_v2  ;;  %22536 = vmatprep.mubr.msk.f32.mxu0 %vm325_vm0, %v12668_v60  ;;  %v12671_v54 = vld [vmem:[#allocation2 + $0x321] sm:$0xff]  ;;  %v16990_v60 = vld [vmem:[#allocation2 + $0x4c9] sm:$0xff] }
 0x671   : > { %v27444_v31 = vadd.f32 %v15932_v8, %v27316_v12  ;;  %23094 = vmatprep.mubr.msk.f32.mxu1 %vm325_vm0, %v16974_v6  ;;  %v12673_v12 = vld [vmem:[#allocation2 + $0x331] sm:$0xff] }
 0x672   : > { %v12685_v8 = vld [vmem:[#allocation2 + $0x391] sm:$0xff] }
 0x673   : > { %22537 = vmatmul.mubr.msk.f32.gmra.mrb[174].mxu0 %vm325_vm0, %v12669_v40 }
 0x674   : > { %23095 = vmatmul.mubr.msk.f32.gmra.mrb[174].mxu1 %vm325_vm0, %v16975_v55  ;;  %22539 = vmatprep.mubr.msk.f32.mxu0 %vm325_vm0, %v12670_v22  ;;  %v16991_v55 = vld [vmem:[#allocation2 + $0x4d1] sm:$0xff]  ;;  %v12686_v22 = vld [vmem:[#allocation2 + $0x399] sm:$0xff] }
 0x675   : > { %23097 = vmatprep.mubr.msk.f32.mxu1 %vm325_vm0, %v16976_v3  ;;  %v16992_v3 = vld [vmem:[#allocation2 + $0x4d9] sm:$0xff] }
 0x677   : > { %22540 = vmatmul.mubr.msk.f32.gmra.mrb[90].mxu0 %vm325_vm0, %v12671_v54  ;;  %v12688_v54 = vld [vmem:[#allocation2 + $0x3a9] sm:$0xff] }
 0x678   : > { %23098 = vmatmul.mubr.msk.f32.gmra.mrb[90].mxu1 %vm325_vm0, %v16977_v52  ;;  %22542 = vmatprep.mubr.msk.f32.mxu0 %vm325_vm0, %v12672_v0  ;;  %v16994_v0 = vld [vmem:[#allocation2 + $0x4e9] sm:$0xff] }
 0x679   : > { %23100 = vmatprep.mubr.msk.f32.mxu1 %vm325_vm0, %v16978_v47 }
 0x67a   : > { %v22379_v19 = vpop.f32.mrb[48].mxu0 }
 0x67b   : > { %v27456_v48 = vadd.f32 %v22379_v19, %v27328_v50  ;;  %v22937_v21 = vpop.f32.mrb[48].mxu1  ;;  %v11655_v15 = vpop.f32.mrb[49].mxu0  ;;  %22543 = vmatmul.mubr.msk.f32.gmra.mrb[178].mxu0 %vm325_vm0, %v12673_v12  ;;  %v12677_v50 = vld [vmem:[#allocation2 + $0x351] sm:$0xff] }
 0x67c   : > { %v27460_v38 = vadd.f32 %v22937_v21, %v27332_v58  ;;  %23101 = vmatmul.mubr.msk.f32.gmra.mrb[178].mxu1 %vm325_vm0, %v16979_v10  ;;  %22545 = vmatprep.mubr.msk.f32.mxu0 %vm325_vm0, %v12674_v28  ;;  %v15961_v34 = vpop.f32.mrb[49].mxu1  ;;  %v16983_v58 = vld [vmem:[#allocation2 + $0x491] sm:$0xff]  ;;  %v12690_v15 = vld [vmem:[#allocation2 + $0x3b9] sm:$0xff] }
 0x67d   : > { %23103 = vmatprep.mubr.msk.f32.mxu1 %vm325_vm0, %v16980_v7  ;;  %v12689_v19 = vld [vmem:[#allocation2 + $0x3b1] sm:$0xff]  ;;  %v16997_v34 = vld [vmem:[#allocation2 + $0x501] sm:$0xff] }
 0x67e   : > { %v16995_v21 = vld [vmem:[#allocation2 + $0x4f1] sm:$0xff] }
 0x67f   : > { %22546 = vmatmul.mubr.msk.f32.gmra.mrb[180].mxu0 %vm325_vm0, %v12675_v37  ;;  %v16996_v37 = vld [vmem:[#allocation2 + $0x4f9] sm:$0xff] }
 0x680   : > { %23104 = vmatmul.mubr.msk.f32.gmra.mrb[180].mxu1 %vm325_vm0, %v16981_v43  ;;  %22548 = vmatprep.mubr.msk.f32.mxu0 %vm325_vm0, %v12676_v35  ;;  %v12692_v43 = vld [vmem:[#allocation2 + $0x3c9] sm:$0xff] }
 0x681   : > { %23106 = vmatprep.mubr.msk.f32.mxu1 %vm325_vm0, %v16982_v18  ;;  %v16998_v35 = vld [vmem:[#allocation2 + $0x509] sm:$0xff]  ;;  %v16999_v18 = vld [vmem:[#allocation2 + $0x511] sm:$0xff] }
 0x682   : > { %v22385_v4 = vpop.f32.mrb[50].mxu0 }
 0x683   : > { %v22943_v11 = vpop.f32.mrb[50].mxu1  ;;  %v11674_v61 = vpop.f32.mrb[51].mxu0  ;;  %22549 = vmatmul.mubr.msk.f32.gmra.mrb[92].mxu0 %vm325_vm0, %v12677_v50  ;;  %v12694_v50 = vld [vmem:[#allocation2 + $0x3d9] sm:$0xff] }
 0x684   : > { %v27471_v44 = vadd.f32 %v11674_v61, %v27343_v33  ;;  %v15980_v36 = vpop.f32.mrb[51].mxu1  ;;  %23107 = vmatmul.mubr.msk.f32.gmra.mrb[92].mxu1 %vm325_vm0, %v16983_v58  ;;  %22551 = vmatprep.mubr.msk.f32.mxu0 %vm325_vm0, %v12678_v51  ;;  %v12681_v33 = vld [vmem:[#allocation2 + $0x371] sm:$0xff]  ;;  %v17000_v51 = vld [vmem:[#allocation2 + $0x519] sm:$0xff] }
 0x685   : > { %v27476_v24 = vadd.f32 %v15980_v36, %v27348_v20  ;;  %23109 = vmatprep.mubr.msk.f32.mxu1 %vm325_vm0, %v16984_v46  ;;  %v12683_v20 = vld [vmem:[#allocation2 + $0x381] sm:$0xff] }
 0x686   : > { %v12695_v36 = vld [vmem:[#allocation2 + $0x3e1] sm:$0xff] }
 0x687   : > { %22552 = vmatmul.mubr.msk.f32.gmra.mrb[184].mxu0 %vm325_vm0, %v12679_v59 }
 0x688   : > { %23110 = vmatmul.mubr.msk.f32.gmra.mrb[184].mxu1 %vm325_vm0, %v16985_v27  ;;  %22554 = vmatprep.mubr.msk.f32.mxu0 %vm325_vm0, %v12680_v26  ;;  %v17001_v27 = vld [vmem:[#allocation2 + $0x521] sm:$0xff]  ;;  %v12696_v26 = vld [vmem:[#allocation2 + $0x3e9] sm:$0xff] }
 0x689   : > { %23112 = vmatprep.mubr.msk.f32.mxu1 %vm325_vm0, %v16986_v16  ;;  %v17002_v16 = vld [vmem:[#allocation2 + $0x529] sm:$0xff] }
 0x68b   : > { %22555 = vmatmul.mubr.msk.f32.gmra.mrb[94].mxu0 %vm325_vm0, %v12681_v33  ;;  %v12698_v33 = vld [vmem:[#allocation2 + $0x3f9] sm:$0xff] }
 0x68c   : > { %23113 = vmatmul.mubr.msk.f32.gmra.mrb[94].mxu1 %vm325_vm0, %v16987_v29  ;;  %22557 = vmatprep.mubr.msk.f32.mxu0 %vm325_vm0, %v12682_v32  ;;  %v17004_v32 = vld [vmem:[#allocation2 + $0x539] sm:$0xff] }
 0x68d   : > { %23115 = vmatprep.mubr.msk.f32.mxu1 %vm325_vm0, %v16988_v62 }
 0x68e   : > { %v22394_v2 = vpop.f32.mrb[52].mxu0 }
 0x68f   : > { %v27488_v39 = vadd.f32 %v22394_v2, %v27360_v17  ;;  %v22952_v6 = vpop.f32.mrb[52].mxu1  ;;  %v11703_v63 = vpop.f32.mrb[53].mxu0  ;;  %22558 = vmatmul.mubr.msk.f32.gmra.mrb[188].mxu0 %vm325_vm0, %v12683_v20  ;;  %v12687_v17 = vld [vmem:[#allocation2 + $0x3a1] sm:$0xff] }
 0x690   : > { %v27492_v57 = vadd.f32 %v22952_v6, %v27364_v56  ;;  %23116 = vmatmul.mubr.msk.f32.gmra.mrb[188].mxu1 %vm325_vm0, %v16989_v25  ;;  %22560 = vmatprep.mubr.msk.f32.mxu0 %vm325_vm0, %v12684_v9  ;;  %v16009_v40 = vpop.f32.mrb[53].mxu1  ;;  %v16993_v56 = vld [vmem:[#allocation2 + $0x4e1] sm:$0xff]  ;;  %v12700_v63 = vld [vmem:[#allocation2 + $0x409] sm:$0xff] }
 0x691   : > { %23118 = vmatprep.mubr.msk.f32.mxu1 %vm325_vm0, %v16990_v60  ;;  %v12699_v2 = vld [vmem:[#allocation2 + $0x401] sm:$0xff]  ;;  %v17007_v40 = vld [vmem:[#allocation2 + $0x551] sm:$0xff] }
 0x692   : > { %v17005_v6 = vld [vmem:[#allocation2 + $0x541] sm:$0xff] }
 0x693   : > { %22561 = vmatmul.mubr.msk.f32.gmra.mrb[190].mxu0 %vm325_vm0, %v12685_v8  ;;  %v17006_v8 = vld [vmem:[#allocation2 + $0x549] sm:$0xff] }
 0x694   : > { %23119 = vmatmul.mubr.msk.f32.gmra.mrb[190].mxu1 %vm325_vm0, %v16991_v55  ;;  %22563 = vmatprep.mubr.msk.f32.mxu0 %vm325_vm0, %v12686_v22 }
 0x695   : > { %23121 = vmatprep.mubr.msk.f32.mxu1 %vm325_vm0, %v16992_v3 }
 0x696   : > { %v22400_v52 = vpop.f32.mrb[54].mxu0 }
 0x697   : > { %v22958_v47 = vpop.f32.mrb[54].mxu1  ;;  %v11722_v12 = vpop.f32.mrb[55].mxu0  ;;  %22564 = vmatmul.mubr.msk.f32.gmra.mrb[96].mxu0 %vm325_vm0, %v12687_v17 }
 0x698   : > { %v27503_v10 = vadd.f32 %v11722_v12, %v27375_v13  ;;  %v16028_v28 = vpop.f32.mrb[55].mxu1  ;;  %23122 = vmatmul.mubr.msk.f32.gmra.mrb[96].mxu1 %vm325_vm0, %v16993_v56  ;;  %22566 = vmatprep.mubr.msk.f32.mxu0 %vm325_vm0, %v12688_v54  ;;  %v12691_v13 = vld [vmem:[#allocation2 + $0x3c1] sm:$0xff] }
 0x699   : > { %v27508_v7 = vadd.f32 %v16028_v28, %v27380_v42  ;;  %23124 = vmatprep.mubr.msk.f32.mxu1 %vm325_vm0, %v16994_v0  ;;  %v12693_v42 = vld [vmem:[#allocation2 + $0x3d1] sm:$0xff] }
 0x69b   : > { %22567 = vmatmul.mubr.msk.f32.gmra.mrb[194].mxu0 %vm325_vm0, %v12689_v19 }
 0x69c   : > { %23125 = vmatmul.mubr.msk.f32.gmra.mrb[194].mxu1 %vm325_vm0, %v16995_v21  ;;  %22569 = vmatprep.mubr.msk.f32.mxu0 %vm325_vm0, %v12690_v15 }
 0x69d   : > { %23127 = vmatprep.mubr.msk.f32.mxu1 %vm325_vm0, %v16996_v37 }
 0x69f   : > { %22570 = vmatmul.mubr.msk.f32.gmra.mrb[98].mxu0 %vm325_vm0, %v12691_v13 }
 0x6a0   : > { %23128 = vmatmul.mubr.msk.f32.gmra.mrb[98].mxu1 %vm325_vm0, %v16997_v34  ;;  %22572 = vmatprep.mubr.msk.f32.mxu0 %vm325_vm0, %v12692_v43 }
 0x6a1   : > { %23130 = vmatprep.mubr.msk.f32.mxu1 %vm325_vm0, %v16998_v35 }
 0x6a2   : > { %v22411_v58 = vpop.f32.mrb[56].mxu0 }
 0x6a3   : > { %v27520_v4 = vadd.f32 %v22411_v58, %v27392_v49  ;;  %v22969_v46 = vpop.f32.mrb[56].mxu1  ;;  %v12009_v11 = vpop.f32.mrb[57].mxu0  ;;  %22573 = vmatmul.mubr.msk.f32.gmra.mrb[198].mxu0 %vm325_vm0, %v12693_v42  ;;  %v12697_v49 = vld [vmem:[#allocation2 + $0x3f1] sm:$0xff] }
 0x6a4   : > { %v27524_v61 = vadd.f32 %v22969_v46, %v27396_v5  ;;  %23131 = vmatmul.mubr.msk.f32.gmra.mrb[198].mxu1 %vm325_vm0, %v16999_v18  ;;  %22575 = vmatprep.mubr.msk.f32.mxu0 %vm325_vm0, %v12694_v50  ;;  %v16315_v59 = vpop.f32.mrb[57].mxu1  ;;  %v17003_v5 = vld [vmem:[#allocation2 + $0x531] sm:$0xff] }
 0x6a5   : > { %23133 = vmatprep.mubr.msk.f32.mxu1 %vm325_vm0, %v17000_v51 }
 0x6a7   : > { %22576 = vmatmul.mubr.msk.f32.gmra.mrb[200].mxu0 %vm325_vm0, %v12695_v36 }
 0x6a8   : > { %23134 = vmatmul.mubr.msk.f32.gmra.mrb[200].mxu1 %vm325_vm0, %v17001_v27  ;;  %22578 = vmatprep.mubr.msk.f32.mxu0 %vm325_vm0, %v12696_v26 }
 0x6a9   : > { %23136 = vmatprep.mubr.msk.f32.mxu1 %vm325_vm0, %v17002_v16 }
 0x6aa   : > { %v22417_v29 = vpop.f32.mrb[58].mxu0 }
 0x6ab   : > { %v22975_v62 = vpop.f32.mrb[58].mxu1  ;;  %v12028_v20 = vpop.f32.mrb[59].mxu0  ;;  %22579 = vmatmul.mubr.msk.f32.gmra.mrb[100].mxu0 %vm325_vm0, %v12697_v49 }
 0x6ac   : > { %v27535_v25 = vadd.f32 %v12028_v20, %v27407_v45  ;;  %v16334_v9 = vpop.f32.mrb[59].mxu1  ;;  %23137 = vmatmul.mubr.msk.f32.gmra.mrb[100].mxu1 %vm325_vm0, %v17003_v5  ;;  %22581 = vmatprep.mubr.msk.f32.mxu0 %vm325_vm0, %v12698_v33  ;;  %v12701_v45 = vld [vmem:[#allocation2 + $0x411] sm:$0xff] }
 0x6ad   : > { %v16493_v60 = vadd.f32 %v16334_v9, %v27412_v23  ;;  %23139 = vmatprep.mubr.msk.f32.mxu1 %vm325_vm0, %v17004_v32 }
 0x6af   : > { %22582 = vmatmul.mubr.msk.f32.gmra.mrb[204].mxu0 %vm325_vm0, %v12699_v2 }
 0x6b0   : > { %23140 = vmatmul.mubr.msk.f32.gmra.mrb[204].mxu1 %vm325_vm0, %v17005_v6  ;;  %22584 = vmatprep.mubr.msk.f32.mxu0 %vm325_vm0, %v12700_v63 }
 0x6b1   : > { %23142 = vmatprep.mubr.msk.f32.mxu1 %vm325_vm0, %v17006_v8 }
 0x6b3   : > { %22585 = vmatmul.mubr.msk.f32.gmra.mrb[102].mxu0 %vm325_vm0, %v12701_v45 }
 0x6b4   : > { %23143 = vmatmul.mubr.msk.f32.gmra.mrb[102].mxu1 %vm325_vm0, %v17007_v40 }
 0x6b6   : > { %v22426_v23 = vpop.f32.mrb[60].mxu0 }
 0x6b7   : > { %v12192_v55 = vadd.f32 %v22426_v23, %v27424_v30  ;;  %v22984_v22 = vpop.f32.mrb[60].mxu1  ;;  %v12057_v3 = vpop.f32.mrb[61].mxu0 }
 0x6b8   : > { %v16498_v17 = vadd.f32 %v22984_v22, %v27428_v53  ;;  %v16363_v56 = vpop.f32.mrb[61].mxu1 }
 0x6be   : > { %v22432_v54 = vpop.f32.mrb[62].mxu0 }
 0x6bf   : > { %v22990_v52 = vpop.f32.mrb[62].mxu1  ;;  %v12076_v0 = vpop.f32.mrb[63].mxu0 }
 0x6c0   : > { %v12195_v47 = vadd.f32 %v12076_v0, %v27439_v14  ;;  %v16382_v12 = vpop.f32.mrb[63].mxu1 }
 0x6c1   : > { %v16501_v28 = vadd.f32 %v16382_v12, %v27444_v31 }
 0x6ca   : > { %v22441_v19 = vpop.f32.mrb[64].mxu0 }
 0x6cb   : > { %v12200_v21 = vadd.f32 %v22441_v19, %v27456_v48  ;;  %v22999_v15 = vpop.f32.mrb[64].mxu1  ;;  %v12105_v37 = vpop.f32.mrb[65].mxu0 }
 0x6cc   : > { %v16506_v30 = vadd.f32 %v22999_v15, %v27460_v38  ;;  %v16411_v13 = vpop.f32.mrb[65].mxu1 }
 0x6d2   : > { %v22447_v34 = vpop.f32.mrb[66].mxu0 }
 0x6d3   : > { %v23005_v43 = vpop.f32.mrb[66].mxu1  ;;  %v12124_v53 = vpop.f32.mrb[67].mxu0 }
 0x6d4   : > { %v12203_v35 = vadd.f32 %v12124_v53, %v27471_v44  ;;  %v16430_v42 = vpop.f32.mrb[67].mxu1 }
 0x6d5   : > { %v16509_v18 = vadd.f32 %v16430_v42, %v27476_v24 }
 0x6de   : > { %v22456_v14 = vpop.f32.mrb[68].mxu0 }
 0x6df   : > { %v12208_v50 = vadd.f32 %v22456_v14, %v27488_v39  ;;  %v23014_v31 = vpop.f32.mrb[68].mxu1  ;;  %v12153_v58 = vpop.f32.mrb[69].mxu0 }
 0x6e0   : > { %v16514_v48 = vadd.f32 %v23014_v31, %v27492_v57  ;;  %v16459_v51 = vpop.f32.mrb[69].mxu1 }
 0x6e6   : > { %v22462_v46 = vpop.f32.mrb[70].mxu0 }
 0x6e7   : > { %v23020_v11 = vpop.f32.mrb[70].mxu1  ;;  %v12172_v38 = vpop.f32.mrb[71].mxu0 }
 0x6e8   : > { %v12211_v36 = vadd.f32 %v12172_v38, %v27503_v10  ;;  %v16478_v59 = vpop.f32.mrb[71].mxu1 }
 0x6e9   : > { %v16517_v27 = vadd.f32 %v16478_v59, %v27508_v7 }
 0x6f2   : > { %v22473_v44 = vpop.f32.mrb[72].mxu0 }
 0x6f3   : > { %v27560_v26 = vadd.f32 %v22473_v44, %v27520_v4  ;;  %v23031_v24 = vpop.f32.mrb[72].mxu1  ;;  %v12459_v16 = vpop.f32.mrb[73].mxu0 }
 0x6f4   : > { %v27563_v39 = vadd.f32 %v23031_v24, %v27524_v61  ;;  %v16765_v49 = vpop.f32.mrb[73].mxu1 }
 0x6fa   : > { %v22479_v57 = vpop.f32.mrb[74].mxu0 }
 0x6fb   : > { %v23037_v5 = vpop.f32.mrb[74].mxu1  ;;  %v12478_v33 = vpop.f32.mrb[75].mxu0 }
 0x6fc   : > { %v27566_v29 = vadd.f32 %v12478_v33, %v27535_v25  ;;  %v16784_v10 = vpop.f32.mrb[75].mxu1 }
 0x6fd   : > { %v27568_v32 = vadd.f32 %v16784_v10, %v16493_v60 }
 0x706   : > { %v22488_v7 = vpop.f32.mrb[76].mxu0 }
 0x707   : > { %v27570_v62 = vadd.f32 %v22488_v7, %v12192_v55  ;;  %v23046_v4 = vpop.f32.mrb[76].mxu1  ;;  %v12507_v20 = vpop.f32.mrb[77].mxu0 }
 0x708   : > { %v27572_v9 = vadd.f32 %v23046_v4, %v16498_v17  ;;  %v16813_v2 = vpop.f32.mrb[77].mxu1 }
 0x70e   : > { %v22494_v61 = vpop.f32.mrb[78].mxu0 }
 0x70f   : > { %v23052_v6 = vpop.f32.mrb[78].mxu1  ;;  %v12526_v63 = vpop.f32.mrb[79].mxu0 }
 0x710   : > { %v27574_v8 = vadd.f32 %v12526_v63, %v12195_v47  ;;  %v16832_v45 = vpop.f32.mrb[79].mxu1 }
 0x711   : > { %v27576_v40 = vadd.f32 %v16832_v45, %v16501_v28 }
 0x71a   : > { %v22503_v25 = vpop.f32.mrb[80].mxu0 }
 0x71b   : > { %v27578_v23 = vadd.f32 %v22503_v25, %v12200_v21  ;;  %v23061_v60 = vpop.f32.mrb[80].mxu1  ;;  %v12555_v22 = vpop.f32.mrb[81].mxu0 }
 0x71c   : > { %v27580_v55 = vadd.f32 %v23061_v60, %v16506_v30  ;;  %v16861_v3 = vpop.f32.mrb[81].mxu1 }
 0x722   : > { %v22509_v56 = vpop.f32.mrb[82].mxu0 }
 0x723   : > { %v23067_v17 = vpop.f32.mrb[82].mxu1  ;;  %v12574_v54 = vpop.f32.mrb[83].mxu0 }
 0x724   : > { %v27582_v52 = vadd.f32 %v12574_v54, %v12203_v35  ;;  %v16880_v0 = vpop.f32.mrb[83].mxu1 }
 0x725   : > { %v27584_v12 = vadd.f32 %v16880_v0, %v16509_v18  ;;  %v27597_v18 = vld [vmem:[%s28310_s5] ss:$0 sm:$0xff] }
 0x72e   : > { %v22518_v47 = vpop.f32.mrb[84].mxu0 }
 0x72f   : > { %v27586_v19 = vadd.f32 %v22518_v47, %v12208_v50  ;;  %v23076_v28 = vpop.f32.mrb[84].mxu1  ;;  %v12603_v15 = vpop.f32.mrb[85].mxu0 }
 0x730   : > { %v27588_v21 = vadd.f32 %v23076_v28, %v16514_v48  ;;  %v16909_v37 = vpop.f32.mrb[85].mxu1 }
 0x736   : > { %v22524_v30 = vpop.f32.mrb[86].mxu0 }
 0x737   : > { %v23082_v13 = vpop.f32.mrb[86].mxu1  ;;  %v12622_v34 = vpop.f32.mrb[87].mxu0 }
 0x738   : > { %v27590_v43 = vadd.f32 %v12622_v34, %v12211_v36  ;;  %v16928_v53 = vpop.f32.mrb[87].mxu1 }
 0x739   : > { %v27592_v35 = vadd.f32 %v16928_v53, %v16517_v27 }
 0x73a   : > { %28401 = vst [vmem:[#allocation17_spill] sm:$0xff] %v27590_v43  ;;  %v22529_v42 = vpop.f32.mrb[168].mxu0 }
 0x73b   : > { %28402 = vst [vmem:[#allocation18_spill] sm:$0xff] %v27592_v35  ;;  %v13113_v14 = vadd.f32 %v27597_v18, %v22529_v42  ;;  %v23087_v50 = vpop.f32.mrb[168].mxu1  ;;  %v12889_v31 = vpop.f32.mrb[169].mxu0 }
 0x73c   : > { %v17419_v58 = vadd.f32 %v27597_v18, %v23087_v50  ;;  %v13112_v48 = vadd.f32 %v27597_v18, %v12889_v31  ;;  %v17195_v51 = vpop.f32.mrb[169].mxu1 }
 0x73d   : > { %13145 = vst.msk [vmem:[%s24242_s1 + $0x208] sm:$0xff] %vm4531_vm3, %v13113_v14  ;;  %v13149_v46 = vsel %vm4531_vm3, %v13113_v14, 0.0  ;;  %v13163_v11 = vmul.f32 %v13113_v14, %v13113_v14  ;;  %v17418_v38 = vadd.f32 %v27597_v18, %v17195_v51 }
 0x73e   : > { %17451 = vst.msk [vmem:[%s24242_s1 + $0x308] sm:$0xff] %vm4531_vm3, %v17419_v58  ;;  %v17455_v36 = vsel %vm4531_vm3, %v17419_v58, 0.0  ;;  %v17469_v59 = vmul.f32 %v17419_v58, %v17419_v58  ;;  %13144 = vst.msk [vmem:[%s24242_s1 + $0x200] sm:$0xff] %vm4531_vm3, %v13112_v48  ;;  %v13148_v27 = vsel %vm4531_vm3, %v13112_v48, 0.0  ;;  %v13162_v44 = vmul.f32 %v13112_v48, %v13112_v48  ;;  %v22532_v24 = vpop.f32.mrb[170].mxu0 }
 0x73f   : > { %v13167_v16 = vsel %vm4531_vm3, %v13163_v11, 0.0  ;;  %v13150_v49 = vadd.f32 %v13149_v46, %v13148_v27  ;;  %17450 = vst.msk [vmem:[%s24242_s1 + $0x300] sm:$0xff] %vm4531_vm3, %v17418_v38  ;;  %v17454_v57 = vsel %vm4531_vm3, %v17418_v38, 0.0  ;;  %v17468_v5 = vmul.f32 %v17418_v38, %v17418_v38  ;;  %v23090_v33 = vpop.f32.mrb[170].mxu1  ;;  %v12899_v10 = vpop.f32.mrb[171].mxu0 }
 0x740   : > { %v17473_v7 = vsel %vm4531_vm3, %v17469_v59, 0.0  ;;  %v13166_v4 = vsel %vm4531_vm3, %v13162_v44, 0.0  ;;  %v17456_v20 = vadd.f32 %v17455_v36, %v17454_v57  ;;  %v13115_v2 = vadd.f32 %v27597_v18, %v22532_v24  ;;  %v17205_v61 = vpop.f32.mrb[171].mxu1 }
 0x741   : > { %v13168_v6 = vadd.f32 %v13167_v16, %v13166_v4  ;;  %v17472_v63 = vsel %vm4531_vm3, %v17468_v5, 0.0  ;;  %v17421_v45 = vadd.f32 %v27597_v18, %v23090_v33  ;;  %v13114_v25 = vadd.f32 %v27597_v18, %v12899_v10 }
 0x742   : > { %v17474_v60 = vadd.f32 %v17473_v7, %v17472_v63  ;;  %13147 = vst.msk [vmem:[%s24242_s1 + $0x218] sm:$0xff] %vm4531_vm3, %v13115_v2  ;;  %v13153_v22 = vsel %vm4531_vm3, %v13115_v2, 0.0  ;;  %v13165_v3 = vmul.f32 %v13115_v2, %v13115_v2  ;;  %v17420_v56 = vadd.f32 %v27597_v18, %v17205_v61  ;;  %v22535_v17 = vpop.f32.mrb[88].mxu0 }
 0x743   : > { %17453 = vst.msk [vmem:[%s24242_s1 + $0x318] sm:$0xff] %vm4531_vm3, %v17421_v45  ;;  %v17459_v54 = vsel %vm4531_vm3, %v17421_v45, 0.0  ;;  %v17471_v0 = vmul.f32 %v17421_v45, %v17421_v45  ;;  %13146 = vst.msk [vmem:[%s24242_s1 + $0x210] sm:$0xff] %vm4531_vm3, %v13114_v25  ;;  %v13151_v47 = vsel %vm4531_vm3, %v13114_v25, 0.0  ;;  %v13164_v28 = vmul.f32 %v13114_v25, %v13114_v25  ;;  %v23093_v15 = vpop.f32.mrb[88].mxu1  ;;  %v12909_v37 = vpop.f32.mrb[89].mxu0 }
 0x744   : > { %v13171_v30 = vsel %vm4531_vm3, %v13165_v3, 0.0  ;;  %v13152_v13 = vadd.f32 %v13151_v47, %v13150_v49  ;;  %17452 = vst.msk [vmem:[%s24242_s1 + $0x310] sm:$0xff] %vm4531_vm3, %v17420_v56  ;;  %v17457_v34 = vsel %vm4531_vm3, %v17420_v56, 0.0  ;;  %v17470_v53 = vmul.f32 %v17420_v56, %v17420_v56  ;;  %v17215_v42 = vpop.f32.mrb[89].mxu1 }
 0x745   : > { %v17477_v14 = vsel %vm4531_vm3, %v17471_v0, 0.0  ;;  %v13169_v50 = vsel %vm4531_vm3, %v13164_v28, 0.0  ;;  %v17458_v31 = vadd.f32 %v17457_v34, %v17456_v20  ;;  %v13084_v58 = vadd.f32 %v22535_v17, %v27560_v26 }
 0x746   : > { %v13154_v48 = vadd.f32 %v13153_v22, %v13152_v13  ;;  %v13170_v51 = vadd.f32 %v13169_v50, %v13168_v6  ;;  %v17475_v46 = vsel %vm4531_vm3, %v17470_v53, 0.0  ;;  %v17390_v11 = vadd.f32 %v23093_v15, %v27563_v39  ;;  %v22538_v38 = vpop.f32.mrb[174].mxu0 }
 0x747   : > { %v27641_v36 = vadd.f32 %v17459_v54, %v17458_v31  ;;  %v17476_v59 = vadd.f32 %v17475_v46, %v17474_v60  ;;  %v13116_v27 = vadd.f32 %v27597_v18, %v13084_v58  ;;  %v13118_v44 = vadd.f32 %v27597_v18, %v22538_v38  ;;  %v23096_v24 = vpop.f32.mrb[174].mxu1  ;;  %v12918_v26 = vpop.f32.mrb[175].mxu0 }
 0x748   : > { %v13155_v16 = vrot.slane %v13154_v48, 4  ;;  %v13172_v49 = vadd.f32 %v13171_v30, %v13170_v51  ;;  %v17422_v57 = vadd.f32 %v27597_v18, %v17390_v11  ;;  %v17424_v5 = vadd.f32 %v27597_v18, %v23096_v24  ;;  %v17224_v33 = vpop.f32.mrb[175].mxu1 }
 0x749   : > { %v27647_v39 = vadd.f32 %v17477_v14, %v17476_v59  ;;  %13180 = vst.msk [vmem:[%s24242_s1 + $0x220] sm:$0xff] %vm4531_vm3, %v13116_v27  ;;  %13182 = vst.msk [vmem:[%s24242_s1 + $0x230] sm:$0xff] %vm4531_vm3, %v13118_v44  ;;  %v13198_v20 = vmul.f32 %v13116_v27, %v13116_v27  ;;  %v13117_v45 = vadd.f32 %v27597_v18, %v12918_v26  ;;  %v13184_v22 = vsel %vm4531_vm3, %v13116_v27, 0.0 }
 0x74a   : > { %v13156_v10 = vadd.f32 %v13155_v16, %v13154_v48  ;;  %v13173_v7 = vrot.slane %v13172_v49, 4  ;;  %17486 = vst.msk [vmem:[%s24242_s1 + $0x320] sm:$0xff] %vm4531_vm3, %v17422_v57  ;;  %17488 = vst.msk [vmem:[%s24242_s1 + $0x330] sm:$0xff] %vm4531_vm3, %v17424_v5  ;;  %v22541_v4 = vpop.f32.mrb[90].mxu0  ;;  %v13200_v60 = vmul.f32 %v13118_v44, %v13118_v44  ;;  %v13187_v47 = vsel %vm4531_vm3, %v13118_v44, 0.0 }
 0x74b   : > { %v23099_v2 = vpop.f32.mrb[90].mxu1  ;;  %v12928_v61 = vpop.f32.mrb[91].mxu0  ;;  %13181 = vst.msk [vmem:[%s24242_s1 + $0x228] sm:$0xff] %vm4531_vm3, %v13117_v45  ;;  %v13185_v17 = vsel %vm4531_vm3, %v13117_v45, 0.0  ;;  %v13199_v54 = vmul.f32 %v13117_v45, %v13117_v45  ;;  %v13202_v15 = vsel %vm4531_vm3, %v13198_v20, 0.0  ;;  %v17423_v42 = vadd.f32 %v27597_v18, %v17224_v33 }
 0x74c   : > { %v13157_v6 = vrot.slane %v13156_v10, 2  ;;  %v13174_v63 = vadd.f32 %v13173_v7, %v13172_v49  ;;  %v17234_v25 = vpop.f32.mrb[91].mxu1  ;;  %v13186_v28 = vadd.f32 %v13185_v17, %v13184_v22  ;;  %v17504_v50 = vmul.f32 %v17422_v57, %v17422_v57 }
 0x74d   : > { %v13203_v53 = vsel %vm4531_vm3, %v13199_v54, 0.0  ;;  %v13205_v31 = vsel %vm4531_vm3, %v13200_v60, 0.0  ;;  %17487 = vst.msk [vmem:[%s24242_s1 + $0x328] sm:$0xff] %vm4531_vm3, %v17423_v42  ;;  %v17490_v11 = vsel %vm4531_vm3, %v17422_v57, 0.0  ;;  %v17491_v38 = vsel %vm4531_vm3, %v17423_v42, 0.0 }
 0x74e   : > { %v13158_v3 = vadd.f32 %v13157_v6, %v13156_v10  ;;  %v13175_v56 = vrot.slane %v13174_v63, 2  ;;  %v22544_v0 = vpop.f32.mrb[178].mxu0  ;;  %v13188_v58 = vadd.f32 %v13187_v47, %v13186_v28  ;;  %v13204_v48 = vadd.f32 %v13203_v53, %v13202_v15 }
 0x74f   : > { %v23102_v37 = vpop.f32.mrb[178].mxu1  ;;  %v12937_v30 = vpop.f32.mrb[179].mxu0  ;;  %v17493_v27 = vsel %vm4531_vm3, %v17424_v5, 0.0  ;;  %v17492_v24 = vadd.f32 %v17491_v38, %v17490_v11  ;;  %v17506_v10 = vmul.f32 %v17424_v5, %v17424_v5  ;;  %v17505_v7 = vmul.f32 %v17423_v42, %v17423_v42 }
 0x750   : > { %v13159_v13 = vrot.slane %v13158_v3, 1  ;;  %v13176_v34 = vadd.f32 %v13175_v56, %v13174_v63  ;;  %v27666_v14 = vpop.f32.mrb[179].mxu1  ;;  %v13206_v44 = vadd.f32 %v13205_v31, %v13204_v48  ;;  %v17508_v20 = vsel %vm4531_vm3, %v17504_v50, 0.0 }
 0x751   : > { %v17494_v57 = vadd.f32 %v17493_v27, %v17492_v24  ;;  %v13087_v2 = vadd.f32 %v12928_v61, %v27566_v29  ;;  %v17393_v6 = vadd.f32 %v17234_v25, %v27568_v32  ;;  %v13121_v45 = vadd.f32 %v27597_v18, %v22544_v0 }
 0x752   : > { %v13160_v51 = vadd.f32 %v13159_v13, %v13158_v3  ;;  %v13177_v46 = vrot.slane %v13176_v34, 1  ;;  %v27673_v59 = vpop.f32.mrb[180].mxu0  ;;  %v17427_v5 = vadd.f32 %v27597_v18, %v23102_v37  ;;  %v13120_v32 = vadd.f32 %v27597_v18, %v12937_v30 }
 0x753   : > { %v27676_v26 = vpop.f32.mrb[180].mxu1  ;;  %v27678_v16 = vpop.f32.mrb[181].mxu0  ;;  %v13119_v3 = vadd.f32 %v27597_v18, %v13087_v2  ;;  %v17425_v29 = vadd.f32 %v27597_v18, %v17393_v6  ;;  %v17511_v25 = vsel %vm4531_vm3, %v17506_v10, 0.0  ;;  %13217 = vst.msk [vmem:[%s24242_s1 + $0x248] sm:$0xff] %vm4531_vm3, %v13121_v45  ;;  %v13221_v56 = vsel %vm4531_vm3, %v13121_v45, 0.0 }
 0x754   : > { %v27681_v49 = vadd.f32 %v13160_v51, %v26846_v1  ;;  %v13178_v33 = vadd.f32 %v13177_v46, %v13176_v34  ;;  %v27683_v4 = vpop.f32.mrb[181].mxu1  ;;  %v17509_v1 = vsel %vm4531_vm3, %v17505_v7, 0.0  ;;  %v13235_v17 = vmul.f32 %v13121_v45, %v13121_v45  ;;  %17523 = vst.msk [vmem:[%s24242_s1 + $0x348] sm:$0xff] %vm4531_vm3, %v17427_v5  ;;  %13216 = vst.msk [vmem:[%s24242_s1 + $0x240] sm:$0xff] %vm4531_vm3, %v13120_v32 }
 0x755   : > { %v17510_v22 = vadd.f32 %v17509_v1, %v17508_v20  ;;  %13183 = vst.msk [vmem:[%s24242_s1 + $0x238] sm:$0xff] %vm4531_vm3, %v13119_v3  ;;  %v13189_v47 = vsel %vm4531_vm3, %v13119_v3, 0.0  ;;  %v13201_v28 = vmul.f32 %v13119_v3, %v13119_v3  ;;  %17489 = vst.msk [vmem:[%s24242_s1 + $0x338] sm:$0xff] %vm4531_vm3, %v17425_v29  ;;  %v17495_v15 = vsel %vm4531_vm3, %v17425_v29, 0.0 }
 0x756   : > { %v27689_v63 = vadd.f32 %v13178_v33, %v26857_v41  ;;  %v27694_v60 = vpop.f32.mrb[92].mxu0  ;;  %v13190_v37 = vadd.f32 %v13189_v47, %v13188_v58  ;;  %v27715_v30 = vadd.f32 %v17495_v15, %v17494_v57  ;;  %v17507_v13 = vmul.f32 %v17425_v29, %v17425_v29 }
 0x757   : > { %v27699_v41 = vpop.f32.mrb[92].mxu1  ;;  %v12957_v61 = vpop.f32.mrb[93].mxu0  ;;  %v17512_v0 = vadd.f32 %v17511_v25, %v17510_v22  ;;  %v17541_v34 = vmul.f32 %v17427_v5, %v17427_v5  ;;  %v13207_v42 = vsel %vm4531_vm3, %v13201_v28, 0.0  ;;  %v13239_v50 = vsel %vm4531_vm3, %v13235_v17, 0.0 }
 0x758   : > { %v17263_v54 = vpop.f32.mrb[93].mxu1  ;;  %v13220_v31 = vsel %vm4531_vm3, %v13120_v32, 0.0  ;;  %v13234_v48 = vmul.f32 %v13120_v32, %v13120_v32  ;;  %v13191_v11 = vrot.slane %v13190_v37, 4  ;;  %v13208_v58 = vadd.f32 %v13207_v42, %v13206_v44 }
 0x759   : > { %v17513_v38 = vsel %vm4531_vm3, %v17507_v13, 0.0  ;;  %v17527_v27 = vsel %vm4531_vm3, %v17427_v5, 0.0  ;;  %v13222_v10 = vadd.f32 %v13221_v56, %v13220_v31  ;;  %v17426_v57 = vadd.f32 %v27597_v18, %v27666_v14 }
 0x75a   : > { %v27717_v53 = vpop.f32.mrb[184].mxu0  ;;  %v27730_v33 = vadd.f32 %v17513_v38, %v17512_v0  ;;  %v13238_v7 = vsel %vm4531_vm3, %v13234_v48, 0.0  ;;  %v13192_v20 = vadd.f32 %v13191_v11, %v13190_v37  ;;  %v13209_v2 = vrot.slane %v13208_v58, 4 }
 0x75b   : > { %v27722_v51 = vpop.f32.mrb[184].mxu1  ;;  %v27724_v46 = vpop.f32.mrb[185].mxu0  ;;  %v13240_v6 = vadd.f32 %v13239_v50, %v13238_v7  ;;  %v17545_v44 = vsel %vm4531_vm3, %v17541_v34, 0.0  ;;  %17522 = vst.msk [vmem:[%s24242_s1 + $0x340] sm:$0xff] %vm4531_vm3, %v17426_v57  ;;  %v17526_v45 = vsel %vm4531_vm3, %v17426_v57, 0.0  ;;  %v17540_v5 = vmul.f32 %v17426_v57, %v17426_v57 }
 0x75c   : > { %v27728_v24 = vpop.f32.mrb[185].mxu1  ;;  %v13123_v22 = vadd.f32 %v27597_v18, %v27673_v59  ;;  %v13193_v32 = vrot.slane %v13192_v20, 2  ;;  %v13210_v14 = vadd.f32 %v13209_v2, %v13208_v58  ;;  %v17528_v61 = vadd.f32 %v17527_v27, %v17526_v45 }
 0x75d   : > { %v17544_v56 = vsel %vm4531_vm3, %v17540_v5, 0.0  ;;  %v17429_v28 = vadd.f32 %v27597_v18, %v27676_v26  ;;  %v13122_v15 = vadd.f32 %v27597_v18, %v27678_v16  ;;  %v17428_v50 = vadd.f32 %v27597_v18, %v27683_v4 }
 0x75e   : > { %v22556_v1 = vpop.f32.mrb[94].mxu0  ;;  %13219 = vst.msk [vmem:[%s24242_s1 + $0x258] sm:$0xff] %vm4531_vm3, %v13123_v22  ;;  %v13194_v17 = vadd.f32 %v13193_v32, %v13192_v20  ;;  %v13211_v54 = vrot.slane %v13210_v14, 2  ;;  %v17546_v0 = vadd.f32 %v17545_v44, %v17544_v56  ;;  %v13237_v59 = vmul.f32 %v13123_v22, %v13123_v22 }
 0x75f   : > { %v23114_v3 = vpop.f32.mrb[94].mxu1  ;;  %v27741_v29 = vpop.f32.mrb[95].mxu0  ;;  %17525 = vst.msk [vmem:[%s24242_s1 + $0x358] sm:$0xff] %vm4531_vm3, %v17429_v28  ;;  %13218 = vst.msk [vmem:[%s24242_s1 + $0x250] sm:$0xff] %vm4531_vm3, %v13122_v15  ;;  %v13223_v26 = vsel %vm4531_vm3, %v13122_v15, 0.0  ;;  %v13225_v16 = vsel %vm4531_vm3, %v13123_v22, 0.0  ;;  %v13236_v7 = vmul.f32 %v13122_v15, %v13122_v15  ;;  %v17543_v22 = vmul.f32 %v17429_v28, %v17429_v28 }
 0x760   : > { %v27743_v25 = vpop.f32.mrb[95].mxu1  ;;  %v13195_v34 = vrot.slane %v13194_v17, 1  ;;  %v13212_v42 = vadd.f32 %v13211_v54, %v13210_v14  ;;  %v13224_v58 = vadd.f32 %v13223_v26, %v13222_v10  ;;  %17524 = vst.msk [vmem:[%s24242_s1 + $0x350] sm:$0xff] %vm4531_vm3, %v17428_v50  ;;  %v13243_v27 = vsel %vm4531_vm3, %v13237_v59, 0.0 }
 0x761   : > { %v17531_v4 = vsel %vm4531_vm3, %v17429_v28, 0.0  ;;  %v17529_v57 = vsel %vm4531_vm3, %v17428_v50, 0.0  ;;  %v13241_v3 = vsel %vm4531_vm3, %v13236_v7, 0.0  ;;  %v17542_v32 = vmul.f32 %v17428_v50, %v17428_v50 }
 0x762   : > { %v27748_v47 = vpop.f32.mrb[188].mxu0  ;;  %v13196_v48 = vadd.f32 %v13195_v34, %v13194_v17  ;;  %v13213_v11 = vrot.slane %v13212_v42, 1  ;;  %v13226_v10 = vadd.f32 %v13225_v16, %v13224_v58  ;;  %v17530_v45 = vadd.f32 %v17529_v57, %v17528_v61 }
 0x763   : > { %v27754_v37 = vpop.f32.mrb[188].mxu1  ;;  %v27756_v13 = vpop.f32.mrb[189].mxu0  ;;  %v13092_v14 = vadd.f32 %v27694_v60, %v27570_v62  ;;  %v13242_v54 = vadd.f32 %v13241_v3, %v13240_v6  ;;  %v17547_v61 = vsel %vm4531_vm3, %v17542_v32, 0.0  ;;  %v17398_v15 = vadd.f32 %v27699_v41, %v27572_v9 }
 0x764   : > { %v27760_v31 = vpop.f32.mrb[189].mxu1  ;;  %v27780_v1 = vadd.f32 %v13196_v48, %v27681_v49  ;;  %v13214_v44 = vadd.f32 %v13213_v11, %v13212_v42  ;;  %v13227_v17 = vrot.slane %v13226_v10, 4  ;;  %v27790_v49 = vadd.f32 %v17531_v4, %v17530_v45 }
 0x765   : > { %v13124_v28 = vadd.f32 %v27597_v18, %v13092_v14  ;;  %v13126_v62 = vadd.f32 %v27597_v18, %v27717_v53  ;;  %v13244_v34 = vadd.f32 %v13243_v27, %v13242_v54  ;;  %v17548_v42 = vadd.f32 %v17547_v61, %v17546_v0 }
 0x766   : > { %v27770_v38 = vpop.f32.mrb[190].mxu0  ;;  %v27788_v56 = vadd.f32 %v13214_v44, %v27689_v63  ;;  %v13228_v6 = vadd.f32 %v13227_v17, %v13226_v10  ;;  %v17549_v26 = vsel %vm4531_vm3, %v17543_v22, 0.0  ;;  %v17430_v48 = vadd.f32 %v27597_v18, %v17398_v15 }
 0x767   : > { %v27775_v20 = vpop.f32.mrb[190].mxu1  ;;  %v27777_v2 = vpop.f32.mrb[191].mxu0  ;;  %13252 = vst.msk [vmem:[%s24242_s1 + $0x260] sm:$0xff] %vm4531_vm3, %v13124_v28  ;;  %13254 = vst.msk [vmem:[%s24242_s1 + $0x270] sm:$0xff] %vm4531_vm3, %v13126_v62  ;;  %v13245_v41 = vrot.slane %v13244_v34, 4  ;;  %v27808_v53 = vadd.f32 %v17549_v26, %v17548_v42  ;;  %v17432_v0 = vadd.f32 %v27597_v18, %v27722_v51  ;;  %v13125_v16 = vadd.f32 %v27597_v18, %v27724_v46 }
 0x768   : > { %v27782_v5 = vpop.f32.mrb[191].mxu1  ;;  %v13229_v9 = vrot.slane %v13228_v6, 2  ;;  %17558 = vst.msk [vmem:[%s24242_s1 + $0x360] sm:$0xff] %vm4531_vm3, %v17430_v48  ;;  %v13272_v57 = vmul.f32 %v13126_v62, %v13126_v62  ;;  %v13270_v22 = vmul.f32 %v13124_v28, %v13124_v28  ;;  %v13256_v46 = vsel %vm4531_vm3, %v13124_v28, 0.0 }
 0x769   : > { %v13246_v7 = vadd.f32 %v13245_v41, %v13244_v34  ;;  %17560 = vst.msk [vmem:[%s24242_s1 + $0x370] sm:$0xff] %vm4531_vm3, %v17432_v0  ;;  %13253 = vst.msk [vmem:[%s24242_s1 + $0x268] sm:$0xff] %vm4531_vm3, %v13125_v16  ;;  %v13257_v10 = vsel %vm4531_vm3, %v13125_v16, 0.0  ;;  %v17461_v32 = vrot.slane %v27641_v36, 4  ;;  %v13259_v14 = vsel %vm4531_vm3, %v13126_v62, 0.0 }
 0x76a   : > { %v27792_v59 = vpop.f32.mrb[96].mxu0  ;;  %v13230_v4 = vadd.f32 %v13229_v9, %v13228_v6  ;;  %v13258_v17 = vadd.f32 %v13257_v10, %v13256_v46  ;;  %v13271_v54 = vmul.f32 %v13125_v16, %v13125_v16  ;;  %v17576_v34 = vmul.f32 %v17430_v48, %v17430_v48 }
 0x76b   : > { %v27800_v63 = vpop.f32.mrb[96].mxu1  ;;  %v13005_v60 = vpop.f32.mrb[97].mxu0  ;;  %v13247_v51 = vrot.slane %v13246_v7, 2  ;;  %v13277_v42 = vsel %vm4531_vm3, %v13272_v57, 0.0  ;;  %v17565_v28 = vsel %vm4531_vm3, %v17432_v0, 0.0  ;;  %v17431_v62 = vadd.f32 %v27597_v18, %v27728_v24 }
 0x76c   : > { %v17311_v50 = vpop.f32.mrb[97].mxu1  ;;  %v13231_v45 = vrot.slane %v13230_v4, 1  ;;  %v13260_v26 = vadd.f32 %v13259_v14, %v13258_v17  ;;  %v13275_v9 = vsel %vm4531_vm3, %v13271_v54, 0.0  ;;  %v17578_v10 = vmul.f32 %v17432_v0, %v17432_v0 }
 0x76d   : > { %v13248_v6 = vadd.f32 %v13247_v51, %v13246_v7  ;;  %17559 = vst.msk [vmem:[%s24242_s1 + $0x368] sm:$0xff] %vm4531_vm3, %v17431_v62  ;;  %v17563_v51 = vsel %vm4531_vm3, %v17431_v62, 0.0  ;;  %v17577_v46 = vmul.f32 %v17431_v62, %v17431_v62  ;;  %v17580_v0 = vsel %vm4531_vm3, %v17576_v34, 0.0 }
 0x76e   : > { %v27810_v11 = vpop.f32.mrb[194].mxu0  ;;  %v13232_v60 = vadd.f32 %v13231_v45, %v13230_v4  ;;  %v13274_v4 = vsel %vm4531_vm3, %v13270_v22, 0.0  ;;  %v17562_v45 = vsel %vm4531_vm3, %v17430_v48, 0.0  ;;  %v13095_v22 = vadd.f32 %v27741_v29, %v27574_v8 }
 0x76f   : > { %v27818_v58 = vpop.f32.mrb[194].mxu1  ;;  %v27820_v27 = vpop.f32.mrb[195].mxu0  ;;  %v13249_v16 = vrot.slane %v13248_v6, 1  ;;  %v13276_v57 = vadd.f32 %v13275_v9, %v13274_v4  ;;  %v17564_v14 = vadd.f32 %v17563_v51, %v17562_v45  ;;  %v17581_v48 = vsel %vm4531_vm3, %v17577_v46, 0.0 }
 0x770   : > { %v27822_v44 = vpop.f32.mrb[195].mxu1  ;;  %v27842_v41 = vadd.f32 %v13232_v60, %v27780_v1  ;;  %v13129_v60 = vadd.f32 %v27597_v18, %v27748_v47  ;;  %v17582_v8 = vadd.f32 %v17581_v48, %v17580_v0  ;;  %v17583_v62 = vsel %vm4531_vm3, %v17578_v10, 0.0 }
 0x771   : > { %v13250_v1 = vadd.f32 %v13249_v16, %v13248_v6  ;;  %v13278_v54 = vadd.f32 %v13277_v42, %v13276_v57  ;;  %v27866_v6 = vadd.f32 %v17461_v32, %v27641_v36  ;;  %v17566_v9 = vadd.f32 %v17565_v28, %v17564_v14 }
 0x772   : > { %v22571_v3 = vpop.f32.mrb[98].mxu0  ;;  %v17479_v42 = vrot.slane %v27647_v39, 4  ;;  %13289 = vst.msk [vmem:[%s24242_s1 + $0x288] sm:$0xff] %vm4531_vm3, %v13129_v60  ;;  %v17435_v32 = vadd.f32 %v27597_v18, %v27754_v37  ;;  %v13128_v28 = vadd.f32 %v27597_v18, %v27756_v13  ;;  %v17434_v16 = vadd.f32 %v27597_v18, %v27760_v31 }
 0x773   : > { %v23129_v61 = vpop.f32.mrb[98].mxu1  ;;  %v27832_v15 = vpop.f32.mrb[99].mxu0  ;;  %v27869_v34 = vadd.f32 %v13250_v1, %v27788_v56  ;;  %v17584_v56 = vadd.f32 %v17583_v62, %v17582_v8  ;;  %v13293_v13 = vsel %vm4531_vm3, %v13129_v60, 0.0  ;;  %v13307_v1 = vmul.f32 %v13129_v60, %v13129_v60 }
 0x774   : > { %v27835_v50 = vpop.f32.mrb[99].mxu1  ;;  %v17401_v61 = vadd.f32 %v27743_v25, %v27576_v40  ;;  %v13127_v40 = vadd.f32 %v27597_v18, %v13095_v22  ;;  %17595 = vst.msk [vmem:[%s24242_s1 + $0x388] sm:$0xff] %vm4531_vm3, %v17435_v32  ;;  %13288 = vst.msk [vmem:[%s24242_s1 + $0x280] sm:$0xff] %vm4531_vm3, %v13128_v28  ;;  %v17599_v22 = vsel %vm4531_vm3, %v17435_v32, 0.0  ;;  %v17613_v62 = vmul.f32 %v17435_v32, %v17435_v32 }
 0x775   : > { %17594 = vst.msk [vmem:[%s24242_s1 + $0x380] sm:$0xff] %vm4531_vm3, %v17434_v16  ;;  %v17612_v32 = vmul.f32 %v17434_v16, %v17434_v16 }
 0x776   : > { %v27845_v7 = vpop.f32.mrb[198].mxu0  ;;  %v17433_v25 = vadd.f32 %v27597_v18, %v17401_v61  ;;  %13255 = vst.msk [vmem:[%s24242_s1 + $0x278] sm:$0xff] %vm4531_vm3, %v13127_v40  ;;  %v13261_v4 = vsel %vm4531_vm3, %v13127_v40, 0.0  ;;  %v13273_v57 = vmul.f32 %v13127_v40, %v13127_v40 }
 0x777   : > { %v27851_v3 = vpop.f32.mrb[198].mxu1  ;;  %v27853_v24 = vpop.f32.mrb[199].mxu0  ;;  %v13262_v37 = vadd.f32 %v13261_v4, %v13260_v26  ;;  %v13292_v26 = vsel %vm4531_vm3, %v13128_v28, 0.0 }
 0x778   : > { %v27858_v17 = vpop.f32.mrb[199].mxu1  ;;  %17561 = vst.msk [vmem:[%s24242_s1 + $0x378] sm:$0xff] %vm4531_vm3, %v17433_v25  ;;  %v17567_v45 = vsel %vm4531_vm3, %v17433_v25, 0.0  ;;  %v17579_v51 = vmul.f32 %v17433_v25, %v17433_v25  ;;  %v13279_v14 = vsel %vm4531_vm3, %v13273_v57, 0.0  ;;  %v17463_v25 = vrot.slane %v27866_v6, 2 }
 0x779   : > { %v27897_v46 = vadd.f32 %v17567_v45, %v17566_v9  ;;  %v13263_v60 = vrot.slane %v13262_v37, 4  ;;  %v13280_v9 = vadd.f32 %v13279_v14, %v13278_v54  ;;  %v13294_v4 = vadd.f32 %v13293_v13, %v13292_v26 }
 0x77a   : > { %v27871_v29 = vpop.f32.mrb[200].mxu0  ;;  %v17585_v0 = vsel %vm4531_vm3, %v17579_v51, 0.0  ;;  %v13306_v45 = vmul.f32 %v13128_v28, %v13128_v28  ;;  %v17598_v57 = vsel %vm4531_vm3, %v17434_v16, 0.0  ;;  %v27919_v51 = vadd.f32 %v17479_v42, %v27647_v39 }
 0x77b   : > { %v27879_v36 = vpop.f32.mrb[200].mxu1  ;;  %v27881_v47 = vpop.f32.mrb[201].mxu0  ;;  %28403 = vst [vmem:[#allocation19_spill] sm:$0xff] %v27897_v46  ;;  %v27914_v8 = vadd.f32 %v17585_v0, %v17584_v56  ;;  %v13264_v35 = vadd.f32 %v13263_v60, %v13262_v37  ;;  %v13281_v43 = vrot.slane %v13280_v9, 4  ;;  %v17600_v56 = vadd.f32 %v17599_v22, %v17598_v57 }
 0x77c   : > { %v27889_v10 = vpop.f32.mrb[201].mxu1  ;;  %v13310_v54 = vsel %vm4531_vm3, %v13306_v45, 0.0  ;;  %v13131_v13 = vadd.f32 %v27597_v18, %v27770_v38  ;;  %v17497_v39 = vrot.slane %v27715_v30, 4  ;;  %v17617_v0 = vsel %vm4531_vm3, %v17613_v62, 0.0 }
 0x77d   : > { %v13265_v42 = vrot.slane %v13264_v35, 2  ;;  %v13282_v37 = vadd.f32 %v13281_v43, %v13280_v9  ;;  %v17616_v60 = vsel %vm4531_vm3, %v17612_v32, 0.0  ;;  %v27939_v45 = vadd.f32 %v17463_v25, %v27866_v6 }
 0x77e   : > { %v27906_v31 = vpop.f32.mrb[100].mxu0  ;;  %13291 = vst.msk [vmem:[%s24242_s1 + $0x298] sm:$0xff] %vm4531_vm3, %v13131_v13  ;;  %v13309_v38 = vmul.f32 %v13131_v13, %v13131_v13  ;;  %v17618_v57 = vadd.f32 %v17617_v0, %v17616_v60  ;;  %v17437_v43 = vadd.f32 %v27597_v18, %v27775_v20  ;;  %v13130_v9 = vadd.f32 %v27597_v18, %v27777_v2 }
 0x77f   : > { %v27912_v48 = vpop.f32.mrb[100].mxu1  ;;  %v13053_v61 = vpop.f32.mrb[101].mxu0  ;;  %v13266_v16 = vadd.f32 %v13265_v42, %v13264_v35  ;;  %v13283_v22 = vrot.slane %v13282_v37, 2  ;;  %v17481_v35 = vrot.slane %v27919_v51, 2  ;;  %v17515_v6 = vrot.slane %v27730_v33, 4 }
 0x780   : > { %v17359_v40 = vpop.f32.mrb[101].mxu1  ;;  %v13311_v61 = vsel %vm4531_vm3, %v13307_v1, 0.0  ;;  %v13297_v25 = vsel %vm4531_vm3, %v13131_v13, 0.0  ;;  %17597 = vst.msk [vmem:[%s24242_s1 + $0x398] sm:$0xff] %vm4531_vm3, %v17437_v43  ;;  %13290 = vst.msk [vmem:[%s24242_s1 + $0x290] sm:$0xff] %vm4531_vm3, %v13130_v9  ;;  %v13295_v20 = vsel %vm4531_vm3, %v13130_v9, 0.0  ;;  %v13308_v2 = vmul.f32 %v13130_v9, %v13130_v9 }
 0x781   : > { %v13312_v26 = vadd.f32 %v13311_v61, %v13310_v54  ;;  %v17498_v54 = vadd.f32 %v17497_v39, %v27715_v30  ;;  %v13267_v32 = vrot.slane %v13266_v16, 1  ;;  %v13284_v42 = vadd.f32 %v13283_v22, %v13282_v37 }
 0x782   : > { %v27922_v46 = vpop.f32.mrb[204].mxu0  ;;  %v13315_v30 = vsel %vm4531_vm3, %v13309_v38, 0.0  ;;  %v17603_v39 = vsel %vm4531_vm3, %v17437_v43, 0.0  ;;  %v17615_v37 = vmul.f32 %v17437_v43, %v17437_v43  ;;  %v13296_v22 = vadd.f32 %v13295_v20, %v13294_v4 }
 0x783   : > { %v27927_v28 = vpop.f32.mrb[204].mxu1  ;;  %v27929_v14 = vpop.f32.mrb[205].mxu0  ;;  %v13268_v0 = vadd.f32 %v13267_v32, %v13266_v16  ;;  %v13285_v60 = vrot.slane %v13284_v42, 1  ;;  %v17436_v13 = vadd.f32 %v27597_v18, %v27782_v5  ;;  %v13100_v16 = vadd.f32 %v27792_v59, %v27578_v23 }
 0x784   : > { %v27933_v1 = vpop.f32.mrb[205].mxu1  ;;  %v13298_v9 = vadd.f32 %v13297_v25, %v13296_v22  ;;  %v17406_v43 = vadd.f32 %v27800_v63, %v27580_v55  ;;  %v13134_v25 = vadd.f32 %v27597_v18, %v27810_v11  ;;  %v27980_v20 = vadd.f32 %v17481_v35, %v27919_v51 }
 0x785   : > { %28404 = vst [vmem:[#allocation28_spill] sm:$0xff] %v27933_v1  ;;  %17596 = vst.msk [vmem:[%s24242_s1 + $0x390] sm:$0xff] %vm4531_vm3, %v17436_v13  ;;  %v17601_v38 = vsel %vm4531_vm3, %v17436_v13, 0.0  ;;  %v17614_v4 = vmul.f32 %v17436_v13, %v17436_v13  ;;  %v17440_v51 = vadd.f32 %v27597_v18, %v27818_v58  ;;  %v17516_v35 = vadd.f32 %v17515_v6, %v27730_v33 }
 0x786   : > { %v22586_v40 = vpop.f32.mrb[102].mxu0  ;;  %v17602_v32 = vadd.f32 %v17601_v38, %v17600_v56  ;;  %v17438_v59 = vadd.f32 %v27597_v18, %v17406_v43  ;;  %v17621_v56 = vsel %vm4531_vm3, %v17615_v37, 0.0  ;;  %13326 = vst.msk [vmem:[%s24242_s1 + $0x2b0] sm:$0xff] %vm4531_vm3, %v13134_v25  ;;  %v13344_v22 = vmul.f32 %v13134_v25, %v13134_v25 }
 0x787   : > { %v23144_v62 = vpop.f32.mrb[102].mxu1  ;;  %v27945_v61 = vpop.f32.mrb[103].mxu0  ;;  %v17619_v23 = vsel %vm4531_vm3, %v17614_v4, 0.0  ;;  %17632 = vst.msk [vmem:[%s24242_s1 + $0x3b0] sm:$0xff] %vm4531_vm3, %v17440_v51  ;;  %v17517_v38 = vrot.slane %v17516_v35, 2  ;;  %v13331_v43 = vsel %vm4531_vm3, %v13134_v25, 0.0 }
 0x788   : > { %28405 = vst [vmem:[#allocation20_spill] sm:$0xff] %v27945_v61  ;;  %v27949_v40 = vpop.f32.mrb[103].mxu1  ;;  %v13313_v62 = vsel %vm4531_vm3, %v13308_v2, 0.0  ;;  %v13286_v61 = vadd.f32 %v13285_v60, %v13284_v42  ;;  %v13299_v42 = vrot.slane %v13298_v9, 4  ;;  %v27982_v63 = vadd.f32 %v17603_v39, %v17602_v32  ;;  %17630 = vst.msk [vmem:[%s24242_s1 + $0x3a0] sm:$0xff] %vm4531_vm3, %v17438_v59 }
 0x789   : > { %28406 = vst [vmem:[#allocation29_spill] sm:$0xff] %v27949_v40  ;;  %v27964_v40 = vadd.f32 %v13268_v0, %v27842_v41  ;;  %v13314_v1 = vadd.f32 %v13313_v62, %v13312_v26  ;;  %v13132_v26 = vadd.f32 %v27597_v18, %v13100_v16  ;;  %v13133_v60 = vadd.f32 %v27597_v18, %v27820_v27 }
 0x78a   : > { %v13287_v5 = vadd.f32 %v13286_v61, %v27869_v34  ;;  %v17620_v34 = vadd.f32 %v17619_v23, %v17618_v57  ;;  %v17499_v61 = vrot.slane %v17498_v54, 2  ;;  %v17465_v57 = vrot.slane %v27939_v45, 1 }
 0x78b   : > { %v13316_v41 = vadd.f32 %v13315_v30, %v13314_v1  ;;  %13324 = vst.msk [vmem:[%s24242_s1 + $0x2a0] sm:$0xff] %vm4531_vm3, %v13132_v26  ;;  %v13300_v1 = vadd.f32 %v13299_v42, %v13298_v9  ;;  %v17483_v30 = vrot.slane %v27980_v20, 1  ;;  %v13342_v37 = vmul.f32 %v13132_v26, %v13132_v26  ;;  %13325 = vst.msk [vmem:[%s24242_s1 + $0x2a8] sm:$0xff] %vm4531_vm3, %v13133_v60 }
 0x78c   : > { %v27991_v2 = vadd.f32 %v17621_v56, %v17620_v34  ;;  %v13328_v58 = vsel %vm4531_vm3, %v13132_v26, 0.0  ;;  %v13329_v13 = vsel %vm4531_vm3, %v13133_v60, 0.0  ;;  %v13343_v16 = vmul.f32 %v13133_v60, %v13133_v60 }
 0x78d   : > { %v13317_v55 = vrot.slane %v13316_v41, 4  ;;  %v13301_v0 = vrot.slane %v13300_v1, 2  ;;  %v28006_v33 = vadd.f32 %v17499_v61, %v17498_v54  ;;  %v17648_v9 = vmul.f32 %v17438_v59, %v17438_v59 }
 0x78e   : > { %v13330_v27 = vadd.f32 %v13329_v13, %v13328_v58  ;;  %v13349_v42 = vsel %vm4531_vm3, %v13344_v22, 0.0  ;;  %v13346_v26 = vsel %vm4531_vm3, %v13342_v37, 0.0  ;;  %v17637_v54 = vsel %vm4531_vm3, %v17440_v51, 0.0 }
 0x78f   : > { %v13318_v11 = vadd.f32 %v13317_v55, %v13316_v41  ;;  %v13302_v62 = vadd.f32 %v13301_v0, %v13300_v1  ;;  %v13347_v41 = vsel %vm4531_vm3, %v13343_v16, 0.0  ;;  %v17439_v56 = vadd.f32 %v27597_v18, %v27822_v44 }
 0x790   : > { %v13332_v23 = vadd.f32 %v13331_v43, %v13330_v27  ;;  %v13348_v34 = vadd.f32 %v13347_v41, %v13346_v26  ;;  %v17650_v61 = vmul.f32 %v17440_v51, %v17440_v51  ;;  %v17634_v25 = vsel %vm4531_vm3, %v17438_v59, 0.0 }
 0x791   : > { %v13319_v39 = vrot.slane %v13318_v11, 2  ;;  %v13303_v4 = vrot.slane %v13302_v62, 1  ;;  %17631 = vst.msk [vmem:[%s24242_s1 + $0x3a8] sm:$0xff] %vm4531_vm3, %v17439_v56  ;;  %v17649_v37 = vmul.f32 %v17439_v56, %v17439_v56  ;;  %v13103_v44 = vadd.f32 %v27832_v15, %v27582_v52 }
 0x792   : > { %v13350_v60 = vadd.f32 %v13349_v42, %v13348_v34  ;;  %v17409_v59 = vadd.f32 %v27835_v50, %v27584_v12  ;;  %v13137_v51 = vadd.f32 %v27597_v18, %v27845_v7  ;;  %v17443_v58 = vadd.f32 %v27597_v18, %v27851_v3 }
 0x793   : > { %v13320_v6 = vadd.f32 %v13319_v39, %v13318_v11  ;;  %v13304_v55 = vadd.f32 %v13303_v4, %v13302_v62  ;;  %v17652_v11 = vsel %vm4531_vm3, %v17648_v9, 0.0  ;;  %v17635_v39 = vsel %vm4531_vm3, %v17439_v56, 0.0 }
 0x794   : > { %v17636_v62 = vadd.f32 %v17635_v39, %v17634_v25  ;;  %v13135_v52 = vadd.f32 %v27597_v18, %v13103_v44  ;;  %v17441_v15 = vadd.f32 %v27597_v18, %v17409_v59  ;;  %v28038_v12 = vadd.f32 %v17517_v38, %v17516_v35  ;;  %13361 = vst.msk [vmem:[%s24242_s1 + $0x2c8] sm:$0xff] %vm4531_vm3, %v13137_v51 }
 0x795   : > { %v13321_v32 = vrot.slane %v13320_v6, 1  ;;  %v28018_v0 = vadd.f32 %v13304_v55, %v27964_v40  ;;  %v17653_v40 = vsel %vm4531_vm3, %v17649_v37, 0.0  ;;  %v17655_v50 = vsel %vm4531_vm3, %v17650_v61, 0.0  ;;  %17667 = vst.msk [vmem:[%s24242_s1 + $0x3c8] sm:$0xff] %vm4531_vm3, %v17443_v58 }
 0x796   : > { %v17638_v13 = vadd.f32 %v17637_v54, %v17636_v62  ;;  %v17654_v16 = vadd.f32 %v17653_v40, %v17652_v11  ;;  %v13365_v7 = vsel %vm4531_vm3, %v13137_v51, 0.0  ;;  %13327 = vst.msk [vmem:[%s24242_s1 + $0x2b8] sm:$0xff] %vm4531_vm3, %v13135_v52  ;;  %v13345_v9 = vmul.f32 %v13135_v52, %v13135_v52  ;;  %17633 = vst.msk [vmem:[%s24242_s1 + $0x3b8] sm:$0xff] %vm4531_vm3, %v17441_v15 }
 0x797   : > { %v13322_v1 = vadd.f32 %v13321_v32, %v13320_v6  ;;  %v13379_v6 = vmul.f32 %v13137_v51, %v13137_v51  ;;  %v17639_v35 = vsel %vm4531_vm3, %v17441_v15, 0.0  ;;  %v17651_v4 = vmul.f32 %v17441_v15, %v17441_v15 }
 0x798   : > { %v17656_v3 = vadd.f32 %v17655_v50, %v17654_v16  ;;  %v28054_v38 = vadd.f32 %v17639_v35, %v17638_v13  ;;  %v17685_v43 = vmul.f32 %v17443_v58, %v17443_v58  ;;  %v13351_v41 = vsel %vm4531_vm3, %v13345_v9, 0.0 }
 0x799   : > { %v28023_v22 = vadd.f32 %v13322_v1, %v13287_v5  ;;  %v13136_v5 = vadd.f32 %v27597_v18, %v27853_v24  ;;  %v13333_v24 = vsel %vm4531_vm3, %v13135_v52, 0.0  ;;  %v13383_v32 = vsel %vm4531_vm3, %v13379_v6, 0.0 }
 0x79a   : > { %v13334_v27 = vadd.f32 %v13333_v24, %v13332_v23  ;;  %v13352_v54 = vadd.f32 %v13351_v41, %v13350_v60  ;;  %v17657_v34 = vsel %vm4531_vm3, %v17651_v4, 0.0  ;;  %v17671_v56 = vsel %vm4531_vm3, %v17443_v58, 0.0 }
 0x79b   : > { %13360 = vst.msk [vmem:[%s24242_s1 + $0x2c0] sm:$0xff] %vm4531_vm3, %v13136_v5  ;;  %v13364_v42 = vsel %vm4531_vm3, %v13136_v5, 0.0  ;;  %v13378_v26 = vmul.f32 %v13136_v5, %v13136_v5  ;;  %v28061_v1 = vadd.f32 %v17657_v34, %v17656_v3  ;;  %v17442_v25 = vadd.f32 %v27597_v18, %v27858_v17  ;;  %v28078_v18 = vld [vmem:[%s28310_s5] ss:$0 sm:$0xff] }
 0x79c   : > { %v13335_v55 = vrot.slane %v13334_v27, 4  ;;  %v13366_v23 = vadd.f32 %v13365_v7, %v13364_v42  ;;  %v28069_v11 = vadd.f32 %v17465_v57, %v27939_v45  ;;  %v13353_v60 = vrot.slane %v13352_v54, 4 }
 0x79d   : > { %v13382_v61 = vsel %vm4531_vm3, %v13378_v26, 0.0  ;;  %v17689_v62 = vsel %vm4531_vm3, %v17685_v43, 0.0  ;;  %17666 = vst.msk [vmem:[%s24242_s1 + $0x3c0] sm:$0xff] %vm4531_vm3, %v17442_v25  ;;  %v17670_v44 = vsel %vm4531_vm3, %v17442_v25, 0.0  ;;  %v17684_v59 = vmul.f32 %v17442_v25, %v17442_v25 }
 0x79e   : > { %v13336_v39 = vadd.f32 %v13335_v55, %v13334_v27  ;;  %v13384_v37 = vadd.f32 %v13383_v32, %v13382_v61  ;;  %v13139_v17 = vadd.f32 %v28078_v18, %v27871_v29  ;;  %v28085_v45 = vadd.f32 %v17483_v30, %v27980_v20 }
 0x79f   : > { %v13354_v40 = vadd.f32 %v13353_v60, %v13352_v54  ;;  %v17672_v51 = vadd.f32 %v17671_v56, %v17670_v44  ;;  %v17501_v58 = vrot.slane %v28006_v33, 1  ;;  %v17519_v5 = vrot.slane %v28038_v12, 1 }
 0x7a0   : > { %v13337_v57 = vrot.slane %v13336_v39, 2  ;;  %v17688_v13 = vsel %vm4531_vm3, %v17684_v59, 0.0  ;;  %13363 = vst.msk [vmem:[%s24242_s1 + $0x2d8] sm:$0xff] %vm4531_vm3, %v13139_v17  ;;  %v13381_v16 = vmul.f32 %v13139_v17, %v13139_v17  ;;  %v17533_v29 = vrot.slane %v27790_v49, 4 }
 0x7a1   : > { %v13355_v15 = vrot.slane %v13354_v40, 2  ;;  %v17690_v20 = vadd.f32 %v17689_v62, %v17688_v13  ;;  %v17551_v30 = vrot.slane %v27808_v53, 4  ;;  %v13369_v50 = vsel %vm4531_vm3, %v13139_v17, 0.0 }
 0x7a2   : > { %v13338_v52 = vadd.f32 %v13337_v57, %v13336_v39  ;;  %v17445_v7 = vadd.f32 %v28078_v18, %v27879_v36  ;;  %v13138_v6 = vadd.f32 %v28078_v18, %v27881_v47  ;;  %v17444_v9 = vadd.f32 %v28078_v18, %v27889_v10 }
 0x7a3   : > { %v13356_v24 = vadd.f32 %v13355_v15, %v13354_v40  ;;  %v13108_v35 = vadd.f32 %v27906_v31, %v27586_v19  ;;  %v13387_v27 = vsel %vm4531_vm3, %v13381_v16, 0.0  ;;  %v17414_v39 = vadd.f32 %v27912_v48, %v27588_v21 }
 0x7a4   : > { %v13339_v3 = vrot.slane %v13338_v52, 1  ;;  %17669 = vst.msk [vmem:[%s24242_s1 + $0x3d8] sm:$0xff] %vm4531_vm3, %v17445_v7  ;;  %v17675_v4 = vsel %vm4531_vm3, %v17445_v7, 0.0  ;;  %13362 = vst.msk [vmem:[%s24242_s1 + $0x2d0] sm:$0xff] %vm4531_vm3, %v13138_v6  ;;  %v13367_v36 = vsel %vm4531_vm3, %v13138_v6, 0.0  ;;  %v13380_v43 = vmul.f32 %v13138_v6, %v13138_v6 }
 0x7a5   : > { %v13357_v41 = vrot.slane %v13356_v24, 1  ;;  %v13368_v32 = vadd.f32 %v13367_v36, %v13366_v23  ;;  %17668 = vst.msk [vmem:[%s24242_s1 + $0x3d0] sm:$0xff] %vm4531_vm3, %v17444_v9  ;;  %v17673_v10 = vsel %vm4531_vm3, %v17444_v9, 0.0  ;;  %v17687_v42 = vmul.f32 %v17445_v7, %v17445_v7 }
 0x7a6   : > { %v13340_v47 = vadd.f32 %v13339_v3, %v13338_v52  ;;  %v13385_v19 = vsel %vm4531_vm3, %v13380_v43, 0.0  ;;  %v17674_v31 = vadd.f32 %v17673_v10, %v17672_v51  ;;  %v17686_v26 = vmul.f32 %v17444_v9, %v17444_v9  ;;  %v28407_v51 = vld [vmem:[#allocation19_spill] sm:$0xff] }
 0x7a7   : > { %v13358_v54 = vadd.f32 %v13357_v41, %v13356_v24  ;;  %v13370_v34 = vadd.f32 %v13369_v50, %v13368_v32  ;;  %v13386_v56 = vadd.f32 %v13385_v19, %v13384_v37  ;;  %v13140_v23 = vadd.f32 %v28078_v18, %v13108_v35  ;;  %v28408_v41 = vld [vmem:[#allocation28_spill] sm:$0xff]  ;;  %v28409_v19 = vld [vmem:[#allocation17_spill] sm:$0xff] }
 0x7a8   : > { %v13341_v55 = vadd.f32 %v13340_v47, %v28018_v0  ;;  %v28115_v61 = vadd.f32 %v17675_v4, %v17674_v31  ;;  %v17691_v25 = vsel %vm4531_vm3, %v17686_v26, 0.0  ;;  %v28125_v59 = vadd.f32 %v17533_v29, %v27790_v49  ;;  %v28410_v31 = vld [vmem:[#allocation20_spill] sm:$0xff] }
 0x7a9   : > { %v28122_v60 = vadd.f32 %v13358_v54, %v28023_v22  ;;  %v13371_v62 = vrot.slane %v13370_v34, 4  ;;  %v13388_v44 = vadd.f32 %v13387_v27, %v13386_v56  ;;  %v17692_v0 = vadd.f32 %v17691_v25, %v17690_v20  ;;  %13396 = vst.msk [vmem:[%s24242_s1 + $0x2e0] sm:$0xff] %vm4531_vm3, %v13140_v23 }
 0x7aa   : > { %v17693_v37 = vsel %vm4531_vm3, %v17687_v42, 0.0  ;;  %v17446_v17 = vadd.f32 %v28078_v18, %v17414_v39  ;;  %v13142_v21 = vadd.f32 %v28078_v18, %v27922_v46  ;;  %v17448_v40 = vadd.f32 %v28078_v18, %v27927_v28 }
 0x7ab   : > { %v13372_v48 = vadd.f32 %v13371_v62, %v13370_v34  ;;  %v13389_v22 = vrot.slane %v13388_v44, 4  ;;  %v28133_v57 = vadd.f32 %v17693_v37, %v17692_v0  ;;  %v28138_v49 = vadd.f32 %v17551_v30, %v27808_v53  ;;  %v28412_v0 = vld [vmem:[#allocation29_spill] sm:$0xff] }
 0x7ac   : > { %v17569_v13 = vrot.slane %v28407_v51, 4  ;;  %v13414_v16 = vmul.f32 %v13140_v23, %v13140_v23  ;;  %17702 = vst.msk [vmem:[%s24242_s1 + $0x3e0] sm:$0xff] %vm4531_vm3, %v17446_v17  ;;  %13398 = vst.msk [vmem:[%s24242_s1 + $0x2f0] sm:$0xff] %vm4531_vm3, %v13142_v21  ;;  %v13416_v29 = vmul.f32 %v13142_v21, %v13142_v21  ;;  %v17587_v46 = vrot.slane %v27914_v8, 4 }
 0x7ad   : > { %v17605_v52 = vrot.slane %v27982_v63, 4  ;;  %v13373_v15 = vrot.slane %v13372_v48, 2  ;;  %v13390_v20 = vadd.f32 %v13389_v22, %v13388_v44  ;;  %17704 = vst.msk [vmem:[%s24242_s1 + $0x3f0] sm:$0xff] %vm4531_vm3, %v17448_v40  ;;  %v17720_v28 = vmul.f32 %v17446_v17, %v17446_v17  ;;  %v28411_v44 = vld [vmem:[#allocation18_spill] sm:$0xff] }
 0x7ae   : > { %v13403_v53 = vsel %vm4531_vm3, %v13142_v21, 0.0  ;;  %v17709_v30 = vsel %vm4531_vm3, %v17448_v40, 0.0  ;;  %v13141_v50 = vadd.f32 %v28078_v18, %v27929_v14  ;;  %v13421_v3 = vsel %vm4531_vm3, %v13416_v29, 0.0 }
 0x7af   : > { %v13374_v7 = vadd.f32 %v13373_v15, %v13372_v48  ;;  %v13391_v6 = vrot.slane %v13390_v20, 2  ;;  %v17722_v24 = vmul.f32 %v17448_v40, %v17448_v40  ;;  %v13400_v9 = vsel %vm4531_vm3, %v13140_v23, 0.0 }
 0x7b0   : > { %13397 = vst.msk [vmem:[%s24242_s1 + $0x2e8] sm:$0xff] %vm4531_vm3, %v13141_v50  ;;  %v13401_v35 = vsel %vm4531_vm3, %v13141_v50, 0.0  ;;  %v13415_v27 = vmul.f32 %v13141_v50, %v13141_v50  ;;  %v13418_v4 = vsel %vm4531_vm3, %v13414_v16, 0.0  ;;  %v17447_v14 = vadd.f32 %v28078_v18, %v28408_v41 }
 0x7b1   : > { %v13375_v36 = vrot.slane %v13374_v7, 1  ;;  %v13392_v43 = vadd.f32 %v13391_v6, %v13390_v20  ;;  %v13402_v47 = vadd.f32 %v13401_v35, %v13400_v9  ;;  %v17706_v10 = vsel %vm4531_vm3, %v17446_v17, 0.0 }
 0x7b2   : > { %v13419_v32 = vsel %vm4531_vm3, %v13415_v27, 0.0  ;;  %v17724_v42 = vsel %vm4531_vm3, %v17720_v28, 0.0  ;;  %v13111_v26 = vadd.f32 %v28410_v31, %v28409_v19  ;;  %17703 = vst.msk [vmem:[%s24242_s1 + $0x3e8] sm:$0xff] %vm4531_vm3, %v17447_v14  ;;  %v17707_v23 = vsel %vm4531_vm3, %v17447_v14, 0.0 }
 0x7b3   : > { %v13376_v54 = vadd.f32 %v13375_v36, %v13374_v7  ;;  %v13393_v34 = vrot.slane %v13392_v43, 1  ;;  %v13404_v56 = vadd.f32 %v13403_v53, %v13402_v47  ;;  %v13420_v25 = vadd.f32 %v13419_v32, %v13418_v4 }
 0x7b4   : > { %v17721_v39 = vmul.f32 %v17447_v14, %v17447_v14  ;;  %v13143_v62 = vadd.f32 %v28078_v18, %v13111_v26  ;;  %v17417_v37 = vadd.f32 %v28412_v0, %v28411_v44  ;;  %v17708_v22 = vadd.f32 %v17707_v23, %v17706_v10 }
 0x7b5   : > { %v28172_v17 = vadd.f32 %v13376_v54, %v13341_v55  ;;  %v13394_v21 = vadd.f32 %v13393_v34, %v13392_v43  ;;  %v13422_v48 = vadd.f32 %v13421_v3, %v13420_v25  ;;  %v17727_v55 = vsel %vm4531_vm3, %v17722_v24, 0.0 }
 0x7b6   : > { %v17725_v40 = vsel %vm4531_vm3, %v17721_v39, 0.0  ;;  %13399 = vst.msk [vmem:[%s24242_s1 + $0x2f8] sm:$0xff] %vm4531_vm3, %v13143_v62  ;;  %v13405_v16 = vsel %vm4531_vm3, %v13143_v62, 0.0  ;;  %v13417_v29 = vmul.f32 %v13143_v62, %v13143_v62  ;;  %v17449_v15 = vadd.f32 %v28078_v18, %v17417_v37 }
 0x7b7   : > { %v28180_v20 = vadd.f32 %v13394_v21, %v28122_v60  ;;  %v17710_v28 = vadd.f32 %v17709_v30, %v17708_v22  ;;  %v17726_v53 = vadd.f32 %v17725_v40, %v17724_v42  ;;  %v13406_v50 = vadd.f32 %v13405_v16, %v13404_v56 }
 0x7b8   : > { %v13423_v7 = vsel %vm4531_vm3, %v13417_v29, 0.0  ;;  %17705 = vst.msk [vmem:[%s24242_s1 + $0x3f8] sm:$0xff] %vm4531_vm3, %v17449_v15  ;;  %v17711_v6 = vsel %vm4531_vm3, %v17449_v15, 0.0  ;;  %v17723_v3 = vmul.f32 %v17449_v15, %v17449_v15  ;;  %v17570_v18 = vadd.f32 %v17569_v13, %v28407_v51  ;;  %s19405_s1 = sshll.u32 %s24153_s9, 4 }
 0x7b9   : > { %v17728_v9 = vadd.f32 %v17727_v55, %v17726_v53  ;;  %v13407_v35 = vrot.slane %v13406_v50, 4  ;;  %v13424_v27 = vadd.f32 %v13423_v7, %v13422_v48  ;;  %v17712_v4 = vadd.f32 %v17711_v6, %v17710_v28  ;;  %s28227_s2 = scalar_lea.hbm %s28312_s7, %s19405_s1  ;;  %s28237_s10 = scalar_lea.hbm %s28313_s8, %s19405_s1 }
 0x7ba   : > { %v17623_v60 = vrot.slane %v27991_v2, 4  ;;  %v17641_v30 = vrot.slane %v28054_v38, 4  ;;  %v17729_v36 = vsel %vm4531_vm3, %v17723_v3, 0.0  ;;  %v17502_v24 = vadd.f32 %v17501_v58, %v28006_v33 }
 0x7bb   : > { %v13408_v43 = vadd.f32 %v13407_v35, %v13406_v50  ;;  %v13425_v47 = vrot.slane %v13424_v27, 4  ;;  %v17730_v41 = vadd.f32 %v17729_v36, %v17728_v9  ;;  %v17535_v14 = vrot.slane %v28125_v59, 2 }
 0x7bc   : > { %v17588_v32 = vadd.f32 %v17587_v46, %v27914_v8  ;;  %v17606_v51 = vadd.f32 %v17605_v52, %v27982_v63  ;;  %v17677_v13 = vrot.slane %v28115_v61, 4  ;;  %v17520_v10 = vadd.f32 %v17519_v5, %v28038_v12 }
 0x7bd   : > { %v17659_v33 = vrot.slane %v28061_v1, 4  ;;  %v13409_v58 = vrot.slane %v13408_v43, 2  ;;  %v13426_v42 = vadd.f32 %v13425_v47, %v13424_v27  ;;  %v17553_v19 = vrot.slane %v28138_v49, 2 }
 0x7be   : > { %v17571_v31 = vrot.slane %v17570_v18, 2  ;;  %v17624_v26 = vadd.f32 %v17623_v60, %v27991_v2  ;;  %v17642_v8 = vadd.f32 %v17641_v30, %v28054_v38  ;;  %v17695_v46 = vrot.slane %v28133_v57, 4 }
 0x7bf   : > { %v13410_v63 = vadd.f32 %v13409_v58, %v13408_v43  ;;  %v13427_v52 = vrot.slane %v13426_v42, 2  ;;  %v17713_v54 = vrot.slane %v17712_v4, 4  ;;  %v17536_v34 = vadd.f32 %v17535_v14, %v28125_v59 }
 0x7c0   : > { %v17589_v56 = vrot.slane %v17588_v32, 2  ;;  %v17607_v12 = vrot.slane %v17606_v51, 2  ;;  %v17678_v5 = vadd.f32 %v17677_v13, %v28115_v61  ;;  %v17660_v25 = vadd.f32 %v17659_v33, %v28061_v1 }
 0x7c1   : > { %v13411_v23 = vrot.slane %v13410_v63, 1  ;;  %v13428_v39 = vadd.f32 %v13427_v52, %v13426_v42  ;;  %v17731_v62 = vrot.slane %v17730_v41, 4  ;;  %v17554_v2 = vadd.f32 %v17553_v19, %v28138_v49 }
 0x7c2   : > { %v17572_v44 = vadd.f32 %v17571_v31, %v17570_v18  ;;  %v17625_v38 = vrot.slane %v17624_v26, 2  ;;  %v17643_v0 = vrot.slane %v17642_v8, 2  ;;  %v17696_v37 = vadd.f32 %v17695_v46, %v28133_v57 }
 0x7c3   : > { %v13412_v21 = vadd.f32 %v13411_v23, %v13410_v63  ;;  %v13429_v48 = vrot.slane %v13428_v39, 1  ;;  %v17714_v22 = vadd.f32 %v17713_v54, %v17712_v4  ;;  %v17537_v59 = vrot.slane %v17536_v34, 1 }
 0x7c4   : > { %v17590_v40 = vadd.f32 %v17589_v56, %v17588_v32  ;;  %v17608_v16 = vadd.f32 %v17607_v12, %v17606_v51  ;;  %v17679_v29 = vrot.slane %v17678_v5, 2  ;;  %v17661_v61 = vrot.slane %v17660_v25, 2 }
 0x7c5   : > { %v13413_v1 = vadd.f32 %v13412_v21, %v28172_v17  ;;  %v13430_v15 = vadd.f32 %v13429_v48, %v13428_v39  ;;  %v17732_v28 = vadd.f32 %v17731_v62, %v17730_v41  ;;  %v17555_v53 = vrot.slane %v17554_v2, 1 }
 0x7c6   : > { %v17573_v50 = vrot.slane %v17572_v44, 1  ;;  %v17626_v49 = vadd.f32 %v17625_v38, %v17624_v26  ;;  %v17644_v55 = vadd.f32 %v17643_v0, %v17642_v8  ;;  %v17715_v6 = vrot.slane %v17714_v22, 2 }
 0x7c7   : > { %v13431_v7 = vadd.f32 %v13430_v15, %v28180_v20  ;;  %v17467_v57 = vadd.f32 %v28069_v11, %v13413_v1  ;;  %v17697_v3 = vrot.slane %v17696_v37, 2  ;;  %v17538_v9 = vadd.f32 %v17537_v59, %v17536_v34 }
 0x7c8   : > { %v17591_v35 = vrot.slane %v17590_v40, 1  ;;  %v17609_v27 = vrot.slane %v17608_v16, 1  ;;  %v17680_v4 = vadd.f32 %v17679_v29, %v17678_v5  ;;  %v17662_v17 = vadd.f32 %v17661_v61, %v17660_v25 }
 0x7c9   : > { %v17503_v18 = vadd.f32 %v17502_v24, %v17467_v57  ;;  %v17485_v60 = vadd.f32 %v28085_v45, %v13431_v7  ;;  %v17733_v30 = vrot.slane %v17732_v28, 2  ;;  %v17556_v36 = vadd.f32 %v17555_v53, %v17554_v2 }
 0x7ca   : > { %v17574_v43 = vadd.f32 %v17573_v50, %v17572_v44  ;;  %v17645_v47 = vrot.slane %v17644_v55, 1  ;;  %v17627_v41 = vrot.slane %v17626_v49, 1  ;;  %v17716_v32 = vadd.f32 %v17715_v6, %v17714_v22 }
 0x7cb   : > { %v17539_v14 = vadd.f32 %v17538_v9, %v17503_v18  ;;  %v17521_v20 = vadd.f32 %v17520_v10, %v17485_v60  ;;  %v17698_v51 = vadd.f32 %v17697_v3, %v17696_v37  ;;  %v17610_v11 = vadd.f32 %v17609_v27, %v17608_v16 }
 0x7cc   : > { %v17681_v13 = vrot.slane %v17680_v4, 1  ;;  %v17592_v33 = vadd.f32 %v17591_v35, %v17590_v40  ;;  %v17663_v24 = vrot.slane %v17662_v17, 1  ;;  %v17734_v19 = vadd.f32 %v17733_v30, %v17732_v28 }
 0x7cd   : > { %v17575_v58 = vadd.f32 %v17574_v43, %v17539_v14  ;;  %v17557_v42 = vadd.f32 %v17556_v36, %v17521_v20  ;;  %v17646_v45 = vadd.f32 %v17645_v47, %v17644_v55  ;;  %v17628_v31 = vadd.f32 %v17627_v41, %v17626_v49 }
 0x7ce   : > { %v17717_v8 = vrot.slane %v17716_v32, 1  ;;  %v17699_v63 = vrot.slane %v17698_v51, 1  ;;  %v17682_v52 = vadd.f32 %v17681_v13, %v17680_v4  ;;  %v17664_v34 = vadd.f32 %v17663_v24, %v17662_v17 }
 0x7cf   : > { %v17611_v26 = vadd.f32 %v17610_v11, %v17575_v58  ;;  %v17593_v46 = vadd.f32 %v17592_v33, %v17557_v42  ;;  %v17735_v56 = vrot.slane %v17734_v19, 1 }
 0x7d0   : > { %v17718_v5 = vadd.f32 %v17717_v8, %v17716_v32  ;;  %v17700_v23 = vadd.f32 %v17699_v63, %v17698_v51 }
 0x7d1   : > { %v17647_v54 = vadd.f32 %v17646_v45, %v17611_v26  ;;  %v17629_v10 = vadd.f32 %v17628_v31, %v17593_v46  ;;  %v17736_v2 = vadd.f32 %v17735_v56, %v17734_v19 }
 0x7d3   : > { %v17683_v12 = vadd.f32 %v17682_v52, %v17647_v54  ;;  %v17665_v25 = vadd.f32 %v17664_v34, %v17629_v10 }
 0x7d5   : > { %v17719_v39 = vadd.f32 %v17718_v5, %v17683_v12  ;;  %v17701_v62 = vadd.f32 %v17700_v23, %v17665_v25 }
 0x7d7   : > { %17739 = vst.msk [vmem:[%s308_s13] sm:$0x1] %vm17738_vm4, %v17719_v39  ;;  %v17737_v44 = vadd.f32 %v17736_v2, %v17701_v62 }
 0x7d8   : > { %23990 = shalt.err (!%p23987_p4)
}
 0x7d9   : > { %s23991_s13 = scalar_lea.hbm %s28227_s2, 16  ;;  %s23995_s9 = scalar_lea.hbm %s28312_s7, 32 }
 0x7da   : > { %p23992_p7 = scmp.ne.s32.totalorder %s28227_s2, %s23991_s13  ;;  %p23996_p10 = scmp.lt.u32.totalorder %s28227_s2, %s28312_s7 }
 0x7db   : > { %p23997_p11 = scmp.lt.u32.totalorder %s23995_s9, %s23991_s13  ;;  %p23999_p13 = scmp.lt.u32.totalorder %s23991_s13, %s28227_s2 }
 0x7dc   : > { %p23993_p8 = pnand %p23992_p7, %p24170_p5 }
 0x7dd   : > { %p23998_p12 = por %p23997_p11, %p23996_p10 }
 0x7de   : > { %p23994_p9 = pneg %p23993_p8 }
 0x7df   : > { %p24000_p0 = por %p23999_p13, %p23998_p12 }
 0x7e1   : > { %p24001_p1 = pnand %p24000_p0, %p23994_p9 }
 0x7e3   : > { %24004 = shalt.err (!%p24001_p1)
}
 0x7e4   : > { %23918 = dma.vmem_to_hbm [thread:$0]  (%p24170_p5), %s28229_s22, 16, %s28227_s2, %s17747_s12   ;;  %17740 = vst.msk [vmem:[%s314_s18] sm:$0x1] %vm17738_vm4, %v17737_v44 }
 0x7e5   : > { %s17751_s19 = scalar_lea.sflag [#allocation6], %s24181_s17  ;;  %s24005_s21 = scalar_lea.vmem %s28239_s23, 16 }
 0x7e6   : > { %p24006_p2 = scmp.ne.s32.totalorder %s28239_s23, %s24005_s21  ;;  %s24086_s24 = smov [#allocation5]  }
 0x7e7   : > { %s24009_s13 = sshll.u32 %s24086_s24, 4  ;;  %s24010_s13 = int_to_ptr.vmem [resolvable:$false] %s24009_s13 }
 0x7e8   : > { %p24007_p3 = pnand %p24006_p2, %p24170_p5  ;;  %s24011_s1 = scalar_lea.vmem %s24010_s13, 32 }
 0x7e9   : > { %p24012_p7 = scmp.lt.s32.totalorder %s28239_s23, %s24010_s13  ;;  %p24013_p8 = scmp.lt.s32.totalorder %s24011_s1, %s24005_s21 }
 0x7ea   : > { %p24008_p4 = pneg %p24007_p3 }
 0x7eb   : > { %p24014_p9 = por %p24013_p8, %p24012_p7 }
 0x7ed   : > { %p24015_p10 = pnand %p24014_p9, %p24008_p4 }
 0x7ef   : > { %24018 = shalt.err (!%p24015_p10)
}
 0x7f0   : > { %s24019_s17 = scalar_lea.hbm %s28237_s10, 16  ;;  %s24023_s2 = scalar_lea.hbm %s28313_s8, 32 }
 0x7f1   : > { %p24020_p11 = scmp.ne.s32.totalorder %s28237_s10, %s24019_s17  ;;  %p24024_p0 = scmp.lt.u32.totalorder %s28237_s10, %s28313_s8 }
 0x7f2   : > { %p24025_p1 = scmp.lt.u32.totalorder %s24023_s2, %s24019_s17  ;;  %p24027_p3 = scmp.lt.u32.totalorder %s24019_s17, %s28237_s10 }
 0x7f3   : > { %p24021_p12 = pnand %p24020_p11, %p24170_p5 }
 0x7f4   : > { %p24026_p2 = por %p24025_p1, %p24024_p0 }
 0x7f5   : > { %p24022_p13 = pneg %p24021_p12 }
 0x7f6   : > { %p24028_p4 = por %p24027_p3, %p24026_p2 }
 0x7f8   : > { %p24029_p7 = pnand %p24028_p4, %p24022_p13 }
 0x7fa   : > { %24032 = shalt.err (!%p24029_p7)
}
 0x7fb   : > { %23919 = dma.vmem_to_hbm [thread:$0]  (%p24170_p5), %s28239_s23, 16, %s28237_s10, %s17751_s19  }
 0x7fc PF: > { %p23929_p8 = scmp.ge.s32.totalorder %s24075_s30, 2  ;;  %s17799_s9 = sand.u32 1, %s24063_s27  }
 0x7fd   : > { %s17800_s25 = scalar_lea.sflag [#allocation4], %s17799_s9 }
 0x7fe   : > { %p23923_p9 = pnand %p23929_p8, %p24174_p6 }
 0x800   : > { %24054 = dma.done.wait (!%p23923_p9), %s17800_s25, 16  }
 0x801   : > { %24056 = vsyncadd (!%p23923_p9), %s17800_s25, 4294967280  ;;  %s17808_s20 = scalar_lea.sflag [#allocation6], %s17799_s9 }
 0x802   : > { %24058 = dma.done.wait (!%p23923_p9), %s17808_s20, 16  }
 0x803   : > { %24060 = vsyncadd (!%p23923_p9), %s17808_s20, 4294967280  ;;  %p22_p5 = scmp.ge.s32.totalorder %s24157_s11, 4   ;;  %s28413_s27 = smov %s24067_s28 }
 0x804   : > { %s28414_s28 = smov %s24071_s29  ;;  %s28415_s29 = smov %s24168_s14 }
 0x805   : > { %s28416_s30 = smov %s24157_s11  ;;  %24 = sbr.rel (!%p22_p5) target bundleno = 8 (0x8), region = 137 }
 0x80c   :  { %17812 = vsyncpa [#allocation4], 1 }
 0x80d   :  { %17814 = vsyncpa [#allocation4 + $0x1], 1 }
 0x80e   :  { %17815 = vsyncpa [#allocation6], 1 }
 0x80f   :  { %17817 = vsyncpa [#allocation6 + $0x1], 1 }

</bundles_post_ra>
